<compile_context>
chip_gen: v5e
topology: v5e:2x2
jax: 0.10.0
libtpu: 0.0.40
codegen_flags: <defaults>
</compile_context>

<pallas_src>
import functools

import jax
import jax.numpy as jnp
from jax.experimental import pallas as pl
from jax.experimental.pallas import tpu as pltpu

C_IN, C_MID = 512, 128
H = W = 8                    # input spatial size (small synthetic shape)
H_OUT, W_OUT = 4 * H, 4 * W
R_IMG = (H + 2) * W          # 80 slab rows per image: (padded rows) x (out cols)
K_TAP = 3 * C_IN             # 1536: kw-im2col contraction length per kh tap
PAD_ROWS = 2 * W             # 16 zero tail rows/step so kh=1,2 slices stay in-bounds


def head_kernel(x_ref, w1_ref, b1_ref, w2_ref, b2_ref, w3_ref, b3_ref, o_ref,
                *, m_step):
    # ---- stage 1: 3x3 conv = sum over kh of row-shifted long-K matmuls ----
    # slab row r of the output uses slab rows r, r+W, r+2W of the input; all
    # three slices are contiguous (length m_step) so no in-kernel reshape.
    acc = jnp.dot(x_ref[pl.ds(0, m_step), :], w1_ref[0],
                  preferred_element_type=jnp.float32)
    for kh in (1, 2):
        acc = acc + jnp.dot(x_ref[pl.ds(kh * W, m_step), :], w1_ref[kh],
                            preferred_element_type=jnp.float32)
    h1 = jnp.maximum(acc + b1_ref[...], 0.0)                   # BN1 + ReLU

    # ---- stage 2: ConvTranspose2d(128,128,2,2), all 4 taps fused ----
    y = jnp.dot(h1.astype(jnp.bfloat16), w2_ref[...],
                preferred_element_type=jnp.float32)
    y = jnp.maximum(y + b2_ref[...], 0.0)                      # BN2 + ReLU

    # ---- stage 3: ConvTranspose2d(128,1,2,2), block-diag over taps (f32) ----
    z = jnp.dot(y, w3_ref[...], preferred_element_type=jnp.float32)
    o_ref[...] = jax.nn.sigmoid(z + b3_ref[...])               # (m_step, 16)


def _choose_blocking(n):
    # Target ~640 matmul rows/step (8 images).  Small batches run as one step
    # with block == full array; larger ones are padded to a multiple of 8 so
    # every step keeps full MXU row occupancy and >=2 steps feed v7x megacore.
    if n <= 8:
        return n, n
    b_blk = 8
    n_pad = ((n + b_blk - 1) // b_blk) * b_blk
    return b_blk, n_pad


def head_forward(x_nchw, kp):
    n = x_nchw.shape[0]
    b_blk, n_pad = _choose_blocking(n)
    nsteps = n_pad // b_blk
    m_step = b_blk * R_IMG                # matmul rows per step (incl. garbage rows)
    rows_in = m_step + PAD_ROWS           # input slab rows per step

    # bf16 FIRST: all subsequent wrapper layout ops move half the bytes.
    x = x_nchw.astype(jnp.bfloat16)
    if n_pad != n:
        x = jnp.pad(x, ((0, n_pad - n), (0, 0), (0, 0), (0, 0)))
    x = jnp.transpose(x, (0, 2, 3, 1))                          # NHWC
    xp = jnp.pad(x, ((0, 0), (1, 1), (1, 1), (0, 0)))           # (n_pad, H+2, W+2, C)

    # kw-only im2col (3x, not 9x): (n_pad, H+2, W, 3*C), kw-major / ci-minor.
    x_kw = jnp.concatenate([xp[:, :, kw:kw + W, :] for kw in range(3)], axis=-1)
    x_kw = x_kw.reshape(nsteps, b_blk * R_IMG, K_TAP)
    x_kw = jnp.pad(x_kw, ((0, 0), (0, PAD_ROWS), (0, 0)))       # per-step tail pad
    x_slab = x_kw.reshape(nsteps * rows_in, K_TAP)

    m_total = nsteps * m_step
    flops = 2 * m_total * (3 * K_TAP * C_MID + C_MID * 4 * C_MID + 4 * C_MID * 16)
    bytes_acc = (x_slab.size * 2
                 + kp["w1"].size * 2 + kp["w2"].size * 2 + kp["w3"].size * 4
                 + (kp["b1"].size + kp["b2"].size + kp["b3"].size) * 4
                 + m_total * 16 * 4)
    cost = pl.CostEstimate(flops=flops, transcendentals=m_total * 16,
                           bytes_accessed=bytes_acc)

    def const_spec(shape):
        # Grid-invariant operand: fetched once, single-buffered (frees VMEM).
        zeros = (0,) * len(shape)
        return pl.BlockSpec(shape, lambda i: zeros, pipeline_mode=pl.Buffered(1))

    z = pl.pallas_call(
        functools.partial(head_kernel, m_step=m_step),
        out_shape=jax.ShapeDtypeStruct((m_total, 16), jnp.float32),
        grid=(nsteps,),
        in_specs=[
            pl.BlockSpec((rows_in, K_TAP), lambda i: (i, 0)),   # kw-im2col slab
            const_spec((3, K_TAP, C_MID)),                      # w1[kh] (BN1 folded)
            const_spec((1, C_MID)),                             # b1
            const_spec((C_MID, 4 * C_MID)),                     # w2 (4 taps fused)
            const_spec((1, 4 * C_MID)),                         # b2
            const_spec((4 * C_MID, 16)),                        # w3 block-diag (f32)
            const_spec((1, 16)),                                # b3
        ],
        out_specs=pl.BlockSpec((m_step, 16), lambda i: (i, 0)),
        compiler_params=pltpu.CompilerParams(
            dimension_semantics=("parallel",),
            vmem_limit_bytes=32 * 1024 * 1024),
        cost_estimate=cost,
    )(x_slab, kp["w1"], kp["b1"], kp["w2"], kp["b2"], kp["w3"], kp["b3"])

    # Drop the 16 garbage rows per image and the batch padding, then undo the
    # deconv-tap interleave: column c = (2*dy2+dx2)*4 + (2*dy3+dx3) maps to
    # output pixel (4i + 2*dy2 + dy3, 4j + 2*dx2 + dx3).
    z = z.reshape(n_pad, R_IMG, 16)[:n, :H * W, :]
    z = z.reshape(n, H, W, 2, 2, 2, 2)            # (n, i, j, dy2, dx2, dy3, dx3)
    z = jnp.transpose(z, (0, 1, 3, 5, 2, 4, 6))   # (n, i, dy2, dy3, j, dx2, dx3)
    return z.reshape(n, H_OUT, W_OUT)


# ----------------------- parameter setup (deterministic) -----------------------
def make_params(key):
    ks = jax.random.split(key, 13)

    def nrm(i, shape, scale):
        return scale * jax.random.normal(ks[i], shape, jnp.float32)

    p = {}
    p["conv1_w"] = nrm(0, (C_MID, C_IN, 3, 3), 0.02)        # Conv2d(512,128,3)
    p["bn1_g"] = 1.0 + nrm(1, (C_MID,), 0.1)
    p["bn1_b"] = nrm(2, (C_MID,), 0.1)
    p["bn1_m"] = nrm(3, (C_MID,), 0.1)
    p["bn1_v"] = 0.5 + jax.random.uniform(ks[4], (C_MID,), jnp.float32)
    p["deconv2_w"] = nrm(5, (C_MID, C_MID, 2, 2), 0.05)     # ConvT(128,128,2,2)
    p["deconv2_b"] = nrm(6, (C_MID,), 0.05)
    p["bn2_g"] = 1.0 + nrm(7, (C_MID,), 0.1)
    p["bn2_b"] = nrm(8, (C_MID,), 0.1)
    p["bn2_m"] = nrm(9, (C_MID,), 0.1)
    p["bn2_v"] = 0.5 + jax.random.uniform(ks[10], (C_MID,), jnp.float32)
    p["deconv3_w"] = nrm(11, (C_MID, 1, 2, 2), 0.05)        # ConvT(128,1,2,2)
    p["deconv3_b"] = nrm(12, (1,), 0.05)
    return p


def prepare_kernel_params(p):
    eps = 1e-5
    s1 = p["bn1_g"] / jnp.sqrt(p["bn1_v"] + eps)
    b1 = p["bn1_b"] - p["bn1_m"] * s1
    s2 = p["bn2_g"] / jnp.sqrt(p["bn2_v"] + eps)
    b2 = (p["deconv2_b"] - p["bn2_m"]) * s2 + p["bn2_b"]    # conv bias folded in

    # conv1_w[co,ci,kh,kw] -> [kh, kw*C+ci, co]; fold BN1 scale into co.
    w1 = jnp.transpose(p["conv1_w"], (2, 3, 1, 0))          # (3, 3, 512, 128)
    w1 = (w1 * s1[None, None, None, :]).reshape(3, K_TAP, C_MID)

    # deconv2_w[ci,co,kh,kw] -> per-tap (ci,co); fold BN2 scale; concat taps
    # along the output-channel axis -> (128, 512).
    w2t = jnp.transpose(p["deconv2_w"], (2, 3, 0, 1)).reshape(4, C_MID, C_MID)
    w2t = w2t * s2[None, None, :]
    w2 = jnp.concatenate([w2t[t] for t in range(4)], axis=1)      # (128, 512)
    b2_all = jnp.tile(b2, 4).reshape(1, 4 * C_MID)

    # deconv3_w[ci,0,kh,kw] -> (ci, 4); block-diagonal over the 4 stage-2 taps.
    w3 = p["deconv3_w"].reshape(C_MID, 4)
    w3_blk = jnp.zeros((4 * C_MID, 16), jnp.float32)
    for t2 in range(4):
        w3_blk = w3_blk.at[t2 * C_MID:(t2 + 1) * C_MID,
                           t2 * 4:(t2 + 1) * 4].set(w3)
    b3 = jnp.full((1, 16), p["deconv3_b"][0], jnp.float32)

    return dict(w1=w1.astype(jnp.bfloat16), b1=b1.reshape(1, C_MID),
                w2=w2.astype(jnp.bfloat16), b2=b2_all,
                w3=w3_blk, b3=b3)          # w3 kept f32 (accuracy, tiny matmul)


# ----------------------- independent pure-JAX reference -----------------------
def ref_forward(x_nchw, p):
    dn = ("NCHW", "OIHW", "NCHW")
    eps = 1e-5
    h = jax.lax.conv_general_dilated(x_nchw, p["conv1_w"], (1, 1),
                                     ((1, 1), (1, 1)), dimension_numbers=dn)
    s1 = p["bn1_g"] / jnp.sqrt(p["bn1_v"] + eps)
    b1 = p["bn1_b"] - p["bn1_m"] * s1
    h = jnp.maximum(h * s1[None, :, None, None] + b1[None, :, None, None], 0.0)

    wc2 = jnp.transpose(p["deconv2_w"], (1, 0, 2, 3))[:, :, ::-1, ::-1]
    h = jax.lax.conv_general_dilated(h, wc2, (1, 1), ((1, 1), (1, 1)),
                                     lhs_dilation=(2, 2), dimension_numbers=dn)
    h = h + p["deconv2_b"][None, :, None, None]
    s2 = p["bn2_g"] / jnp.sqrt(p["bn2_v"] + eps)
    b2 = p["bn2_b"] - p["bn2_m"] * s2
    h = jnp.maximum(h * s2[None, :, None, None] + b2[None, :, None, None], 0.0)

    wc3 = jnp.transpose(p["deconv3_w"], (1, 0, 2, 3))[:, :, ::-1, ::-1]
    h = jax.lax.conv_general_dilated(h, wc3, (1, 1), ((1, 1), (1, 1)),
                                     lhs_dilation=(2, 2), dimension_numbers=dn)
    h = h + p["deconv3_b"][None, :, None, None]
    return jax.nn.sigmoid(h)[:, 0]     # squeeze(1)


if __name__ == "__main__":
    key = jax.random.PRNGKey(0)
    k_par, k_x = jax.random.split(key)
    params = make_params(k_par)
    kparams = prepare_kernel_params(params)

    x = jax.random.normal(k_x, (2, C_IN, H, W), jnp.float32)   # NCHW

    out = jax.jit(head_forward)(x, kparams)
    out = jax.block_until_ready(out)
    assert out.shape == (2, H_OUT, W_OUT), out.shape

    ref = ref_forward(x, params)
    max_diff = float(jnp.max(jnp.abs(out - ref)))
    # bf16 MXU inputs for stages 1-2 (f32 accumulation), f32 stage 3; a wrong
    # tap decomposition / BN fold would be off by O(1e-1).
    assert max_diff < 1e-2, f"mismatch vs reference: {max_diff}"

    # TODO(synk): loss()/get_unified_focal_loss_* are training-only helpers,
    # not part of forward(); they are not implemented here.
    print("KERNEL_OK")
</pallas_src>

<mosaic_0001>
module attributes {stable_mosaic.version = 11 : i64} {
  func.func @head_kernel(%arg0: i32, %arg1: memref<176x1536xbf16, #tpu.memory_space<vmem>>, %arg2: memref<3x1536x128xbf16, #tpu.memory_space<vmem>>, %arg3: memref<1x128xf32, #tpu.memory_space<vmem>>, %arg4: memref<128x512xbf16, #tpu.memory_space<vmem>>, %arg5: memref<1x512xf32, #tpu.memory_space<vmem>>, %arg6: memref<512x16xf32, #tpu.memory_space<vmem>>, %arg7: memref<1x16xf32, #tpu.memory_space<vmem>>, %arg8: memref<160x16xf32, #tpu.memory_space<vmem>>) attributes {dimension_semantics = [#tpu.dimension_semantics<parallel>], iteration_bounds = array<i64: 1>, scalar_prefetch = 0 : i64, scratch_operands = 0 : i64, tpu.core_type = #tpu.core_type<tc>, window_params = [{transform_indices = @transform_0, window_bounds = array<i64: 176, 1536>}, {pipeline_mode = #tpu.pipeline_mode<synchronous>, transform_indices = @transform_1, window_bounds = array<i64: 3, 1536, 128>}, {pipeline_mode = #tpu.pipeline_mode<synchronous>, transform_indices = @transform_2, window_bounds = array<i64: 1, 128>}, {pipeline_mode = #tpu.pipeline_mode<synchronous>, transform_indices = @transform_3, window_bounds = array<i64: 128, 512>}, {pipeline_mode = #tpu.pipeline_mode<synchronous>, transform_indices = @transform_4, window_bounds = array<i64: 1, 512>}, {pipeline_mode = #tpu.pipeline_mode<synchronous>, transform_indices = @transform_5, window_bounds = array<i64: 512, 16>}, {pipeline_mode = #tpu.pipeline_mode<synchronous>, transform_indices = @transform_6, window_bounds = array<i64: 1, 16>}, {transform_indices = @transform_7, window_bounds = array<i64: 160, 16>}]} {
    %c0 = arith.constant 0 : index
    %c0_0 = arith.constant 0 : index
    %0 = vector.load %arg1[%c0, %c0_0] : memref<176x1536xbf16, #tpu.memory_space<vmem>>, vector<160x1536xbf16>
    %c0_1 = arith.constant 0 : index
    %c0_2 = arith.constant 0 : index
    %c0_3 = arith.constant 0 : index
    %1 = vector.load %arg2[%c0_1, %c0_2, %c0_3] : memref<3x1536x128xbf16, #tpu.memory_space<vmem>>, vector<1x1536x128xbf16>
    %2 = vector.shape_cast %1 : vector<1x1536x128xbf16> to vector<1536x128xbf16>
    %cst = arith.constant dense<0.000000e+00> : vector<160x128xf32>
    %3 = tpu.matmul %0, %2, %cst {dimension_numbers = #tpu.dot_dimension_numbers<[1], [0], [0], [1], [0, 0, 1, 1], [], []>} : vector<160x1536xbf16>, vector<1536x128xbf16>, vector<160x128xf32> -> vector<160x128xf32>
    %c8 = arith.constant 8 : index
    %c0_4 = arith.constant 0 : index
    %4 = vector.load %arg1[%c8, %c0_4] : memref<176x1536xbf16, #tpu.memory_space<vmem>>, vector<160x1536xbf16>
    %c1 = arith.constant 1 : index
    %c0_5 = arith.constant 0 : index
    %c0_6 = arith.constant 0 : index
    %5 = vector.load %arg2[%c1, %c0_5, %c0_6] : memref<3x1536x128xbf16, #tpu.memory_space<vmem>>, vector<1x1536x128xbf16>
    %6 = vector.shape_cast %5 : vector<1x1536x128xbf16> to vector<1536x128xbf16>
    %cst_7 = arith.constant dense<0.000000e+00> : vector<160x128xf32>
    %7 = tpu.matmul %4, %6, %cst_7 {dimension_numbers = #tpu.dot_dimension_numbers<[1], [0], [0], [1], [0, 0, 1, 1], [], []>} : vector<160x1536xbf16>, vector<1536x128xbf16>, vector<160x128xf32> -> vector<160x128xf32>
    %8 = arith.addf %3, %7 : vector<160x128xf32>
    %c16 = arith.constant 16 : index
    %c0_8 = arith.constant 0 : index
    %9 = vector.load %arg1[%c16, %c0_8] : memref<176x1536xbf16, #tpu.memory_space<vmem>>, vector<160x1536xbf16>
    %c2 = arith.constant 2 : index
    %c0_9 = arith.constant 0 : index
    %c0_10 = arith.constant 0 : index
    %10 = vector.load %arg2[%c2, %c0_9, %c0_10] : memref<3x1536x128xbf16, #tpu.memory_space<vmem>>, vector<1x1536x128xbf16>
    %11 = vector.shape_cast %10 : vector<1x1536x128xbf16> to vector<1536x128xbf16>
    %cst_11 = arith.constant dense<0.000000e+00> : vector<160x128xf32>
    %12 = tpu.matmul %9, %11, %cst_11 {dimension_numbers = #tpu.dot_dimension_numbers<[1], [0], [0], [1], [0, 0, 1, 1], [], []>} : vector<160x1536xbf16>, vector<1536x128xbf16>, vector<160x128xf32> -> vector<160x128xf32>
    %13 = arith.addf %8, %12 : vector<160x128xf32>
    %c0_12 = arith.constant 0 : index
    %c0_13 = arith.constant 0 : index
    %14 = vector.load %arg3[%c0_12, %c0_13] : memref<1x128xf32, #tpu.memory_space<vmem>>, vector<1x128xf32>
    %15 = vector.broadcast %14 : vector<1x128xf32> to vector<160x128xf32>
    %16 = arith.addf %13, %15 : vector<160x128xf32>
    %cst_14 = arith.constant 0.000000e+00 : f32
    %17 = vector.broadcast %cst_14 : f32 to vector<160x128xf32>
    %18 = arith.maximumf %16, %17 : vector<160x128xf32>
    %19 = arith.truncf %18 : vector<160x128xf32> to vector<160x128xbf16>
    %c0_15 = arith.constant 0 : index
    %c0_16 = arith.constant 0 : index
    %20 = vector.load %arg4[%c0_15, %c0_16] : memref<128x512xbf16, #tpu.memory_space<vmem>>, vector<128x512xbf16>
    %cst_17 = arith.constant dense<0.000000e+00> : vector<160x512xf32>
    %21 = tpu.matmul %19, %20, %cst_17 {dimension_numbers = #tpu.dot_dimension_numbers<[1], [0], [0], [1], [0, 0, 1, 1], [], []>} : vector<160x128xbf16>, vector<128x512xbf16>, vector<160x512xf32> -> vector<160x512xf32>
    %c0_18 = arith.constant 0 : index
    %c0_19 = arith.constant 0 : index
    %22 = vector.load %arg5[%c0_18, %c0_19] : memref<1x512xf32, #tpu.memory_space<vmem>>, vector<1x512xf32>
    %23 = vector.broadcast %22 : vector<1x512xf32> to vector<160x512xf32>
    %24 = arith.addf %21, %23 : vector<160x512xf32>
    %cst_20 = arith.constant 0.000000e+00 : f32
    %25 = vector.broadcast %cst_20 : f32 to vector<160x512xf32>
    %26 = arith.maximumf %24, %25 : vector<160x512xf32>
    %c0_21 = arith.constant 0 : index
    %c0_22 = arith.constant 0 : index
    %27 = vector.load %arg6[%c0_21, %c0_22] : memref<512x16xf32, #tpu.memory_space<vmem>>, vector<512x16xf32>
    %cst_23 = arith.constant dense<0.000000e+00> : vector<160x16xf32>
    %28 = tpu.matmul %26, %27, %cst_23 {dimension_numbers = #tpu.dot_dimension_numbers<[1], [0], [0], [1], [0, 0, 1, 1], [], []>} : vector<160x512xf32>, vector<512x16xf32>, vector<160x16xf32> -> vector<160x16xf32>
    %c0_24 = arith.constant 0 : index
    %c0_25 = arith.constant 0 : index
    %29 = vector.load %arg7[%c0_24, %c0_25] : memref<1x16xf32, #tpu.memory_space<vmem>>, vector<1x16xf32>
    %30 = vector.broadcast %29 : vector<1x16xf32> to vector<160x16xf32>
    %31 = arith.addf %28, %30 : vector<160x16xf32>
    %32 = arith.negf %31 : vector<160x16xf32>
    %33 = math.exp %32 : vector<160x16xf32>
    %cst_26 = arith.constant 1.000000e+00 : f32
    %34 = vector.broadcast %cst_26 : f32 to vector<160x16xf32>
    %35 = arith.addf %34, %33 : vector<160x16xf32>
    %36 = arith.divf %34, %35 : vector<160x16xf32>
    %c0_27 = arith.constant 0 : index
    %c0_28 = arith.constant 0 : index
    %37 = vector.load %arg8[%c0_27, %c0_28] : memref<160x16xf32, #tpu.memory_space<vmem>>, vector<160x16xf32>
    tpu.vector_store %arg8[%c0_27, %c0_28], %36 {strides = array<i32>} : memref<160x16xf32, #tpu.memory_space<vmem>>, vector<160x16xf32>,
    return
  }
  func.func @transform_0(%arg0: i32) -> (i32, i32) {
    %c0_i32 = arith.constant 0 : i32
    %c0_i32_0 = arith.constant 0 : i32
    return %arg0, %c0_i32 : i32, i32
  }
  func.func @transform_1(%arg0: i32) -> (i32, i32, i32) {
    %c0_i32 = arith.constant 0 : i32
    %c0_i32_0 = arith.constant 0 : i32
    %c0_i32_1 = arith.constant 0 : i32
    %c0_i32_2 = arith.constant 0 : i32
    return %c0_i32, %c0_i32_0, %c0_i32_1 : i32, i32, i32
  }
  func.func @transform_2(%arg0: i32) -> (i32, i32) {
    %c0_i32 = arith.constant 0 : i32
    %c0_i32_0 = arith.constant 0 : i32
    %c0_i32_1 = arith.constant 0 : i32
    return %c0_i32, %c0_i32_0 : i32, i32
  }
  func.func @transform_3(%arg0: i32) -> (i32, i32) {
    %c0_i32 = arith.constant 0 : i32
    %c0_i32_0 = arith.constant 0 : i32
    %c0_i32_1 = arith.constant 0 : i32
    return %c0_i32, %c0_i32_0 : i32, i32
  }
  func.func @transform_4(%arg0: i32) -> (i32, i32) {
    %c0_i32 = arith.constant 0 : i32
    %c0_i32_0 = arith.constant 0 : i32
    %c0_i32_1 = arith.constant 0 : i32
    return %c0_i32, %c0_i32_0 : i32, i32
  }
  func.func @transform_5(%arg0: i32) -> (i32, i32) {
    %c0_i32 = arith.constant 0 : i32
    %c0_i32_0 = arith.constant 0 : i32
    %c0_i32_1 = arith.constant 0 : i32
    return %c0_i32, %c0_i32_0 : i32, i32
  }
  func.func @transform_6(%arg0: i32) -> (i32, i32) {
    %c0_i32 = arith.constant 0 : i32
    %c0_i32_0 = arith.constant 0 : i32
    %c0_i32_1 = arith.constant 0 : i32
    return %c0_i32, %c0_i32_0 : i32, i32
  }
  func.func @transform_7(%arg0: i32) -> (i32, i32) {
    %c0_i32 = arith.constant 0 : i32
    %c0_i32_0 = arith.constant 0 : i32
    return %arg0, %c0_i32 : i32, i32
  }
}

</mosaic_0001>

<bundles_post_ra>
// kernel: head_forward.1
= control target key start
LH: loop header
LB: loop body
LE: loop exit
PB: predicated region body
PF: predicated region fallthrough
CT: control target
= control target key end

     0   :  { %vm7508_vm4 = vcmask 130048   ;;  %s14689_s1 = inlined_call_operand.vmem [shape: bf16[3,1536,128], index: 1, kind: input, shape index: {}]   ;;  %s14690_s0 = inlined_call_operand.vmem [shape: bf16[176,1536], index: 0, kind: input, shape index: {}]   ;;  %s14691_s3 = inlined_call_operand.vmem [shape: bf16[128,512], index: 3, kind: input, shape index: {}]   ;;  %s14692_s2 = inlined_call_operand.vmem [shape: f32[1,128], index: 2, kind: input, shape index: {}]   ;;  %s14693_s5 = inlined_call_operand.vmem [shape: f32[512,16], index: 5, kind: input, shape index: {}]   ;;  %s14694_s4 = inlined_call_operand.vmem [shape: f32[1,512], index: 4, kind: input, shape index: {}]   ;;  %s14695_s6 = inlined_call_operand.vmem [shape: f32[1,16], index: 6, kind: input, shape index: {}]   ;;  %s14696_s7 = inlined_call_operand.vmem [shape: f32[160,16], index: 7, kind: output, shape index: {}]  }
   0x1   :  { %v9800_v0 = vld [vmem:[%s14689_s1 + $0x338] sm:$0xff]  ;;  %v9799_v4 = vld [vmem:[%s14689_s1 + $0x330] sm:$0xff]  ;;  %v9798_v8 = vld [vmem:[%s14689_s1 + $0x328] sm:$0xff] }
   0x2   :  { %v9808_v1 = vld [vmem:[%s14689_s1 + $0x378] sm:$0xff]  ;;  %1713 = vmatpush.bf16.msra.mxu0 %v9800_v0  ;;  %v9807_v5 = vld [vmem:[%s14689_s1 + $0x370] sm:$0xff]  ;;  %v9806_v9 = vld [vmem:[%s14689_s1 + $0x368] sm:$0xff] }
   0x3   :  { %v9816_v2 = vld [vmem:[%s14689_s1 + $0x3b8] sm:$0xff]  ;;  %1772 = vmatpush.bf16.msra.mxu1 %v9808_v1  ;;  %v9815_v6 = vld [vmem:[%s14689_s1 + $0x3b0] sm:$0xff]  ;;  %v9814_v10 = vld [vmem:[%s14689_s1 + $0x3a8] sm:$0xff] }
   0x4   :  { %v9824_v3 = vld [vmem:[%s14689_s1 + $0x3f8] sm:$0xff]  ;;  %1831 = vmatpush.bf16.msra.mxu2 %v9816_v2  ;;  %v9823_v7 = vld [vmem:[%s14689_s1 + $0x3f0] sm:$0xff]  ;;  %v9822_v11 = vld [vmem:[%s14689_s1 + $0x3e8] sm:$0xff] }
   0x5   :  { %1890 = vmatpush.bf16.msra.mxu3 %v9824_v3  ;;  %v9797_v12 = vld [vmem:[%s14689_s1 + $0x320] sm:$0xff]  ;;  %v9796_v16 = vld [vmem:[%s14689_s1 + $0x318] sm:$0xff]  ;;  %v9795_v20 = vld [vmem:[%s14689_s1 + $0x310] sm:$0xff] }
   0x6   :  { %1714 = vmatpush.bf16.msra.mxu0 %v9799_v4  ;;  %v9805_v13 = vld [vmem:[%s14689_s1 + $0x360] sm:$0xff]  ;;  %v9804_v17 = vld [vmem:[%s14689_s1 + $0x358] sm:$0xff]  ;;  %v9803_v21 = vld [vmem:[%s14689_s1 + $0x350] sm:$0xff] }
   0x7   :  { %1773 = vmatpush.bf16.msra.mxu1 %v9807_v5  ;;  %v9813_v14 = vld [vmem:[%s14689_s1 + $0x3a0] sm:$0xff]  ;;  %v9812_v18 = vld [vmem:[%s14689_s1 + $0x398] sm:$0xff]  ;;  %v9811_v22 = vld [vmem:[%s14689_s1 + $0x390] sm:$0xff] }
   0x8   :  { %1832 = vmatpush.bf16.msra.mxu2 %v9815_v6  ;;  %v9821_v15 = vld [vmem:[%s14689_s1 + $0x3e0] sm:$0xff]  ;;  %v9820_v19 = vld [vmem:[%s14689_s1 + $0x3d8] sm:$0xff]  ;;  %v9819_v23 = vld [vmem:[%s14689_s1 + $0x3d0] sm:$0xff] }
   0x9   :  { %1891 = vmatpush.bf16.msra.mxu3 %v9823_v7  ;;  %v9794_v24 = vld [vmem:[%s14689_s1 + $0x308] sm:$0xff]  ;;  %v10344_v27 = vld [vmem:[%s14690_s0 + $0x30] sm:$0xff]  ;;  %v10349_v28 = vld [vmem:[%s14690_s0 + $0x60] sm:$0xff] }
   0xa   :  { %1715 = vmatpush.bf16.msra.mxu0 %v9798_v8  ;;  %v9802_v25 = vld [vmem:[%s14689_s1 + $0x348] sm:$0xff]  ;;  %v10357_v30 = vld [vmem:[%s14690_s0 + $0x38] sm:$0xff]  ;;  %v14772_v32 = vunpack.c.l.b16 %v10344_v27  ;;  %v14764_v33 = vunpack.c.l.b16 %v10349_v28  ;;  %v14771_v34 = vunpack.c.h.b16 %v10344_v27  ;;  %v14762_v35 = vunpack.c.h.b16 %v10349_v28  ;;  %v9793_v36 = vld [vmem:[%s14689_s1 + $0x300] sm:$0xff] }
   0xb   :  { %1774 = vmatpush.bf16.msra.mxu1 %v9806_v9  ;;  %v9810_v26 = vld [vmem:[%s14689_s1 + $0x388] sm:$0xff]  ;;  %v9801_v37 = vld [vmem:[%s14689_s1 + $0x340] sm:$0xff]  ;;  %v14770_v38 = vunpack.c.l.b16 %v10357_v30  ;;  %v14769_v40 = vunpack.c.h.b16 %v10357_v30  ;;  %v9848_v44 = vld [vmem:[%s14689_s1 + $0x4b8] sm:$0xff] }
   0xc   :  { %1833 = vmatpush.bf16.msra.mxu2 %v9814_v10  ;;  %v9818_v29 = vld [vmem:[%s14689_s1 + $0x3c8] sm:$0xff]  ;;  %v9809_v42 = vld [vmem:[%s14689_s1 + $0x380] sm:$0xff]  ;;  %v9832_v45 = vld [vmem:[%s14689_s1 + $0x438] sm:$0xff]  ;;  %v897_v46 = vpack.c.b16 %v14764_v33, %v14772_v32  ;;  %v898_v47 = vpack.c.b16 %v14762_v35, %v14771_v34 }
   0xd   :  { %1892 = vmatpush.bf16.msra.mxu3 %v9822_v11  ;;  %v10362_v31 = vld [vmem:[%s14690_s0 + $0x68] sm:$0xff]  ;;  %v9817_v43 = vld [vmem:[%s14689_s1 + $0x3c0] sm:$0xff]  ;;  %v9856_v50 = vld [vmem:[%s14689_s1 + $0x4f8] sm:$0xff] }
   0xe   :  { %1716 = vmatpush.bf16.msra.mxu0 %v9797_v12  ;;  %v14760_v39 = vunpack.c.l.b16 %v10362_v31  ;;  %v14758_v41 = vunpack.c.h.b16 %v10362_v31  ;;  %v9840_v51 = vld [vmem:[%s14689_s1 + $0x478] sm:$0xff]  ;;  %v9847_v52 = vld [vmem:[%s14689_s1 + $0x4b0] sm:$0xff]  ;;  %v9846_v56 = vld [vmem:[%s14689_s1 + $0x4a8] sm:$0xff] }
   0xf   :  { %1775 = vmatpush.bf16.msra.mxu1 %v9805_v13  ;;  %v9831_v53 = vld [vmem:[%s14689_s1 + $0x430] sm:$0xff]  ;;  %v9830_v57 = vld [vmem:[%s14689_s1 + $0x428] sm:$0xff]  ;;  %v10438_v59 = vld [vmem:[%s14690_s0 + $0xc0] sm:$0xff] }
  0x10   :  { %1834 = vmatpush.bf16.msra.mxu2 %v9813_v14  ;;  %v899_v48 = vpack.c.b16 %v14760_v39, %v14770_v38  ;;  %v900_v49 = vpack.c.b16 %v14758_v41, %v14769_v40  ;;  %v9855_v54 = vld [vmem:[%s14689_s1 + $0x4f0] sm:$0xff]  ;;  %v10443_v60 = vld [vmem:[%s14690_s0 + $0x98] sm:$0xff]  ;;  %v10448_v61 = vld [vmem:[%s14690_s0 + $0xc8] sm:$0xff]  ;;  %v14756_v1 = vunpack.c.l.b16 %v10438_v59  ;;  %v14746_v3 = vunpack.c.h.b16 %v10438_v59 }
  0x11   :  { %1893 = vmatpush.bf16.msra.mxu3 %v9821_v15  ;;  %v9839_v55 = vld [vmem:[%s14689_s1 + $0x470] sm:$0xff]  ;;  %v9854_v62 = vld [vmem:[%s14689_s1 + $0x4e8] sm:$0xff]  ;;  %v14759_v4 = vunpack.c.l.b16 %v10443_v60  ;;  %v14744_v5 = vunpack.c.l.b16 %v10448_v61  ;;  %v14757_v6 = vunpack.c.h.b16 %v10443_v60  ;;  %v14742_v7 = vunpack.c.h.b16 %v10448_v61  ;;  %v9845_v12 = vld [vmem:[%s14689_s1 + $0x4a0] sm:$0xff] }
  0x12   :  { %1717 = vmatpush.bf16.msra.mxu0 %v9796_v16  ;;  %v10433_v58 = vld [vmem:[%s14690_s0 + $0x90] sm:$0xff]  ;;  %v9838_v63 = vld [vmem:[%s14689_s1 + $0x468] sm:$0xff]  ;;  %v9829_v13 = vld [vmem:[%s14689_s1 + $0x420] sm:$0xff] }
  0x13   :  { %1776 = vmatpush.bf16.msra.mxu1 %v9804_v17  ;;  %v14763_v0 = vunpack.c.l.b16 %v10433_v58  ;;  %v14761_v2 = vunpack.c.h.b16 %v10433_v58  ;;  %v911_v10 = vpack.c.b16 %v14744_v5, %v14759_v4  ;;  %v912_v11 = vpack.c.b16 %v14742_v7, %v14757_v6  ;;  %v9853_v14 = vld [vmem:[%s14689_s1 + $0x4e0] sm:$0xff]  ;;  %v10492_v15 = vld [vmem:[%s14690_s0 + $0xf0] sm:$0xff]  ;;  %v10502_v17 = vld [vmem:[%s14690_s0 + $0xf8] sm:$0xff] }
  0x14   :  { %1835 = vmatpush.bf16.msra.mxu2 %v9812_v18  ;;  %v10497_v16 = vld [vmem:[%s14690_s0 + $0x120] sm:$0xff]  ;;  %v10507_v18 = vld [vmem:[%s14690_s0 + $0x128] sm:$0xff] }
  0x15   :  { %1894 = vmatpush.bf16.msra.mxu3 %v9820_v19  ;;  %v909_v8 = vpack.c.b16 %v14756_v1, %v14763_v0  ;;  %v910_v9 = vpack.c.b16 %v14746_v3, %v14761_v2  ;;  %v14747_v19 = vunpack.c.l.b16 %v10492_v15 }
  0x16   :  { %1718 = vmatpush.bf16.msra.mxu0 %v9795_v20  ;;  %v14732_v20 = vunpack.c.l.b16 %v10497_v16 }
  0x17   :  { %1777 = vmatpush.bf16.msra.mxu1 %v9803_v21  ;;  %v14745_v21 = vunpack.c.h.b16 %v10492_v15 }
  0x18   :  { %1836 = vmatpush.bf16.msra.mxu2 %v9811_v22  ;;  %v14730_v22 = vunpack.c.h.b16 %v10497_v16 }
  0x19   :  { %1895 = vmatpush.bf16.msra.mxu3 %v9819_v23  ;;  %v14743_v23 = vunpack.c.l.b16 %v10502_v17 }
  0x1a   :  { %1719 = vmatpush.bf16.msra.mxu0 %v9794_v24  ;;  %v14720_v24 = vunpack.c.l.b16 %v10507_v18 }
  0x1b   :  { %1778 = vmatpush.bf16.msra.mxu1 %v9802_v25  ;;  %v14733_v25 = vunpack.c.h.b16 %v10502_v17 }
  0x1c   :  { %1837 = vmatpush.bf16.msra.mxu2 %v9810_v26  ;;  %v14718_v26 = vunpack.c.h.b16 %v10507_v18 }
  0x1d   :  { %1896 = vmatpush.bf16.msra.mxu3 %v9818_v29  ;;  %v921_v29 = vpack.c.b16 %v14732_v20, %v14747_v19 }
  0x1e   :  { %1720 = vmatpush.bf16.msra.mxu0 %v9793_v36  ;;  %v922_v36 = vpack.c.b16 %v14730_v22, %v14745_v21 }
  0x1f   :  { %1779 = vmatpush.bf16.msra.mxu1 %v9801_v37  ;;  %v923_v37 = vpack.c.b16 %v14720_v24, %v14743_v23 }
  0x20   :  { %1838 = vmatpush.bf16.msra.mxu2 %v9809_v42  ;;  %v924_v42 = vpack.c.b16 %v14718_v26, %v14733_v25  ;;  %v9841_v25 = vld [vmem:[%s14689_s1 + $0x480] sm:$0xff] }
  0x21   :  { %1897 = vmatpush.bf16.msra.mxu3 %v9817_v43  ;;  %1721 = vmatmul.bf16.vlgmr.msra.gmra.mxu0 %v897_v46  ;;  %v9837_v43 = vld [vmem:[%s14689_s1 + $0x460] sm:$0xff]  ;;  %v10549_v46 = vld [vmem:[%s14690_s0 + $0x158] sm:$0xff] }
  0x22   :  { %1949 = vmatpush.bf16.msrb.mxu0 %v9832_v45  ;;  %1780 = vmatmul.bf16.vlgmr.msra.gmra.mxu1 %v898_v47  ;;  %v10544_v45 = vld [vmem:[%s14690_s0 + $0x180] sm:$0xff]  ;;  %v10554_v47 = vld [vmem:[%s14690_s0 + $0x188] sm:$0xff] }
  0x23   :  { %1839 = vmatmul.bf16.vlgmr.msra.gmra.mxu2 %v899_v48  ;;  %2008 = vmatpush.bf16.msrb.mxu1 %v9840_v51  ;;  %v14706_v51 = vunpack.c.h.b16 %v10544_v45 }
  0x24   :  { %2067 = vmatpush.bf16.msrb.mxu2 %v9848_v44  ;;  %1898 = vmatmul.bf16.vlgmr.msra.gmra.mxu3 %v900_v49  ;;  %v10539_v44 = vld [vmem:[%s14690_s0 + $0x150] sm:$0xff]  ;;  %v14708_v49 = vunpack.c.l.b16 %v10544_v45 }
  0x25   :  { %2126 = vmatpush.bf16.msrb.mxu3 %v9856_v50  ;;  %v14731_v48 = vunpack.c.l.b16 %v10539_v44  ;;  %v14729_v50 = vunpack.c.h.b16 %v10539_v44 }
  0x26   :  { %1950 = vmatpush.bf16.msrb.mxu0 %v9831_v53  ;;  %v14704_v53 = vunpack.c.l.b16 %v10554_v47 }
  0x27   :  { %2009 = vmatpush.bf16.msrb.mxu1 %v9839_v55  ;;  %v14702_v55 = vunpack.c.h.b16 %v10554_v47 }
  0x28   :  { %2068 = vmatpush.bf16.msrb.mxu2 %v9847_v52  ;;  %v14719_v52 = vunpack.c.l.b16 %v10549_v46 }
  0x29   :  { %2127 = vmatpush.bf16.msrb.mxu3 %v9855_v54  ;;  %v14717_v54 = vunpack.c.h.b16 %v10549_v46 }
  0x2a   :  { %1951 = vmatpush.bf16.msrb.mxu0 %v9830_v57  ;;  %v934_v57 = vpack.c.b16 %v14706_v51, %v14729_v50 }
  0x2b   :  { %2010 = vmatpush.bf16.msrb.mxu1 %v9838_v63  ;;  %v936_v63 = vpack.c.b16 %v14702_v55, %v14717_v54 }
  0x2c   :  { %2069 = vmatpush.bf16.msrb.mxu2 %v9846_v56  ;;  %v933_v56 = vpack.c.b16 %v14708_v49, %v14731_v48 }
  0x2d   :  { %2128 = vmatpush.bf16.msrb.mxu3 %v9854_v62  ;;  %v935_v62 = vpack.c.b16 %v14704_v53, %v14719_v52 }
  0x2e   :  { %1952 = vmatpush.bf16.msrb.mxu0 %v9829_v13  ;;  %v10600_v13 = vld [vmem:[%s14690_s0 + $0x1e0] sm:$0xff] }
  0x2f   :  { %2011 = vmatpush.bf16.msrb.mxu1 %v9837_v43  ;;  %v14698_v43 = vunpack.c.h.b16 %v10600_v13 }
  0x30   :  { %2070 = vmatpush.bf16.msrb.mxu2 %v9845_v12  ;;  %v10595_v12 = vld [vmem:[%s14690_s0 + $0x1b0] sm:$0xff] }
  0x31   :  { %1726 = vmatmul.bf16.gmra.mxu0 %v909_v8  ;;  %2129 = vmatpush.bf16.msrb.mxu3 %v9853_v14  ;;  %v9844_v8 = vld [vmem:[%s14689_s1 + $0x498] sm:$0xff] }
  0x32   :  { %1785 = vmatmul.bf16.gmra.mxu1 %v910_v9  ;;  %v9828_v9 = vld [vmem:[%s14689_s1 + $0x418] sm:$0xff] }
  0x33   :  { %1844 = vmatmul.bf16.gmra.mxu2 %v911_v10  ;;  %v9852_v10 = vld [vmem:[%s14689_s1 + $0x4d8] sm:$0xff]  ;;  %1953 = vmatpush.bf16.msrb.mxu0 %v9828_v9 }
  0x34   :  { %1903 = vmatmul.bf16.gmra.mxu3 %v912_v11  ;;  %v9836_v11 = vld [vmem:[%s14689_s1 + $0x458] sm:$0xff]  ;;  %2071 = vmatpush.bf16.msrb.mxu2 %v9844_v8 }
  0x35   :  { %2130 = vmatpush.bf16.msrb.mxu3 %v9852_v10  ;;  %2012 = vmatpush.bf16.msrb.mxu1 %v9836_v11  ;;  %v10605_v14 = vld [vmem:[%s14690_s0 + $0x1b8] sm:$0xff] }
  0x41   :  { %1731 = vmatmul.bf16.gmra.mxu0 %v921_v29  ;;  %v10610_v29 = vld [vmem:[%s14690_s0 + $0x1e8] sm:$0xff] }
  0x42   :  { %1790 = vmatmul.bf16.gmra.mxu1 %v922_v36  ;;  %v14707_v36 = vunpack.c.l.b16 %v10595_v12 }
  0x43   :  { %1849 = vmatmul.bf16.gmra.mxu2 %v923_v37  ;;  %v14697_v37 = vunpack.c.l.b16 %v10600_v13 }
  0x44   :  { %1908 = vmatmul.bf16.gmra.mxu3 %v924_v42  ;;  %v14705_v42 = vunpack.c.h.b16 %v10595_v12 }
  0x45   :  { %v945_v8 = vpack.c.b16 %v14697_v37, %v14707_v36  ;;  %v9843_v37 = vld [vmem:[%s14689_s1 + $0x490] sm:$0xff] }
  0x46   :  { %v946_v9 = vpack.c.b16 %v14698_v43, %v14705_v42  ;;  %v9827_v43 = vld [vmem:[%s14689_s1 + $0x410] sm:$0xff]  ;;  %2072 = vmatpush.bf16.msrb.mxu2 %v9843_v37  ;;  %v10666_v37 = vld [vmem:[%s14690_s0 + $0x248] sm:$0xff] }
  0x47   :  { %1954 = vmatpush.bf16.msrb.mxu0 %v9827_v43  ;;  %15032 = vst [vmem:[#allocation3_spill] sm:$0xff] %v10666_v37  ;;  %v14711_v55 = vunpack.c.l.b16 %v10666_v37  ;;  %v14712_v53 = vunpack.c.h.b16 %v10666_v37 }
  0x51   :  { %1736 = vmatmul.bf16.gmra.mxu0 %v933_v56  ;;  %v14703_v56 = vunpack.c.l.b16 %v10605_v14 }
  0x52   :  { %1795 = vmatmul.bf16.gmra.mxu1 %v934_v57  ;;  %v14699_v57 = vunpack.c.l.b16 %v10610_v29 }
  0x53   :  { %1854 = vmatmul.bf16.gmra.mxu2 %v935_v62  ;;  %v14701_v62 = vunpack.c.h.b16 %v10605_v14 }
  0x54   :  { %1913 = vmatmul.bf16.gmra.mxu3 %v936_v63  ;;  %v14700_v63 = vunpack.c.h.b16 %v10610_v29  ;;  %v947_v10 = vpack.c.b16 %v14699_v57, %v14703_v56  ;;  %v9851_v57 = vld [vmem:[%s14689_s1 + $0x4d0] sm:$0xff] }
  0x55   :  { %2131 = vmatpush.bf16.msrb.mxu3 %v9851_v57 }
  0x56   :  { %v948_v11 = vpack.c.b16 %v14700_v63, %v14701_v62  ;;  %v9835_v63 = vld [vmem:[%s14689_s1 + $0x450] sm:$0xff] }
  0x57   :  { %2013 = vmatpush.bf16.msrb.mxu1 %v9835_v63 }
  0x61   :  { %1741 = vmatmul.bf16.gmra.mxu0 %v945_v8  ;;  %v10651_v8 = vld [vmem:[%s14690_s0 + $0x210] sm:$0xff] }
  0x62   :  { %1800 = vmatmul.bf16.gmra.mxu1 %v946_v9  ;;  %v10656_v9 = vld [vmem:[%s14690_s0 + $0x240] sm:$0xff]  ;;  %v14716_v43 = vunpack.c.l.b16 %v10651_v8  ;;  %v14715_v63 = vunpack.c.h.b16 %v10651_v8 }
  0x63   :  { %1859 = vmatmul.bf16.gmra.mxu2 %v947_v10  ;;  %15031 = vst [vmem:[#allocation2_spill] sm:$0xff] %v10656_v9  ;;  %v10661_v10 = vld [vmem:[%s14690_s0 + $0x218] sm:$0xff]  ;;  %v14709_v57 = vunpack.c.l.b16 %v10656_v9 }
  0x64   :  { %1918 = vmatmul.bf16.gmra.mxu3 %v948_v11  ;;  %v14710_v11 = vunpack.c.h.b16 %v10656_v9  ;;  %v14714_v62 = vunpack.c.l.b16 %v10661_v10  ;;  %v14713_v56 = vunpack.c.h.b16 %v10661_v10 }
  0x65   :  { %v957_v42 = vpack.c.b16 %v14709_v57, %v14716_v43  ;;  %v9842_v57 = vld [vmem:[%s14689_s1 + $0x488] sm:$0xff] }
  0x66   :  { %v958_v51 = vpack.c.b16 %v14710_v11, %v14715_v63  ;;  %v959_v36 = vpack.c.b16 %v14711_v55, %v14714_v62  ;;  %v960_v49 = vpack.c.b16 %v14712_v53, %v14713_v56  ;;  %v9826_v11 = vld [vmem:[%s14689_s1 + $0x408] sm:$0xff]  ;;  %2073 = vmatpush.bf16.msrb.mxu2 %v9842_v57 }
  0x67   :  { %v9850_v55 = vld [vmem:[%s14689_s1 + $0x4c8] sm:$0xff]  ;;  %1955 = vmatpush.bf16.msrb.mxu0 %v9826_v11 }
  0x68   :  { %v9834_v53 = vld [vmem:[%s14689_s1 + $0x448] sm:$0xff]  ;;  %2132 = vmatpush.bf16.msrb.mxu3 %v9850_v55 }
  0x69   :  { %2014 = vmatpush.bf16.msrb.mxu1 %v9834_v53  ;;  %v10722_v55 = vld [vmem:[%s14690_s0 + $0x2a8] sm:$0xff] }
  0x6a   :  { %15036 = vst [vmem:[#allocation7_spill] sm:$0xff] %v10722_v55  ;;  %v14723_v62 = vunpack.c.l.b16 %v10722_v55  ;;  %v14724_v43 = vunpack.c.h.b16 %v10722_v55  ;;  %2074 = vmatpush.bf16.msrb.mxu2 %v9841_v25 }
  0x71   :  { %1746 = vmatmul.bf16.gmra.mxu0 %v957_v42 }
  0x72   :  { %1805 = vmatmul.bf16.gmra.mxu1 %v958_v51  ;;  %v10712_v51 = vld [vmem:[%s14690_s0 + $0x2a0] sm:$0xff] }
  0x73   :  { %1864 = vmatmul.bf16.gmra.mxu2 %v959_v36  ;;  %15034 = vst [vmem:[#allocation5_spill] sm:$0xff] %v10712_v51  ;;  %v10717_v36 = vld [vmem:[%s14690_s0 + $0x278] sm:$0xff]  ;;  %v14721_v42 = vunpack.c.l.b16 %v10712_v51  ;;  %v14722_v11 = vunpack.c.h.b16 %v10712_v51 }
  0x74   :  { %1923 = vmatmul.bf16.gmra.mxu3 %v960_v49  ;;  %v10707_v49 = vld [vmem:[%s14690_s0 + $0x270] sm:$0xff]  ;;  %15035 = vst [vmem:[#allocation6_spill] sm:$0xff] %v10717_v36  ;;  %v14726_v56 = vunpack.c.l.b16 %v10717_v36  ;;  %v14725_v63 = vunpack.c.h.b16 %v10717_v36 }
  0x75   :  { %15033 = vst [vmem:[#allocation4_spill] sm:$0xff] %v10707_v49  ;;  %v14728_v53 = vunpack.c.l.b16 %v10707_v49  ;;  %v14727_v57 = vunpack.c.h.b16 %v10707_v49 }
  0x76   :  { %v971_v52 = vpack.c.b16 %v14723_v62, %v14726_v56  ;;  %v972_v24 = vpack.c.b16 %v14724_v43, %v14725_v63  ;;  %v10761_v62 = vld [vmem:[%s14690_s0 + $0x2d8] sm:$0xff] }
  0x77   :  { %v969_v54 = vpack.c.b16 %v14721_v42, %v14728_v53  ;;  %v970_v26 = vpack.c.b16 %v14722_v11, %v14727_v57  ;;  %v10751_v42 = vld [vmem:[%s14690_s0 + $0x2d0] sm:$0xff]  ;;  %v10756_v11 = vld [vmem:[%s14690_s0 + $0x300] sm:$0xff]  ;;  %15039 = vst [vmem:[#allocation10_spill] sm:$0xff] %v10761_v62  ;;  %v14739_v63 = vunpack.c.l.b16 %v10761_v62  ;;  %v14738_v57 = vunpack.c.h.b16 %v10761_v62 }
  0x78   :  { %15037 = vst [vmem:[#allocation8_spill] sm:$0xff] %v10751_v42  ;;  %v14735_v43 = vunpack.c.h.b16 %v10756_v11 }
  0x79   :  { %15038 = vst [vmem:[#allocation9_spill] sm:$0xff] %v10756_v11 }
  0x81   :  { %1751 = vmatmul.bf16.gmra.mxu0 %v969_v54  ;;  %v14740_v54 = vunpack.c.h.b16 %v10751_v42 }
  0x82   :  { %1810 = vmatmul.bf16.gmra.mxu1 %v970_v26  ;;  %v10766_v26 = vld [vmem:[%s14690_s0 + $0x308] sm:$0xff] }
  0x83   :  { %1869 = vmatmul.bf16.gmra.mxu2 %v971_v52  ;;  %15040 = vst [vmem:[#allocation11_spill] sm:$0xff] %v10766_v26  ;;  %v14734_v52 = vunpack.c.l.b16 %v10756_v11  ;;  %v14737_v56 = vunpack.c.l.b16 %v10766_v26  ;;  %v14736_v53 = vunpack.c.h.b16 %v10766_v26  ;;  %v982_v22 = vpack.c.b16 %v14735_v43, %v14740_v54  ;;  %v9849_v43 = vld [vmem:[%s14689_s1 + $0x4c0] sm:$0xff] }
  0x84   :  { %1928 = vmatmul.bf16.gmra.mxu3 %v972_v24  ;;  %v14741_v24 = vunpack.c.l.b16 %v10751_v42 }
  0x85   :  { %v983_v48 = vpack.c.b16 %v14737_v56, %v14739_v63  ;;  %v984_v20 = vpack.c.b16 %v14736_v53, %v14738_v57  ;;  %v9833_v53 = vld [vmem:[%s14689_s1 + $0x440] sm:$0xff]  ;;  %2133 = vmatpush.bf16.msrb.mxu3 %v9849_v43  ;;  %v10807_v56 = vld [vmem:[%s14690_s0 + $0x330] sm:$0xff] }
  0x86   :  { %v981_v50 = vpack.c.b16 %v14734_v52, %v14741_v24  ;;  %v9825_v52 = vld [vmem:[%s14689_s1 + $0x400] sm:$0xff]  ;;  %2015 = vmatpush.bf16.msrb.mxu1 %v9833_v53  ;;  %15041 = vst [vmem:[#allocation12_spill] sm:$0xff] %v10807_v56  ;;  %v14755_v25 = vunpack.c.l.b16 %v10807_v56  ;;  %v14754_v43 = vunpack.c.h.b16 %v10807_v56 }
  0x87   :  { %1956 = vmatpush.bf16.msrb.mxu0 %v9825_v52 }
  0x91   :  { %1756 = vmatmul.bf16.gmra.mxu0 %v981_v50  ;;  %v10812_v50 = vld [vmem:[%s14690_s0 + $0x360] sm:$0xff] }
  0x92   :  { %1815 = vmatmul.bf16.gmra.mxu1 %v982_v22  ;;  %15042 = vst [vmem:[#allocation13_spill] sm:$0xff] %v10812_v50  ;;  %v10822_v22 = vld [vmem:[%s14690_s0 + $0x368] sm:$0xff]  ;;  %v14748_v53 = vunpack.c.h.b16 %v10812_v50 }
  0x93   :  { %1874 = vmatmul.bf16.gmra.mxu2 %v983_v48  ;;  %15044 = vst [vmem:[#allocation15_spill] sm:$0xff] %v10822_v22  ;;  %v14749_v48 = vunpack.c.l.b16 %v10812_v50  ;;  %v14750_v57 = vunpack.c.l.b16 %v10822_v22  ;;  %v14751_v54 = vunpack.c.h.b16 %v10822_v22 }
  0x94   :  { %1933 = vmatmul.bf16.gmra.mxu3 %v984_v20  ;;  %v10817_v20 = vld [vmem:[%s14690_s0 + $0x338] sm:$0xff]  ;;  %v994_v7 = vpack.c.b16 %v14748_v53, %v14754_v43 }
  0x95   :  { %15043 = vst [vmem:[#allocation14_spill] sm:$0xff] %v10817_v20  ;;  %v14753_v52 = vunpack.c.l.b16 %v10817_v20  ;;  %v14752_v63 = vunpack.c.h.b16 %v10817_v20  ;;  %v993_v24 = vpack.c.b16 %v14749_v48, %v14755_v25  ;;  %v9880_v53 = vld [vmem:[%s14689_s1 + $0x5b8] sm:$0xff] }
  0x96   :  { %v9864_v48 = vld [vmem:[%s14689_s1 + $0x538] sm:$0xff]  ;;  %2303 = vmatpush.bf16.msra.mxu2 %v9880_v53 }
  0x97   :  { %v995_v21 = vpack.c.b16 %v14750_v57, %v14753_v52  ;;  %v996_v3 = vpack.c.b16 %v14751_v54, %v14752_v63  ;;  %v9888_v57 = vld [vmem:[%s14689_s1 + $0x5f8] sm:$0xff]  ;;  %2185 = vmatpush.bf16.msra.mxu0 %v9864_v48 }
  0x98   :  { %2362 = vmatpush.bf16.msra.mxu3 %v9888_v57  ;;  %v10868_v48 = vld [vmem:[%s14690_s0 + $0x398] sm:$0xff] }
  0x99   :  { %15046 = vst [vmem:[#allocation17_spill] sm:$0xff] %v10868_v48  ;;  %v14767_v43 = vunpack.c.l.b16 %v10868_v48  ;;  %v14766_v1 = vunpack.c.h.b16 %v10868_v48 }
  0x9e   :  { %v1722_v23 = vpop.f32.mrf.mxu0 }
  0x9f   :  { %v1781_v5 = vpop.f32.mrf.mxu1 }
  0xa0   :  { %v1782_v19 = vadd.f32 %v1781_v5, %v1722_v23  ;;  %v10860_v23 = vld [vmem:[%s14690_s0 + $0x390] sm:$0xff] }
  0xa1   :  { %1761 = vmatmul.bf16.gmra.mxu0 %v993_v24  ;;  %15045 = vst [vmem:[#allocation16_spill] sm:$0xff] %v10860_v23  ;;  %v338_v24 = vld [vmem:[%s14690_s0 + $0x3c0] sm:$0xff]  ;;  %v14765_v53 = vunpack.c.l.b16 %v10860_v23 }
  0xa2   :  { %1820 = vmatmul.bf16.gmra.mxu1 %v994_v7  ;;  %v885_v52 = vunpack.c.l.b16 %v338_v24 }
  0xa3   :  { %1879 = vmatmul.bf16.gmra.mxu2 %v995_v21 }
  0xa4   :  { %1938 = vmatmul.bf16.gmra.mxu3 %v996_v3 }
  0xa6   :  { %v1840_v54 = vpop.f32.mrf.mxu2  ;;  %v1724_v21 = vpop.f32.mrf.mxu0 }
  0xa7   :  { %v1899_v5 = vpop.f32.mrf.mxu3  ;;  %v1841_v7 = vadd.f32 %v1840_v54, %v1782_v19  ;;  %v1783_v3 = vpop.f32.mrf.mxu1  ;;  %v339_v19 = vld [vmem:[%s14690_s0 + $0x3c8] sm:$0xff]  ;;  %v9872_v54 = vld [vmem:[%s14689_s1 + $0x578] sm:$0xff] }
  0xa8   :  { %v1784_v63 = vadd.f32 %v1783_v3, %v1724_v21  ;;  %v14768_v21 = vunpack.c.h.b16 %v10860_v23  ;;  %v886_v3 = vunpack.c.h.b16 %v338_v24  ;;  %v887_v25 = vunpack.c.l.b16 %v339_v19  ;;  %2244 = vmatpush.bf16.msra.mxu1 %v9872_v54 }
  0xa9   :  { %v10873_v57 = vadd.f32 %v1899_v5, %v1841_v7  ;;  %v888_v6 = vunpack.c.h.b16 %v339_v19  ;;  %v1005_v7 = vpack.c.b16 %v885_v52, %v14765_v53 }
  0xaa   :  { %v1006_v4 = vpack.c.b16 %v886_v3, %v14768_v21  ;;  %v1007_v24 = vpack.c.b16 %v887_v25, %v14767_v43  ;;  %v9887_v25 = vld [vmem:[%s14689_s1 + $0x5f0] sm:$0xff] }
  0xab   :  { %v1008_v0 = vpack.c.b16 %v888_v6, %v14766_v1  ;;  %v9863_v6 = vld [vmem:[%s14689_s1 + $0x530] sm:$0xff]  ;;  %2363 = vmatpush.bf16.msra.mxu3 %v9887_v25 }
  0xac   :  { %2186 = vmatpush.bf16.msra.mxu0 %v9863_v6 }
  0xae   :  { %v1842_v41 = vpop.f32.mrf.mxu2  ;;  %v1727_v2 = vpop.f32.mrf.mxu0 }
  0xaf   :  { %v1901_v5 = vpop.f32.mrf.mxu3  ;;  %v1843_v39 = vadd.f32 %v1842_v41, %v1784_v63  ;;  %v1786_v35 = vpop.f32.mrf.mxu1  ;;  %v10895_v63 = vld [vmem:[%s14690_s0 + $0x40] sm:$0xff] }
  0xb0   :  { %v1787_v33 = vadd.f32 %v1786_v35, %v1727_v2  ;;  %15047 = vst [vmem:[#allocation18_spill] sm:$0xff] %v10895_v63  ;;  %v10900_v35 = vld [vmem:[%s14690_s0 + $0x70] sm:$0xff] }
  0xb1   :  { %v10890_v19 = vadd.f32 %v1901_v5, %v1843_v39  ;;  %1766 = vmatmul.bf16.gmra.mxu0 %v1005_v7  ;;  %15048 = vst [vmem:[#allocation19_spill] sm:$0xff] %v10900_v35  ;;  %v14776_v5 = vunpack.c.l.b16 %v10895_v63  ;;  %v14773_v7 = vunpack.c.l.b16 %v10900_v35 }
  0xb2   :  { %1825 = vmatmul.bf16.gmra.mxu1 %v1006_v4  ;;  %v9879_v4 = vld [vmem:[%s14689_s1 + $0x5b0] sm:$0xff] }
  0xb3   :  { %1884 = vmatmul.bf16.gmra.mxu2 %v1007_v24  ;;  %v14775_v24 = vunpack.c.h.b16 %v10895_v63  ;;  %v901_v40 = vpack.c.b16 %v14773_v7, %v14776_v5 }
  0xb4   :  { %1943 = vmatmul.bf16.gmra.mxu3 %v1008_v0  ;;  %v10905_v0 = vld [vmem:[%s14690_s0 + $0x48] sm:$0xff]  ;;  %2304 = vmatpush.bf16.msra.mxu2 %v9879_v4 }
  0xb5   :  { %15049 = vst [vmem:[#allocation20_spill] sm:$0xff] %v10905_v0  ;;  %v15051_v6 = vunpack.c.h.b16 %v10905_v0 }
  0xb6   :  { %v1845_v52 = vpop.f32.mrf.mxu2  ;;  %v1729_v3 = vpop.f32.mrf.mxu0 }
  0xb7   :  { %v1904_v54 = vpop.f32.mrf.mxu3  ;;  %v1846_v53 = vadd.f32 %v1845_v52, %v1787_v33  ;;  %v1788_v41 = vpop.f32.mrf.mxu1  ;;  %v10910_v33 = vld [vmem:[%s14690_s0 + $0x78] sm:$0xff]  ;;  %v9871_v52 = vld [vmem:[%s14689_s1 + $0x570] sm:$0xff] }
  0xb8   :  { %v1789_v39 = vadd.f32 %v1788_v41, %v1729_v3  ;;  %15050 = vst [vmem:[#allocation21_spill] sm:$0xff] %v10910_v33  ;;  %v14777_v3 = vunpack.c.l.b16 %v10910_v33  ;;  %v14778_v1 = vunpack.c.h.b16 %v10910_v33  ;;  %2245 = vmatpush.bf16.msra.mxu1 %v9871_v52 }
  0xb9   :  { %v10912_v2 = vadd.f32 %v1904_v54, %v1846_v53  ;;  %v14774_v53 = vunpack.c.h.b16 %v10900_v35  ;;  %v14779_v54 = vunpack.c.l.b16 %v10905_v0 }
  0xba   :  { %v904_v25 = vpack.c.b16 %v14778_v1, %v15051_v6 }
  0xbb   :  { %v902_v38 = vpack.c.b16 %v14774_v53, %v14775_v24  ;;  %v903_v4 = vpack.c.b16 %v14777_v3, %v14779_v54  ;;  %v10955_v3 = vld [vmem:[%s14690_s0 + $0xa0] sm:$0xff] }
  0xbc   :  { %15052 = vst [vmem:[#allocation22_spill] sm:$0xff] %v10955_v3 }
  0xbe   :  { %v1847_v43 = vpop.f32.mrf.mxu2  ;;  %v1732_v32 = vpop.f32.mrf.mxu0 }
  0xbf   :  { %v1906_v21 = vpop.f32.mrf.mxu3  ;;  %v1848_v34 = vadd.f32 %v1847_v43, %v1789_v39  ;;  %v1791_v41 = vpop.f32.mrf.mxu1 }
  0xc0   :  { %v1792_v52 = vadd.f32 %v1791_v41, %v1732_v32  ;;  %v10960_v32 = vld [vmem:[%s14690_s0 + $0xd0] sm:$0xff]  ;;  %v9878_v41 = vld [vmem:[%s14689_s1 + $0x5a8] sm:$0xff] }
  0xc1   :  { %v10950_v7 = vadd.f32 %v1906_v21, %v1848_v34  ;;  %1957 = vmatmul.bf16.vlgmr.msrb.gmra.mxu0 %v901_v40  ;;  %15053 = vst [vmem:[#allocation23_spill] sm:$0xff] %v10960_v32  ;;  %v10970_v40 = vld [vmem:[%s14690_s0 + $0xd8] sm:$0xff]  ;;  %v14792_v6 = vunpack.c.l.b16 %v10960_v32  ;;  %2305 = vmatpush.bf16.msra.mxu2 %v9878_v41 }
  0xc2   :  { %2016 = vmatmul.bf16.vlgmr.msrb.gmra.mxu1 %v902_v38  ;;  %v10965_v38 = vld [vmem:[%s14690_s0 + $0xa8] sm:$0xff]  ;;  %15055 = vst [vmem:[#allocation25_spill] sm:$0xff] %v10970_v40  ;;  %v15059_v41 = vunpack.c.l.b16 %v10970_v40  ;;  %v15061_v63 = vunpack.c.h.b16 %v10970_v40 }
  0xc3   :  { %2075 = vmatmul.bf16.vlgmr.msrb.gmra.mxu2 %v903_v4  ;;  %15054 = vst [vmem:[#allocation24_spill] sm:$0xff] %v10965_v38  ;;  %v14793_v4 = vunpack.c.l.b16 %v10955_v3  ;;  %v15058_v1 = vunpack.c.l.b16 %v10965_v38 }
  0xc4   :  { %2134 = vmatmul.bf16.vlgmr.msrb.gmra.mxu3 %v904_v25 }
  0xc5   :  { %v913_v25 = vpack.c.b16 %v14792_v6, %v14793_v4 }
  0xc6   :  { %v1850_v43 = vpop.f32.mrf.mxu2  ;;  %v1734_v24 = vpop.f32.mrf.mxu0 }
  0xc7   :  { %v1909_v39 = vpop.f32.mrf.mxu3  ;;  %v1851_v53 = vadd.f32 %v1850_v43, %v1792_v52  ;;  %v1793_v5 = vpop.f32.mrf.mxu1  ;;  %v15057_v52 = vunpack.c.h.b16 %v10960_v32 }
  0xc8   :  { %v1794_v34 = vadd.f32 %v1793_v5, %v1734_v24  ;;  %v9862_v5 = vld [vmem:[%s14689_s1 + $0x528] sm:$0xff] }
  0xc9   :  { %v10972_v21 = vadd.f32 %v1909_v39, %v1851_v53  ;;  %v9886_v24 = vld [vmem:[%s14689_s1 + $0x5e8] sm:$0xff]  ;;  %2187 = vmatpush.bf16.msra.mxu0 %v9862_v5  ;;  %v15056_v53 = vunpack.c.h.b16 %v10955_v3  ;;  %v915_v5 = vpack.c.b16 %v15059_v41, %v15058_v1 }
  0xca   :  { %2364 = vmatpush.bf16.msra.mxu3 %v9886_v24  ;;  %v15060_v24 = vunpack.c.h.b16 %v10965_v38 }
  0xcb   :  { %v914_v35 = vpack.c.b16 %v15057_v52, %v15056_v53  ;;  %v9870_v53 = vld [vmem:[%s14689_s1 + $0x568] sm:$0xff] }
  0xcc   :  { %v916_v48 = vpack.c.b16 %v15061_v63, %v15060_v24  ;;  %2246 = vmatpush.bf16.msra.mxu1 %v9870_v53  ;;  %v11015_v63 = vld [vmem:[%s14690_s0 + $0x100] sm:$0xff] }
  0xcd   :  { %15062 = vst [vmem:[#allocation26_spill] sm:$0xff] %v11015_v63 }
  0xce   :  { %v1852_v54 = vpop.f32.mrf.mxu2  ;;  %v1737_v0 = vpop.f32.mrf.mxu0 }
  0xcf   :  { %v1911_v33 = vpop.f32.mrf.mxu3  ;;  %v1853_v43 = vadd.f32 %v1852_v54, %v1794_v34  ;;  %v1796_v39 = vpop.f32.mrf.mxu1 }
  0xd0   :  { %v1797_v22 = vadd.f32 %v1796_v39, %v1737_v0  ;;  %v11020_v0 = vld [vmem:[%s14690_s0 + $0x130] sm:$0xff]  ;;  %v14808_v39 = vunpack.c.h.b16 %v11015_v63 }
  0xd1   :  { %v11007_v6 = vadd.f32 %v1911_v33, %v1853_v43  ;;  %1962 = vmatmul.bf16.gmra.mxu0 %v913_v25  ;;  %15063 = vst [vmem:[#allocation27_spill] sm:$0xff] %v11020_v0  ;;  %v14809_v25 = vunpack.c.l.b16 %v11015_v63  ;;  %v14806_v43 = vunpack.c.l.b16 %v11020_v0 }
  0xd2   :  { %2021 = vmatmul.bf16.gmra.mxu1 %v914_v35 }
  0xd3   :  { %2080 = vmatmul.bf16.gmra.mxu2 %v915_v5  ;;  %v14807_v5 = vunpack.c.h.b16 %v11020_v0 }
  0xd4   :  { %2139 = vmatmul.bf16.gmra.mxu3 %v916_v48  ;;  %v11025_v48 = vld [vmem:[%s14690_s0 + $0x108] sm:$0xff] }
  0xd5   :  { %15064 = vst [vmem:[#allocation28_spill] sm:$0xff] %v11025_v48  ;;  %v15066_v53 = vunpack.c.l.b16 %v11025_v48  ;;  %v15068_v38 = vunpack.c.h.b16 %v11025_v48 }
  0xd6   :  { %v1855_v54 = vpop.f32.mrf.mxu2  ;;  %v1739_v52 = vpop.f32.mrf.mxu0 }
  0xd7   :  { %v1914_v34 = vpop.f32.mrf.mxu3  ;;  %v1856_v1 = vadd.f32 %v1855_v54, %v1797_v22  ;;  %v1798_v41 = vpop.f32.mrf.mxu1  ;;  %v11030_v22 = vld [vmem:[%s14690_s0 + $0x138] sm:$0xff] }
  0xd8   :  { %v1799_v33 = vadd.f32 %v1798_v41, %v1739_v52  ;;  %15065 = vst [vmem:[#allocation29_spill] sm:$0xff] %v11030_v22  ;;  %v15067_v54 = vunpack.c.l.b16 %v11030_v22  ;;  %v15069_v3 = vunpack.c.h.b16 %v11030_v22 }
  0xd9   :  { %v11032_v35 = vadd.f32 %v1914_v34, %v1856_v1  ;;  %v925_v34 = vpack.c.b16 %v14806_v43, %v14809_v25  ;;  %v926_v1 = vpack.c.b16 %v14807_v5, %v14808_v39  ;;  %v9877_v5 = vld [vmem:[%s14689_s1 + $0x5a0] sm:$0xff] }
  0xda   :  { %v927_v52 = vpack.c.b16 %v15067_v54, %v15066_v53  ;;  %v928_v23 = vpack.c.b16 %v15069_v3, %v15068_v38  ;;  %v9885_v53 = vld [vmem:[%s14689_s1 + $0x5e0] sm:$0xff]  ;;  %2306 = vmatpush.bf16.msra.mxu2 %v9877_v5  ;;  %v11085_v5 = vld [vmem:[%s14690_s0 + $0x168] sm:$0xff] }
  0xdb   :  { %v9869_v3 = vld [vmem:[%s14689_s1 + $0x560] sm:$0xff]  ;;  %2365 = vmatpush.bf16.msra.mxu3 %v9885_v53  ;;  %15072 = vst [vmem:[#allocation32_spill] sm:$0xff] %v11085_v5  ;;  %v15076_v48 = vunpack.c.h.b16 %v11085_v5 }
  0xdc   :  { %2247 = vmatpush.bf16.msra.mxu1 %v9869_v3  ;;  %v11075_v54 = vld [vmem:[%s14690_s0 + $0x160] sm:$0xff] }
  0xdd   :  { %15070 = vst [vmem:[#allocation30_spill] sm:$0xff] %v11075_v54 }
  0xde   :  { %v1857_v41 = vpop.f32.mrf.mxu2  ;;  %v1742_v24 = vpop.f32.mrf.mxu0 }
  0xdf   :  { %v1916_v4 = vpop.f32.mrf.mxu3  ;;  %v1858_v40 = vadd.f32 %v1857_v41, %v1799_v33  ;;  %v1801_v32 = vpop.f32.mrf.mxu1  ;;  %v9861_v33 = vld [vmem:[%s14689_s1 + $0x520] sm:$0xff] }
  0xe0   :  { %v1802_v50 = vadd.f32 %v1801_v32, %v1742_v24  ;;  %2188 = vmatpush.bf16.msra.mxu0 %v9861_v33  ;;  %v14824_v33 = vunpack.c.h.b16 %v11075_v54 }
  0xe1   :  { %v11058_v43 = vadd.f32 %v1916_v4, %v1858_v40  ;;  %1967 = vmatmul.bf16.gmra.mxu0 %v925_v34  ;;  %v14825_v34 = vunpack.c.l.b16 %v11075_v54 }
  0xe2   :  { %2026 = vmatmul.bf16.gmra.mxu1 %v926_v1 }
  0xe3   :  { %2085 = vmatmul.bf16.gmra.mxu2 %v927_v52 }
  0xe4   :  { %2144 = vmatmul.bf16.gmra.mxu3 %v928_v23  ;;  %v11080_v23 = vld [vmem:[%s14690_s0 + $0x190] sm:$0xff] }
  0xe5   :  { %15071 = vst [vmem:[#allocation31_spill] sm:$0xff] %v11080_v23  ;;  %v14822_v1 = vunpack.c.l.b16 %v11080_v23  ;;  %v14823_v53 = vunpack.c.h.b16 %v11080_v23 }
  0xe6   :  { %v1860_v32 = vpop.f32.mrf.mxu2  ;;  %v1744_v4 = vpop.f32.mrf.mxu0 }
  0xe7   :  { %v1919_v38 = vpop.f32.mrf.mxu3  ;;  %v1861_v40 = vadd.f32 %v1860_v32, %v1802_v50  ;;  %v1803_v24 = vpop.f32.mrf.mxu1  ;;  %v11090_v50 = vld [vmem:[%s14690_s0 + $0x198] sm:$0xff]  ;;  %v15074_v32 = vunpack.c.l.b16 %v11085_v5 }
  0xe8   :  { %v1804_v52 = vadd.f32 %v1803_v24, %v1744_v4  ;;  %15073 = vst [vmem:[#allocation33_spill] sm:$0xff] %v11090_v50  ;;  %v15075_v4 = vunpack.c.l.b16 %v11090_v50  ;;  %v15077_v63 = vunpack.c.h.b16 %v11090_v50 }
  0xe9   :  { %v11092_v41 = vadd.f32 %v1919_v38, %v1861_v40  ;;  %v937_v38 = vpack.c.b16 %v14822_v1, %v14825_v34  ;;  %v938_v40 = vpack.c.b16 %v14823_v53, %v14824_v33 }
  0xea   :  { %v939_v24 = vpack.c.b16 %v15075_v4, %v15074_v32  ;;  %v940_v20 = vpack.c.b16 %v15077_v63, %v15076_v48  ;;  %v9884_v32 = vld [vmem:[%s14689_s1 + $0x5d8] sm:$0xff] }
  0xeb   :  { %2366 = vmatpush.bf16.msra.mxu3 %v9884_v32 }
  0xee   :  { %v1862_v39 = vpop.f32.mrf.mxu2  ;;  %v1747_v3 = vpop.f32.mrf.mxu0 }
  0xef   :  { %v1921_v25 = vpop.f32.mrf.mxu3  ;;  %v1863_v22 = vadd.f32 %v1862_v39, %v1804_v52  ;;  %v1806_v0 = vpop.f32.mrf.mxu1  ;;  %v9876_v39 = vld [vmem:[%s14689_s1 + $0x598] sm:$0xff] }
  0xf0   :  { %v1807_v26 = vadd.f32 %v1806_v0, %v1747_v3  ;;  %v9860_v52 = vld [vmem:[%s14689_s1 + $0x518] sm:$0xff]  ;;  %2307 = vmatpush.bf16.msra.mxu2 %v9876_v39  ;;  %v11137_v3 = vld [vmem:[%s14690_s0 + $0x1f0] sm:$0xff] }
  0xf1   :  { %v11118_v1 = vadd.f32 %v1921_v25, %v1863_v22  ;;  %1972 = vmatmul.bf16.gmra.mxu0 %v937_v38  ;;  %v11132_v25 = vld [vmem:[%s14690_s0 + $0x1c0] sm:$0xff]  ;;  %15079 = vst [vmem:[#allocation35_spill] sm:$0xff] %v11137_v3 }
  0xf2   :  { %2031 = vmatmul.bf16.gmra.mxu1 %v938_v40  ;;  %2189 = vmatpush.bf16.msra.mxu0 %v9860_v52  ;;  %15078 = vst [vmem:[#allocation34_spill] sm:$0xff] %v11132_v25  ;;  %v9868_v40 = vld [vmem:[%s14689_s1 + $0x558] sm:$0xff]  ;;  %v14841_v39 = vunpack.c.l.b16 %v11132_v25  ;;  %v14838_v52 = vunpack.c.l.b16 %v11137_v3  ;;  %v14840_v32 = vunpack.c.h.b16 %v11132_v25 }
  0xf3   :  { %2090 = vmatmul.bf16.gmra.mxu2 %v939_v24  ;;  %v11142_v24 = vld [vmem:[%s14690_s0 + $0x1c8] sm:$0xff]  ;;  %2248 = vmatpush.bf16.msra.mxu1 %v9868_v40 }
  0xf4   :  { %2149 = vmatmul.bf16.gmra.mxu3 %v940_v20  ;;  %15080 = vst [vmem:[#allocation36_spill] sm:$0xff] %v11142_v24  ;;  %v949_v34 = vpack.c.b16 %v14838_v52, %v14841_v39  ;;  %v15082_v53 = vunpack.c.l.b16 %v11142_v24  ;;  %v15084_v5 = vunpack.c.h.b16 %v11142_v24 }
  0xf6   :  { %v1865_v63 = vpop.f32.mrf.mxu2  ;;  %v1749_v22 = vpop.f32.mrf.mxu0 }
  0xf7   :  { %v1924_v0 = vpop.f32.mrf.mxu3  ;;  %v1866_v48 = vadd.f32 %v1865_v63, %v1807_v26  ;;  %v1808_v20 = vpop.f32.mrf.mxu1  ;;  %v11147_v26 = vld [vmem:[%s14690_s0 + $0x1f8] sm:$0xff]  ;;  %v14839_v63 = vunpack.c.h.b16 %v11137_v3 }
  0xf8   :  { %v1809_v4 = vadd.f32 %v1808_v20, %v1749_v22  ;;  %15081 = vst [vmem:[#allocation37_spill] sm:$0xff] %v11147_v26  ;;  %v15085_v54 = vunpack.c.h.b16 %v11147_v26 }
  0xf9   :  { %v11149_v38 = vadd.f32 %v1924_v0, %v1866_v48  ;;  %v950_v50 = vpack.c.b16 %v14839_v63, %v14840_v32  ;;  %v15083_v0 = vunpack.c.l.b16 %v11147_v26 }
  0xfa   :  { %v952_v56 = vpack.c.b16 %v15085_v54, %v15084_v5  ;;  %v11188_v54 = vld [vmem:[%s14690_s0 + $0x250] sm:$0xff] }
  0xfb   :  { %v951_v40 = vpack.c.b16 %v15083_v0, %v15082_v53  ;;  %v11183_v53 = vld [vmem:[%s14690_s0 + $0x220] sm:$0xff]  ;;  %15087 = vst [vmem:[#allocation39_spill] sm:$0xff] %v11188_v54  ;;  %v15092_v0 = vunpack.c.h.b16 %v11188_v54 }
  0xfc   :  { %15086 = vst [vmem:[#allocation38_spill] sm:$0xff] %v11183_v53  ;;  %v15091_v3 = vunpack.c.h.b16 %v11183_v53 }
  0xfe   :  { %v1867_v48 = vpop.f32.mrf.mxu2  ;;  %v1752_v23 = vpop.f32.mrf.mxu0 }
  0xff   :  { %v1926_v33 = vpop.f32.mrf.mxu3  ;;  %v1868_v22 = vadd.f32 %v1867_v48, %v1809_v4  ;;  %v1811_v20 = vpop.f32.mrf.mxu1 }
 0x100   :  { %v1812_v11 = vadd.f32 %v1811_v20, %v1752_v23  ;;  %v9867_v20 = vld [vmem:[%s14689_s1 + $0x550] sm:$0xff] }
 0x101   :  { %v11178_v52 = vadd.f32 %v1926_v33, %v1868_v22  ;;  %1977 = vmatmul.bf16.gmra.mxu0 %v949_v34  ;;  %v9859_v34 = vld [vmem:[%s14689_s1 + $0x510] sm:$0xff]  ;;  %2249 = vmatpush.bf16.msra.mxu1 %v9867_v20 }
 0x102   :  { %2036 = vmatmul.bf16.gmra.mxu1 %v950_v50  ;;  %v9875_v50 = vld [vmem:[%s14689_s1 + $0x590] sm:$0xff]  ;;  %2190 = vmatpush.bf16.msra.mxu0 %v9859_v34 }
 0x103   :  { %2095 = vmatmul.bf16.gmra.mxu2 %v951_v40  ;;  %v9883_v33 = vld [vmem:[%s14689_s1 + $0x5d0] sm:$0xff]  ;;  %v962_v40 = vpack.c.b16 %v15092_v0, %v15091_v3 }
 0x104   :  { %2154 = vmatmul.bf16.gmra.mxu3 %v952_v56  ;;  %v11193_v56 = vld [vmem:[%s14690_s0 + $0x228] sm:$0xff]  ;;  %2308 = vmatpush.bf16.msra.mxu2 %v9875_v50 }
 0x105   :  { %15088 = vst [vmem:[#allocation40_spill] sm:$0xff] %v11193_v56  ;;  %2367 = vmatpush.bf16.msra.mxu3 %v9883_v33  ;;  %v15093_v50 = vunpack.c.l.b16 %v11193_v56  ;;  %v15095_v20 = vunpack.c.h.b16 %v11193_v56 }
 0x106   :  { %v1870_v4 = vpop.f32.mrf.mxu2  ;;  %v1754_v32 = vpop.f32.mrf.mxu0 }
 0x107   :  { %v1929_v48 = vpop.f32.mrf.mxu3  ;;  %v1871_v63 = vadd.f32 %v1870_v4, %v1812_v11  ;;  %v1813_v39 = vpop.f32.mrf.mxu1  ;;  %v11198_v11 = vld [vmem:[%s14690_s0 + $0x258] sm:$0xff] }
 0x108   :  { %v1814_v23 = vadd.f32 %v1813_v39, %v1754_v32  ;;  %15089 = vst [vmem:[#allocation41_spill] sm:$0xff] %v11198_v11  ;;  %v14854_v39 = vunpack.c.l.b16 %v11183_v53  ;;  %v15094_v34 = vunpack.c.l.b16 %v11198_v11 }
 0x109   :  { %v11200_v5 = vadd.f32 %v1929_v48, %v1871_v63  ;;  %v14855_v48 = vunpack.c.h.b16 %v11198_v11  ;;  %v15090_v63 = vunpack.c.l.b16 %v11188_v54 }
 0x10a   :  { %v963_v33 = vpack.c.b16 %v15094_v34, %v15093_v50  ;;  %v11243_v50 = vld [vmem:[%s14690_s0 + $0x280] sm:$0xff] }
 0x10b   :  { %v961_v26 = vpack.c.b16 %v15090_v63, %v14854_v39  ;;  %v964_v62 = vpack.c.b16 %v14855_v48, %v15095_v20  ;;  %15096 = vst [vmem:[#allocation42_spill] sm:$0xff] %v11243_v50  ;;  %v15100_v20 = vunpack.c.h.b16 %v11243_v50 }
 0x10e   :  { %v1872_v32 = vpop.f32.mrf.mxu2  ;;  %v1757_v4 = vpop.f32.mrf.mxu0 }
 0x10f   :  { %v1931_v22 = vpop.f32.mrf.mxu3  ;;  %v1873_v24 = vadd.f32 %v1872_v32, %v1814_v23  ;;  %v1816_v25 = vpop.f32.mrf.mxu1 }
 0x110   :  { %v1817_v55 = vadd.f32 %v1816_v25, %v1757_v4  ;;  %v11248_v25 = vld [vmem:[%s14690_s0 + $0x2b0] sm:$0xff]  ;;  %v14869_v4 = vunpack.c.l.b16 %v11243_v50 }
 0x111   :  { %v11238_v63 = vadd.f32 %v1931_v22, %v1873_v24  ;;  %1982 = vmatmul.bf16.gmra.mxu0 %v961_v26  ;;  %15097 = vst [vmem:[#allocation43_spill] sm:$0xff] %v11248_v25  ;;  %v9874_v22 = vld [vmem:[%s14689_s1 + $0x588] sm:$0xff]  ;;  %v14868_v34 = vunpack.c.l.b16 %v11248_v25 }
 0x112   :  { %2041 = vmatmul.bf16.gmra.mxu1 %v962_v40  ;;  %v9882_v40 = vld [vmem:[%s14689_s1 + $0x5c8] sm:$0xff]  ;;  %2309 = vmatpush.bf16.msra.mxu2 %v9874_v22 }
 0x113   :  { %2100 = vmatmul.bf16.gmra.mxu2 %v963_v33  ;;  %2368 = vmatpush.bf16.msra.mxu3 %v9882_v40  ;;  %v973_v33 = vpack.c.b16 %v14868_v34, %v14869_v4 }
 0x114   :  { %2159 = vmatmul.bf16.gmra.mxu3 %v964_v62  ;;  %v11253_v62 = vld [vmem:[%s14690_s0 + $0x288] sm:$0xff] }
 0x115   :  { %15098 = vst [vmem:[#allocation44_spill] sm:$0xff] %v11253_v62  ;;  %v15104_v40 = vunpack.c.h.b16 %v11253_v62 }
 0x116   :  { %v1875_v3 = vpop.f32.mrf.mxu2  ;;  %v1759_v0 = vpop.f32.mrf.mxu0 }
 0x117   :  { %v1934_v23 = vpop.f32.mrf.mxu3  ;;  %v1876_v32 = vadd.f32 %v1875_v3, %v1817_v55  ;;  %v1818_v39 = vpop.f32.mrf.mxu1  ;;  %v11258_v55 = vld [vmem:[%s14690_s0 + $0x2b8] sm:$0xff]  ;;  %v15101_v3 = vunpack.c.h.b16 %v11248_v25 }
 0x118   :  { %v1819_v24 = vadd.f32 %v1818_v39, %v1759_v0  ;;  %15099 = vst [vmem:[#allocation45_spill] sm:$0xff] %v11258_v55  ;;  %v9858_v39 = vld [vmem:[%s14689_s1 + $0x508] sm:$0xff]  ;;  %v15102_v0 = vunpack.c.l.b16 %v11253_v62  ;;  %v15103_v22 = vunpack.c.l.b16 %v11258_v55  ;;  %v15105_v53 = vunpack.c.h.b16 %v11258_v55 }
 0x119   :  { %v11260_v26 = vadd.f32 %v1934_v23, %v1876_v32  ;;  %2191 = vmatpush.bf16.msra.mxu0 %v9858_v39  ;;  %v974_v54 = vpack.c.b16 %v15101_v3, %v15100_v20  ;;  %v9866_v20 = vld [vmem:[%s14689_s1 + $0x548] sm:$0xff] }
 0x11a   :  { %v975_v39 = vpack.c.b16 %v15103_v22, %v15102_v0  ;;  %v976_v42 = vpack.c.b16 %v15105_v53, %v15104_v40  ;;  %2250 = vmatpush.bf16.msra.mxu1 %v9866_v20  ;;  %v11303_v53 = vld [vmem:[%s14690_s0 + $0x2e0] sm:$0xff] }
 0x11b   :  { %15106 = vst [vmem:[#allocation46_spill] sm:$0xff] %v11303_v53 }
 0x11e   :  { %v1877_v48 = vpop.f32.mrf.mxu2  ;;  %v1762_v56 = vpop.f32.mrf.mxu0 }
 0x11f   :  { %v1936_v11 = vpop.f32.mrf.mxu3  ;;  %v1878_v23 = vadd.f32 %v1877_v48, %v1819_v24  ;;  %v1821_v32 = vpop.f32.mrf.mxu1 }
 0x120   :  { %v1822_v51 = vadd.f32 %v1821_v32, %v1762_v56  ;;  %v11308_v56 = vld [vmem:[%s14690_s0 + $0x310] sm:$0xff]  ;;  %v14884_v32 = vunpack.c.h.b16 %v11303_v53 }
 0x121   :  { %v11295_v34 = vadd.f32 %v1936_v11, %v1878_v23  ;;  %1987 = vmatmul.bf16.gmra.mxu0 %v973_v33  ;;  %15107 = vst [vmem:[#allocation47_spill] sm:$0xff] %v11308_v56  ;;  %v14885_v33 = vunpack.c.l.b16 %v11303_v53  ;;  %v14882_v23 = vunpack.c.l.b16 %v11308_v56 }
 0x122   :  { %2046 = vmatmul.bf16.gmra.mxu1 %v974_v54 }
 0x123   :  { %2105 = vmatmul.bf16.gmra.mxu2 %v975_v39  ;;  %v14883_v39 = vunpack.c.h.b16 %v11308_v56 }
 0x124   :  { %2164 = vmatmul.bf16.gmra.mxu3 %v976_v42  ;;  %v11313_v42 = vld [vmem:[%s14690_s0 + $0x2e8] sm:$0xff] }
 0x125   :  { %15108 = vst [vmem:[#allocation48_spill] sm:$0xff] %v11313_v42  ;;  %v15110_v20 = vunpack.c.l.b16 %v11313_v42  ;;  %v15112_v62 = vunpack.c.h.b16 %v11313_v42 }
 0x126   :  { %v1880_v48 = vpop.f32.mrf.mxu2  ;;  %v1764_v0 = vpop.f32.mrf.mxu0 }
 0x127   :  { %v1939_v24 = vpop.f32.mrf.mxu3  ;;  %v1881_v3 = vadd.f32 %v1880_v48, %v1822_v51  ;;  %v1823_v22 = vpop.f32.mrf.mxu1  ;;  %v11318_v51 = vld [vmem:[%s14690_s0 + $0x318] sm:$0xff] }
 0x128   :  { %v1824_v11 = vadd.f32 %v1823_v22, %v1764_v0  ;;  %15109 = vst [vmem:[#allocation49_spill] sm:$0xff] %v11318_v51  ;;  %v15111_v48 = vunpack.c.l.b16 %v11318_v51  ;;  %v15113_v50 = vunpack.c.h.b16 %v11318_v51 }
 0x129   :  { %v11320_v54 = vadd.f32 %v1939_v24, %v1881_v3  ;;  %v985_v24 = vpack.c.b16 %v14882_v23, %v14885_v33  ;;  %v986_v3 = vpack.c.b16 %v14883_v39, %v14884_v32  ;;  %v9873_v39 = vld [vmem:[%s14689_s1 + $0x580] sm:$0xff] }
 0x12a   :  { %v987_v0 = vpack.c.b16 %v15111_v48, %v15110_v20  ;;  %v988_v36 = vpack.c.b16 %v15113_v50, %v15112_v62  ;;  %v9881_v20 = vld [vmem:[%s14689_s1 + $0x5c0] sm:$0xff]  ;;  %2310 = vmatpush.bf16.msra.mxu2 %v9873_v39  ;;  %v11373_v39 = vld [vmem:[%s14690_s0 + $0x348] sm:$0xff] }
 0x12b   :  { %v9865_v50 = vld [vmem:[%s14689_s1 + $0x540] sm:$0xff]  ;;  %2369 = vmatpush.bf16.msra.mxu3 %v9881_v20  ;;  %15116 = vst [vmem:[#allocation52_spill] sm:$0xff] %v11373_v39  ;;  %v15120_v42 = vunpack.c.h.b16 %v11373_v39 }
 0x12c   :  { %2251 = vmatpush.bf16.msra.mxu1 %v9865_v50  ;;  %v11363_v48 = vld [vmem:[%s14690_s0 + $0x340] sm:$0xff] }
 0x12d   :  { %15114 = vst [vmem:[#allocation50_spill] sm:$0xff] %v11363_v48 }
 0x12e   :  { %v1882_v22 = vpop.f32.mrf.mxu2  ;;  %v1767_v40 = vpop.f32.mrf.mxu0 }
 0x12f   :  { %v1941_v4 = vpop.f32.mrf.mxu3  ;;  %v1883_v55 = vadd.f32 %v1882_v22, %v1824_v11  ;;  %v1826_v25 = vpop.f32.mrf.mxu1  ;;  %v9857_v11 = vld [vmem:[%s14689_s1 + $0x500] sm:$0xff] }
 0x130   :  { %v1827_v37 = vadd.f32 %v1826_v25, %v1767_v40  ;;  %2192 = vmatpush.bf16.msra.mxu0 %v9857_v11  ;;  %v14901_v11 = vunpack.c.h.b16 %v11363_v48 }
 0x131   :  { %v11346_v23 = vadd.f32 %v1941_v4, %v1883_v55  ;;  %1992 = vmatmul.bf16.gmra.mxu0 %v985_v24  ;;  %v14897_v24 = vunpack.c.l.b16 %v11363_v48 }
 0x132   :  { %2051 = vmatmul.bf16.gmra.mxu1 %v986_v3 }
 0x133   :  { %2110 = vmatmul.bf16.gmra.mxu2 %v987_v0 }
 0x134   :  { %2169 = vmatmul.bf16.gmra.mxu3 %v988_v36  ;;  %v11368_v36 = vld [vmem:[%s14690_s0 + $0x370] sm:$0xff] }
 0x135   :  { %15115 = vst [vmem:[#allocation51_spill] sm:$0xff] %v11368_v36  ;;  %v14896_v3 = vunpack.c.l.b16 %v11368_v36  ;;  %v14900_v20 = vunpack.c.h.b16 %v11368_v36 }
 0x136   :  { %v1885_v25 = vpop.f32.mrf.mxu2  ;;  %v1769_v4 = vpop.f32.mrf.mxu0 }
 0x137   :  { %v1944_v62 = vpop.f32.mrf.mxu3  ;;  %v1886_v55 = vadd.f32 %v1885_v25, %v1827_v37  ;;  %v1828_v40 = vpop.f32.mrf.mxu1  ;;  %v11378_v37 = vld [vmem:[%s14690_s0 + $0x378] sm:$0xff]  ;;  %v15118_v25 = vunpack.c.l.b16 %v11373_v39 }
 0x138   :  { %v1829_v0 = vadd.f32 %v1828_v40, %v1769_v4  ;;  %15117 = vst [vmem:[#allocation53_spill] sm:$0xff] %v11378_v37  ;;  %v15119_v4 = vunpack.c.l.b16 %v11378_v37  ;;  %v15121_v53 = vunpack.c.h.b16 %v11378_v37 }
 0x139   :  { %v11380_v22 = vadd.f32 %v1944_v62, %v1886_v55  ;;  %v997_v62 = vpack.c.b16 %v14896_v3, %v14897_v24  ;;  %v998_v55 = vpack.c.b16 %v14900_v20, %v14901_v11 }
 0x13a   :  { %v999_v40 = vpack.c.b16 %v15119_v4, %v15118_v25  ;;  %v1000_v49 = vpack.c.b16 %v15121_v53, %v15120_v42  ;;  %v9728_v53 = vld [vmem:[%s14689_s1 + $0xf8] sm:$0xff]  ;;  %v11430_v25 = vld [vmem:[%s14690_s0 + $0x3a8] sm:$0xff] }
 0x13b   :  { %3432 = vmatpush.bf16.msrb.mxu3 %v9728_v53  ;;  %15123 = vst [vmem:[#allocation55_spill] sm:$0xff] %v11430_v25  ;;  %v341_v4 = vld [vmem:[%s14690_s0 + $0x3d8] sm:$0xff]  ;;  %v14910_v53 = vunpack.c.l.b16 %v11430_v25 }
 0x13c   :  { %v892_v20 = vunpack.c.h.b16 %v341_v4 }
 0x13e   :  { %v1887_v32 = vpop.f32.mrf.mxu2  ;;  %v1958_v50 = vpop.f32.mrf.mxu0 }
 0x13f   :  { %v1946_v33 = vpop.f32.mrf.mxu3  ;;  %v1888_v51 = vadd.f32 %v1887_v32, %v1829_v0  ;;  %v2017_v56 = vpop.f32.mrf.mxu1  ;;  %v1959_v3 = vadd.f32 %v1958_v50, %v10873_v57  ;;  %v9720_v32 = vld [vmem:[%s14689_s1 + $0xb8] sm:$0xff] }
 0x140   :  { %v9704_v0 = vld [vmem:[%s14689_s1 + $0x38] sm:$0xff]  ;;  %3373 = vmatpush.bf16.msrb.mxu2 %v9720_v32 }
 0x141   :  { %v11407_v24 = vadd.f32 %v1946_v33, %v1888_v51  ;;  %v2018_v48 = vadd.f32 %v2017_v56, %v1959_v3  ;;  %1997 = vmatmul.bf16.gmra.mxu0 %v997_v62  ;;  %v340_v3 = vld [vmem:[%s14690_s0 + $0x3d0] sm:$0xff]  ;;  %v9712_v62 = vld [vmem:[%s14689_s1 + $0x78] sm:$0xff] }
 0x142   :  { %2056 = vmatmul.bf16.gmra.mxu1 %v998_v55  ;;  %3255 = vmatpush.bf16.msrb.mxu0 %v9704_v0  ;;  %v889_v32 = vunpack.c.l.b16 %v340_v3  ;;  %v890_v0 = vunpack.c.h.b16 %v340_v3 }
 0x143   :  { %2115 = vmatmul.bf16.gmra.mxu2 %v999_v40  ;;  %3314 = vmatpush.bf16.msrb.mxu1 %v9712_v62 }
 0x144   :  { %2174 = vmatmul.bf16.gmra.mxu3 %v1000_v49  ;;  %v11421_v49 = vld [vmem:[%s14690_s0 + $0x3a0] sm:$0xff] }
 0x145   :  { %15122 = vst [vmem:[#allocation54_spill] sm:$0xff] %v11421_v49 }
 0x146   :  { %v2076_v57 = vpop.f32.mrf.mxu2  ;;  %v1960_v51 = vpop.f32.mrf.mxu0 }
 0x147   :  { %v2135_v56 = vpop.f32.mrf.mxu3  ;;  %v2077_v42 = vadd.f32 %v2076_v57, %v2018_v48  ;;  %v2019_v33 = vpop.f32.mrf.mxu1  ;;  %v1961_v50 = vadd.f32 %v1960_v51, %v10890_v19  ;;  %v14913_v48 = vunpack.c.l.b16 %v11421_v49  ;;  %v14912_v19 = vunpack.c.h.b16 %v11421_v49 }
 0x148   :  { %v891_v57 = vunpack.c.l.b16 %v341_v4  ;;  %v14911_v51 = vunpack.c.h.b16 %v11430_v25 }
 0x149   :  { %v11435_v40 = vadd.f32 %v2135_v56, %v2077_v42  ;;  %v2020_v55 = vadd.f32 %v2019_v33, %v1961_v50  ;;  %v1009_v11 = vpack.c.b16 %v889_v32, %v14913_v48  ;;  %v1010_v37 = vpack.c.b16 %v890_v0, %v14912_v19 }
 0x14a   :  { %v1011_v3 = vpack.c.b16 %v891_v57, %v14910_v53  ;;  %v1012_v39 = vpack.c.b16 %v892_v20, %v14911_v51  ;;  %v9719_v20 = vld [vmem:[%s14689_s1 + $0xb0] sm:$0xff] }
 0x14b   :  { %3374 = vmatpush.bf16.msrb.mxu2 %v9719_v20 }
 0x14e   :  { %v2078_v56 = vpop.f32.mrf.mxu2  ;;  %v1963_v50 = vpop.f32.mrf.mxu0 }
 0x14f   :  { %v2137_v42 = vpop.f32.mrf.mxu3  ;;  %v2079_v33 = vadd.f32 %v2078_v56, %v2020_v55  ;;  %v2022_v36 = vpop.f32.mrf.mxu1  ;;  %v1964_v4 = vadd.f32 %v1963_v50, %v10912_v2  ;;  %v11458_v55 = vld [vmem:[%s14690_s0 + $0x50] sm:$0xff]  ;;  %v11463_v2 = vld [vmem:[%s14690_s0 + $0x80] sm:$0xff] }
 0x150   :  { %15124 = vst [vmem:[#allocation56_spill] sm:$0xff] %v11458_v55  ;;  %v14920_v50 = vunpack.c.h.b16 %v11463_v2 }
 0x151   :  { %v11453_v62 = vadd.f32 %v2137_v42, %v2079_v33  ;;  %v2023_v9 = vadd.f32 %v2022_v36, %v1964_v4  ;;  %2002 = vmatmul.bf16.gmra.mxu0 %v1009_v11  ;;  %15125 = vst [vmem:[#allocation57_spill] sm:$0xff] %v11463_v2  ;;  %v14917_v11 = vunpack.c.l.b16 %v11458_v55  ;;  %v14921_v33 = vunpack.c.h.b16 %v11458_v55  ;;  %v9727_v4 = vld [vmem:[%s14689_s1 + $0xf0] sm:$0xff] }
 0x152   :  { %2061 = vmatmul.bf16.gmra.mxu1 %v1010_v37  ;;  %v11474_v37 = vld [vmem:[%s14690_s0 + $0x88] sm:$0xff]  ;;  %3433 = vmatpush.bf16.msrb.mxu3 %v9727_v4 }
 0x153   :  { %2120 = vmatmul.bf16.gmra.mxu2 %v1011_v3  ;;  %15127 = vst [vmem:[#allocation59_spill] sm:$0xff] %v11474_v37  ;;  %v9703_v3 = vld [vmem:[%s14689_s1 + $0x30] sm:$0xff]  ;;  %v906_v48 = vpack.c.b16 %v14920_v50, %v14921_v33 }
 0x154   :  { %2179 = vmatmul.bf16.gmra.mxu3 %v1012_v39  ;;  %v11469_v39 = vld [vmem:[%s14690_s0 + $0x58] sm:$0xff]  ;;  %3256 = vmatpush.bf16.msrb.mxu0 %v9703_v3  ;;  %v15129_v3 = vunpack.c.l.b16 %v11474_v37 }
 0x155   :  { %15126 = vst [vmem:[#allocation58_spill] sm:$0xff] %v11469_v39  ;;  %v15128_v20 = vunpack.c.l.b16 %v11469_v39 }
 0x156   :  { %v2081_v32 = vpop.f32.mrf.mxu2  ;;  %v1965_v56 = vpop.f32.mrf.mxu0 }
 0x157   :  { %v2140_v0 = vpop.f32.mrf.mxu3  ;;  %v2082_v57 = vadd.f32 %v2081_v32, %v2023_v9  ;;  %v2024_v53 = vpop.f32.mrf.mxu1  ;;  %v1966_v36 = vadd.f32 %v1965_v56, %v10950_v7  ;;  %v14916_v7 = vunpack.c.l.b16 %v11463_v2  ;;  %v9711_v32 = vld [vmem:[%s14689_s1 + $0x70] sm:$0xff]  ;;  %v14922_v56 = vunpack.c.h.b16 %v11474_v37 }
 0x158   :  { %3315 = vmatpush.bf16.msrb.mxu1 %v9711_v32  ;;  %v907_v4 = vpack.c.b16 %v15129_v3, %v15128_v20  ;;  %v15130_v32 = vunpack.c.h.b16 %v11469_v39  ;;  %v11520_v20 = vld [vmem:[%s14690_s0 + $0xb0] sm:$0xff] }
 0x159   :  { %v11476_v9 = vadd.f32 %v2140_v0, %v2082_v57  ;;  %v2025_v42 = vadd.f32 %v2024_v53, %v1966_v36  ;;  %v905_v19 = vpack.c.b16 %v14916_v7, %v14917_v11  ;;  %15131 = vst [vmem:[#allocation60_spill] sm:$0xff] %v11520_v20 }
 0x15a   :  { %v908_v25 = vpack.c.b16 %v14922_v56, %v15130_v32 }
 0x15e   :  { %v2083_v36 = vpop.f32.mrf.mxu2  ;;  %v1968_v57 = vpop.f32.mrf.mxu0 }
 0x15f   :  { %v2142_v51 = vpop.f32.mrf.mxu3  ;;  %v2084_v0 = vadd.f32 %v2083_v36, %v2025_v42  ;;  %v2027_v53 = vpop.f32.mrf.mxu1  ;;  %v1969_v7 = vadd.f32 %v1968_v57, %v10972_v21  ;;  %v11525_v21 = vld [vmem:[%s14690_s0 + $0xe0] sm:$0xff]  ;;  %v9702_v57 = vld [vmem:[%s14689_s1 + $0x28] sm:$0xff] }
 0x160   :  { %15132 = vst [vmem:[#allocation61_spill] sm:$0xff] %v11525_v21  ;;  %3257 = vmatpush.bf16.msrb.mxu0 %v9702_v57 }
 0x161   :  { %v11515_v11 = vadd.f32 %v2142_v51, %v2084_v0  ;;  %v2028_v55 = vadd.f32 %v2027_v53, %v1969_v7  ;;  %2193 = vmatmul.bf16.vlgmr.msra.gmra.mxu0 %v905_v19  ;;  %v14929_v53 = vunpack.c.l.b16 %v11525_v21  ;;  %v14932_v0 = vunpack.c.h.b16 %v11520_v20 }
 0x162   :  { %2252 = vmatmul.bf16.vlgmr.msra.gmra.mxu1 %v906_v48  ;;  %v11536_v48 = vld [vmem:[%s14690_s0 + $0xe8] sm:$0xff] }
 0x163   :  { %2311 = vmatmul.bf16.vlgmr.msra.gmra.mxu2 %v907_v4  ;;  %15134 = vst [vmem:[#allocation63_spill] sm:$0xff] %v11536_v48  ;;  %v9726_v4 = vld [vmem:[%s14689_s1 + $0xe8] sm:$0xff]  ;;  %v15138_v2 = vunpack.c.h.b16 %v11536_v48 }
 0x164   :  { %2370 = vmatmul.bf16.vlgmr.msra.gmra.mxu3 %v908_v25  ;;  %v11531_v25 = vld [vmem:[%s14690_s0 + $0xb8] sm:$0xff] }
 0x165   :  { %15133 = vst [vmem:[#allocation62_spill] sm:$0xff] %v11531_v25  ;;  %3434 = vmatpush.bf16.msrb.mxu3 %v9726_v4  ;;  %v15137_v4 = vunpack.c.h.b16 %v11531_v25 }
 0x166   :  { %v2086_v42 = vpop.f32.mrf.mxu2  ;;  %v1970_v50 = vpop.f32.mrf.mxu0 }
 0x167   :  { %v2145_v36 = vpop.f32.mrf.mxu3  ;;  %v2087_v3 = vadd.f32 %v2086_v42, %v2028_v55  ;;  %v2029_v33 = vpop.f32.mrf.mxu1  ;;  %v1971_v19 = vadd.f32 %v1970_v50, %v11007_v6  ;;  %v14930_v55 = vunpack.c.l.b16 %v11520_v20  ;;  %v14931_v6 = vunpack.c.h.b16 %v11525_v21  ;;  %v9718_v50 = vld [vmem:[%s14689_s1 + $0xa8] sm:$0xff] }
 0x168   :  { %3375 = vmatpush.bf16.msrb.mxu2 %v9718_v50  ;;  %v15136_v50 = vunpack.c.l.b16 %v11536_v48  ;;  %v920_v39 = vpack.c.b16 %v15138_v2, %v15137_v4  ;;  %v11582_v2 = vld [vmem:[%s14690_s0 + $0x110] sm:$0xff] }
 0x169   :  { %v11538_v51 = vadd.f32 %v2145_v36, %v2087_v3  ;;  %v2030_v7 = vadd.f32 %v2029_v33, %v1971_v19  ;;  %v917_v56 = vpack.c.b16 %v14929_v53, %v14930_v55  ;;  %v918_v33 = vpack.c.b16 %v14931_v6, %v14932_v0  ;;  %15139 = vst [vmem:[#allocation64_spill] sm:$0xff] %v11582_v2 }
 0x16a   :  { %v15135_v36 = vunpack.c.l.b16 %v11531_v25 }
 0x16c   :  { %v919_v57 = vpack.c.b16 %v15136_v50, %v15135_v36 }
 0x16e   :  { %v2088_v3 = vpop.f32.mrf.mxu2  ;;  %v1973_v37 = vpop.f32.mrf.mxu0 }
 0x16f   :  { %v2147_v19 = vpop.f32.mrf.mxu3  ;;  %v2089_v32 = vadd.f32 %v2088_v3, %v2030_v7  ;;  %v2032_v42 = vpop.f32.mrf.mxu1  ;;  %v1974_v53 = vadd.f32 %v1973_v37, %v11032_v35  ;;  %v9710_v7 = vld [vmem:[%s14689_s1 + $0x68] sm:$0xff] }
 0x170   :  { %3316 = vmatpush.bf16.msrb.mxu1 %v9710_v7  ;;  %v14944_v7 = vunpack.c.h.b16 %v11582_v2 }
 0x171   :  { %v11574_v55 = vadd.f32 %v2147_v19, %v2089_v32  ;;  %v2033_v3 = vadd.f32 %v2032_v42, %v1974_v53  ;;  %2198 = vmatmul.bf16.gmra.mxu0 %v917_v56  ;;  %v11587_v19 = vld [vmem:[%s14690_s0 + $0x140] sm:$0xff]  ;;  %v11598_v53 = vld [vmem:[%s14690_s0 + $0x148] sm:$0xff]  ;;  %v14942_v42 = vunpack.c.l.b16 %v11582_v2 }
 0x172   :  { %2257 = vmatmul.bf16.gmra.mxu1 %v918_v33  ;;  %15140 = vst [vmem:[#allocation65_spill] sm:$0xff] %v11587_v19  ;;  %v14941_v4 = vunpack.c.l.b16 %v11587_v19  ;;  %v15146_v25 = vunpack.c.h.b16 %v11598_v53 }
 0x173   :  { %2316 = vmatmul.bf16.gmra.mxu2 %v919_v57  ;;  %15142 = vst [vmem:[#allocation67_spill] sm:$0xff] %v11598_v53 }
 0x174   :  { %2375 = vmatmul.bf16.gmra.mxu3 %v920_v39  ;;  %v11593_v39 = vld [vmem:[%s14690_s0 + $0x118] sm:$0xff] }
 0x175   :  { %15141 = vst [vmem:[#allocation66_spill] sm:$0xff] %v11593_v39  ;;  %v15145_v21 = vunpack.c.h.b16 %v11593_v39 }
 0x176   :  { %v2091_v36 = vpop.f32.mrf.mxu2  ;;  %v1975_v37 = vpop.f32.mrf.mxu0 }
 0x177   :  { %v2150_v50 = vpop.f32.mrf.mxu3  ;;  %v2092_v35 = vadd.f32 %v2091_v36, %v2033_v3  ;;  %v2034_v32 = vpop.f32.mrf.mxu1  ;;  %v1976_v56 = vadd.f32 %v1975_v37, %v11058_v43  ;;  %v14943_v43 = vunpack.c.h.b16 %v11587_v19  ;;  %v15143_v36 = vunpack.c.l.b16 %v11593_v39 }
 0x178   :  { %v15144_v37 = vunpack.c.l.b16 %v11598_v53  ;;  %v932_v20 = vpack.c.b16 %v15146_v25, %v15145_v21 }
 0x179   :  { %v11600_v33 = vadd.f32 %v2150_v50, %v2092_v35  ;;  %v2035_v57 = vadd.f32 %v2034_v32, %v1976_v56  ;;  %v929_v35 = vpack.c.b16 %v14941_v4, %v14942_v42  ;;  %v930_v32 = vpack.c.b16 %v14943_v43, %v14944_v7 }
 0x17a   :  { %v931_v6 = vpack.c.b16 %v15144_v37, %v15143_v36  ;;  %v9701_v36 = vld [vmem:[%s14689_s1 + $0x20] sm:$0xff] }
 0x17b   :  { %v9725_v37 = vld [vmem:[%s14689_s1 + $0xe0] sm:$0xff]  ;;  %3258 = vmatpush.bf16.msrb.mxu0 %v9701_v36 }
 0x17c   :  { %3435 = vmatpush.bf16.msrb.mxu3 %v9725_v37 }
 0x17e   :  { %v2093_v0 = vpop.f32.mrf.mxu2  ;;  %v1978_v3 = vpop.f32.mrf.mxu0 }
 0x17f   :  { %v2152_v50 = vpop.f32.mrf.mxu3  ;;  %v2094_v56 = vadd.f32 %v2093_v0, %v2035_v57  ;;  %v2037_v48 = vpop.f32.mrf.mxu1  ;;  %v1979_v4 = vadd.f32 %v1978_v3, %v11092_v41  ;;  %v9717_v0 = vld [vmem:[%s14689_s1 + $0xa0] sm:$0xff] }
 0x180   :  { %v9709_v41 = vld [vmem:[%s14689_s1 + $0x60] sm:$0xff]  ;;  %3376 = vmatpush.bf16.msrb.mxu2 %v9717_v0 }
 0x181   :  { %v11627_v42 = vadd.f32 %v2152_v50, %v2094_v56  ;;  %v2038_v57 = vadd.f32 %v2037_v48, %v1979_v4  ;;  %2203 = vmatmul.bf16.gmra.mxu0 %v929_v35  ;;  %3317 = vmatpush.bf16.msrb.mxu1 %v9709_v41  ;;  %v11644_v48 = vld [vmem:[%s14690_s0 + $0x170] sm:$0xff]  ;;  %v11655_v35 = vld [vmem:[%s14690_s0 + $0x178] sm:$0xff] }
 0x182   :  { %2262 = vmatmul.bf16.gmra.mxu1 %v930_v32  ;;  %15147 = vst [vmem:[#allocation68_spill] sm:$0xff] %v11644_v48  ;;  %v11660_v32 = vld [vmem:[%s14690_s0 + $0x1a8] sm:$0xff]  ;;  %v14954_v0 = vunpack.c.l.b16 %v11644_v48  ;;  %v14958_v37 = vunpack.c.h.b16 %v11644_v48  ;;  %v15153_v19 = vunpack.c.h.b16 %v11655_v35 }
 0x183   :  { %2321 = vmatmul.bf16.gmra.mxu2 %v931_v6  ;;  %15149 = vst [vmem:[#allocation70_spill] sm:$0xff] %v11655_v35  ;;  %v15154_v39 = vunpack.c.h.b16 %v11660_v32 }
 0x184   :  { %2380 = vmatmul.bf16.gmra.mxu3 %v932_v20  ;;  %v11649_v20 = vld [vmem:[%s14690_s0 + $0x1a0] sm:$0xff]  ;;  %15150 = vst [vmem:[#allocation71_spill] sm:$0xff] %v11660_v32 }
 0x185   :  { %15148 = vst [vmem:[#allocation69_spill] sm:$0xff] %v11649_v20  ;;  %v14953_v36 = vunpack.c.l.b16 %v11649_v20  ;;  %v944_v2 = vpack.c.b16 %v15154_v39, %v15153_v19  ;;  %v9724_v19 = vld [vmem:[%s14689_s1 + $0xd8] sm:$0xff] }
 0x186   :  { %v2096_v21 = vpop.f32.mrf.mxu2  ;;  %v1980_v3 = vpop.f32.mrf.mxu0  ;;  %3436 = vmatpush.bf16.msrb.mxu3 %v9724_v19 }
 0x187   :  { %v2155_v25 = vpop.f32.mrf.mxu3  ;;  %v2097_v4 = vadd.f32 %v2096_v21, %v2038_v57  ;;  %v2039_v50 = vpop.f32.mrf.mxu1  ;;  %v1981_v6 = vadd.f32 %v1980_v3, %v11118_v1  ;;  %v14957_v1 = vunpack.c.h.b16 %v11649_v20  ;;  %v15151_v21 = vunpack.c.l.b16 %v11655_v35 }
 0x188   :  { %v15152_v3 = vunpack.c.l.b16 %v11660_v32 }
 0x189   :  { %v11662_v56 = vadd.f32 %v2155_v25, %v2097_v4  ;;  %v2040_v57 = vadd.f32 %v2039_v50, %v1981_v6  ;;  %v941_v4 = vpack.c.b16 %v14953_v36, %v14954_v0  ;;  %v942_v50 = vpack.c.b16 %v14957_v1, %v14958_v37 }
 0x18a   :  { %v943_v43 = vpack.c.b16 %v15152_v3, %v15151_v21  ;;  %v11714_v3 = vld [vmem:[%s14690_s0 + $0x1d8] sm:$0xff] }
 0x18b   :  { %15157 = vst [vmem:[#allocation74_spill] sm:$0xff] %v11714_v3  ;;  %v15161_v32 = vunpack.c.h.b16 %v11714_v3 }
 0x18e   :  { %v2098_v7 = vpop.f32.mrf.mxu2  ;;  %v1983_v41 = vpop.f32.mrf.mxu0 }
 0x18f   :  { %v2157_v25 = vpop.f32.mrf.mxu3  ;;  %v2099_v6 = vadd.f32 %v2098_v7, %v2040_v57  ;;  %v2042_v53 = vpop.f32.mrf.mxu1  ;;  %v1984_v36 = vadd.f32 %v1983_v41, %v11149_v38  ;;  %v9716_v7 = vld [vmem:[%s14689_s1 + $0x98] sm:$0xff]  ;;  %v11708_v41 = vld [vmem:[%s14690_s0 + $0x200] sm:$0xff] }
 0x190   :  { %v9700_v57 = vld [vmem:[%s14689_s1 + $0x18] sm:$0xff]  ;;  %3377 = vmatpush.bf16.msrb.mxu2 %v9716_v7  ;;  %15156 = vst [vmem:[#allocation73_spill] sm:$0xff] %v11708_v41 }
 0x191   :  { %v11689_v0 = vadd.f32 %v2157_v25, %v2099_v6  ;;  %v2043_v48 = vadd.f32 %v2042_v53, %v1984_v36  ;;  %2208 = vmatmul.bf16.gmra.mxu0 %v941_v4  ;;  %v11719_v25 = vld [vmem:[%s14690_s0 + $0x208] sm:$0xff] }
 0x192   :  { %2267 = vmatmul.bf16.gmra.mxu1 %v942_v50  ;;  %3259 = vmatpush.bf16.msrb.mxu0 %v9700_v57  ;;  %15158 = vst [vmem:[#allocation75_spill] sm:$0xff] %v11719_v25  ;;  %v9708_v50 = vld [vmem:[%s14689_s1 + $0x58] sm:$0xff]  ;;  %v14969_v57 = vunpack.c.h.b16 %v11708_v41  ;;  %v15162_v20 = vunpack.c.h.b16 %v11719_v25 }
 0x193   :  { %2326 = vmatmul.bf16.gmra.mxu2 %v943_v43  ;;  %3318 = vmatpush.bf16.msrb.mxu1 %v9708_v50 }
 0x194   :  { %2385 = vmatmul.bf16.gmra.mxu3 %v944_v2  ;;  %v11703_v2 = vld [vmem:[%s14690_s0 + $0x1d0] sm:$0xff]  ;;  %v956_v35 = vpack.c.b16 %v15162_v20, %v15161_v32  ;;  %v11772_v32 = vld [vmem:[%s14690_s0 + $0x268] sm:$0xff] }
 0x195   :  { %15155 = vst [vmem:[#allocation72_spill] sm:$0xff] %v11703_v2  ;;  %v14966_v4 = vunpack.c.l.b16 %v11703_v2  ;;  %v14970_v7 = vunpack.c.h.b16 %v11703_v2 }
 0x196   :  { %v2101_v38 = vpop.f32.mrf.mxu2  ;;  %v1985_v43 = vpop.f32.mrf.mxu0  ;;  %15166 = vst [vmem:[#allocation79_spill] sm:$0xff] %v11772_v32 }
 0x197   :  { %v2160_v39 = vpop.f32.mrf.mxu3  ;;  %v2102_v53 = vadd.f32 %v2101_v38, %v2043_v48  ;;  %v2044_v36 = vpop.f32.mrf.mxu1  ;;  %v1986_v21 = vadd.f32 %v1985_v43, %v11178_v52  ;;  %v14965_v52 = vunpack.c.l.b16 %v11708_v41 }
 0x199   :  { %v11721_v48 = vadd.f32 %v2160_v39, %v2102_v53  ;;  %v2045_v6 = vadd.f32 %v2044_v36, %v1986_v21  ;;  %v953_v36 = vpack.c.b16 %v14965_v52, %v14966_v4  ;;  %v954_v21 = vpack.c.b16 %v14969_v57, %v14970_v7 }
 0x19a   :  { %v15159_v39 = vunpack.c.l.b16 %v11714_v3  ;;  %v15160_v53 = vunpack.c.l.b16 %v11719_v25 }
 0x19c   :  { %v955_v50 = vpack.c.b16 %v15160_v53, %v15159_v39  ;;  %v11756_v39 = vld [vmem:[%s14690_s0 + $0x230] sm:$0xff] }
 0x19d   :  { %15163 = vst [vmem:[#allocation76_spill] sm:$0xff] %v11756_v39 }
 0x19e   :  { %v2103_v43 = vpop.f32.mrf.mxu2  ;;  %v1988_v19 = vpop.f32.mrf.mxu0 }
 0x19f   :  { %v2162_v1 = vpop.f32.mrf.mxu3  ;;  %v2104_v37 = vadd.f32 %v2103_v43, %v2045_v6  ;;  %v2047_v38 = vpop.f32.mrf.mxu1  ;;  %v1989_v52 = vadd.f32 %v1988_v19, %v11200_v5  ;;  %v11761_v5 = vld [vmem:[%s14690_s0 + $0x260] sm:$0xff] }
 0x1a0   :  { %15164 = vst [vmem:[#allocation77_spill] sm:$0xff] %v11761_v5 }
 0x1a1   :  { %v11751_v4 = vadd.f32 %v2162_v1, %v2104_v37  ;;  %v2048_v2 = vadd.f32 %v2047_v38, %v1989_v52  ;;  %2213 = vmatmul.bf16.gmra.mxu0 %v953_v36  ;;  %v14978_v1 = vunpack.c.l.b16 %v11756_v39  ;;  %v9699_v38 = vld [vmem:[%s14689_s1 + $0x10] sm:$0xff] }
 0x1a2   :  { %2272 = vmatmul.bf16.gmra.mxu1 %v954_v21  ;;  %v9723_v36 = vld [vmem:[%s14689_s1 + $0xd0] sm:$0xff]  ;;  %3260 = vmatpush.bf16.msrb.mxu0 %v9699_v38  ;;  %v15169_v38 = vunpack.c.l.b16 %v11772_v32 }
 0x1a3   :  { %2331 = vmatmul.bf16.gmra.mxu2 %v955_v50  ;;  %v9707_v21 = vld [vmem:[%s14689_s1 + $0x50] sm:$0xff]  ;;  %3437 = vmatpush.bf16.msrb.mxu3 %v9723_v36 }
 0x1a4   :  { %2390 = vmatmul.bf16.gmra.mxu3 %v956_v35  ;;  %v11767_v35 = vld [vmem:[%s14690_s0 + $0x238] sm:$0xff]  ;;  %3319 = vmatpush.bf16.msrb.mxu1 %v9707_v21 }
 0x1a5   :  { %15165 = vst [vmem:[#allocation78_spill] sm:$0xff] %v11767_v35  ;;  %v15170_v21 = vunpack.c.h.b16 %v11767_v35 }
 0x1a6   :  { %v2106_v6 = vpop.f32.mrf.mxu2  ;;  %v1990_v57 = vpop.f32.mrf.mxu0 }
 0x1a7   :  { %v2165_v43 = vpop.f32.mrf.mxu3  ;;  %v2107_v53 = vadd.f32 %v2106_v6, %v2048_v2  ;;  %v2049_v7 = vpop.f32.mrf.mxu1  ;;  %v1991_v20 = vadd.f32 %v1990_v57, %v11238_v63  ;;  %v9715_v2 = vld [vmem:[%s14689_s1 + $0x90] sm:$0xff]  ;;  %v14977_v63 = vunpack.c.l.b16 %v11761_v5  ;;  %v14981_v57 = vunpack.c.h.b16 %v11756_v39 }
 0x1a8   :  { %3378 = vmatpush.bf16.msrb.mxu2 %v9715_v2  ;;  %v15168_v2 = vunpack.c.l.b16 %v11767_v35 }
 0x1a9   :  { %v11774_v37 = vadd.f32 %v2165_v43, %v2107_v53  ;;  %v2050_v52 = vadd.f32 %v2049_v7, %v1991_v20  ;;  %v14982_v43 = vunpack.c.h.b16 %v11772_v32  ;;  %v965_v19 = vpack.c.b16 %v14977_v63, %v14978_v1 }
 0x1aa   :  { %v15167_v7 = vunpack.c.h.b16 %v11761_v5  ;;  %v967_v36 = vpack.c.b16 %v15169_v38, %v15168_v2 }
 0x1ab   :  { %v968_v3 = vpack.c.b16 %v14982_v43, %v15170_v21  ;;  %v9722_v21 = vld [vmem:[%s14689_s1 + $0xc8] sm:$0xff] }
 0x1ac   :  { %v966_v50 = vpack.c.b16 %v15167_v7, %v14981_v57  ;;  %3438 = vmatpush.bf16.msrb.mxu3 %v9722_v21 }
 0x1ae   :  { %v2108_v53 = vpop.f32.mrf.mxu2  ;;  %v1993_v6 = vpop.f32.mrf.mxu0 }
 0x1af   :  { %v2167_v20 = vpop.f32.mrf.mxu3  ;;  %v2109_v25 = vadd.f32 %v2108_v53, %v2050_v52  ;;  %v2052_v41 = vpop.f32.mrf.mxu1  ;;  %v1994_v63 = vadd.f32 %v1993_v6, %v11260_v26  ;;  %v11818_v53 = vld [vmem:[%s14690_s0 + $0x290] sm:$0xff]  ;;  %v11823_v26 = vld [vmem:[%s14690_s0 + $0x2c0] sm:$0xff] }
 0x1b0   :  { %15171 = vst [vmem:[#allocation80_spill] sm:$0xff] %v11818_v53  ;;  %v14992_v6 = vunpack.c.h.b16 %v11818_v53 }
 0x1b1   :  { %v11813_v1 = vadd.f32 %v2167_v20, %v2109_v25  ;;  %v2053_v39 = vadd.f32 %v2052_v41, %v1994_v63  ;;  %2218 = vmatmul.bf16.gmra.mxu0 %v965_v19  ;;  %15172 = vst [vmem:[#allocation81_spill] sm:$0xff] %v11823_v26  ;;  %v11834_v25 = vld [vmem:[%s14690_s0 + $0x2c8] sm:$0xff]  ;;  %v14990_v63 = vunpack.c.l.b16 %v11818_v53 }
 0x1b2   :  { %2277 = vmatmul.bf16.gmra.mxu1 %v966_v50  ;;  %15174 = vst [vmem:[#allocation83_spill] sm:$0xff] %v11834_v25  ;;  %v14989_v50 = vunpack.c.l.b16 %v11823_v26  ;;  %v9714_v20 = vld [vmem:[%s14689_s1 + $0x88] sm:$0xff]  ;;  %v15178_v5 = vunpack.c.h.b16 %v11834_v25 }
 0x1b3   :  { %2336 = vmatmul.bf16.gmra.mxu2 %v967_v36  ;;  %v9698_v36 = vld [vmem:[%s14689_s1 + $0x8] sm:$0xff] }
 0x1b4   :  { %2395 = vmatmul.bf16.gmra.mxu3 %v968_v3  ;;  %v11829_v3 = vld [vmem:[%s14690_s0 + $0x298] sm:$0xff]  ;;  %3379 = vmatpush.bf16.msrb.mxu2 %v9714_v20  ;;  %v977_v43 = vpack.c.b16 %v14989_v50, %v14990_v63  ;;  %v15176_v20 = vunpack.c.l.b16 %v11834_v25 }
 0x1b5   :  { %15173 = vst [vmem:[#allocation82_spill] sm:$0xff] %v11829_v3  ;;  %3261 = vmatpush.bf16.msrb.mxu0 %v9698_v36  ;;  %v15177_v21 = vunpack.c.h.b16 %v11829_v3 }
 0x1b6   :  { %v2111_v52 = vpop.f32.mrf.mxu2  ;;  %v1995_v38 = vpop.f32.mrf.mxu0 }
 0x1b7   :  { %v2170_v7 = vpop.f32.mrf.mxu3  ;;  %v2112_v2 = vadd.f32 %v2111_v52, %v2053_v39  ;;  %v2054_v57 = vpop.f32.mrf.mxu1  ;;  %v1996_v41 = vadd.f32 %v1995_v38, %v11295_v34  ;;  %v14991_v34 = vunpack.c.h.b16 %v11823_v26  ;;  %v980_v35 = vpack.c.b16 %v15178_v5, %v15177_v21  ;;  %v11880_v5 = vld [vmem:[%s14690_s0 + $0x2f0] sm:$0xff] }
 0x1b8   :  { %15179 = vst [vmem:[#allocation84_spill] sm:$0xff] %v11880_v5 }
 0x1b9   :  { %v11836_v39 = vadd.f32 %v2170_v7, %v2112_v2  ;;  %v2055_v19 = vadd.f32 %v2054_v57, %v1996_v41  ;;  %v978_v57 = vpack.c.b16 %v14991_v34, %v14992_v6  ;;  %v15175_v2 = vunpack.c.l.b16 %v11829_v3 }
 0x1bb   :  { %v979_v36 = vpack.c.b16 %v15176_v20, %v15175_v2 }
 0x1be   :  { %v2113_v38 = vpop.f32.mrf.mxu2  ;;  %v1998_v32 = vpop.f32.mrf.mxu0 }
 0x1bf   :  { %v2172_v41 = vpop.f32.mrf.mxu3  ;;  %v2114_v52 = vadd.f32 %v2113_v38, %v2055_v19  ;;  %v2057_v7 = vpop.f32.mrf.mxu1  ;;  %v1999_v50 = vadd.f32 %v1998_v32, %v11320_v54  ;;  %v9706_v19 = vld [vmem:[%s14689_s1 + $0x48] sm:$0xff] }
 0x1c0   :  { %3320 = vmatpush.bf16.msrb.mxu1 %v9706_v19  ;;  %v15004_v19 = vunpack.c.h.b16 %v11880_v5 }
 0x1c1   :  { %v11872_v63 = vadd.f32 %v2172_v41, %v2114_v52  ;;  %v2058_v38 = vadd.f32 %v2057_v7, %v1999_v50  ;;  %2223 = vmatmul.bf16.gmra.mxu0 %v977_v43  ;;  %v11885_v41 = vld [vmem:[%s14690_s0 + $0x320] sm:$0xff]  ;;  %v11896_v50 = vld [vmem:[%s14690_s0 + $0x328] sm:$0xff]  ;;  %v15002_v7 = vunpack.c.l.b16 %v11880_v5 }
 0x1c2   :  { %2282 = vmatmul.bf16.gmra.mxu1 %v978_v57  ;;  %15180 = vst [vmem:[#allocation85_spill] sm:$0xff] %v11885_v41  ;;  %v15001_v21 = vunpack.c.l.b16 %v11885_v41  ;;  %v15186_v3 = vunpack.c.h.b16 %v11896_v50 }
 0x1c3   :  { %2341 = vmatmul.bf16.gmra.mxu2 %v979_v36  ;;  %15182 = vst [vmem:[#allocation87_spill] sm:$0xff] %v11896_v50 }
 0x1c4   :  { %2400 = vmatmul.bf16.gmra.mxu3 %v980_v35  ;;  %v11891_v35 = vld [vmem:[%s14690_s0 + $0x2f8] sm:$0xff] }
 0x1c5   :  { %15181 = vst [vmem:[#allocation86_spill] sm:$0xff] %v11891_v35  ;;  %v15185_v26 = vunpack.c.h.b16 %v11891_v35 }
 0x1c6   :  { %v2116_v2 = vpop.f32.mrf.mxu2  ;;  %v2000_v32 = vpop.f32.mrf.mxu0 }
 0x1c7   :  { %v2175_v20 = vpop.f32.mrf.mxu3  ;;  %v2117_v54 = vadd.f32 %v2116_v2, %v2058_v38  ;;  %v2059_v52 = vpop.f32.mrf.mxu1  ;;  %v2001_v43 = vadd.f32 %v2000_v32, %v11346_v23  ;;  %v15003_v23 = vunpack.c.h.b16 %v11885_v41  ;;  %v15183_v2 = vunpack.c.l.b16 %v11891_v35 }
 0x1c8   :  { %v15184_v32 = vunpack.c.l.b16 %v11896_v50  ;;  %v992_v53 = vpack.c.b16 %v15186_v3, %v15185_v26 }
 0x1c9   :  { %v11898_v57 = vadd.f32 %v2175_v20, %v2117_v54  ;;  %v2060_v36 = vadd.f32 %v2059_v52, %v2001_v43  ;;  %v989_v54 = vpack.c.b16 %v15001_v21, %v15002_v7  ;;  %v990_v52 = vpack.c.b16 %v15003_v23, %v15004_v19 }
 0x1ca   :  { %v991_v34 = vpack.c.b16 %v15184_v32, %v15183_v2  ;;  %v9697_v2 = vld [vmem:[%s14689_s1] sm:$0xff] }
 0x1cb   :  { %v9721_v32 = vld [vmem:[%s14689_s1 + $0xc0] sm:$0xff]  ;;  %3262 = vmatpush.bf16.msrb.mxu0 %v9697_v2 }
 0x1cc   :  { %3439 = vmatpush.bf16.msrb.mxu3 %v9721_v32 }
 0x1ce   :  { %v2118_v6 = vpop.f32.mrf.mxu2  ;;  %v2003_v38 = vpop.f32.mrf.mxu0 }
 0x1cf   :  { %v2177_v20 = vpop.f32.mrf.mxu3  ;;  %v2119_v43 = vadd.f32 %v2118_v6, %v2060_v36  ;;  %v2062_v25 = vpop.f32.mrf.mxu1  ;;  %v2004_v21 = vadd.f32 %v2003_v38, %v11380_v22  ;;  %v9713_v6 = vld [vmem:[%s14689_s1 + $0x80] sm:$0xff] }
 0x1d0   :  { %v9705_v22 = vld [vmem:[%s14689_s1 + $0x40] sm:$0xff]  ;;  %3380 = vmatpush.bf16.msrb.mxu2 %v9713_v6 }
 0x1d1   :  { %v11925_v7 = vadd.f32 %v2177_v20, %v2119_v43  ;;  %v2063_v36 = vadd.f32 %v2062_v25, %v2004_v21  ;;  %2228 = vmatmul.bf16.gmra.mxu0 %v989_v54  ;;  %3321 = vmatpush.bf16.msrb.mxu1 %v9705_v22  ;;  %v11942_v25 = vld [vmem:[%s14690_s0 + $0x350] sm:$0xff]  ;;  %v11953_v54 = vld [vmem:[%s14690_s0 + $0x358] sm:$0xff] }
 0x1d2   :  { %2287 = vmatmul.bf16.gmra.mxu1 %v990_v52  ;;  %15187 = vst [vmem:[#allocation88_spill] sm:$0xff] %v11942_v25  ;;  %v11958_v52 = vld [vmem:[%s14690_s0 + $0x388] sm:$0xff]  ;;  %v15014_v6 = vunpack.c.l.b16 %v11942_v25  ;;  %v15018_v32 = vunpack.c.h.b16 %v11942_v25  ;;  %v15193_v41 = vunpack.c.h.b16 %v11953_v54 }
 0x1d3   :  { %2346 = vmatmul.bf16.gmra.mxu2 %v991_v34  ;;  %15189 = vst [vmem:[#allocation90_spill] sm:$0xff] %v11953_v54  ;;  %v15194_v35 = vunpack.c.h.b16 %v11958_v52 }
 0x1d4   :  { %2405 = vmatmul.bf16.gmra.mxu3 %v992_v53  ;;  %v11947_v53 = vld [vmem:[%s14690_s0 + $0x380] sm:$0xff]  ;;  %15190 = vst [vmem:[#allocation91_spill] sm:$0xff] %v11958_v52 }
 0x1d5   :  { %15188 = vst [vmem:[#allocation89_spill] sm:$0xff] %v11947_v53  ;;  %v15013_v2 = vunpack.c.l.b16 %v11947_v53  ;;  %v1004_v5 = vpack.c.b16 %v15194_v35, %v15193_v41  ;;  %v9760_v41 = vld [vmem:[%s14689_s1 + $0x1f8] sm:$0xff] }
 0x1d6   :  { %v2121_v26 = vpop.f32.mrf.mxu2  ;;  %v2005_v38 = vpop.f32.mrf.mxu0  ;;  %3668 = vmatpush.bf16.msra.mxu3 %v9760_v41 }
 0x1d7   :  { %v2180_v3 = vpop.f32.mrf.mxu3  ;;  %v2122_v21 = vadd.f32 %v2121_v26, %v2063_v36  ;;  %v2064_v20 = vpop.f32.mrf.mxu1  ;;  %v2006_v34 = vadd.f32 %v2005_v38, %v11407_v24  ;;  %v15017_v24 = vunpack.c.h.b16 %v11947_v53  ;;  %v15191_v26 = vunpack.c.l.b16 %v11953_v54 }
 0x1d8   :  { %v15192_v38 = vunpack.c.l.b16 %v11958_v52 }
 0x1d9   :  { %v11960_v43 = vadd.f32 %v2180_v3, %v2122_v21  ;;  %v2065_v36 = vadd.f32 %v2064_v20, %v2006_v34  ;;  %v1001_v21 = vpack.c.b16 %v15013_v2, %v15014_v6  ;;  %v1002_v20 = vpack.c.b16 %v15017_v24, %v15018_v32 }
 0x1da   :  { %v1003_v23 = vpack.c.b16 %v15192_v38, %v15191_v26  ;;  %v12010_v38 = vld [vmem:[%s14690_s0 + $0x3b8] sm:$0xff] }
 0x1db   :  { %v15027_v41 = vunpack.c.l.b16 %v12010_v38 }
 0x1de   :  { %v2123_v19 = vpop.f32.mrf.mxu2  ;;  %v2194_v22 = vpop.f32.mrf.mxu0 }
 0x1df   :  { %v2182_v3 = vpop.f32.mrf.mxu3  ;;  %v2124_v34 = vadd.f32 %v2123_v19, %v2065_v36  ;;  %v2253_v50 = vpop.f32.mrf.mxu1  ;;  %v2195_v2 = vadd.f32 %v2194_v22, %v11435_v40  ;;  %v9752_v19 = vld [vmem:[%s14689_s1 + $0x1b8] sm:$0xff]  ;;  %v342_v22 = vld [vmem:[%s14690_s0 + $0x3e0] sm:$0xff] }
 0x1e0   :  { %v9736_v36 = vld [vmem:[%s14689_s1 + $0x138] sm:$0xff]  ;;  %3609 = vmatpush.bf16.msra.mxu2 %v9752_v19  ;;  %v893_v19 = vunpack.c.l.b16 %v342_v22 }
 0x1e1   :  { %v11987_v6 = vadd.f32 %v2182_v3, %v2124_v34  ;;  %v2254_v25 = vadd.f32 %v2253_v50, %v2195_v2  ;;  %2233 = vmatmul.bf16.gmra.mxu0 %v1001_v21  ;;  %v343_v3 = vld [vmem:[%s14690_s0 + $0x3e8] sm:$0xff] }
 0x1e2   :  { %2292 = vmatmul.bf16.gmra.mxu1 %v1002_v20  ;;  %3491 = vmatpush.bf16.msra.mxu0 %v9736_v36  ;;  %v9744_v20 = vld [vmem:[%s14689_s1 + $0x178] sm:$0xff]  ;;  %v894_v36 = vunpack.c.h.b16 %v342_v22  ;;  %v896_v24 = vunpack.c.h.b16 %v343_v3 }
 0x1e3   :  { %2351 = vmatmul.bf16.gmra.mxu2 %v1003_v23  ;;  %3550 = vmatpush.bf16.msra.mxu1 %v9744_v20 }
 0x1e4   :  { %2410 = vmatmul.bf16.gmra.mxu3 %v1004_v5  ;;  %v12001_v5 = vld [vmem:[%s14690_s0 + $0x3b0] sm:$0xff] }
 0x1e6   :  { %v2312_v40 = vpop.f32.mrf.mxu2  ;;  %v2196_v23 = vpop.f32.mrf.mxu0 }
 0x1e7   :  { %v2371_v35 = vpop.f32.mrf.mxu3  ;;  %v2313_v50 = vadd.f32 %v2312_v40, %v2254_v25  ;;  %v2255_v2 = vpop.f32.mrf.mxu1  ;;  %v2197_v26 = vadd.f32 %v2196_v23, %v11453_v62  ;;  %v15030_v25 = vunpack.c.l.b16 %v12001_v5  ;;  %v15029_v62 = vunpack.c.h.b16 %v12001_v5 }
 0x1e8   :  { %v895_v40 = vunpack.c.l.b16 %v343_v3  ;;  %v15028_v23 = vunpack.c.h.b16 %v12010_v38 }
 0x1e9   :  { %v12015_v21 = vadd.f32 %v2371_v35, %v2313_v50  ;;  %v2256_v34 = vadd.f32 %v2255_v2, %v2197_v26  ;;  %v1013_v32 = vpack.c.b16 %v893_v19, %v15030_v25  ;;  %v1014_v52 = vpack.c.b16 %v894_v36, %v15029_v62 }
 0x1ea   :  { %v1015_v22 = vpack.c.b16 %v895_v40, %v15027_v41  ;;  %v1016_v54 = vpack.c.b16 %v896_v24, %v15028_v23  ;;  %v15198_v23 = vunpack.c.h.b16 %v10357_v30 }
 0x1ee   :  { %v2314_v35 = vpop.f32.mrf.mxu2  ;;  %v2199_v26 = vpop.f32.mrf.mxu0 }
 0x1ef   :  { %v2373_v50 = vpop.f32.mrf.mxu3  ;;  %v2315_v2 = vadd.f32 %v2314_v35, %v2256_v34  ;;  %v2258_v53 = vpop.f32.mrf.mxu1  ;;  %v2200_v3 = vadd.f32 %v2199_v26, %v11476_v9  ;;  %v26_v34 = vld [vmem:[%s14690_s0] sm:$0xff]  ;;  %v27_v9 = vld [vmem:[%s14690_s0 + $0x8] sm:$0xff] }
 0x1f0   :  { %v2429_v26 = vunpack.c.l.b16 %v27_v9 }
 0x1f1   :  { %v12033_v20 = vadd.f32 %v2373_v50, %v2315_v2  ;;  %v2259_v49 = vadd.f32 %v2258_v53, %v2200_v3  ;;  %2238 = vmatmul.bf16.gmra.mxu0 %v1013_v32  ;;  %v2428_v32 = vunpack.c.h.b16 %v26_v34  ;;  %v9759_v2 = vld [vmem:[%s14689_s1 + $0x1f0] sm:$0xff] }
 0x1f2   :  { %2297 = vmatmul.bf16.gmra.mxu1 %v1014_v52  ;;  %v2427_v52 = vunpack.c.l.b16 %v26_v34  ;;  %3669 = vmatpush.bf16.msra.mxu3 %v9759_v2 }
 0x1f3   :  { %2356 = vmatmul.bf16.gmra.mxu2 %v1015_v22  ;;  %v2430_v22 = vunpack.c.h.b16 %v27_v9 }
 0x1f4   :  { %2415 = vmatmul.bf16.gmra.mxu3 %v1016_v54  ;;  %v9751_v54 = vld [vmem:[%s14689_s1 + $0x1b0] sm:$0xff] }
 0x1f5   :  { %3610 = vmatpush.bf16.msra.mxu2 %v9751_v54  ;;  %v2442_v62 = vpack.c.b16 %v15198_v23, %v2430_v22 }
 0x1f6   :  { %v2317_v19 = vpop.f32.mrf.mxu2  ;;  %v2201_v40 = vpop.f32.mrf.mxu0 }
 0x1f7   :  { %v2376_v36 = vpop.f32.mrf.mxu3  ;;  %v2318_v35 = vadd.f32 %v2317_v19, %v2259_v49  ;;  %v2260_v41 = vpop.f32.mrf.mxu1  ;;  %v2202_v24 = vadd.f32 %v2201_v40, %v11515_v11  ;;  %v9735_v49 = vld [vmem:[%s14689_s1 + $0x130] sm:$0xff]  ;;  %v15196_v19 = vunpack.c.h.b16 %v10344_v27  ;;  %v15197_v40 = vunpack.c.l.b16 %v10357_v30 }
 0x1f8   :  { %v9743_v11 = vld [vmem:[%s14689_s1 + $0x170] sm:$0xff]  ;;  %3492 = vmatpush.bf16.msra.mxu0 %v9735_v49 }
 0x1f9   :  { %v12042_v53 = vadd.f32 %v2376_v36, %v2318_v35  ;;  %v2261_v50 = vadd.f32 %v2260_v41, %v2202_v24  ;;  %3551 = vmatpush.bf16.msra.mxu1 %v9743_v11  ;;  %v15195_v41 = vunpack.c.l.b16 %v10344_v27  ;;  %v2440_v36 = vpack.c.b16 %v15196_v19, %v2428_v32 }
 0x1fa   :  { %v2441_v24 = vpack.c.b16 %v15197_v40, %v2429_v26  ;;  %v15200_v19 = vunpack.c.l.b16 %v10433_v58 }
 0x1fb   :  { %v2439_v3 = vpack.c.b16 %v15195_v41, %v2427_v52 }
 0x1fe   :  { %v2319_v34 = vpop.f32.mrf.mxu2  ;;  %v2204_v9 = vpop.f32.mrf.mxu0 }
 0x1ff   :  { %v2378_v35 = vpop.f32.mrf.mxu3  ;;  %v2320_v25 = vadd.f32 %v2319_v34, %v2261_v50  ;;  %v2263_v54 = vpop.f32.mrf.mxu1  ;;  %v2205_v49 = vadd.f32 %v2204_v9, %v11538_v51  ;;  %v9750_v51 = vld [vmem:[%s14689_s1 + $0x1a8] sm:$0xff]  ;;  %v15201_v34 = vunpack.c.h.b16 %v10349_v28 }
 0x200   :  { %3611 = vmatpush.bf16.msra.mxu2 %v9750_v51 }
 0x201   :  { %v12065_v2 = vadd.f32 %v2378_v35, %v2320_v25  ;;  %v2264_v11 = vadd.f32 %v2263_v54, %v2205_v49  ;;  %3263 = vmatmul.bf16.vlgmr.msrb.gmra.mxu0 %v2439_v3  ;;  %v9734_v25 = vld [vmem:[%s14689_s1 + $0x128] sm:$0xff]  ;;  %v15199_v3 = vunpack.c.l.b16 %v10349_v28  ;;  %v15202_v35 = vunpack.c.h.b16 %v10433_v58 }
 0x202   :  { %3322 = vmatmul.bf16.vlgmr.msrb.gmra.mxu1 %v2440_v36  ;;  %3493 = vmatpush.bf16.msra.mxu0 %v9734_v25  ;;  %v15203_v49 = vunpack.c.l.b16 %v10362_v31  ;;  %v9742_v28 = vld [vmem:[%s14689_s1 + $0x168] sm:$0xff] }
 0x203   :  { %3381 = vmatmul.bf16.vlgmr.msrb.gmra.mxu2 %v2441_v24  ;;  %v2451_v36 = vpack.c.b16 %v15200_v19, %v15199_v3  ;;  %v2452_v40 = vpack.c.b16 %v15202_v35, %v15201_v34  ;;  %3552 = vmatpush.bf16.msra.mxu1 %v9742_v28  ;;  %v15207_v19 = vunpack.c.l.b16 %v10438_v59  ;;  %v15209_v35 = vunpack.c.h.b16 %v10438_v59  ;;  %v9749_v59 = vld [vmem:[%s14689_s1 + $0x1a0] sm:$0xff] }
 0x204   :  { %3440 = vmatmul.bf16.vlgmr.msrb.gmra.mxu3 %v2442_v62  ;;  %v9758_v62 = vld [vmem:[%s14689_s1 + $0x1e8] sm:$0xff]  ;;  %3612 = vmatpush.bf16.msra.mxu2 %v9749_v59 }
 0x205   :  { %3670 = vmatpush.bf16.msra.mxu3 %v9758_v62 }
 0x206   :  { %v2322_v27 = vpop.f32.mrf.mxu2  ;;  %v2206_v41 = vpop.f32.mrf.mxu0 }
 0x207   :  { %v2381_v52 = vpop.f32.mrf.mxu3  ;;  %v2323_v32 = vadd.f32 %v2322_v27, %v2264_v11  ;;  %v2265_v26 = vpop.f32.mrf.mxu1  ;;  %v2207_v30 = vadd.f32 %v2206_v41, %v11574_v55  ;;  %v15204_v11 = vunpack.c.l.b16 %v10443_v60 }
 0x209   :  { %v12068_v23 = vadd.f32 %v2381_v52, %v2323_v32  ;;  %v2266_v50 = vadd.f32 %v2265_v26, %v2207_v30  ;;  %v2453_v27 = vpack.c.b16 %v15204_v11, %v15203_v49  ;;  %v15205_v52 = vunpack.c.h.b16 %v10362_v31 }
 0x20a   :  { %v15206_v32 = vunpack.c.h.b16 %v10443_v60  ;;  %v15212_v11 = vunpack.c.l.b16 %v10502_v17 }
 0x20c   :  { %v2454_v41 = vpack.c.b16 %v15206_v32, %v15205_v52  ;;  %v15213_v52 = vunpack.c.h.b16 %v10448_v61  ;;  %v15214_v32 = vunpack.c.h.b16 %v10502_v17  ;;  %v9741_v17 = vld [vmem:[%s14689_s1 + $0x160] sm:$0xff] }
 0x20d   :  { %3553 = vmatpush.bf16.msra.mxu1 %v9741_v17 }
 0x20e   :  { %v2324_v22 = vpop.f32.mrf.mxu2  ;;  %v2209_v9 = vpop.f32.mrf.mxu0 }
 0x20f   :  { %v2383_v55 = vpop.f32.mrf.mxu3  ;;  %v2325_v24 = vadd.f32 %v2324_v22, %v2266_v50  ;;  %v2268_v54 = vpop.f32.mrf.mxu1  ;;  %v2210_v26 = vadd.f32 %v2209_v9, %v11600_v33 }
 0x211   :  { %v12096_v30 = vadd.f32 %v2383_v55, %v2325_v24  ;;  %v2269_v58 = vadd.f32 %v2268_v54, %v2210_v26  ;;  %3268 = vmatmul.bf16.gmra.mxu0 %v2451_v36  ;;  %v15208_v36 = vunpack.c.l.b16 %v10492_v15 }
 0x212   :  { %3327 = vmatmul.bf16.gmra.mxu1 %v2452_v40  ;;  %v15210_v40 = vunpack.c.h.b16 %v10492_v15 }
 0x213   :  { %3386 = vmatmul.bf16.gmra.mxu2 %v2453_v27  ;;  %v2463_v34 = vpack.c.b16 %v15208_v36, %v15207_v19  ;;  %v15215_v19 = vunpack.c.l.b16 %v10497_v16  ;;  %v15216_v36 = vunpack.c.l.b16 %v10539_v44 }
 0x214   :  { %3445 = vmatmul.bf16.gmra.mxu3 %v2454_v41  ;;  %v2464_v24 = vpack.c.b16 %v15210_v40, %v15209_v35  ;;  %v2466_v41 = vpack.c.b16 %v15214_v32, %v15213_v52  ;;  %v15217_v35 = vunpack.c.h.b16 %v10497_v16  ;;  %v15218_v40 = vunpack.c.h.b16 %v10539_v44  ;;  %v9748_v44 = vld [vmem:[%s14689_s1 + $0x198] sm:$0xff] }
 0x215   :  { %v15222_v52 = vunpack.c.h.b16 %v10549_v46  ;;  %3613 = vmatpush.bf16.msra.mxu2 %v9748_v44  ;;  %v9731_v44 = vld [vmem:[%s14689_s1 + $0x110] sm:$0xff] }
 0x216   :  { %v2327_v50 = vpop.f32.mrf.mxu2  ;;  %v2211_v25 = vpop.f32.mrf.mxu0 }
 0x217   :  { %v2386_v51 = vpop.f32.mrf.mxu3  ;;  %v2328_v31 = vadd.f32 %v2327_v50, %v2269_v58  ;;  %v2270_v60 = vpop.f32.mrf.mxu1  ;;  %v2212_v62 = vadd.f32 %v2211_v25, %v11627_v42  ;;  %v15211_v42 = vunpack.c.l.b16 %v10448_v61  ;;  %v9733_v58 = vld [vmem:[%s14689_s1 + $0x120] sm:$0xff] }
 0x218   :  { %v9757_v61 = vld [vmem:[%s14689_s1 + $0x1e0] sm:$0xff]  ;;  %3494 = vmatpush.bf16.msra.mxu0 %v9733_v58 }
 0x219   :  { %v12102_v33 = vadd.f32 %v2386_v51, %v2328_v31  ;;  %v2271_v22 = vadd.f32 %v2270_v60, %v2212_v62  ;;  %v2465_v27 = vpack.c.b16 %v15212_v11, %v15211_v42  ;;  %3671 = vmatpush.bf16.msra.mxu3 %v9757_v61  ;;  %v15220_v42 = vunpack.c.l.b16 %v10549_v46  ;;  %v9756_v46 = vld [vmem:[%s14689_s1 + $0x1d8] sm:$0xff] }
 0x21d   :  { %3672 = vmatpush.bf16.msra.mxu3 %v9756_v46  ;;  %v9739_v46 = vld [vmem:[%s14689_s1 + $0x150] sm:$0xff] }
 0x21e   :  { %v2329_v55 = vpop.f32.mrf.mxu2  ;;  %v2214_v54 = vpop.f32.mrf.mxu0 }
 0x21f   :  { %v2388_v3 = vpop.f32.mrf.mxu3  ;;  %v2330_v9 = vadd.f32 %v2329_v55, %v2271_v22  ;;  %v2273_v49 = vpop.f32.mrf.mxu1  ;;  %v2215_v26 = vadd.f32 %v2214_v54, %v11662_v56 }
 0x221   :  { %v12121_v28 = vadd.f32 %v2388_v3, %v2330_v9  ;;  %v2274_v15 = vadd.f32 %v2273_v49, %v2215_v26  ;;  %3273 = vmatmul.bf16.gmra.mxu0 %v2463_v34  ;;  %v2475_v34 = vpack.c.b16 %v15216_v36, %v15215_v19  ;;  %v15226_v19 = vunpack.c.h.b16 %v10595_v12 }
 0x222   :  { %3332 = vmatmul.bf16.gmra.mxu1 %v2464_v24  ;;  %v2476_v24 = vpack.c.b16 %v15218_v40, %v15217_v35  ;;  %v15227_v40 = vunpack.c.l.b16 %v10554_v47 }
 0x223   :  { %3391 = vmatmul.bf16.gmra.mxu2 %v2465_v27  ;;  %v15221_v27 = vunpack.c.h.b16 %v10507_v18 }
 0x224   :  { %3450 = vmatmul.bf16.gmra.mxu3 %v2466_v41 }
 0x225   :  { %v2478_v32 = vpack.c.b16 %v15222_v52, %v15221_v27 }
 0x226   :  { %v2332_v56 = vpop.f32.mrf.mxu2  ;;  %v2216_v31 = vpop.f32.mrf.mxu0 }
 0x227   :  { %v2391_v50 = vpop.f32.mrf.mxu3  ;;  %v2333_v51 = vadd.f32 %v2332_v56, %v2274_v15  ;;  %v2275_v25 = vpop.f32.mrf.mxu1  ;;  %v2217_v60 = vadd.f32 %v2216_v31, %v11689_v0  ;;  %v15219_v0 = vunpack.c.l.b16 %v10507_v18  ;;  %v9732_v18 = vld [vmem:[%s14689_s1 + $0x118] sm:$0xff] }
 0x228   :  { %3495 = vmatpush.bf16.msra.mxu0 %v9732_v18  ;;  %v9755_v18 = vld [vmem:[%s14689_s1 + $0x1d0] sm:$0xff] }
 0x229   :  { %v12136_v62 = vadd.f32 %v2391_v50, %v2333_v51  ;;  %v2276_v22 = vadd.f32 %v2275_v25, %v2217_v60  ;;  %v2477_v11 = vpack.c.b16 %v15220_v42, %v15219_v0  ;;  %v9740_v50 = vld [vmem:[%s14689_s1 + $0x158] sm:$0xff]  ;;  %v15223_v60 = vunpack.c.l.b16 %v10544_v45  ;;  %3673 = vmatpush.bf16.msra.mxu3 %v9755_v18 }
 0x22a   :  { %3554 = vmatpush.bf16.msra.mxu1 %v9740_v50 }
 0x22c   :  { %3496 = vmatpush.bf16.msra.mxu0 %v9731_v44 }
 0x22e   :  { %v2334_v55 = vpop.f32.mrf.mxu2  ;;  %v2219_v54 = vpop.f32.mrf.mxu0  ;;  %3555 = vmatpush.bf16.msra.mxu1 %v9739_v46  ;;  %v15245_v46 = vld [vmem:[#allocation3_spill] sm:$0xff] }
 0x22f   :  { %v2393_v3 = vpop.f32.mrf.mxu3  ;;  %v2335_v9 = vadd.f32 %v2334_v55, %v2276_v22  ;;  %v2278_v49 = vpop.f32.mrf.mxu1  ;;  %v2220_v41 = vadd.f32 %v2219_v54, %v11721_v48  ;;  %v15224_v22 = vunpack.c.l.b16 %v10595_v12  ;;  %v15229_v54 = vunpack.c.h.b16 %v10554_v47 }
 0x231   :  { %v12155_v26 = vadd.f32 %v2393_v3, %v2335_v9  ;;  %v2279_v16 = vadd.f32 %v2278_v49, %v2220_v41  ;;  %3278 = vmatmul.bf16.gmra.mxu0 %v2475_v34  ;;  %v2487_v55 = vpack.c.b16 %v15224_v22, %v15223_v60  ;;  %v15225_v3 = vunpack.c.h.b16 %v10544_v45 }
 0x232   :  { %3337 = vmatmul.bf16.gmra.mxu1 %v2476_v24  ;;  %v15228_v24 = vunpack.c.l.b16 %v10605_v14  ;;  %v15230_v49 = vunpack.c.h.b16 %v10605_v14  ;;  %v9747_v14 = vld [vmem:[%s14689_s1 + $0x190] sm:$0xff]  ;;  %v15235_v60 = vunpack.c.l.b16 %v10610_v29  ;;  %v15236_v22 = vunpack.c.l.b16 %v10661_v10 }
 0x233   :  { %3396 = vmatmul.bf16.gmra.mxu2 %v2477_v11 }
 0x234   :  { %3455 = vmatmul.bf16.gmra.mxu3 %v2478_v32  ;;  %v2489_v9 = vpack.c.b16 %v15228_v24, %v15227_v40  ;;  %v2490_v0 = vpack.c.b16 %v15230_v49, %v15229_v54  ;;  %3614 = vmatpush.bf16.msra.mxu2 %v9747_v14  ;;  %v9730_v49 = vld [vmem:[%s14689_s1 + $0x108] sm:$0xff] }
 0x235   :  { %3497 = vmatpush.bf16.msra.mxu0 %v9730_v49 }
 0x236   :  { %v2337_v48 = vpop.f32.mrf.mxu2  ;;  %v2221_v58 = vpop.f32.mrf.mxu0 }
 0x237   :  { %v2396_v59 = vpop.f32.mrf.mxu3  ;;  %v2338_v15 = vadd.f32 %v2337_v48, %v2279_v16  ;;  %v2280_v61 = vpop.f32.mrf.mxu1  ;;  %v2222_v17 = vadd.f32 %v2221_v58, %v11751_v4  ;;  %v2488_v4 = vpack.c.b16 %v15226_v19, %v15225_v3  ;;  %v15237_v3 = vunpack.c.h.b16 %v10610_v29 }
 0x238   :  { %v15238_v19 = vunpack.c.h.b16 %v10661_v10 }
 0x239   :  { %v12167_v56 = vadd.f32 %v2396_v59, %v2338_v15  ;;  %v2281_v51 = vadd.f32 %v2280_v61, %v2222_v17  ;;  %v15231_v59 = vunpack.c.l.b16 %v10600_v13  ;;  %v15232_v15 = vunpack.c.l.b16 %v10651_v8 }
 0x23a   :  { %v15233_v61 = vunpack.c.h.b16 %v10600_v13  ;;  %v15234_v17 = vunpack.c.h.b16 %v10651_v8 }
 0x23b   :  { %v2499_v58 = vpack.c.b16 %v15232_v15, %v15231_v59 }
 0x23c   :  { %v2500_v50 = vpack.c.b16 %v15234_v17, %v15233_v61 }
 0x23e   :  { %v2339_v31 = vpop.f32.mrf.mxu2  ;;  %v2224_v34 = vpop.f32.mrf.mxu0 }
 0x23f   :  { %v2398_v25 = vpop.f32.mrf.mxu3  ;;  %v2340_v36 = vadd.f32 %v2339_v31, %v2281_v51  ;;  %v2283_v35 = vpop.f32.mrf.mxu1  ;;  %v2225_v42 = vadd.f32 %v2224_v34, %v11774_v37 }
 0x241   :  { %v12189_v11 = vadd.f32 %v2398_v25, %v2340_v36  ;;  %v2284_v45 = vadd.f32 %v2283_v35, %v2225_v42  ;;  %3283 = vmatmul.bf16.gmra.mxu0 %v2487_v55  ;;  %v2501_v55 = vpack.c.b16 %v15236_v22, %v15235_v60 }
 0x242   :  { %3342 = vmatmul.bf16.gmra.mxu1 %v2488_v4  ;;  %v2502_v4 = vpack.c.b16 %v15238_v19, %v15237_v3 }
 0x243   :  { %3401 = vmatmul.bf16.gmra.mxu2 %v2489_v9 }
 0x244   :  { %3460 = vmatmul.bf16.gmra.mxu3 %v2490_v0  ;;  %v9754_v0 = vld [vmem:[%s14689_s1 + $0x1c8] sm:$0xff] }
 0x245   :  { %3674 = vmatpush.bf16.msra.mxu3 %v9754_v0 }
 0x246   :  { %v2342_v12 = vpop.f32.mrf.mxu2  ;;  %v2226_v32 = vpop.f32.mrf.mxu0 }
 0x247   :  { %v2401_v27 = vpop.f32.mrf.mxu3  ;;  %v2343_v52 = vadd.f32 %v2342_v12, %v2284_v45  ;;  %v2285_v41 = vpop.f32.mrf.mxu1  ;;  %v2227_v16 = vadd.f32 %v2226_v32, %v11813_v1  ;;  %v15239_v45 = vld [vmem:[#allocation2_spill] sm:$0xff] }
 0x248   :  { %v15240_v12 = vunpack.c.l.b16 %v15239_v45 }
 0x249   :  { %v12192_v47 = vadd.f32 %v2401_v27, %v2343_v52  ;;  %v2286_v37 = vadd.f32 %v2285_v41, %v2227_v16  ;;  %v15241_v27 = vld [vmem:[#allocation4_spill] sm:$0xff]  ;;  %v15243_v41 = vunpack.c.h.b16 %v15239_v45  ;;  %v15257_v45 = vld [vmem:[#allocation7_spill] sm:$0xff] }
 0x24a   :  { %v15242_v52 = vunpack.c.l.b16 %v15241_v27  ;;  %v15244_v16 = vunpack.c.h.b16 %v15241_v27 }
 0x24c   :  { %v2511_v32 = vpack.c.b16 %v15242_v52, %v15240_v12  ;;  %v2512_v14 = vpack.c.b16 %v15244_v16, %v15243_v41  ;;  %v15259_v12 = vld [vmem:[#allocation10_spill] sm:$0xff] }
 0x24d   :  { %v15260_v27 = vunpack.c.l.b16 %v15259_v12  ;;  %v15262_v41 = vunpack.c.h.b16 %v15259_v12  ;;  %v9784_v12 = vld [vmem:[%s14689_s1 + $0x2b8] sm:$0xff] }
 0x24e   :  { %v2344_v1 = vpop.f32.mrf.mxu2  ;;  %v2229_v31 = vpop.f32.mrf.mxu0 }
 0x24f   :  { %v2403_v48 = vpop.f32.mrf.mxu3  ;;  %v2345_v51 = vadd.f32 %v2344_v1, %v2286_v37  ;;  %v2288_v25 = vpop.f32.mrf.mxu1  ;;  %v2230_v36 = vadd.f32 %v2229_v31, %v11836_v39  ;;  %v9746_v39 = vld [vmem:[%s14689_s1 + $0x188] sm:$0xff]  ;;  %v15246_v1 = vunpack.c.l.b16 %v15245_v46 }
 0x250   :  { %3615 = vmatpush.bf16.msra.mxu2 %v9746_v39  ;;  %v9738_v31 = vld [vmem:[%s14689_s1 + $0x148] sm:$0xff] }
 0x251   :  { %v12223_v34 = vadd.f32 %v2403_v48, %v2345_v51  ;;  %v2289_v13 = vadd.f32 %v2288_v25, %v2230_v36  ;;  %3288 = vmatmul.bf16.gmra.mxu0 %v2499_v58  ;;  %v15247_v48 = vld [vmem:[#allocation6_spill] sm:$0xff]  ;;  %v15249_v58 = vunpack.c.h.b16 %v15245_v46  ;;  %3556 = vmatpush.bf16.msra.mxu1 %v9738_v31 }
 0x252   :  { %3347 = vmatmul.bf16.gmra.mxu1 %v2500_v50  ;;  %v15248_v59 = vunpack.c.l.b16 %v15247_v48  ;;  %v15250_v61 = vunpack.c.h.b16 %v15247_v48  ;;  %v9729_v46 = vld [vmem:[%s14689_s1 + $0x100] sm:$0xff] }
 0x253   :  { %3406 = vmatmul.bf16.gmra.mxu2 %v2501_v55  ;;  %3498 = vmatpush.bf16.msra.mxu0 %v9729_v46  ;;  %v9776_v46 = vld [vmem:[%s14689_s1 + $0x278] sm:$0xff] }
 0x254   :  { %3465 = vmatmul.bf16.gmra.mxu3 %v2502_v4  ;;  %v2513_v15 = vpack.c.b16 %v15248_v59, %v15246_v1  ;;  %v2514_v17 = vpack.c.b16 %v15250_v61, %v15249_v58  ;;  %v9753_v1 = vld [vmem:[%s14689_s1 + $0x1c0] sm:$0xff] }
 0x255   :  { %3675 = vmatpush.bf16.msra.mxu3 %v9753_v1 }
 0x256   :  { %v2347_v8 = vpop.f32.mrf.mxu2  ;;  %v2231_v24 = vpop.f32.mrf.mxu0 }
 0x257   :  { %v2406_v35 = vpop.f32.mrf.mxu3  ;;  %v2348_v40 = vadd.f32 %v2347_v8, %v2289_v13  ;;  %v2290_v9 = vpop.f32.mrf.mxu1  ;;  %v2232_v54 = vadd.f32 %v2231_v24, %v11872_v63  ;;  %v15253_v24 = vld [vmem:[#allocation8_spill] sm:$0xff] }
 0x258   :  { %v15256_v39 = vunpack.c.h.b16 %v15253_v24 }
 0x259   :  { %v12226_v29 = vadd.f32 %v2406_v35, %v2348_v40  ;;  %v2291_v10 = vadd.f32 %v2290_v9, %v2232_v54  ;;  %v15251_v35 = vld [vmem:[#allocation5_spill] sm:$0xff]  ;;  %v15254_v9 = vunpack.c.l.b16 %v15253_v24 }
 0x25a   :  { %v15252_v40 = vunpack.c.l.b16 %v15251_v35 }
 0x25c   :  { %v2523_v54 = vpack.c.b16 %v15254_v9, %v15252_v40  ;;  %v15269_v9 = vld [vmem:[#allocation11_spill] sm:$0xff] }
 0x25e   :  { %v2349_v42 = vpop.f32.mrf.mxu2  ;;  %v2234_v44 = vpop.f32.mrf.mxu0 }
 0x25f   :  { %v2408_v63 = vpop.f32.mrf.mxu3  ;;  %v2350_v37 = vadd.f32 %v2349_v42, %v2291_v10  ;;  %v2293_v18 = vpop.f32.mrf.mxu1  ;;  %v2235_v50 = vadd.f32 %v2234_v44, %v11898_v57  ;;  %v15255_v10 = vunpack.c.h.b16 %v15251_v35  ;;  %v9745_v44 = vld [vmem:[%s14689_s1 + $0x180] sm:$0xff] }
 0x260   :  { %3616 = vmatpush.bf16.msra.mxu2 %v9745_v44 }
 0x261   :  { %v12254_v51 = vadd.f32 %v2408_v63, %v2350_v37  ;;  %v2294_v25 = vadd.f32 %v2293_v18, %v2235_v50  ;;  %3293 = vmatmul.bf16.gmra.mxu0 %v2511_v32  ;;  %v2524_v49 = vpack.c.b16 %v15256_v39, %v15255_v10  ;;  %v15261_v32 = vunpack.c.h.b16 %v15257_v45 }
 0x262   :  { %3352 = vmatmul.bf16.gmra.mxu1 %v2512_v14 }
 0x263   :  { %3411 = vmatmul.bf16.gmra.mxu2 %v2513_v15  ;;  %v2526_v16 = vpack.c.b16 %v15262_v41, %v15261_v32 }
 0x264   :  { %3470 = vmatmul.bf16.gmra.mxu3 %v2514_v17  ;;  %3845 = vmatpush.bf16.msrb.mxu2 %v9784_v12  ;;  %v9783_v12 = vld [vmem:[%s14689_s1 + $0x2b0] sm:$0xff] }
 0x266   :  { %v2352_v60 = vpop.f32.mrf.mxu2  ;;  %v2236_v3 = vpop.f32.mrf.mxu0 }
 0x267   :  { %v2411_v22 = vpop.f32.mrf.mxu3  ;;  %v2353_v55 = vadd.f32 %v2352_v60, %v2294_v25  ;;  %v2295_v19 = vpop.f32.mrf.mxu1  ;;  %v2237_v4 = vadd.f32 %v2236_v3, %v11925_v7  ;;  %v15258_v7 = vunpack.c.l.b16 %v15257_v45  ;;  %v15265_v3 = vld [vmem:[#allocation12_spill] sm:$0xff] }
 0x268   :  { %3846 = vmatpush.bf16.msrb.mxu2 %v9783_v12 }
 0x269   :  { %v12260_v57 = vadd.f32 %v2411_v22, %v2353_v55  ;;  %v2296_v36 = vadd.f32 %v2295_v19, %v2237_v4  ;;  %v2525_v52 = vpack.c.b16 %v15260_v27, %v15258_v7  ;;  %v15263_v22 = vld [vmem:[#allocation9_spill] sm:$0xff]  ;;  %v15266_v19 = vunpack.c.l.b16 %v15265_v3 }
 0x26a   :  { %v15264_v55 = vunpack.c.l.b16 %v15263_v22  ;;  %v9768_v27 = vld [vmem:[%s14689_s1 + $0x238] sm:$0xff] }
 0x26b   :  { %3727 = vmatpush.bf16.msrb.mxu0 %v9768_v27 }
 0x26c   :  { %v2535_v4 = vpack.c.b16 %v15266_v19, %v15264_v55 }
 0x26e   :  { %v2354_v13 = vpop.f32.mrf.mxu2  ;;  %v2239_v42 = vpop.f32.mrf.mxu0 }
 0x26f   :  { %v2413_v8 = vpop.f32.mrf.mxu3  ;;  %v2355_v0 = vadd.f32 %v2354_v13, %v2296_v36  ;;  %v2298_v63 = vpop.f32.mrf.mxu1  ;;  %v2240_v14 = vadd.f32 %v2239_v42, %v11960_v43  ;;  %v9737_v43 = vld [vmem:[%s14689_s1 + $0x140] sm:$0xff]  ;;  %v15267_v36 = vunpack.c.h.b16 %v15263_v22  ;;  %v15268_v13 = vunpack.c.h.b16 %v15265_v3  ;;  %v15281_v3 = vld [vmem:[#allocation15_spill] sm:$0xff] }
 0x270   :  { %3557 = vmatpush.bf16.msra.mxu1 %v9737_v43  ;;  %v15282_v19 = vunpack.c.l.b16 %v15281_v3 }
 0x271   :  { %v12279_v37 = vadd.f32 %v2413_v8, %v2355_v0  ;;  %v2299_v18 = vadd.f32 %v2298_v63, %v2240_v14  ;;  %3298 = vmatmul.bf16.gmra.mxu0 %v2523_v54  ;;  %v2536_v8 = vpack.c.b16 %v15268_v13, %v15267_v36  ;;  %v15271_v54 = vld [vmem:[#allocation14_spill] sm:$0xff] }
 0x272   :  { %3357 = vmatmul.bf16.gmra.mxu1 %v2524_v49  ;;  %v15272_v10 = vunpack.c.l.b16 %v15271_v54  ;;  %v15273_v49 = vunpack.c.h.b16 %v15269_v9  ;;  %v15274_v0 = vunpack.c.h.b16 %v15271_v54 }
 0x273   :  { %3416 = vmatmul.bf16.gmra.mxu2 %v2525_v52  ;;  %v9792_v52 = vld [vmem:[%s14689_s1 + $0x2f8] sm:$0xff] }
 0x274   :  { %3475 = vmatmul.bf16.gmra.mxu3 %v2526_v16  ;;  %v2538_v42 = vpack.c.b16 %v15274_v0, %v15273_v49  ;;  %3786 = vmatpush.bf16.msrb.mxu1 %v9776_v46 }
 0x275   :  { %3904 = vmatpush.bf16.msrb.mxu3 %v9792_v52 }
 0x276   :  { %v2357_v48 = vpop.f32.mrf.mxu2  ;;  %v2241_v58 = vpop.f32.mrf.mxu0 }
 0x277   :  { %v2416_v59 = vpop.f32.mrf.mxu3  ;;  %v2358_v15 = vadd.f32 %v2357_v48, %v2299_v18  ;;  %v2300_v61 = vpop.f32.mrf.mxu1  ;;  %v2242_v17 = vadd.f32 %v2241_v58, %v11987_v6  ;;  %v15270_v6 = vunpack.c.l.b16 %v15269_v9  ;;  %v15277_v58 = vld [vmem:[#allocation16_spill] sm:$0xff] }
 0x279   :  { %v12294_v50 = vadd.f32 %v2416_v59, %v2358_v15  ;;  %v2301_v31 = vadd.f32 %v2300_v61, %v2242_v17  ;;  %v2537_v39 = vpack.c.b16 %v15272_v10, %v15270_v6  ;;  %v15275_v59 = vld [vmem:[#allocation13_spill] sm:$0xff]  ;;  %v15278_v61 = vunpack.c.l.b16 %v15277_v58 }
 0x27a   :  { %v15276_v15 = vunpack.c.l.b16 %v15275_v59 }
 0x27c   :  { %v2547_v17 = vpack.c.b16 %v15278_v61, %v15276_v15 }
 0x27e   :  { %v2359_v25 = vpop.f32.mrf.mxu2  ;;  %v3264_v40 = vpop.f32.mrf.mxu0 }
 0x27f   :  { %v2418_v60 = vpop.f32.mrf.mxu3  ;;  %v2360_v35 = vadd.f32 %v2359_v25, %v2301_v31  ;;  %v3323_v24 = vpop.f32.mrf.mxu1  ;;  %v3265_v63 = vadd.f32 %v3264_v40, %v12015_v21  ;;  %v15279_v31 = vunpack.c.h.b16 %v15275_v59  ;;  %v15280_v25 = vunpack.c.h.b16 %v15277_v58  ;;  %v15290_v58 = vld [vmem:[#allocation20_spill] sm:$0xff] }
 0x280   :  { %v15291_v61 = vunpack.c.l.b16 %v15290_v58 }
 0x281   :  { %v12313_v45 = vadd.f32 %v2418_v60, %v2360_v35  ;;  %v3324_v7 = vadd.f32 %v3323_v24, %v3265_v63  ;;  %3303 = vmatmul.bf16.gmra.mxu0 %v2535_v4  ;;  %v15283_v4 = vld [vmem:[#allocation17_spill] sm:$0xff] }
 0x282   :  { %3362 = vmatmul.bf16.gmra.mxu1 %v2536_v8  ;;  %v15284_v36 = vunpack.c.l.b16 %v15283_v4  ;;  %v15285_v8 = vunpack.c.h.b16 %v15281_v3  ;;  %v15286_v35 = vunpack.c.h.b16 %v15283_v4 }
 0x283   :  { %3421 = vmatmul.bf16.gmra.mxu2 %v2537_v39  ;;  %v28_v39 = vld [vmem:[%s14690_s0 + $0x10] sm:$0xff] }
 0x284   :  { %3480 = vmatmul.bf16.gmra.mxu3 %v2538_v42  ;;  %v2549_v13 = vpack.c.b16 %v15284_v36, %v15282_v19  ;;  %v2550_v40 = vpack.c.b16 %v15286_v35, %v15285_v8  ;;  %v2431_v27 = vunpack.c.l.b16 %v28_v39  ;;  %v2432_v52 = vunpack.c.h.b16 %v28_v39 }
 0x286   :  { %v3382_v21 = vpop.f32.mrf.mxu2  ;;  %v3266_v16 = vpop.f32.mrf.mxu0 }
 0x287   :  { %v3441_v32 = vpop.f32.mrf.mxu3  ;;  %v3383_v41 = vadd.f32 %v3382_v21, %v3324_v7  ;;  %v3325_v14 = vpop.f32.mrf.mxu1  ;;  %v3267_v44 = vadd.f32 %v3266_v16, %v12033_v20  ;;  %v2548_v20 = vpack.c.b16 %v15280_v25, %v15279_v31  ;;  %v15292_v31 = vunpack.c.h.b16 %v15290_v58  ;;  %v9774_v58 = vld [vmem:[%s14689_s1 + $0x268] sm:$0xff] }
 0x289   :  { %v12325_v18 = vadd.f32 %v3441_v32, %v3383_v41  ;;  %v3326_v1 = vadd.f32 %v3325_v14, %v3267_v44  ;;  %v9767_v32 = vld [vmem:[%s14689_s1 + $0x230] sm:$0xff]  ;;  %v15287_v44 = vld [vmem:[#allocation18_spill] sm:$0xff] }
 0x28a   :  { %v9791_v41 = vld [vmem:[%s14689_s1 + $0x2f0] sm:$0xff]  ;;  %3728 = vmatpush.bf16.msrb.mxu0 %v9767_v32  ;;  %v15288_v46 = vunpack.c.l.b16 %v15287_v44 }
 0x28b   :  { %3905 = vmatpush.bf16.msrb.mxu3 %v9791_v41 }
 0x28e   :  { %v3384_v43 = vpop.f32.mrf.mxu2  ;;  %v3269_v22 = vpop.f32.mrf.mxu0 }
 0x28f   :  { %v3443_v48 = vpop.f32.mrf.mxu3  ;;  %v3385_v60 = vadd.f32 %v3384_v43, %v3326_v1  ;;  %v3328_v55 = vpop.f32.mrf.mxu1  ;;  %v3270_v24 = vadd.f32 %v3269_v22, %v12042_v53  ;;  %v29_v53 = vld [vmem:[%s14690_s0 + $0x18] sm:$0xff]  ;;  %v2443_v1 = vpack.c.b16 %v15288_v46, %v2431_v27  ;;  %v15289_v43 = vunpack.c.h.b16 %v15287_v44 }
 0x290   :  { %v2433_v16 = vunpack.c.l.b16 %v29_v53  ;;  %v2434_v14 = vunpack.c.h.b16 %v29_v53 }
 0x291   :  { %v12347_v9 = vadd.f32 %v3443_v48, %v3385_v60  ;;  %v3329_v6 = vadd.f32 %v3328_v55, %v3270_v24  ;;  %3308 = vmatmul.bf16.gmra.mxu0 %v2547_v17  ;;  %v2444_v48 = vpack.c.b16 %v15289_v43, %v2432_v52 }
 0x292   :  { %3367 = vmatmul.bf16.gmra.mxu1 %v2548_v20  ;;  %v2445_v17 = vpack.c.b16 %v15291_v61, %v2433_v16  ;;  %v2446_v25 = vpack.c.b16 %v15292_v31, %v2434_v14  ;;  %v15301_v14 = vld [vmem:[#allocation24_spill] sm:$0xff] }
 0x293   :  { %3426 = vmatmul.bf16.gmra.mxu2 %v2549_v13  ;;  %v15302_v44 = vunpack.c.l.b16 %v15301_v14  ;;  %v15304_v43 = vunpack.c.h.b16 %v15301_v14 }
 0x294   :  { %3485 = vmatmul.bf16.gmra.mxu3 %v2550_v40 }
 0x296   :  { %v3387_v54 = vpop.f32.mrf.mxu2  ;;  %v3271_v0 = vpop.f32.mrf.mxu0 }
 0x297   :  { %v3446_v10 = vpop.f32.mrf.mxu3  ;;  %v3388_v49 = vadd.f32 %v3387_v54, %v3329_v6  ;;  %v3330_v42 = vpop.f32.mrf.mxu1  ;;  %v3272_v63 = vadd.f32 %v3271_v0, %v12065_v2  ;;  %v9775_v2 = vld [vmem:[%s14689_s1 + $0x270] sm:$0xff]  ;;  %v9766_v54 = vld [vmem:[%s14689_s1 + $0x228] sm:$0xff] }
 0x298   :  { %3787 = vmatpush.bf16.msrb.mxu1 %v9775_v2  ;;  %3729 = vmatpush.bf16.msrb.mxu0 %v9766_v54  ;;  %v15299_v2 = vld [vmem:[#allocation21_spill] sm:$0xff] }
 0x299   :  { %v12356_v7 = vadd.f32 %v3446_v10, %v3388_v49  ;;  %v3331_v21 = vadd.f32 %v3330_v42, %v3272_v63  ;;  %v9790_v10 = vld [vmem:[%s14689_s1 + $0x2e8] sm:$0xff]  ;;  %v15295_v42 = vld [vmem:[#allocation22_spill] sm:$0xff]  ;;  %v15300_v16 = vunpack.c.l.b16 %v15299_v2 }
 0x29a   :  { %3906 = vmatpush.bf16.msrb.mxu3 %v9790_v10  ;;  %v15293_v49 = vld [vmem:[#allocation19_spill] sm:$0xff]  ;;  %v15296_v53 = vunpack.c.l.b16 %v15295_v42  ;;  %v15298_v27 = vunpack.c.h.b16 %v15295_v42 }
 0x29b   :  { %v15294_v0 = vunpack.c.l.b16 %v15293_v49  ;;  %v15297_v12 = vunpack.c.h.b16 %v15293_v49  ;;  %v2457_v46 = vpack.c.b16 %v15302_v44, %v15300_v16  ;;  %v15311_v49 = vld [vmem:[#allocation25_spill] sm:$0xff]  ;;  %v9789_v16 = vld [vmem:[%s14689_s1 + $0x2e0] sm:$0xff] }
 0x29c   :  { %3788 = vmatpush.bf16.msrb.mxu1 %v9774_v58 }
 0x29d   :  { %v2455_v63 = vpack.c.b16 %v15296_v53, %v15294_v0  ;;  %v2456_v52 = vpack.c.b16 %v15298_v27, %v15297_v12  ;;  %v15313_v0 = vld [vmem:[#allocation28_spill] sm:$0xff] }
 0x29e   :  { %v3389_v59 = vpop.f32.mrf.mxu2  ;;  %v3274_v60 = vpop.f32.mrf.mxu0  ;;  %v15314_v42 = vunpack.c.l.b16 %v15313_v0  ;;  %v15316_v12 = vunpack.c.h.b16 %v15313_v0  ;;  %3907 = vmatpush.bf16.msrb.mxu3 %v9789_v16  ;;  %v9780_v0 = vld [vmem:[%s14689_s1 + $0x298] sm:$0xff] }
 0x29f   :  { %v3448_v15 = vpop.f32.mrf.mxu3  ;;  %v3390_v20 = vadd.f32 %v3389_v59, %v3331_v21  ;;  %v3333_v22 = vpop.f32.mrf.mxu1  ;;  %v3275_v55 = vadd.f32 %v3274_v60, %v12068_v23  ;;  %v9782_v23 = vld [vmem:[%s14689_s1 + $0x2a8] sm:$0xff] }
 0x2a0   :  { %3847 = vmatpush.bf16.msrb.mxu2 %v9782_v23 }
 0x2a1   :  { %v12379_v3 = vadd.f32 %v3448_v15, %v3390_v20  ;;  %v3334_v19 = vadd.f32 %v3333_v22, %v3275_v55  ;;  %3499 = vmatmul.bf16.vlgmr.msra.gmra.mxu0 %v2443_v1  ;;  %v15303_v1 = vunpack.c.h.b16 %v15299_v2  ;;  %v9765_v2 = vld [vmem:[%s14689_s1 + $0x220] sm:$0xff] }
 0x2a2   :  { %3558 = vmatmul.bf16.vlgmr.msra.gmra.mxu1 %v2444_v48  ;;  %3730 = vmatpush.bf16.msrb.mxu0 %v9765_v2  ;;  %v9772_v2 = vld [vmem:[%s14689_s1 + $0x258] sm:$0xff] }
 0x2a3   :  { %3617 = vmatmul.bf16.vlgmr.msra.gmra.mxu2 %v2445_v17  ;;  %v2458_v48 = vpack.c.b16 %v15304_v43, %v15303_v1 }
 0x2a4   :  { %3676 = vmatmul.bf16.vlgmr.msra.gmra.mxu3 %v2446_v25 }
 0x2a6   :  { %v3392_v4 = vpop.f32.mrf.mxu2  ;;  %v3276_v8 = vpop.f32.mrf.mxu0 }
 0x2a7   :  { %v3451_v36 = vpop.f32.mrf.mxu3  ;;  %v3393_v13 = vadd.f32 %v3392_v4, %v3334_v19  ;;  %v3335_v35 = vpop.f32.mrf.mxu1  ;;  %v3277_v40 = vadd.f32 %v3276_v8, %v12096_v30  ;;  %v15307_v8 = vld [vmem:[#allocation26_spill] sm:$0xff] }
 0x2a8   :  { %v15310_v23 = vunpack.c.h.b16 %v15307_v8 }
 0x2a9   :  { %v12382_v24 = vadd.f32 %v3451_v36, %v3393_v13  ;;  %v3336_v6 = vadd.f32 %v3335_v35, %v3277_v40  ;;  %v15305_v36 = vld [vmem:[#allocation23_spill] sm:$0xff]  ;;  %v15308_v35 = vunpack.c.l.b16 %v15307_v8 }
 0x2aa   :  { %v15306_v13 = vunpack.c.l.b16 %v15305_v36 }
 0x2ac   :  { %v2467_v40 = vpack.c.b16 %v15308_v35, %v15306_v13  ;;  %v15323_v35 = vld [vmem:[#allocation29_spill] sm:$0xff] }
 0x2ae   :  { %v3394_v39 = vpop.f32.mrf.mxu2  ;;  %v3279_v32 = vpop.f32.mrf.mxu0 }
 0x2af   :  { %v3453_v30 = vpop.f32.mrf.mxu3  ;;  %v3395_v21 = vadd.f32 %v3394_v39, %v3336_v6  ;;  %v3338_v41 = vpop.f32.mrf.mxu1  ;;  %v3280_v59 = vadd.f32 %v3279_v32, %v12102_v33  ;;  %v15309_v6 = vunpack.c.h.b16 %v15305_v36  ;;  %v9781_v32 = vld [vmem:[%s14689_s1 + $0x2a0] sm:$0xff] }
 0x2b0   :  { %3848 = vmatpush.bf16.msrb.mxu2 %v9781_v32 }
 0x2b1   :  { %v12410_v15 = vadd.f32 %v3453_v30, %v3395_v21  ;;  %v3339_v61 = vadd.f32 %v3338_v41, %v3280_v59  ;;  %3504 = vmatmul.bf16.gmra.mxu0 %v2455_v63  ;;  %v2468_v54 = vpack.c.b16 %v15310_v23, %v15309_v6  ;;  %v15315_v63 = vunpack.c.h.b16 %v15311_v49 }
 0x2b2   :  { %3563 = vmatmul.bf16.gmra.mxu1 %v2456_v52 }
 0x2b3   :  { %3622 = vmatmul.bf16.gmra.mxu2 %v2457_v46  ;;  %v2470_v27 = vpack.c.b16 %v15316_v12, %v15315_v63 }
 0x2b4   :  { %3681 = vmatmul.bf16.gmra.mxu3 %v2458_v48  ;;  %3849 = vmatpush.bf16.msrb.mxu2 %v9780_v0  ;;  %v9763_v0 = vld [vmem:[%s14689_s1 + $0x210] sm:$0xff] }
 0x2b6   :  { %v3397_v17 = vpop.f32.mrf.mxu2  ;;  %v3281_v20 = vpop.f32.mrf.mxu0 }
 0x2b7   :  { %v3456_v31 = vpop.f32.mrf.mxu3  ;;  %v3398_v25 = vadd.f32 %v3397_v17, %v3339_v61  ;;  %v3340_v60 = vpop.f32.mrf.mxu1  ;;  %v3282_v22 = vadd.f32 %v3281_v20, %v12121_v28  ;;  %v15312_v28 = vunpack.c.l.b16 %v15311_v49  ;;  %v15319_v20 = vld [vmem:[#allocation30_spill] sm:$0xff] }
 0x2b9   :  { %v12416_v33 = vadd.f32 %v3456_v31, %v3398_v25  ;;  %v3341_v55 = vadd.f32 %v3340_v60, %v3282_v22  ;;  %v2469_v53 = vpack.c.b16 %v15314_v42, %v15312_v28  ;;  %v15317_v31 = vld [vmem:[#allocation27_spill] sm:$0xff]  ;;  %v15320_v60 = vunpack.c.l.b16 %v15319_v20  ;;  %v9764_v42 = vld [vmem:[%s14689_s1 + $0x218] sm:$0xff] }
 0x2ba   :  { %v15318_v25 = vunpack.c.l.b16 %v15317_v31  ;;  %3731 = vmatpush.bf16.msrb.mxu0 %v9764_v42  ;;  %v9787_v42 = vld [vmem:[%s14689_s1 + $0x2d0] sm:$0xff] }
 0x2bc   :  { %v2479_v22 = vpack.c.b16 %v15320_v60, %v15318_v25 }
 0x2be   :  { %v3399_v19 = vpop.f32.mrf.mxu2  ;;  %v3284_v39 = vpop.f32.mrf.mxu0  ;;  %3732 = vmatpush.bf16.msrb.mxu0 %v9763_v0 }
 0x2bf   :  { %v3458_v4 = vpop.f32.mrf.mxu3  ;;  %v3400_v10 = vadd.f32 %v3399_v19, %v3341_v55  ;;  %v3343_v30 = vpop.f32.mrf.mxu1  ;;  %v3285_v52 = vadd.f32 %v3284_v39, %v12136_v62  ;;  %v9773_v62 = vld [vmem:[%s14689_s1 + $0x260] sm:$0xff]  ;;  %v15321_v55 = vunpack.c.h.b16 %v15317_v31  ;;  %v15322_v19 = vunpack.c.h.b16 %v15319_v20  ;;  %v15335_v20 = vld [vmem:[#allocation33_spill] sm:$0xff] }
 0x2c0   :  { %3789 = vmatpush.bf16.msrb.mxu1 %v9773_v62  ;;  %v15336_v60 = vunpack.c.l.b16 %v15335_v20 }
 0x2c1   :  { %v12435_v21 = vadd.f32 %v3458_v4, %v3400_v10  ;;  %v3344_v41 = vadd.f32 %v3343_v30, %v3285_v52  ;;  %3509 = vmatmul.bf16.gmra.mxu0 %v2467_v40  ;;  %v2480_v4 = vpack.c.b16 %v15322_v19, %v15321_v55  ;;  %v15325_v40 = vld [vmem:[#allocation32_spill] sm:$0xff] }
 0x2c2   :  { %3568 = vmatmul.bf16.gmra.mxu1 %v2468_v54  ;;  %v15326_v6 = vunpack.c.l.b16 %v15325_v40  ;;  %v15327_v54 = vunpack.c.h.b16 %v15323_v35  ;;  %v15328_v10 = vunpack.c.h.b16 %v15325_v40 }
 0x2c3   :  { %3627 = vmatmul.bf16.gmra.mxu2 %v2469_v53  ;;  %v9788_v53 = vld [vmem:[%s14689_s1 + $0x2d8] sm:$0xff] }
 0x2c4   :  { %3686 = vmatmul.bf16.gmra.mxu3 %v2470_v27  ;;  %v2482_v39 = vpack.c.b16 %v15328_v10, %v15327_v54  ;;  %3790 = vmatpush.bf16.msrb.mxu1 %v9772_v2 }
 0x2c5   :  { %3908 = vmatpush.bf16.msrb.mxu3 %v9788_v53  ;;  %v9771_v53 = vld [vmem:[%s14689_s1 + $0x250] sm:$0xff] }
 0x2c6   :  { %v3402_v14 = vpop.f32.mrf.mxu2  ;;  %v3286_v1 = vpop.f32.mrf.mxu0 }
 0x2c7   :  { %v3461_v44 = vpop.f32.mrf.mxu3  ;;  %v3403_v46 = vadd.f32 %v3402_v14, %v3344_v41  ;;  %v3345_v43 = vpop.f32.mrf.mxu1  ;;  %v3287_v48 = vadd.f32 %v3286_v1, %v12155_v26  ;;  %v15324_v26 = vunpack.c.l.b16 %v15323_v35  ;;  %v15331_v1 = vld [vmem:[#allocation34_spill] sm:$0xff] }
 0x2c8   :  { %3791 = vmatpush.bf16.msrb.mxu1 %v9771_v53 }
 0x2c9   :  { %v12450_v59 = vadd.f32 %v3461_v44, %v3403_v46  ;;  %v3346_v58 = vadd.f32 %v3345_v43, %v3287_v48  ;;  %v2481_v23 = vpack.c.b16 %v15326_v6, %v15324_v26  ;;  %v15329_v44 = vld [vmem:[#allocation31_spill] sm:$0xff]  ;;  %v15332_v43 = vunpack.c.l.b16 %v15331_v1  ;;  %3909 = vmatpush.bf16.msrb.mxu3 %v9787_v42 }
 0x2ca   :  { %v15330_v46 = vunpack.c.l.b16 %v15329_v44 }
 0x2cc   :  { %v2491_v48 = vpack.c.b16 %v15332_v43, %v15330_v46 }
 0x2ce   :  { %v3404_v61 = vpop.f32.mrf.mxu2  ;;  %v3289_v13 = vpop.f32.mrf.mxu0 }
 0x2cf   :  { %v3463_v17 = vpop.f32.mrf.mxu3  ;;  %v3405_v36 = vadd.f32 %v3404_v61, %v3346_v58  ;;  %v3348_v8 = vpop.f32.mrf.mxu1  ;;  %v3290_v30 = vadd.f32 %v3289_v13, %v12167_v56  ;;  %v15333_v58 = vunpack.c.h.b16 %v15329_v44  ;;  %v15334_v61 = vunpack.c.h.b16 %v15331_v1  ;;  %v15347_v1 = vld [vmem:[#allocation37_spill] sm:$0xff] }
 0x2d0   :  { %v15348_v43 = vunpack.c.l.b16 %v15347_v1 }
 0x2d1   :  { %v12469_v49 = vadd.f32 %v3463_v17, %v3405_v36  ;;  %v3349_v28 = vadd.f32 %v3348_v8, %v3290_v30  ;;  %3514 = vmatmul.bf16.gmra.mxu0 %v2479_v22  ;;  %v15337_v22 = vld [vmem:[#allocation36_spill] sm:$0xff] }
 0x2d2   :  { %3573 = vmatmul.bf16.gmra.mxu1 %v2480_v4  ;;  %v15338_v55 = vunpack.c.l.b16 %v15337_v22  ;;  %v15339_v4 = vunpack.c.h.b16 %v15335_v20  ;;  %v15340_v36 = vunpack.c.h.b16 %v15337_v22 }
 0x2d3   :  { %3632 = vmatmul.bf16.gmra.mxu2 %v2481_v23 }
 0x2d4   :  { %3691 = vmatmul.bf16.gmra.mxu3 %v2482_v39  ;;  %v2493_v19 = vpack.c.b16 %v15338_v55, %v15336_v60  ;;  %v2494_v13 = vpack.c.b16 %v15340_v36, %v15339_v4 }
 0x2d6   :  { %v3407_v56 = vpop.f32.mrf.mxu2  ;;  %v3291_v27 = vpop.f32.mrf.mxu0 }
 0x2d7   :  { %v3466_v63 = vpop.f32.mrf.mxu3  ;;  %v3408_v12 = vadd.f32 %v3407_v56, %v3349_v28  ;;  %v3350_v52 = vpop.f32.mrf.mxu1  ;;  %v3292_v32 = vadd.f32 %v3291_v27, %v12189_v11  ;;  %v2492_v11 = vpack.c.b16 %v15334_v61, %v15333_v58  ;;  %v15343_v27 = vld [vmem:[#allocation38_spill] sm:$0xff] }
 0x2d9   :  { %v12481_v41 = vadd.f32 %v3466_v63, %v3408_v12  ;;  %v3351_v16 = vadd.f32 %v3350_v52, %v3292_v32  ;;  %v15341_v63 = vld [vmem:[#allocation35_spill] sm:$0xff]  ;;  %v15344_v52 = vunpack.c.l.b16 %v15343_v27 }
 0x2da   :  { %v15342_v12 = vunpack.c.l.b16 %v15341_v63  ;;  %v15345_v2 = vunpack.c.h.b16 %v15341_v63 }
 0x2dc   :  { %v2503_v32 = vpack.c.b16 %v15344_v52, %v15342_v12  ;;  %v15359_v12 = vld [vmem:[#allocation41_spill] sm:$0xff]  ;;  %v15361_v52 = vld [vmem:[#allocation44_spill] sm:$0xff] }
 0x2de   :  { %v3409_v62 = vpop.f32.mrf.mxu2  ;;  %v3294_v31 = vpop.f32.mrf.mxu0 }
 0x2df   :  { %v3468_v14 = vpop.f32.mrf.mxu3  ;;  %v3410_v17 = vadd.f32 %v3409_v62, %v3351_v16  ;;  %v3353_v25 = vpop.f32.mrf.mxu1  ;;  %v3295_v8 = vadd.f32 %v3294_v31, %v12192_v47  ;;  %v9779_v47 = vld [vmem:[%s14689_s1 + $0x290] sm:$0xff]  ;;  %v15346_v16 = vunpack.c.h.b16 %v15343_v27  ;;  %v15360_v27 = vunpack.c.l.b16 %v15359_v12 }
 0x2e0   :  { %3850 = vmatpush.bf16.msrb.mxu2 %v9779_v47 }
 0x2e1   :  { %v12503_v35 = vadd.f32 %v3468_v14, %v3410_v17  ;;  %v3354_v26 = vadd.f32 %v3353_v25, %v3295_v8  ;;  %3519 = vmatmul.bf16.gmra.mxu0 %v2491_v48  ;;  %v2504_v62 = vpack.c.b16 %v15346_v16, %v15345_v2  ;;  %v15349_v48 = vld [vmem:[#allocation40_spill] sm:$0xff]  ;;  %v15363_v16 = vunpack.c.h.b16 %v15359_v12  ;;  %v9761_v12 = vld [vmem:[%s14689_s1 + $0x200] sm:$0xff] }
 0x2e2   :  { %3578 = vmatmul.bf16.gmra.mxu1 %v2492_v11  ;;  %v15350_v58 = vunpack.c.l.b16 %v15349_v48  ;;  %v15351_v11 = vunpack.c.h.b16 %v15347_v1  ;;  %v15352_v17 = vunpack.c.h.b16 %v15349_v48  ;;  %v9770_v1 = vld [vmem:[%s14689_s1 + $0x248] sm:$0xff] }
 0x2e3   :  { %3637 = vmatmul.bf16.gmra.mxu2 %v2493_v19  ;;  %3792 = vmatpush.bf16.msrb.mxu1 %v9770_v1 }
 0x2e4   :  { %3696 = vmatmul.bf16.gmra.mxu3 %v2494_v13  ;;  %v2505_v61 = vpack.c.b16 %v15350_v58, %v15348_v43  ;;  %v2506_v31 = vpack.c.b16 %v15352_v17, %v15351_v11 }
 0x2e6   :  { %v3412_v40 = vpop.f32.mrf.mxu2  ;;  %v3296_v54 = vpop.f32.mrf.mxu0 }
 0x2e7   :  { %v3471_v6 = vpop.f32.mrf.mxu3  ;;  %v3413_v23 = vadd.f32 %v3412_v40, %v3354_v26  ;;  %v3355_v10 = vpop.f32.mrf.mxu1  ;;  %v3297_v39 = vadd.f32 %v3296_v54, %v12223_v34  ;;  %v9762_v40 = vld [vmem:[%s14689_s1 + $0x208] sm:$0xff] }
 0x2e8   :  { %3733 = vmatpush.bf16.msrb.mxu0 %v9762_v40  ;;  %v15353_v54 = vld [vmem:[#allocation39_spill] sm:$0xff] }
 0x2e9   :  { %v12506_v30 = vadd.f32 %v3471_v6, %v3413_v23  ;;  %v3356_v28 = vadd.f32 %v3355_v10, %v3297_v39  ;;  %v9786_v6 = vld [vmem:[%s14689_s1 + $0x2c8] sm:$0xff]  ;;  %v15354_v10 = vunpack.c.l.b16 %v15353_v54  ;;  %v15355_v39 = vld [vmem:[#allocation42_spill] sm:$0xff]  ;;  %v15357_v0 = vunpack.c.h.b16 %v15353_v54  ;;  %v15371_v54 = vld [vmem:[#allocation45_spill] sm:$0xff] }
 0x2ea   :  { %3910 = vmatpush.bf16.msrb.mxu3 %v9786_v6  ;;  %v15356_v47 = vunpack.c.l.b16 %v15355_v39  ;;  %v15358_v42 = vunpack.c.h.b16 %v15355_v39 }
 0x2ec   :  { %v2516_v53 = vpack.c.b16 %v15358_v42, %v15357_v0  ;;  %3734 = vmatpush.bf16.msrb.mxu0 %v9761_v12  ;;  %v10024_v12 = vld [vmem:[%s14689_s1 + $0x678] sm:$0xff] }
 0x2ee   :  { %v3414_v34 = vpop.f32.mrf.mxu2  ;;  %v3299_v44 = vpop.f32.mrf.mxu0 }
 0x2ef   :  { %v3473_v56 = vpop.f32.mrf.mxu3  ;;  %v3415_v14 = vadd.f32 %v3414_v34, %v3356_v28  ;;  %v3358_v46 = vpop.f32.mrf.mxu1  ;;  %v3300_v25 = vadd.f32 %v3299_v44, %v12226_v29  ;;  %v9778_v29 = vld [vmem:[%s14689_s1 + $0x288] sm:$0xff]  ;;  %v2515_v28 = vpack.c.b16 %v15356_v47, %v15354_v10  ;;  %v15373_v10 = vld [vmem:[#allocation48_spill] sm:$0xff] }
 0x2f0   :  { %3851 = vmatpush.bf16.msrb.mxu2 %v9778_v29  ;;  %v15374_v39 = vunpack.c.l.b16 %v15373_v10  ;;  %v15376_v0 = vunpack.c.h.b16 %v15373_v10  ;;  %v10032_v10 = vld [vmem:[%s14689_s1 + $0x6b8] sm:$0xff] }
 0x2f1   :  { %v12537_v20 = vadd.f32 %v3473_v56, %v3415_v14  ;;  %v3359_v60 = vadd.f32 %v3358_v46, %v3300_v25  ;;  %3524 = vmatmul.bf16.gmra.mxu0 %v2503_v32  ;;  %v15362_v32 = vunpack.c.l.b16 %v15361_v52 }
 0x2f2   :  { %3583 = vmatmul.bf16.gmra.mxu1 %v2504_v62  ;;  %v15364_v62 = vunpack.c.h.b16 %v15361_v52 }
 0x2f3   :  { %3642 = vmatmul.bf16.gmra.mxu2 %v2505_v61  ;;  %v2517_v2 = vpack.c.b16 %v15362_v32, %v15360_v27  ;;  %v9785_v27 = vld [vmem:[%s14689_s1 + $0x2c0] sm:$0xff] }
 0x2f4   :  { %3701 = vmatmul.bf16.gmra.mxu3 %v2506_v31  ;;  %v2518_v14 = vpack.c.b16 %v15364_v62, %v15363_v16 }
 0x2f5   :  { %3911 = vmatpush.bf16.msrb.mxu3 %v9785_v27 }
 0x2f6   :  { %v3417_v22 = vpop.f32.mrf.mxu2  ;;  %v3301_v4 = vpop.f32.mrf.mxu0 }
 0x2f7   :  { %v3476_v55 = vpop.f32.mrf.mxu3  ;;  %v3418_v19 = vadd.f32 %v3417_v22, %v3359_v60  ;;  %v3360_v36 = vpop.f32.mrf.mxu1  ;;  %v3302_v13 = vadd.f32 %v3301_v4, %v12254_v51  ;;  %v15367_v4 = vld [vmem:[#allocation46_spill] sm:$0xff] }
 0x2f8   :  { %v15370_v29 = vunpack.c.h.b16 %v15367_v4 }
 0x2f9   :  { %v12540_v8 = vadd.f32 %v3476_v55, %v3418_v19  ;;  %v3361_v26 = vadd.f32 %v3360_v36, %v3302_v13  ;;  %v15365_v55 = vld [vmem:[#allocation43_spill] sm:$0xff]  ;;  %v15368_v36 = vunpack.c.l.b16 %v15367_v4 }
 0x2fa   :  { %v15366_v19 = vunpack.c.l.b16 %v15365_v55 }
 0x2fc   :  { %v2527_v13 = vpack.c.b16 %v15368_v36, %v15366_v19  ;;  %v15383_v36 = vld [vmem:[#allocation49_spill] sm:$0xff] }
 0x2fe   :  { %v3419_v23 = vpop.f32.mrf.mxu2  ;;  %v3304_v56 = vpop.f32.mrf.mxu0 }
 0x2ff   :  { %v3478_v51 = vpop.f32.mrf.mxu3  ;;  %v3420_v34 = vadd.f32 %v3419_v23, %v3361_v26  ;;  %v3363_v63 = vpop.f32.mrf.mxu1  ;;  %v3305_v44 = vadd.f32 %v3304_v56, %v12260_v57  ;;  %v15369_v26 = vunpack.c.h.b16 %v15365_v55  ;;  %v9777_v56 = vld [vmem:[%s14689_s1 + $0x280] sm:$0xff] }
 0x300   :  { %3852 = vmatpush.bf16.msrb.mxu2 %v9777_v56 }
 0x301   :  { %v12568_v46 = vadd.f32 %v3478_v51, %v3420_v34  ;;  %v3364_v43 = vadd.f32 %v3363_v63, %v3305_v44  ;;  %3529 = vmatmul.bf16.gmra.mxu0 %v2515_v28  ;;  %v2528_v40 = vpack.c.b16 %v15370_v29, %v15369_v26  ;;  %v15375_v28 = vunpack.c.h.b16 %v15371_v54 }
 0x302   :  { %3588 = vmatmul.bf16.gmra.mxu1 %v2516_v53 }
 0x303   :  { %3647 = vmatmul.bf16.gmra.mxu2 %v2517_v2  ;;  %v2530_v42 = vpack.c.b16 %v15376_v0, %v15375_v28 }
 0x304   :  { %3706 = vmatmul.bf16.gmra.mxu3 %v2518_v14  ;;  %5570 = vmatpush.bf16.msra.mxu2 %v10032_v10  ;;  %v10031_v10 = vld [vmem:[%s14689_s1 + $0x6b0] sm:$0xff] }
 0x306   :  { %v3422_v48 = vpop.f32.mrf.mxu2  ;;  %v3306_v11 = vpop.f32.mrf.mxu0 }
 0x307   :  { %v3481_v58 = vpop.f32.mrf.mxu3  ;;  %v3423_v61 = vadd.f32 %v3422_v48, %v3364_v43  ;;  %v3365_v17 = vpop.f32.mrf.mxu1  ;;  %v3307_v31 = vadd.f32 %v3306_v11, %v12279_v37  ;;  %v15372_v37 = vunpack.c.l.b16 %v15371_v54  ;;  %v15379_v11 = vld [vmem:[#allocation50_spill] sm:$0xff] }
 0x308   :  { %5571 = vmatpush.bf16.msra.mxu2 %v10031_v10 }
 0x309   :  { %v12574_v57 = vadd.f32 %v3481_v58, %v3423_v61  ;;  %v3366_v25 = vadd.f32 %v3365_v17, %v3307_v31  ;;  %v2529_v47 = vpack.c.b16 %v15374_v39, %v15372_v37  ;;  %v15377_v58 = vld [vmem:[#allocation47_spill] sm:$0xff]  ;;  %v15380_v17 = vunpack.c.l.b16 %v15379_v11  ;;  %v10016_v39 = vld [vmem:[%s14689_s1 + $0x638] sm:$0xff] }
 0x30a   :  { %v15378_v61 = vunpack.c.l.b16 %v15377_v58  ;;  %5452 = vmatpush.bf16.msra.mxu0 %v10016_v39 }
 0x30c   :  { %v2539_v31 = vpack.c.b16 %v15380_v17, %v15378_v61 }
 0x30e   :  { %v3424_v60 = vpop.f32.mrf.mxu2  ;;  %v3309_v23 = vpop.f32.mrf.mxu0 }
 0x30f   :  { %v3483_v22 = vpop.f32.mrf.mxu3  ;;  %v3425_v6 = vadd.f32 %v3424_v60, %v3366_v25  ;;  %v3368_v51 = vpop.f32.mrf.mxu1  ;;  %v3310_v53 = vadd.f32 %v3309_v23, %v12294_v50  ;;  %v9769_v50 = vld [vmem:[%s14689_s1 + $0x240] sm:$0xff]  ;;  %v15381_v25 = vunpack.c.h.b16 %v15377_v58  ;;  %v15382_v60 = vunpack.c.h.b16 %v15379_v11  ;;  %v15395_v11 = vld [vmem:[#allocation53_spill] sm:$0xff] }
 0x310   :  { %3793 = vmatpush.bf16.msrb.mxu1 %v9769_v50  ;;  %v15396_v17 = vunpack.c.l.b16 %v15395_v11 }
 0x311   :  { %v12593_v34 = vadd.f32 %v3483_v22, %v3425_v6  ;;  %v3369_v63 = vadd.f32 %v3368_v51, %v3310_v53  ;;  %3534 = vmatmul.bf16.gmra.mxu0 %v2527_v13  ;;  %v2540_v22 = vpack.c.b16 %v15382_v60, %v15381_v25  ;;  %v15385_v13 = vld [vmem:[#allocation52_spill] sm:$0xff] }
 0x312   :  { %3593 = vmatmul.bf16.gmra.mxu1 %v2528_v40  ;;  %v15386_v26 = vunpack.c.l.b16 %v15385_v13  ;;  %v15387_v40 = vunpack.c.h.b16 %v15383_v36  ;;  %v15388_v6 = vunpack.c.h.b16 %v15385_v13 }
 0x313   :  { %3652 = vmatmul.bf16.gmra.mxu2 %v2529_v47  ;;  %v10040_v47 = vld [vmem:[%s14689_s1 + $0x6f8] sm:$0xff] }
 0x314   :  { %3711 = vmatmul.bf16.gmra.mxu3 %v2530_v42  ;;  %v2542_v23 = vpack.c.b16 %v15388_v6, %v15387_v40  ;;  %5511 = vmatpush.bf16.msra.mxu1 %v10024_v12 }
 0x315   :  { %5629 = vmatpush.bf16.msra.mxu3 %v10040_v47 }
 0x316   :  { %v3427_v52 = vpop.f32.mrf.mxu2  ;;  %v3311_v16 = vpop.f32.mrf.mxu0 }
 0x317   :  { %v3486_v32 = vpop.f32.mrf.mxu3  ;;  %v3428_v2 = vadd.f32 %v3427_v52, %v3369_v63  ;;  %v3370_v62 = vpop.f32.mrf.mxu1  ;;  %v3312_v14 = vadd.f32 %v3311_v16, %v12313_v45  ;;  %v15384_v45 = vunpack.c.l.b16 %v15383_v36  ;;  %v15391_v16 = vld [vmem:[#allocation54_spill] sm:$0xff] }
 0x319   :  { %v12608_v44 = vadd.f32 %v3486_v32, %v3428_v2  ;;  %v3371_v1 = vadd.f32 %v3370_v62, %v3312_v14  ;;  %v2541_v29 = vpack.c.b16 %v15386_v26, %v15384_v45  ;;  %v15389_v32 = vld [vmem:[#allocation51_spill] sm:$0xff]  ;;  %v15392_v62 = vunpack.c.l.b16 %v15391_v16 }
 0x31a   :  { %v15390_v2 = vunpack.c.l.b16 %v15389_v32 }
 0x31c   :  { %v2551_v14 = vpack.c.b16 %v15392_v62, %v15390_v2 }
 0x31e   :  { %v3429_v43 = vpop.f32.mrf.mxu2  ;;  %v3500_v19 = vpop.f32.mrf.mxu0 }
 0x31f   :  { %v3488_v48 = vpop.f32.mrf.mxu3  ;;  %v3430_v55 = vadd.f32 %v3429_v43, %v3371_v1  ;;  %v3559_v4 = vpop.f32.mrf.mxu1  ;;  %v3501_v51 = vadd.f32 %v3500_v19, %v12325_v18  ;;  %v15393_v1 = vunpack.c.h.b16 %v15389_v32  ;;  %v15394_v43 = vunpack.c.h.b16 %v15391_v16 }
 0x321   :  { %v12627_v54 = vadd.f32 %v3488_v48, %v3430_v55  ;;  %v3560_v37 = vadd.f32 %v3559_v4, %v3501_v51  ;;  %3539 = vmatmul.bf16.gmra.mxu0 %v2539_v31  ;;  %v15397_v31 = vld [vmem:[#allocation55_spill] sm:$0xff] }
 0x322   :  { %3598 = vmatmul.bf16.gmra.mxu1 %v2540_v22  ;;  %v15398_v25 = vunpack.c.l.b16 %v15397_v31  ;;  %v15399_v22 = vunpack.c.h.b16 %v15395_v11  ;;  %v15400_v55 = vunpack.c.h.b16 %v15397_v31 }
 0x323   :  { %3657 = vmatmul.bf16.gmra.mxu2 %v2541_v29 }
 0x324   :  { %3716 = vmatmul.bf16.gmra.mxu3 %v2542_v23  ;;  %v2553_v60 = vpack.c.b16 %v15398_v25, %v15396_v17  ;;  %v2554_v19 = vpack.c.b16 %v15400_v55, %v15399_v22  ;;  %v30_v23 = vld [vmem:[%s14690_s0 + $0x20] sm:$0xff] }
 0x325   :  { %v2435_v47 = vunpack.c.l.b16 %v30_v23 }
 0x326   :  { %v3618_v18 = vpop.f32.mrf.mxu2  ;;  %v3502_v42 = vpop.f32.mrf.mxu0 }
 0x327   :  { %v3677_v28 = vpop.f32.mrf.mxu3  ;;  %v3619_v0 = vadd.f32 %v3618_v18, %v3560_v37  ;;  %v3561_v53 = vpop.f32.mrf.mxu1  ;;  %v3503_v56 = vadd.f32 %v3502_v42, %v12347_v9  ;;  %v2552_v9 = vpack.c.b16 %v15394_v43, %v15393_v1  ;;  %v2436_v18 = vunpack.c.h.b16 %v30_v23  ;;  %v15404_v1 = vld [vmem:[#allocation58_spill] sm:$0xff]  ;;  %v15409_v23 = vld [vmem:[#allocation60_spill] sm:$0xff] }
 0x328   :  { %v15405_v43 = vunpack.c.l.b16 %v15404_v1 }
 0x329   :  { %v12639_v63 = vadd.f32 %v3677_v28, %v3619_v0  ;;  %v3562_v27 = vadd.f32 %v3561_v53, %v3503_v56  ;;  %v10015_v28 = vld [vmem:[%s14689_s1 + $0x630] sm:$0xff] }
 0x32a   :  { %v10023_v0 = vld [vmem:[%s14689_s1 + $0x670] sm:$0xff]  ;;  %5453 = vmatpush.bf16.msra.mxu0 %v10015_v28 }
 0x32b   :  { %5512 = vmatpush.bf16.msra.mxu1 %v10023_v0  ;;  %v15413_v0 = vld [vmem:[#allocation59_spill] sm:$0xff] }
 0x32e   :  { %v3620_v50 = vpop.f32.mrf.mxu2  ;;  %v3505_v58 = vpop.f32.mrf.mxu0 }
 0x32f   :  { %v3679_v52 = vpop.f32.mrf.mxu3  ;;  %v3621_v48 = vadd.f32 %v3620_v50, %v3562_v27  ;;  %v3564_v61 = vpop.f32.mrf.mxu1  ;;  %v3506_v4 = vadd.f32 %v3505_v58, %v12356_v7  ;;  %v31_v7 = vld [vmem:[%s14690_s0 + $0x28] sm:$0xff]  ;;  %v15401_v27 = vld [vmem:[#allocation56_spill] sm:$0xff] }
 0x330   :  { %v2437_v42 = vunpack.c.l.b16 %v31_v7  ;;  %v2438_v53 = vunpack.c.h.b16 %v31_v7  ;;  %v15402_v50 = vunpack.c.l.b16 %v15401_v27  ;;  %v15403_v32 = vunpack.c.h.b16 %v15401_v27 }
 0x331   :  { %v12661_v36 = vadd.f32 %v3679_v52, %v3621_v48  ;;  %v3565_v45 = vadd.f32 %v3564_v61, %v3506_v4  ;;  %3544 = vmatmul.bf16.gmra.mxu0 %v2551_v14  ;;  %v15406_v48 = vunpack.c.h.b16 %v15404_v1  ;;  %v15417_v27 = vunpack.c.h.b16 %v15413_v0 }
 0x332   :  { %3603 = vmatmul.bf16.gmra.mxu1 %v2552_v9  ;;  %v2447_v52 = vpack.c.b16 %v15402_v50, %v2435_v47  ;;  %v2448_v2 = vpack.c.b16 %v15403_v32, %v2436_v18  ;;  %v2449_v9 = vpack.c.b16 %v15405_v43, %v2437_v42  ;;  %v15414_v42 = vunpack.c.l.b16 %v15413_v0  ;;  %v10013_v0 = vld [vmem:[%s14689_s1 + $0x620] sm:$0xff] }
 0x333   :  { %3662 = vmatmul.bf16.gmra.mxu2 %v2553_v60  ;;  %v2450_v58 = vpack.c.b16 %v15406_v48, %v2438_v53  ;;  %v15415_v53 = vld [vmem:[#allocation62_spill] sm:$0xff] }
 0x334   :  { %3721 = vmatmul.bf16.gmra.mxu3 %v2554_v19  ;;  %v15418_v50 = vunpack.c.h.b16 %v15415_v53 }
 0x336   :  { %v3623_v13 = vpop.f32.mrf.mxu2  ;;  %v3507_v40 = vpop.f32.mrf.mxu0 }
 0x337   :  { %v3682_v26 = vpop.f32.mrf.mxu3  ;;  %v3624_v29 = vadd.f32 %v3623_v13, %v3565_v45  ;;  %v3566_v6 = vpop.f32.mrf.mxu1  ;;  %v3508_v51 = vadd.f32 %v3507_v40, %v12379_v3  ;;  %v10039_v3 = vld [vmem:[%s14689_s1 + $0x6f0] sm:$0xff]  ;;  %v10014_v13 = vld [vmem:[%s14689_s1 + $0x628] sm:$0xff]  ;;  %v15407_v40 = vld [vmem:[#allocation57_spill] sm:$0xff] }
 0x338   :  { %5630 = vmatpush.bf16.msra.mxu3 %v10039_v3  ;;  %5454 = vmatpush.bf16.msra.mxu0 %v10014_v13  ;;  %v15411_v10 = vunpack.c.h.b16 %v15407_v40 }
 0x339   :  { %v12670_v37 = vadd.f32 %v3682_v26, %v3624_v29  ;;  %v3567_v39 = vadd.f32 %v3566_v6, %v3508_v51  ;;  %v10038_v26 = vld [vmem:[%s14689_s1 + $0x6e8] sm:$0xff]  ;;  %v15408_v6 = vunpack.c.l.b16 %v15407_v40  ;;  %v15410_v51 = vunpack.c.l.b16 %v15409_v23 }
 0x33a   :  { %v15425_v40 = vld [vmem:[#allocation63_spill] sm:$0xff] }
 0x33b   :  { %v2459_v7 = vpack.c.b16 %v15410_v51, %v15408_v6  ;;  %v15427_v6 = vld [vmem:[#allocation66_spill] sm:$0xff] }
 0x33c   :  { %5631 = vmatpush.bf16.msra.mxu3 %v10038_v26  ;;  %5455 = vmatpush.bf16.msra.mxu0 %v10013_v0  ;;  %v10020_v0 = vld [vmem:[%s14689_s1 + $0x658] sm:$0xff] }
 0x33e   :  { %v3625_v56 = vpop.f32.mrf.mxu2  ;;  %v3510_v62 = vpop.f32.mrf.mxu0 }
 0x33f   :  { %v3684_v12 = vpop.f32.mrf.mxu3  ;;  %v3626_v16 = vadd.f32 %v3625_v56, %v3567_v39  ;;  %v3569_v14 = vpop.f32.mrf.mxu1  ;;  %v3511_v61 = vadd.f32 %v3510_v62, %v12382_v24  ;;  %v10030_v24 = vld [vmem:[%s14689_s1 + $0x6a8] sm:$0xff]  ;;  %v15412_v39 = vunpack.c.h.b16 %v15409_v23  ;;  %v15416_v56 = vunpack.c.l.b16 %v15415_v53 }
 0x340   :  { %5572 = vmatpush.bf16.msra.mxu2 %v10030_v24  ;;  %v15428_v23 = vunpack.c.l.b16 %v15427_v6 }
 0x341   :  { %v12693_v11 = vadd.f32 %v3684_v12, %v3626_v16  ;;  %v3570_v17 = vadd.f32 %v3569_v14, %v3511_v61  ;;  %3735 = vmatmul.bf16.vlgmr.msrb.gmra.mxu0 %v2447_v52  ;;  %v2460_v47 = vpack.c.b16 %v15412_v39, %v15411_v10  ;;  %v2461_v12 = vpack.c.b16 %v15416_v56, %v15414_v42  ;;  %v10022_v16 = vld [vmem:[%s14689_s1 + $0x668] sm:$0xff]  ;;  %v10037_v42 = vld [vmem:[%s14689_s1 + $0x6e0] sm:$0xff] }
 0x342   :  { %3794 = vmatmul.bf16.vlgmr.msrb.gmra.mxu1 %v2448_v2  ;;  %v2462_v52 = vpack.c.b16 %v15418_v50, %v15417_v27  ;;  %v15430_v10 = vunpack.c.h.b16 %v15427_v6  ;;  %5632 = vmatpush.bf16.msra.mxu3 %v10037_v42  ;;  %v10028_v6 = vld [vmem:[%s14689_s1 + $0x698] sm:$0xff] }
 0x343   :  { %3853 = vmatmul.bf16.vlgmr.msrb.gmra.mxu2 %v2449_v9  ;;  %5513 = vmatpush.bf16.msra.mxu1 %v10022_v16 }
 0x344   :  { %3912 = vmatmul.bf16.vlgmr.msrb.gmra.mxu3 %v2450_v58 }
 0x346   :  { %v3628_v31 = vpop.f32.mrf.mxu2  ;;  %v3512_v22 = vpop.f32.mrf.mxu0 }
 0x347   :  { %v3687_v25 = vpop.f32.mrf.mxu3  ;;  %v3629_v60 = vadd.f32 %v3628_v31, %v3570_v17  ;;  %v3571_v55 = vpop.f32.mrf.mxu1  ;;  %v3513_v19 = vadd.f32 %v3512_v22, %v12410_v15  ;;  %v15421_v22 = vld [vmem:[#allocation64_spill] sm:$0xff] }
 0x348   :  { %v15424_v24 = vunpack.c.h.b16 %v15421_v22 }
 0x349   :  { %v12696_v4 = vadd.f32 %v3687_v25, %v3629_v60  ;;  %v3572_v45 = vadd.f32 %v3571_v55, %v3513_v19  ;;  %v15419_v25 = vld [vmem:[#allocation61_spill] sm:$0xff]  ;;  %v15422_v55 = vunpack.c.l.b16 %v15421_v22 }
 0x34a   :  { %v15420_v60 = vunpack.c.l.b16 %v15419_v25 }
 0x34c   :  { %v2471_v19 = vpack.c.b16 %v15422_v55, %v15420_v60  ;;  %v15437_v55 = vld [vmem:[#allocation67_spill] sm:$0xff] }
 0x34e   :  { %v3630_v29 = vpop.f32.mrf.mxu2  ;;  %v3515_v28 = vpop.f32.mrf.mxu0 }
 0x34f   :  { %v3689_v15 = vpop.f32.mrf.mxu3  ;;  %v3631_v18 = vadd.f32 %v3630_v29, %v3572_v45  ;;  %v3574_v3 = vpop.f32.mrf.mxu1  ;;  %v3516_v32 = vadd.f32 %v3515_v28, %v12416_v33  ;;  %v15423_v45 = vunpack.c.h.b16 %v15419_v25  ;;  %v10029_v28 = vld [vmem:[%s14689_s1 + $0x6a0] sm:$0xff] }
 0x350   :  { %5573 = vmatpush.bf16.msra.mxu2 %v10029_v28 }
 0x351   :  { %v12724_v2 = vadd.f32 %v3689_v15, %v3631_v18  ;;  %v3575_v62 = vadd.f32 %v3574_v3, %v3516_v32  ;;  %3740 = vmatmul.bf16.gmra.mxu0 %v2459_v7  ;;  %v2472_v13 = vpack.c.b16 %v15424_v24, %v15423_v45  ;;  %v15429_v7 = vunpack.c.h.b16 %v15425_v40 }
 0x352   :  { %3799 = vmatmul.bf16.gmra.mxu1 %v2460_v47 }
 0x353   :  { %3858 = vmatmul.bf16.gmra.mxu2 %v2461_v12  ;;  %v2474_v39 = vpack.c.b16 %v15430_v10, %v15429_v7 }
 0x354   :  { %3917 = vmatmul.bf16.gmra.mxu3 %v2462_v52  ;;  %5574 = vmatpush.bf16.msra.mxu2 %v10028_v6  ;;  %v10011_v6 = vld [vmem:[%s14689_s1 + $0x610] sm:$0xff] }
 0x356   :  { %v3633_v14 = vpop.f32.mrf.mxu2  ;;  %v3517_v9 = vpop.f32.mrf.mxu0 }
 0x357   :  { %v3692_v1 = vpop.f32.mrf.mxu3  ;;  %v3634_v43 = vadd.f32 %v3633_v14, %v3575_v62  ;;  %v3576_v48 = vpop.f32.mrf.mxu1  ;;  %v3518_v58 = vadd.f32 %v3517_v9, %v12435_v21  ;;  %v15426_v21 = vunpack.c.l.b16 %v15425_v40  ;;  %v15433_v9 = vld [vmem:[#allocation68_spill] sm:$0xff] }
 0x359   :  { %v12730_v33 = vadd.f32 %v3692_v1, %v3634_v43  ;;  %v3577_v61 = vadd.f32 %v3576_v48, %v3518_v58  ;;  %v2473_v51 = vpack.c.b16 %v15428_v23, %v15426_v21  ;;  %v15431_v1 = vld [vmem:[#allocation65_spill] sm:$0xff]  ;;  %v15434_v48 = vunpack.c.l.b16 %v15433_v9 }
 0x35a   :  { %v15432_v43 = vunpack.c.l.b16 %v15431_v1  ;;  %v10012_v23 = vld [vmem:[%s14689_s1 + $0x618] sm:$0xff] }
 0x35b   :  { %5456 = vmatpush.bf16.msra.mxu0 %v10012_v23  ;;  %v10035_v23 = vld [vmem:[%s14689_s1 + $0x6d0] sm:$0xff] }
 0x35c   :  { %v2483_v58 = vpack.c.b16 %v15434_v48, %v15432_v43 }
 0x35e   :  { %v3635_v17 = vpop.f32.mrf.mxu2  ;;  %v3520_v29 = vpop.f32.mrf.mxu0 }
 0x35f   :  { %v3694_v31 = vpop.f32.mrf.mxu3  ;;  %v3636_v26 = vadd.f32 %v3635_v17, %v3577_v61  ;;  %v3579_v15 = vpop.f32.mrf.mxu1  ;;  %v3521_v47 = vadd.f32 %v3520_v29, %v12450_v59  ;;  %v10021_v59 = vld [vmem:[%s14689_s1 + $0x660] sm:$0xff]  ;;  %v15435_v61 = vunpack.c.h.b16 %v15431_v1  ;;  %v15436_v17 = vunpack.c.h.b16 %v15433_v9  ;;  %v15449_v9 = vld [vmem:[#allocation71_spill] sm:$0xff]  ;;  %5457 = vmatpush.bf16.msra.mxu0 %v10011_v6 }
 0x360   :  { %5514 = vmatpush.bf16.msra.mxu1 %v10021_v59  ;;  %v15450_v48 = vunpack.c.l.b16 %v15449_v9 }
 0x361   :  { %v12749_v18 = vadd.f32 %v3694_v31, %v3636_v26  ;;  %v3580_v3 = vadd.f32 %v3579_v15, %v3521_v47  ;;  %3745 = vmatmul.bf16.gmra.mxu0 %v2471_v19  ;;  %v2484_v31 = vpack.c.b16 %v15436_v17, %v15435_v61  ;;  %v15439_v19 = vld [vmem:[#allocation70_spill] sm:$0xff] }
 0x362   :  { %3804 = vmatmul.bf16.gmra.mxu1 %v2472_v13  ;;  %v15440_v45 = vunpack.c.l.b16 %v15439_v19  ;;  %v15441_v13 = vunpack.c.h.b16 %v15437_v55  ;;  %v15442_v26 = vunpack.c.h.b16 %v15439_v19 }
 0x363   :  { %3863 = vmatmul.bf16.gmra.mxu2 %v2473_v51  ;;  %v10036_v51 = vld [vmem:[%s14689_s1 + $0x6d8] sm:$0xff] }
 0x364   :  { %3922 = vmatmul.bf16.gmra.mxu3 %v2474_v39  ;;  %v2486_v29 = vpack.c.b16 %v15442_v26, %v15441_v13  ;;  %5515 = vmatpush.bf16.msra.mxu1 %v10020_v0 }
 0x365   :  { %5633 = vmatpush.bf16.msra.mxu3 %v10036_v51  ;;  %v10019_v51 = vld [vmem:[%s14689_s1 + $0x650] sm:$0xff] }
 0x366   :  { %v3638_v53 = vpop.f32.mrf.mxu2  ;;  %v3522_v27 = vpop.f32.mrf.mxu0 }
 0x367   :  { %v3697_v56 = vpop.f32.mrf.mxu3  ;;  %v3639_v12 = vadd.f32 %v3638_v53, %v3580_v3  ;;  %v3581_v50 = vpop.f32.mrf.mxu1  ;;  %v3523_v52 = vadd.f32 %v3522_v27, %v12469_v49  ;;  %v15438_v49 = vunpack.c.l.b16 %v15437_v55  ;;  %v15445_v27 = vld [vmem:[#allocation72_spill] sm:$0xff] }
 0x368   :  { %5516 = vmatpush.bf16.msra.mxu1 %v10019_v51 }
 0x369   :  { %v12764_v32 = vadd.f32 %v3697_v56, %v3639_v12  ;;  %v3582_v16 = vadd.f32 %v3581_v50, %v3523_v52  ;;  %v2485_v24 = vpack.c.b16 %v15440_v45, %v15438_v49  ;;  %v15443_v56 = vld [vmem:[#allocation69_spill] sm:$0xff]  ;;  %v15446_v50 = vunpack.c.l.b16 %v15445_v27  ;;  %5634 = vmatpush.bf16.msra.mxu3 %v10035_v23 }
 0x36a   :  { %v15444_v12 = vunpack.c.l.b16 %v15443_v56 }
 0x36c   :  { %v2495_v52 = vpack.c.b16 %v15446_v50, %v15444_v12 }
 0x36e   :  { %v3640_v62 = vpop.f32.mrf.mxu2  ;;  %v3525_v60 = vpop.f32.mrf.mxu0 }
 0x36f   :  { %v3699_v14 = vpop.f32.mrf.mxu3  ;;  %v3641_v25 = vadd.f32 %v3640_v62, %v3582_v16  ;;  %v3584_v22 = vpop.f32.mrf.mxu1  ;;  %v3526_v15 = vadd.f32 %v3525_v60, %v12481_v41  ;;  %v15447_v16 = vunpack.c.h.b16 %v15443_v56  ;;  %v15448_v62 = vunpack.c.h.b16 %v15445_v27  ;;  %v15461_v27 = vld [vmem:[#allocation75_spill] sm:$0xff] }
 0x370   :  { %v15462_v50 = vunpack.c.l.b16 %v15461_v27 }
 0x371   :  { %v12783_v40 = vadd.f32 %v3699_v14, %v3641_v25  ;;  %v3585_v21 = vadd.f32 %v3584_v22, %v3526_v15  ;;  %3750 = vmatmul.bf16.gmra.mxu0 %v2483_v58  ;;  %v15451_v58 = vld [vmem:[#allocation74_spill] sm:$0xff] }
 0x372   :  { %3809 = vmatmul.bf16.gmra.mxu1 %v2484_v31  ;;  %v15452_v61 = vunpack.c.l.b16 %v15451_v58  ;;  %v15453_v31 = vunpack.c.h.b16 %v15449_v9  ;;  %v15454_v25 = vunpack.c.h.b16 %v15451_v58 }
 0x373   :  { %3868 = vmatmul.bf16.gmra.mxu2 %v2485_v24 }
 0x374   :  { %3927 = vmatmul.bf16.gmra.mxu3 %v2486_v29  ;;  %v2497_v17 = vpack.c.b16 %v15452_v61, %v15450_v48  ;;  %v2498_v60 = vpack.c.b16 %v15454_v25, %v15453_v31 }
 0x376   :  { %v3643_v41 = vpop.f32.mrf.mxu2  ;;  %v3527_v39 = vpop.f32.mrf.mxu0 }
 0x377   :  { %v3702_v7 = vpop.f32.mrf.mxu3  ;;  %v3644_v10 = vadd.f32 %v3643_v41, %v3585_v21  ;;  %v3586_v47 = vpop.f32.mrf.mxu1  ;;  %v3528_v28 = vadd.f32 %v3527_v39, %v12503_v35  ;;  %v2496_v35 = vpack.c.b16 %v15448_v62, %v15447_v16  ;;  %v15457_v39 = vld [vmem:[#allocation76_spill] sm:$0xff] }
 0x379   :  { %v12795_v3 = vadd.f32 %v3702_v7, %v3644_v10  ;;  %v3587_v42 = vadd.f32 %v3586_v47, %v3528_v28  ;;  %v15455_v7 = vld [vmem:[#allocation73_spill] sm:$0xff]  ;;  %v15458_v47 = vunpack.c.l.b16 %v15457_v39 }
 0x37a   :  { %v15456_v10 = vunpack.c.l.b16 %v15455_v7  ;;  %v15459_v0 = vunpack.c.h.b16 %v15455_v7 }
 0x37c   :  { %v2507_v28 = vpack.c.b16 %v15458_v47, %v15456_v10  ;;  %v15473_v10 = vld [vmem:[#allocation79_spill] sm:$0xff]  ;;  %v15475_v47 = vld [vmem:[#allocation82_spill] sm:$0xff] }
 0x37e   :  { %v3645_v59 = vpop.f32.mrf.mxu2  ;;  %v3530_v1 = vpop.f32.mrf.mxu0 }
 0x37f   :  { %v3704_v53 = vpop.f32.mrf.mxu3  ;;  %v3646_v14 = vadd.f32 %v3645_v59, %v3587_v42  ;;  %v3589_v43 = vpop.f32.mrf.mxu1  ;;  %v3531_v22 = vadd.f32 %v3530_v1, %v12506_v30  ;;  %v10027_v30 = vld [vmem:[%s14689_s1 + $0x690] sm:$0xff]  ;;  %v15460_v42 = vunpack.c.h.b16 %v15457_v39  ;;  %v15474_v39 = vunpack.c.l.b16 %v15473_v10 }
 0x380   :  { %5575 = vmatpush.bf16.msra.mxu2 %v10027_v30 }
 0x381   :  { %v12817_v55 = vadd.f32 %v3704_v53, %v3646_v14  ;;  %v3590_v49 = vadd.f32 %v3589_v43, %v3531_v22  ;;  %3755 = vmatmul.bf16.gmra.mxu0 %v2495_v52  ;;  %v2508_v59 = vpack.c.b16 %v15460_v42, %v15459_v0  ;;  %v15463_v52 = vld [vmem:[#allocation78_spill] sm:$0xff]  ;;  %v15477_v42 = vunpack.c.h.b16 %v15473_v10 }
 0x382   :  { %3814 = vmatmul.bf16.gmra.mxu1 %v2496_v35  ;;  %v15464_v16 = vunpack.c.l.b16 %v15463_v52  ;;  %v15465_v35 = vunpack.c.h.b16 %v15461_v27  ;;  %v15466_v14 = vunpack.c.h.b16 %v15463_v52  ;;  %v10018_v27 = vld [vmem:[%s14689_s1 + $0x648] sm:$0xff]  ;;  %v10009_v10 = vld [vmem:[%s14689_s1 + $0x600] sm:$0xff] }
 0x383   :  { %3873 = vmatmul.bf16.gmra.mxu2 %v2497_v17  ;;  %5517 = vmatpush.bf16.msra.mxu1 %v10018_v27 }
 0x384   :  { %3932 = vmatmul.bf16.gmra.mxu3 %v2498_v60  ;;  %v2509_v62 = vpack.c.b16 %v15464_v16, %v15462_v50  ;;  %v2510_v1 = vpack.c.b16 %v15466_v14, %v15465_v35 }
 0x386   :  { %v3648_v19 = vpop.f32.mrf.mxu2  ;;  %v3532_v13 = vpop.f32.mrf.mxu0 }
 0x387   :  { %v3707_v45 = vpop.f32.mrf.mxu3  ;;  %v3649_v24 = vadd.f32 %v3648_v19, %v3590_v49  ;;  %v3591_v26 = vpop.f32.mrf.mxu1  ;;  %v3533_v29 = vadd.f32 %v3532_v13, %v12537_v20  ;;  %v10010_v19 = vld [vmem:[%s14689_s1 + $0x608] sm:$0xff]  ;;  %v15467_v13 = vld [vmem:[#allocation77_spill] sm:$0xff] }
 0x388   :  { %5458 = vmatpush.bf16.msra.mxu0 %v10010_v19  ;;  %v15471_v6 = vunpack.c.h.b16 %v15467_v13 }
 0x389   :  { %v12820_v15 = vadd.f32 %v3707_v45, %v3649_v24  ;;  %v3592_v21 = vadd.f32 %v3591_v26, %v3533_v29  ;;  %v10034_v45 = vld [vmem:[%s14689_s1 + $0x6c8] sm:$0xff]  ;;  %v15468_v26 = vunpack.c.l.b16 %v15467_v13  ;;  %v15469_v29 = vld [vmem:[#allocation80_spill] sm:$0xff] }
 0x38a   :  { %5635 = vmatpush.bf16.msra.mxu3 %v10034_v45  ;;  %v15470_v30 = vunpack.c.l.b16 %v15469_v29  ;;  %v15472_v23 = vunpack.c.h.b16 %v15469_v29  ;;  %v15485_v13 = vld [vmem:[#allocation83_spill] sm:$0xff] }
 0x38c   :  { %v2520_v51 = vpack.c.b16 %v15472_v23, %v15471_v6  ;;  %5459 = vmatpush.bf16.msra.mxu0 %v10009_v10  ;;  %v10056_v10 = vld [vmem:[%s14689_s1 + $0x778] sm:$0xff] }
 0x38e   :  { %v3650_v20 = vpop.f32.mrf.mxu2  ;;  %v3535_v56 = vpop.f32.mrf.mxu0 }
 0x38f   :  { %v3709_v41 = vpop.f32.mrf.mxu3  ;;  %v3651_v53 = vadd.f32 %v3650_v20, %v3592_v21  ;;  %v3594_v12 = vpop.f32.mrf.mxu1  ;;  %v3536_v43 = vadd.f32 %v3535_v56, %v12540_v8  ;;  %v10026_v8 = vld [vmem:[%s14689_s1 + $0x688] sm:$0xff]  ;;  %v2519_v21 = vpack.c.b16 %v15470_v30, %v15468_v26  ;;  %v15487_v26 = vld [vmem:[#allocation86_spill] sm:$0xff] }
 0x390   :  { %5576 = vmatpush.bf16.msra.mxu2 %v10026_v8  ;;  %v15488_v29 = vunpack.c.l.b16 %v15487_v26  ;;  %v15490_v6 = vunpack.c.h.b16 %v15487_v26  ;;  %v10064_v26 = vld [vmem:[%s14689_s1 + $0x7b8] sm:$0xff] }
 0x391   :  { %v12851_v9 = vadd.f32 %v3709_v41, %v3651_v53  ;;  %v3595_v48 = vadd.f32 %v3594_v12, %v3536_v43  ;;  %3760 = vmatmul.bf16.gmra.mxu0 %v2507_v28  ;;  %v15476_v28 = vunpack.c.l.b16 %v15475_v47 }
 0x392   :  { %3819 = vmatmul.bf16.gmra.mxu1 %v2508_v59  ;;  %v15478_v59 = vunpack.c.h.b16 %v15475_v47 }
 0x393   :  { %3878 = vmatmul.bf16.gmra.mxu2 %v2509_v62  ;;  %v2521_v0 = vpack.c.b16 %v15476_v28, %v15474_v39  ;;  %v10033_v39 = vld [vmem:[%s14689_s1 + $0x6c0] sm:$0xff] }
 0x394   :  { %3937 = vmatmul.bf16.gmra.mxu3 %v2510_v1  ;;  %v2522_v53 = vpack.c.b16 %v15478_v59, %v15477_v42 }
 0x395   :  { %5636 = vmatpush.bf16.msra.mxu3 %v10033_v39 }
 0x396   :  { %v3653_v58 = vpop.f32.mrf.mxu2  ;;  %v3537_v31 = vpop.f32.mrf.mxu0 }
 0x397   :  { %v3712_v61 = vpop.f32.mrf.mxu3  ;;  %v3654_v17 = vadd.f32 %v3653_v58, %v3595_v48  ;;  %v3596_v25 = vpop.f32.mrf.mxu1  ;;  %v3538_v60 = vadd.f32 %v3537_v31, %v12568_v46  ;;  %v15481_v31 = vld [vmem:[#allocation84_spill] sm:$0xff] }
 0x398   :  { %v15484_v8 = vunpack.c.h.b16 %v15481_v31 }
 0x399   :  { %v12854_v22 = vadd.f32 %v3712_v61, %v3654_v17  ;;  %v3597_v49 = vadd.f32 %v3596_v25, %v3538_v60  ;;  %v15479_v61 = vld [vmem:[#allocation81_spill] sm:$0xff]  ;;  %v15482_v25 = vunpack.c.l.b16 %v15481_v31 }
 0x39a   :  { %v15480_v17 = vunpack.c.l.b16 %v15479_v61 }
 0x39c   :  { %v2531_v60 = vpack.c.b16 %v15482_v25, %v15480_v17  ;;  %v15497_v25 = vld [vmem:[#allocation87_spill] sm:$0xff] }
 0x39e   :  { %v3655_v24 = vpop.f32.mrf.mxu2  ;;  %v3540_v41 = vpop.f32.mrf.mxu0 }
 0x39f   :  { %v3714_v46 = vpop.f32.mrf.mxu3  ;;  %v3656_v20 = vadd.f32 %v3655_v24, %v3597_v49  ;;  %v3599_v7 = vpop.f32.mrf.mxu1  ;;  %v3541_v56 = vadd.f32 %v3540_v41, %v12574_v57  ;;  %v15483_v49 = vunpack.c.h.b16 %v15479_v61  ;;  %v10025_v41 = vld [vmem:[%s14689_s1 + $0x680] sm:$0xff] }
 0x3a0   :  { %5577 = vmatpush.bf16.msra.mxu2 %v10025_v41 }
 0x3a1   :  { %v12882_v12 = vadd.f32 %v3714_v46, %v3656_v20  ;;  %v3600_v50 = vadd.f32 %v3599_v7, %v3541_v56  ;;  %3765 = vmatmul.bf16.gmra.mxu0 %v2519_v21  ;;  %v2532_v19 = vpack.c.b16 %v15484_v8, %v15483_v49  ;;  %v15489_v21 = vunpack.c.h.b16 %v15485_v13 }
 0x3a2   :  { %3824 = vmatmul.bf16.gmra.mxu1 %v2520_v51 }
 0x3a3   :  { %3883 = vmatmul.bf16.gmra.mxu2 %v2521_v0  ;;  %v2534_v23 = vpack.c.b16 %v15490_v6, %v15489_v21 }
 0x3a4   :  { %3942 = vmatmul.bf16.gmra.mxu3 %v2522_v53  ;;  %5806 = vmatpush.bf16.msrb.mxu2 %v10064_v26  ;;  %v9889_v26 = vld [vmem:[%s14690_s0 + $0x64] sm:$0xf] }
 0x3a6   :  { %v3658_v52 = vpop.f32.mrf.mxu2  ;;  %v3542_v35 = vpop.f32.mrf.mxu0 }
 0x3a7   :  { %v3717_v16 = vpop.f32.mrf.mxu3  ;;  %v3659_v62 = vadd.f32 %v3658_v52, %v3600_v50  ;;  %v3601_v14 = vpop.f32.mrf.mxu1  ;;  %v3543_v1 = vadd.f32 %v3542_v35, %v12593_v34  ;;  %v15486_v34 = vunpack.c.l.b16 %v15485_v13  ;;  %v15493_v35 = vld [vmem:[#allocation88_spill] sm:$0xff] }
 0x3a9   :  { %v12888_v57 = vadd.f32 %v3717_v16, %v3659_v62  ;;  %v3602_v43 = vadd.f32 %v3601_v14, %v3543_v1  ;;  %v2533_v30 = vpack.c.b16 %v15488_v29, %v15486_v34  ;;  %v15491_v16 = vld [vmem:[#allocation85_spill] sm:$0xff]  ;;  %v15494_v14 = vunpack.c.l.b16 %v15493_v35 }
 0x3aa   :  { %v15492_v62 = vunpack.c.l.b16 %v15491_v16  ;;  %v10048_v29 = vld [vmem:[%s14689_s1 + $0x738] sm:$0xff] }
 0x3ab   :  { %5688 = vmatpush.bf16.msrb.mxu0 %v10048_v29  ;;  %v8689_v29 = vld [vmem:[%s14690_s0 + $0x90] sm:$0xf0] }
 0x3ac   :  { %v2543_v1 = vpack.c.b16 %v15494_v14, %v15492_v62  ;;  %v15508_v62 = vld [vmem:[#allocation91_spill] sm:$0xff]  ;;  %v15510_v14 = vunpack.c.l.b16 %v12010_v38 }
 0x3ae   :  { %v3660_v48 = vpop.f32.mrf.mxu2  ;;  %v3545_v24 = vpop.f32.mrf.mxu0 }
 0x3af   :  { %v3719_v58 = vpop.f32.mrf.mxu3  ;;  %v3661_v45 = vadd.f32 %v3660_v48, %v3602_v43  ;;  %v3604_v46 = vpop.f32.mrf.mxu1  ;;  %v3546_v51 = vadd.f32 %v3545_v24, %v12608_v44  ;;  %v10017_v44 = vld [vmem:[%s14689_s1 + $0x640] sm:$0xff]  ;;  %v15495_v43 = vunpack.c.h.b16 %v15491_v16  ;;  %v15496_v48 = vunpack.c.h.b16 %v15493_v35 }
 0x3b0   :  { %5518 = vmatpush.bf16.msra.mxu1 %v10017_v44  ;;  %v15509_v35 = vunpack.c.l.b16 %v15508_v62 }
 0x3b1   :  { %v12907_v20 = vadd.f32 %v3719_v58, %v3661_v45  ;;  %v3605_v7 = vadd.f32 %v3604_v46, %v3546_v51  ;;  %3770 = vmatmul.bf16.gmra.mxu0 %v2531_v60  ;;  %v2544_v58 = vpack.c.b16 %v15496_v48, %v15495_v43  ;;  %v15499_v60 = vld [vmem:[#allocation90_spill] sm:$0xff]  ;;  %v15511_v43 = vunpack.c.h.b16 %v15508_v62 }
 0x3b2   :  { %3829 = vmatmul.bf16.gmra.mxu1 %v2532_v19  ;;  %v15500_v49 = vunpack.c.l.b16 %v15499_v60  ;;  %v15501_v19 = vunpack.c.h.b16 %v15497_v25  ;;  %v15502_v45 = vunpack.c.h.b16 %v15499_v60  ;;  %v15512_v48 = vunpack.c.h.b16 %v12010_v38  ;;  %v8687_v38 = vld [vmem:[%s14690_s0 + $0x60] sm:$0xf] }
 0x3b3   :  { %3888 = vmatmul.bf16.gmra.mxu2 %v2533_v30  ;;  %v10072_v30 = vld [vmem:[%s14689_s1 + $0x7f8] sm:$0xff] }
 0x3b4   :  { %3947 = vmatmul.bf16.gmra.mxu3 %v2534_v23  ;;  %v2546_v24 = vpack.c.b16 %v15502_v45, %v15501_v19  ;;  %5747 = vmatpush.bf16.msrb.mxu1 %v10056_v10  ;;  %v10063_v45 = vld [vmem:[%s14689_s1 + $0x7b0] sm:$0xff]  ;;  %v8692_v10 = vor.u32 %v9889_v26, %v8689_v29  ;;  %v10054_v29 = vld [vmem:[%s14689_s1 + $0x768] sm:$0xff] }
 0x3b5   :  { %5865 = vmatpush.bf16.msrb.mxu3 %v10072_v30  ;;  %v8695_v30 = vld [vmem:[%s14690_s0 + $0x68] sm:$0xf]  ;;  %5807 = vmatpush.bf16.msrb.mxu2 %v10063_v45 }
 0x3b6   :  { %v3663_v47 = vpop.f32.mrf.mxu2  ;;  %v3547_v42 = vpop.f32.mrf.mxu0 }
 0x3b7   :  { %v3722_v28 = vpop.f32.mrf.mxu3  ;;  %v3664_v0 = vadd.f32 %v3663_v47, %v3605_v7  ;;  %v3606_v59 = vpop.f32.mrf.mxu1  ;;  %v3548_v53 = vadd.f32 %v3547_v42, %v12627_v54  ;;  %v15498_v54 = vunpack.c.l.b16 %v15497_v25  ;;  %v15505_v42 = vunpack.c.l.b16 %v12001_v5 }
 0x3b9   :  { %v12922_v56 = vadd.f32 %v3722_v28, %v3664_v0  ;;  %v3607_v27 = vadd.f32 %v3606_v59, %v3548_v53  ;;  %v2545_v8 = vpack.c.b16 %v15500_v49, %v15498_v54  ;;  %v15503_v28 = vld [vmem:[#allocation89_spill] sm:$0xff] }
 0x3ba   :  { %v15504_v0 = vunpack.c.l.b16 %v15503_v28  ;;  %v15506_v53 = vunpack.c.h.b16 %v15503_v28 }
 0x3bc   :  { %v2555_v59 = vpack.c.b16 %v15505_v42, %v15504_v0 }
 0x3be   :  { %v3665_v50 = vpop.f32.mrf.mxu2  ;;  %v3736_v17 = vpop.f32.mrf.mxu0 }
 0x3bf   :  { %v3724_v52 = vpop.f32.mrf.mxu3  ;;  %v3666_v61 = vadd.f32 %v3665_v50, %v3607_v27  ;;  %v3795_v31 = vpop.f32.mrf.mxu1  ;;  %v3737_v46 = vadd.f32 %v3736_v17, %v12639_v63  ;;  %v15507_v27 = vunpack.c.h.b16 %v12001_v5 }
 0x3c1   :  { %v12941_v13 = vadd.f32 %v3724_v52, %v3666_v61  ;;  %v3796_v34 = vadd.f32 %v3795_v31, %v3737_v46  ;;  %3775 = vmatmul.bf16.gmra.mxu0 %v2543_v1  ;;  %v2557_v1 = vpack.c.b16 %v15510_v14, %v15509_v35  ;;  %v10047_v46 = vld [vmem:[%s14689_s1 + $0x730] sm:$0xff] }
 0x3c2   :  { %3834 = vmatmul.bf16.gmra.mxu1 %v2544_v58  ;;  %v2558_v58 = vpack.c.b16 %v15512_v48, %v15511_v43  ;;  %5689 = vmatpush.bf16.msrb.mxu0 %v10047_v46  ;;  %v9907_v14 = vld [vmem:[%s14690_s0 + $0xec] sm:$0xf0]  ;;  %v10062_v43 = vld [vmem:[%s14689_s1 + $0x7a8] sm:$0xff] }
 0x3c3   :  { %3893 = vmatmul.bf16.gmra.mxu2 %v2545_v8  ;;  %v10046_v48 = vld [vmem:[%s14689_s1 + $0x728] sm:$0xff] }
 0x3c4   :  { %3952 = vmatmul.bf16.gmra.mxu3 %v2546_v24  ;;  %5808 = vmatpush.bf16.msrb.mxu2 %v10062_v43 }
 0x3c6   :  { %v3854_v63 = vpop.f32.mrf.mxu2  ;;  %v3738_v23 = vpop.f32.mrf.mxu0  ;;  %5690 = vmatpush.bf16.msrb.mxu0 %v10046_v48 }
 0x3c7   :  { %v3913_v21 = vpop.f32.mrf.mxu3  ;;  %v3855_v6 = vadd.f32 %v3854_v63, %v3796_v34  ;;  %v3797_v51 = vpop.f32.mrf.mxu1  ;;  %v3739_v41 = vadd.f32 %v3738_v23, %v12661_v36  ;;  %v2556_v36 = vpack.c.b16 %v15507_v27, %v15506_v53  ;;  %v10055_v34 = vld [vmem:[%s14689_s1 + $0x770] sm:$0xff]  ;;  %v9896_v63 = vld [vmem:[%s14690_s0 + $0x94] sm:$0xf0] }
 0x3c8   :  { %5748 = vmatpush.bf16.msrb.mxu1 %v10055_v34  ;;  %v8696_v28 = vor.u32 %v9896_v63, %v8695_v30 }
 0x3c9   :  { %v12953_v7 = vadd.f32 %v3913_v21, %v3855_v6  ;;  %v3798_v39 = vadd.f32 %v3797_v51, %v3739_v41  ;;  %v9890_v21 = vld [vmem:[%s14690_s0 + $0x6c] sm:$0xf]  ;;  %v8697_v6 = vld [vmem:[%s14690_s0 + $0x98] sm:$0xf0] }
 0x3ca   :  { %v8700_v0 = vor.u32 %v9890_v21, %v8697_v6 }
 0x3cc   :  { %5749 = vmatpush.bf16.msrb.mxu1 %v10054_v29  ;;  %v9926_v29 = vld [vmem:[%s14690_s0 + $0x18c] sm:$0xf] }
 0x3ce   :  { %v3856_v44 = vpop.f32.mrf.mxu2  ;;  %v3741_v52 = vpop.f32.mrf.mxu0 }
 0x3cf   :  { %v3915_v47 = vpop.f32.mrf.mxu3  ;;  %v3857_v50 = vadd.f32 %v3856_v44, %v3798_v39  ;;  %v3800_v16 = vpop.f32.mrf.mxu1  ;;  %v3742_v61 = vadd.f32 %v3741_v52, %v12670_v37  ;;  %v9895_v37 = vld [vmem:[%s14690_s0 + $0x8c] sm:$0xf0] }
 0x3d0   :  { %v8688_v41 = vor.u32 %v9895_v37, %v8687_v38 }
 0x3d1   :  { %v12975_v17 = vadd.f32 %v3915_v47, %v3857_v50  ;;  %v3801_v31 = vadd.f32 %v3800_v16, %v3742_v61  ;;  %3780 = vmatmul.bf16.gmra.mxu0 %v2555_v59  ;;  %v8737_v61 = vld [vmem:[%s14690_s0 + $0xf0] sm:$0xf0] }
 0x3d2   :  { %3839 = vmatmul.bf16.gmra.mxu1 %v2556_v36 }
 0x3d3   :  { %3898 = vmatmul.bf16.gmra.mxu2 %v2557_v1 }
 0x3d4   :  { %3957 = vmatmul.bf16.gmra.mxu3 %v2558_v58  ;;  %v9901_v58 = vld [vmem:[%s14690_s0 + $0xc4] sm:$0xf] }
 0x3d5   :  { %v8740_v38 = vor.u32 %v9901_v58, %v8737_v61  ;;  %v10045_v61 = vld [vmem:[%s14689_s1 + $0x720] sm:$0xff] }
 0x3d6   :  { %v3859_v5 = vpop.f32.mrf.mxu2  ;;  %v3743_v60 = vpop.f32.mrf.mxu0  ;;  %5691 = vmatpush.bf16.msrb.mxu0 %v10045_v61  ;;  %v9944_v61 = vld [vmem:[%s14690_s0 + $0x214] sm:$0xf0] }
 0x3d7   :  { %v3918_v25 = vpop.f32.mrf.mxu3  ;;  %v3860_v54 = vadd.f32 %v3859_v5, %v3801_v31  ;;  %v3802_v49 = vpop.f32.mrf.mxu1  ;;  %v3744_v8 = vadd.f32 %v3743_v60, %v12693_v11  ;;  %v10071_v11 = vld [vmem:[%s14689_s1 + $0x7f0] sm:$0xff]  ;;  %v8743_v31 = vld [vmem:[%s14690_s0 + $0xc8] sm:$0xf]  ;;  %v9908_v5 = vld [vmem:[%s14690_s0 + $0xf4] sm:$0xf0] }
 0x3d8   :  { %5866 = vmatpush.bf16.msrb.mxu3 %v10071_v11  ;;  %v8744_v46 = vor.u32 %v9908_v5, %v8743_v31  ;;  %v10069_v31 = vld [vmem:[%s14689_s1 + $0x7e0] sm:$0xff] }
 0x3d9   :  { %v12978_v19 = vadd.f32 %v3918_v25, %v3860_v54  ;;  %v3803_v24 = vadd.f32 %v3802_v49, %v3744_v8  ;;  %v9902_v25 = vld [vmem:[%s14690_s0 + $0xcc] sm:$0xf]  ;;  %v8745_v54 = vld [vmem:[%s14690_s0 + $0xf8] sm:$0xf0] }
 0x3da   :  { %v8748_v11 = vor.u32 %v9902_v25, %v8745_v54 }
 0x3de   :  { %v3861_v23 = vpop.f32.mrf.mxu2  ;;  %v3746_v44 = vpop.f32.mrf.mxu0 }
 0x3df   :  { %v3920_v51 = vpop.f32.mrf.mxu3  ;;  %v3862_v39 = vadd.f32 %v3861_v23, %v3803_v24  ;;  %v3805_v47 = vpop.f32.mrf.mxu1  ;;  %v3747_v42 = vadd.f32 %v3746_v44, %v12696_v4  ;;  %v8735_v4 = vld [vmem:[%s14690_s0 + $0xc0] sm:$0xf]  ;;  %v9919_v44 = vld [vmem:[%s14690_s0 + $0x14c] sm:$0xf0] }
 0x3e0   :  { %v8736_v8 = vor.u32 %v9907_v14, %v8735_v4 }
 0x3e1   :  { %v13017_v59 = vadd.f32 %v3920_v51, %v3862_v39  ;;  %v3806_v53 = vadd.f32 %v3805_v47, %v3747_v42  ;;  %5460 = vmatmul.bf16.vlgmr.msra.gmra.mxu0 %v8688_v41  ;;  %v8783_v39 = vld [vmem:[%s14690_s0 + $0x120] sm:$0xf]  ;;  %v9913_v47 = vld [vmem:[%s14690_s0 + $0x124] sm:$0xf]  ;;  %v9914_v42 = vld [vmem:[%s14690_s0 + $0x12c] sm:$0xf] }
 0x3e2   :  { %5519 = vmatmul.bf16.vlgmr.msra.gmra.mxu1 %v8692_v10 }
 0x3e3   :  { %5578 = vmatmul.bf16.vlgmr.msra.gmra.mxu2 %v8696_v28  ;;  %v8785_v28 = vld [vmem:[%s14690_s0 + $0x150] sm:$0xf0] }
 0x3e4   :  { %5637 = vmatmul.bf16.vlgmr.msra.gmra.mxu3 %v8700_v0  ;;  %v9920_v0 = vld [vmem:[%s14690_s0 + $0x154] sm:$0xf0] }
 0x3e6   :  { %v3864_v27 = vpop.f32.mrf.mxu2  ;;  %v3748_v52 = vpop.f32.mrf.mxu0 }
 0x3e7   :  { %v3923_v36 = vpop.f32.mrf.mxu3  ;;  %v3865_v50 = vadd.f32 %v3864_v27, %v3806_v53  ;;  %v3807_v16 = vpop.f32.mrf.mxu1  ;;  %v3749_v62 = vadd.f32 %v3748_v52, %v12724_v2  ;;  %v10070_v2 = vld [vmem:[%s14689_s1 + $0x7e8] sm:$0xff]  ;;  %v8793_v53 = vld [vmem:[%s14690_s0 + $0x158] sm:$0xf0]  ;;  %v8788_v52 = vor.u32 %v9913_v47, %v8785_v28 }
 0x3e8   :  { %5867 = vmatpush.bf16.msrb.mxu3 %v10070_v2  ;;  %v10061_v2 = vld [vmem:[%s14689_s1 + $0x7a0] sm:$0xff] }
 0x3e9   :  { %v13020_v35 = vadd.f32 %v3923_v36, %v3865_v50  ;;  %v3808_v1 = vadd.f32 %v3807_v16, %v3749_v62  ;;  %v8784_v50 = vor.u32 %v9919_v44, %v8783_v39  ;;  %5809 = vmatpush.bf16.msrb.mxu2 %v10061_v2  ;;  %v9937_v2 = vld [vmem:[%s14690_s0 + $0x1e4] sm:$0xf] }
 0x3ec   :  { %5868 = vmatpush.bf16.msrb.mxu3 %v10069_v31  ;;  %v9938_v31 = vld [vmem:[%s14690_s0 + $0x1ec] sm:$0xf] }
 0x3ee   :  { %v3866_v60 = vpop.f32.mrf.mxu2  ;;  %v3751_v45 = vpop.f32.mrf.mxu0 }
 0x3ef   :  { %v3925_v49 = vpop.f32.mrf.mxu3  ;;  %v3867_v37 = vadd.f32 %v3866_v60, %v3808_v1  ;;  %v3810_v24 = vpop.f32.mrf.mxu1  ;;  %v3752_v34 = vadd.f32 %v3751_v45, %v12730_v33  ;;  %v8796_v1 = vor.u32 %v9914_v42, %v8793_v53  ;;  %v8831_v45 = vld [vmem:[%s14690_s0 + $0x180] sm:$0xf]  ;;  %v10044_v42 = vld [vmem:[%s14689_s1 + $0x718] sm:$0xff] }
 0x3f0   :  { %v10068_v53 = vld [vmem:[%s14689_s1 + $0x7d8] sm:$0xff]  ;;  %5692 = vmatpush.bf16.msrb.mxu0 %v10044_v42 }
 0x3f1   :  { %v13056_v26 = vadd.f32 %v3925_v49, %v3867_v37  ;;  %v3811_v30 = vadd.f32 %v3810_v24, %v3752_v34  ;;  %5465 = vmatmul.bf16.gmra.mxu0 %v8736_v8  ;;  %v9931_v24 = vld [vmem:[%s14690_s0 + $0x1ac] sm:$0xf0]  ;;  %v9932_v34 = vld [vmem:[%s14690_s0 + $0x1b4] sm:$0xf0]  ;;  %5869 = vmatpush.bf16.msrb.mxu3 %v10068_v53  ;;  %v9950_v53 = vld [vmem:[%s14690_s0 + $0x24c] sm:$0xf] }
 0x3f2   :  { %5524 = vmatmul.bf16.gmra.mxu1 %v8740_v38  ;;  %v9956_v42 = vld [vmem:[%s14690_s0 + $0x274] sm:$0xf0] }
 0x3f3   :  { %5583 = vmatmul.bf16.gmra.mxu2 %v8744_v46  ;;  %v9925_v46 = vld [vmem:[%s14690_s0 + $0x184] sm:$0xf] }
 0x3f4   :  { %5642 = vmatmul.bf16.gmra.mxu3 %v8748_v11  ;;  %v8833_v11 = vld [vmem:[%s14690_s0 + $0x1b0] sm:$0xf0] }
 0x3f6   :  { %v3869_v63 = vpop.f32.mrf.mxu2  ;;  %v3753_v23 = vpop.f32.mrf.mxu0 }
 0x3f7   :  { %v3928_v21 = vpop.f32.mrf.mxu3  ;;  %v3870_v6 = vadd.f32 %v3869_v63, %v3811_v30  ;;  %v3812_v51 = vpop.f32.mrf.mxu1  ;;  %v3754_v41 = vadd.f32 %v3753_v23, %v12749_v18  ;;  %v8791_v18 = vld [vmem:[%s14690_s0 + $0x128] sm:$0xf]  ;;  %v8841_v30 = vld [vmem:[%s14690_s0 + $0x1b8] sm:$0xf0]  ;;  %v8836_v23 = vor.u32 %v9925_v46, %v8833_v11 }
 0x3f8   :  { %v8792_v14 = vor.u32 %v9920_v0, %v8791_v18  ;;  %v8844_v44 = vor.u32 %v9926_v29, %v8841_v30  ;;  %v10060_v0 = vld [vmem:[%s14689_s1 + $0x798] sm:$0xff] }
 0x3f9   :  { %v13062_v33 = vadd.f32 %v3928_v21, %v3870_v6  ;;  %v3813_v10 = vadd.f32 %v3812_v51, %v3754_v41  ;;  %v8832_v6 = vor.u32 %v9931_v24, %v8831_v45  ;;  %5810 = vmatpush.bf16.msrb.mxu2 %v10060_v0  ;;  %v8935_v0 = vld [vmem:[%s14690_s0 + $0x248] sm:$0xf] }
 0x3fe   :  { %v3871_v27 = vpop.f32.mrf.mxu2  ;;  %v3756_v62 = vpop.f32.mrf.mxu0 }
 0x3ff   :  { %v3930_v36 = vpop.f32.mrf.mxu3  ;;  %v3872_v16 = vadd.f32 %v3871_v27, %v3813_v10  ;;  %v3815_v4 = vpop.f32.mrf.mxu1  ;;  %v3757_v43 = vadd.f32 %v3756_v62, %v12764_v32  ;;  %v10053_v32 = vld [vmem:[%s14689_s1 + $0x760] sm:$0xff] }
 0x400   :  { %5750 = vmatpush.bf16.msrb.mxu1 %v10053_v32  ;;  %v8889_v32 = vld [vmem:[%s14690_s0 + $0x218] sm:$0xf0] }
 0x401   :  { %v13089_v48 = vadd.f32 %v3930_v36, %v3872_v16  ;;  %v3816_v58 = vadd.f32 %v3815_v4, %v3757_v43  ;;  %5470 = vmatmul.bf16.gmra.mxu0 %v8784_v50  ;;  %v10052_v4 = vld [vmem:[%s14689_s1 + $0x758] sm:$0xff]  ;;  %v9943_v43 = vld [vmem:[%s14690_s0 + $0x20c] sm:$0xf0]  ;;  %v8892_v24 = vor.u32 %v9938_v31, %v8889_v32 }
 0x402   :  { %5529 = vmatmul.bf16.gmra.mxu1 %v8788_v52 }
 0x403   :  { %5588 = vmatmul.bf16.gmra.mxu2 %v8792_v14 }
 0x404   :  { %5647 = vmatmul.bf16.gmra.mxu3 %v8796_v1  ;;  %v8879_v1 = vld [vmem:[%s14690_s0 + $0x1e0] sm:$0xf]  ;;  %5751 = vmatpush.bf16.msrb.mxu1 %v10052_v4 }
 0x406   :  { %v3874_v5 = vpop.f32.mrf.mxu2  ;;  %v3758_v60 = vpop.f32.mrf.mxu0 }
 0x407   :  { %v3933_v25 = vpop.f32.mrf.mxu3  ;;  %v3875_v54 = vadd.f32 %v3874_v5, %v3816_v58  ;;  %v3817_v49 = vpop.f32.mrf.mxu1  ;;  %v3759_v8 = vadd.f32 %v3758_v60, %v12783_v40  ;;  %v8839_v40 = vld [vmem:[%s14690_s0 + $0x188] sm:$0xf] }
 0x408   :  { %v8840_v39 = vor.u32 %v9932_v34, %v8839_v40  ;;  %v8887_v58 = vld [vmem:[%s14690_s0 + $0x1e8] sm:$0xf] }
 0x409   :  { %v13104_v38 = vadd.f32 %v3933_v25, %v3875_v54  ;;  %v3818_v37 = vadd.f32 %v3817_v49, %v3759_v8  ;;  %v8880_v54 = vor.u32 %v9943_v43, %v8879_v1  ;;  %v8888_v45 = vor.u32 %v9944_v61, %v8887_v58 }
 0x40a   :  { %v8936_v1 = vor.u32 %v9956_v42, %v8935_v0 }
 0x40e   :  { %v3876_v63 = vpop.f32.mrf.mxu2  ;;  %v3761_v41 = vpop.f32.mrf.mxu0 }
 0x40f   :  { %v3935_v21 = vpop.f32.mrf.mxu3  ;;  %v3877_v51 = vadd.f32 %v3876_v63, %v3818_v37  ;;  %v3820_v10 = vpop.f32.mrf.mxu1  ;;  %v3762_v47 = vadd.f32 %v3761_v41, %v12795_v3  ;;  %v10059_v41 = vld [vmem:[%s14689_s1 + $0x790] sm:$0xff] }
 0x410   :  { %5811 = vmatpush.bf16.msrb.mxu2 %v10059_v41 }
 0x411   :  { %v13131_v28 = vadd.f32 %v3935_v21, %v3877_v51  ;;  %v3821_v18 = vadd.f32 %v3820_v10, %v3762_v47  ;;  %5475 = vmatmul.bf16.gmra.mxu0 %v8832_v6  ;;  %v9955_v51 = vld [vmem:[%s14690_s0 + $0x26c] sm:$0xf0]  ;;  %v9949_v47 = vld [vmem:[%s14690_s0 + $0x244] sm:$0xf] }
 0x412   :  { %5534 = vmatmul.bf16.gmra.mxu1 %v8836_v23 }
 0x413   :  { %5593 = vmatmul.bf16.gmra.mxu2 %v8840_v39  ;;  %v10043_v39 = vld [vmem:[%s14689_s1 + $0x710] sm:$0xff] }
 0x414   :  { %5652 = vmatmul.bf16.gmra.mxu3 %v8844_v44  ;;  %v10051_v44 = vld [vmem:[%s14689_s1 + $0x750] sm:$0xff]  ;;  %5693 = vmatpush.bf16.msrb.mxu0 %v10043_v39 }
 0x415   :  { %5752 = vmatpush.bf16.msrb.mxu1 %v10051_v44 }
 0x416   :  { %v3879_v3 = vpop.f32.mrf.mxu2  ;;  %v3763_v50 = vpop.f32.mrf.mxu0 }
 0x417   :  { %v3938_v27 = vpop.f32.mrf.mxu3  ;;  %v3880_v36 = vadd.f32 %v3879_v3, %v3821_v18  ;;  %v3822_v52 = vpop.f32.mrf.mxu1  ;;  %v3764_v16 = vadd.f32 %v3763_v50, %v12817_v55  ;;  %v8881_v55 = vld [vmem:[%s14690_s0 + $0x210] sm:$0xf0]  ;;  %v8937_v3 = vld [vmem:[%s14690_s0 + $0x278] sm:$0xf0] }
 0x418   :  { %v8884_v60 = vor.u32 %v9937_v2, %v8881_v55  ;;  %v8929_v18 = vld [vmem:[%s14690_s0 + $0x270] sm:$0xf0]  ;;  %v8940_v43 = vor.u32 %v9950_v53, %v8937_v3 }
 0x419   :  { %v13143_v62 = vadd.f32 %v3938_v27, %v3880_v36  ;;  %v3823_v14 = vadd.f32 %v3822_v52, %v3764_v16  ;;  %v8932_v52 = vor.u32 %v9949_v47, %v8929_v18  ;;  %v10050_v18 = vld [vmem:[%s14689_s1 + $0x748] sm:$0xff] }
 0x41a   :  { %5753 = vmatpush.bf16.msrb.mxu1 %v10050_v18  ;;  %v9986_v18 = vld [vmem:[%s14690_s0 + $0x36c] sm:$0xf] }
 0x41e   :  { %v3881_v5 = vpop.f32.mrf.mxu2  ;;  %v3766_v8 = vpop.f32.mrf.mxu0 }
 0x41f   :  { %v3940_v25 = vpop.f32.mrf.mxu3  ;;  %v3882_v49 = vadd.f32 %v3881_v5, %v3823_v14  ;;  %v3825_v37 = vpop.f32.mrf.mxu1  ;;  %v3767_v46 = vadd.f32 %v3766_v8, %v12820_v15  ;;  %v8927_v15 = vld [vmem:[%s14690_s0 + $0x240] sm:$0xf] }
 0x420   :  { %v8928_v50 = vor.u32 %v9955_v51, %v8927_v15 }
 0x421   :  { %v13173_v11 = vadd.f32 %v3940_v25, %v3882_v49  ;;  %v3826_v40 = vadd.f32 %v3825_v37, %v3767_v46  ;;  %5480 = vmatmul.bf16.gmra.mxu0 %v8880_v54  ;;  %v9967_v49 = vld [vmem:[%s14690_s0 + $0x2cc] sm:$0xf0]  ;;  %v10058_v37 = vld [vmem:[%s14689_s1 + $0x788] sm:$0xff]  ;;  %v8977_v46 = vld [vmem:[%s14690_s0 + $0x2d0] sm:$0xf0] }
 0x422   :  { %5539 = vmatmul.bf16.gmra.mxu1 %v8884_v60  ;;  %5812 = vmatpush.bf16.msrb.mxu2 %v10058_v37 }
 0x423   :  { %5598 = vmatmul.bf16.gmra.mxu2 %v8888_v45  ;;  %v10042_v45 = vld [vmem:[%s14689_s1 + $0x708] sm:$0xff] }
 0x424   :  { %5657 = vmatmul.bf16.gmra.mxu3 %v8892_v24  ;;  %v9961_v24 = vld [vmem:[%s14690_s0 + $0x2a4] sm:$0xf]  ;;  %5694 = vmatpush.bf16.msrb.mxu0 %v10042_v45 }
 0x425   :  { %v8980_v15 = vor.u32 %v9961_v24, %v8977_v46  ;;  %v10041_v24 = vld [vmem:[%s14689_s1 + $0x700] sm:$0xff] }
 0x426   :  { %v3884_v34 = vpop.f32.mrf.mxu2  ;;  %v3768_v63 = vpop.f32.mrf.mxu0  ;;  %v10065_v46 = vld [vmem:[%s14689_s1 + $0x7c0] sm:$0xff] }
 0x427   :  { %v3943_v29 = vpop.f32.mrf.mxu3  ;;  %v3885_v30 = vadd.f32 %v3884_v34, %v3826_v40  ;;  %v3827_v21 = vpop.f32.mrf.mxu1  ;;  %v3769_v6 = vadd.f32 %v3768_v63, %v12851_v9  ;;  %v10067_v9 = vld [vmem:[%s14689_s1 + $0x7d0] sm:$0xff]  ;;  %v8983_v40 = vld [vmem:[%s14690_s0 + $0x2a8] sm:$0xf]  ;;  %v9968_v34 = vld [vmem:[%s14690_s0 + $0x2d4] sm:$0xf0] }
 0x428   :  { %5870 = vmatpush.bf16.msrb.mxu3 %v10067_v9  ;;  %v8984_v39 = vor.u32 %v9968_v34, %v8983_v40  ;;  %5695 = vmatpush.bf16.msrb.mxu0 %v10041_v24  ;;  %v9127_v24 = vld [vmem:[%s14690_s0 + $0x3c8] sm:$0xf] }
 0x429   :  { %v13176_v23 = vadd.f32 %v3943_v29, %v3885_v30  ;;  %v3828_v10 = vadd.f32 %v3827_v21, %v3769_v6  ;;  %v9962_v29 = vld [vmem:[%s14690_s0 + $0x2ac] sm:$0xf]  ;;  %v8985_v30 = vld [vmem:[%s14690_s0 + $0x2d8] sm:$0xf0] }
 0x42a   :  { %v8988_v9 = vor.u32 %v9962_v29, %v8985_v30 }
 0x42e   :  { %v3886_v27 = vpop.f32.mrf.mxu2  ;;  %v3771_v4 = vpop.f32.mrf.mxu0 }
 0x42f   :  { %v3945_v36 = vpop.f32.mrf.mxu3  ;;  %v3887_v16 = vadd.f32 %v3886_v27, %v3828_v10  ;;  %v3830_v14 = vpop.f32.mrf.mxu1  ;;  %v3772_v2 = vadd.f32 %v3771_v4, %v12854_v22  ;;  %v8975_v22 = vld [vmem:[%s14690_s0 + $0x2a0] sm:$0xf]  ;;  %v9979_v4 = vld [vmem:[%s14690_s0 + $0x32c] sm:$0xf0] }
 0x430   :  { %v8976_v6 = vor.u32 %v9967_v49, %v8975_v22 }
 0x431   :  { %v13215_v55 = vadd.f32 %v3945_v36, %v3887_v16  ;;  %v3831_v58 = vadd.f32 %v3830_v14, %v3772_v2  ;;  %5485 = vmatmul.bf16.gmra.mxu0 %v8928_v50  ;;  %v9023_v16 = vld [vmem:[%s14690_s0 + $0x300] sm:$0xf]  ;;  %v9973_v14 = vld [vmem:[%s14690_s0 + $0x304] sm:$0xf]  ;;  %v9974_v2 = vld [vmem:[%s14690_s0 + $0x30c] sm:$0xf] }
 0x432   :  { %5544 = vmatmul.bf16.gmra.mxu1 %v8932_v52 }
 0x433   :  { %5603 = vmatmul.bf16.gmra.mxu2 %v8936_v1  ;;  %v9025_v1 = vld [vmem:[%s14690_s0 + $0x330] sm:$0xf0] }
 0x434   :  { %5662 = vmatmul.bf16.gmra.mxu3 %v8940_v43  ;;  %v9980_v43 = vld [vmem:[%s14690_s0 + $0x334] sm:$0xf0] }
 0x436   :  { %v3889_v61 = vpop.f32.mrf.mxu2  ;;  %v3773_v5 = vpop.f32.mrf.mxu0 }
 0x437   :  { %v3948_v31 = vpop.f32.mrf.mxu3  ;;  %v3890_v32 = vadd.f32 %v3889_v61, %v3831_v58  ;;  %v3832_v25 = vpop.f32.mrf.mxu1  ;;  %v3774_v54 = vadd.f32 %v3773_v5, %v12882_v12  ;;  %v10066_v12 = vld [vmem:[%s14689_s1 + $0x7c8] sm:$0xff]  ;;  %v9033_v58 = vld [vmem:[%s14690_s0 + $0x338] sm:$0xf0]  ;;  %v9028_v5 = vor.u32 %v9973_v14, %v9025_v1 }
 0x438   :  { %5871 = vmatpush.bf16.msrb.mxu3 %v10066_v12  ;;  %v10057_v12 = vld [vmem:[%s14689_s1 + $0x780] sm:$0xff] }
 0x439   :  { %v13218_v60 = vadd.f32 %v3948_v31, %v3890_v32  ;;  %v3833_v8 = vadd.f32 %v3832_v25, %v3774_v54  ;;  %v9024_v32 = vor.u32 %v9979_v4, %v9023_v16  ;;  %5813 = vmatpush.bf16.msrb.mxu2 %v10057_v12  ;;  %v9121_v12 = vld [vmem:[%s14690_s0 + $0x3f0] sm:$0xf0] }
 0x43c   :  { %5872 = vmatpush.bf16.msrb.mxu3 %v10065_v46  ;;  %v10004_v46 = vld [vmem:[%s14690_s0 + $0x3f4] sm:$0xf0] }
 0x43e   :  { %v3891_v63 = vpop.f32.mrf.mxu2  ;;  %v3776_v41 = vpop.f32.mrf.mxu0 }
 0x43f   :  { %v3950_v21 = vpop.f32.mrf.mxu3  ;;  %v3892_v51 = vadd.f32 %v3891_v63, %v3833_v8  ;;  %v3835_v10 = vpop.f32.mrf.mxu1  ;;  %v3777_v44 = vadd.f32 %v3776_v41, %v12888_v57  ;;  %v9036_v8 = vor.u32 %v9974_v2, %v9033_v58  ;;  %v9071_v41 = vld [vmem:[%s14690_s0 + $0x360] sm:$0xf]  ;;  %v10104_v2 = vld [vmem:[%s14689_s1 + $0x8f8] sm:$0xff] }
 0x440   :  { %6101 = vmatpush.bf16.msra.mxu3 %v10104_v2  ;;  %v9898_v2 = vld [vmem:[%s14690_s0 + $0xa4] sm:$0xf0] }
 0x441   :  { %v13254_v47 = vadd.f32 %v3950_v21, %v3892_v51  ;;  %v3836_v0 = vadd.f32 %v3835_v10, %v3777_v44  ;;  %5490 = vmatmul.bf16.gmra.mxu0 %v8976_v6  ;;  %v9991_v10 = vld [vmem:[%s14690_s0 + $0x38c] sm:$0xf0]  ;;  %v9992_v44 = vld [vmem:[%s14690_s0 + $0x394] sm:$0xf0] }
 0x442   :  { %5549 = vmatmul.bf16.gmra.mxu1 %v8980_v15 }
 0x443   :  { %5608 = vmatmul.bf16.gmra.mxu2 %v8984_v39  ;;  %v9985_v39 = vld [vmem:[%s14690_s0 + $0x364] sm:$0xf] }
 0x444   :  { %5667 = vmatmul.bf16.gmra.mxu3 %v8988_v9  ;;  %v9073_v9 = vld [vmem:[%s14690_s0 + $0x390] sm:$0xf0] }
 0x446   :  { %v3894_v42 = vpop.f32.mrf.mxu2  ;;  %v3778_v27 = vpop.f32.mrf.mxu0 }
 0x447   :  { %v3953_v53 = vpop.f32.mrf.mxu3  ;;  %v3895_v3 = vadd.f32 %v3894_v42, %v3836_v0  ;;  %v3837_v36 = vpop.f32.mrf.mxu1  ;;  %v3779_v50 = vadd.f32 %v3778_v27, %v12907_v20  ;;  %v9031_v20 = vld [vmem:[%s14690_s0 + $0x308] sm:$0xf]  ;;  %v9081_v0 = vld [vmem:[%s14690_s0 + $0x398] sm:$0xf0]  ;;  %v9076_v27 = vor.u32 %v9985_v39, %v9073_v9 }
 0x448   :  { %v9032_v49 = vor.u32 %v9980_v43, %v9031_v20  ;;  %v9084_v4 = vor.u32 %v9986_v18, %v9081_v0  ;;  %v10096_v20 = vld [vmem:[%s14689_s1 + $0x8b8] sm:$0xff] }
 0x449   :  { %v13260_v57 = vadd.f32 %v3953_v53, %v3895_v3  ;;  %v3838_v52 = vadd.f32 %v3837_v36, %v3779_v50  ;;  %v9072_v3 = vor.u32 %v9991_v10, %v9071_v41  ;;  %v10080_v43 = vld [vmem:[%s14689_s1 + $0x838] sm:$0xff]  ;;  %6042 = vmatpush.bf16.msra.mxu2 %v10096_v20  ;;  %v9128_v41 = vor.u32 %v10004_v46, %v9127_v24  ;;  %v8705_v20 = vld [vmem:[%s14690_s0 + $0xa0] sm:$0xf0] }
 0x44a   :  { %5924 = vmatpush.bf16.msra.mxu0 %v10080_v43  ;;  %v8711_v43 = vld [vmem:[%s14690_s0 + $0x78] sm:$0xf] }
 0x44b   :  { %15513 = vst [vmem:[#allocation2_spill] sm:$0xff] %v13260_v57 }
 0x44e   :  { %v3896_v61 = vpop.f32.mrf.mxu2  ;;  %v3781_v54 = vpop.f32.mrf.mxu0 }
 0x44f   :  { %v3955_v31 = vpop.f32.mrf.mxu3  ;;  %v3897_v25 = vadd.f32 %v3896_v61, %v3838_v52  ;;  %v3840_v22 = vpop.f32.mrf.mxu1  ;;  %v3782_v37 = vadd.f32 %v3781_v54, %v12922_v56  ;;  %v10049_v56 = vld [vmem:[%s14689_s1 + $0x740] sm:$0xff] }
 0x450   :  { %5754 = vmatpush.bf16.msrb.mxu1 %v10049_v56  ;;  %v9129_v56 = vld [vmem:[%s14690_s0 + $0x3f8] sm:$0xf0] }
 0x451   :  { %v13287_v45 = vadd.f32 %v3955_v31, %v3897_v25  ;;  %v3841_v40 = vadd.f32 %v3840_v22, %v3782_v37  ;;  %5495 = vmatmul.bf16.gmra.mxu0 %v9024_v32  ;;  %v10088_v22 = vld [vmem:[%s14689_s1 + $0x878] sm:$0xff]  ;;  %v9997_v37 = vld [vmem:[%s14690_s0 + $0x3c4] sm:$0xf] }
 0x452   :  { %5554 = vmatmul.bf16.gmra.mxu1 %v9028_v5 }
 0x453   :  { %15514 = vst [vmem:[#allocation4_spill] sm:$0xff] %v13287_v45  ;;  %5613 = vmatmul.bf16.gmra.mxu2 %v9032_v49  ;;  %v9119_v49 = vld [vmem:[%s14690_s0 + $0x3c0] sm:$0xf] }
 0x454   :  { %5672 = vmatmul.bf16.gmra.mxu3 %v9036_v8  ;;  %v10003_v8 = vld [vmem:[%s14690_s0 + $0x3ec] sm:$0xf0]  ;;  %5983 = vmatpush.bf16.msra.mxu1 %v10088_v22 }
 0x456   :  { %v3899_v34 = vpop.f32.mrf.mxu2  ;;  %v3783_v63 = vpop.f32.mrf.mxu0 }
 0x457   :  { %v3958_v29 = vpop.f32.mrf.mxu3  ;;  %v3900_v30 = vadd.f32 %v3899_v34, %v3841_v40  ;;  %v3842_v21 = vpop.f32.mrf.mxu1  ;;  %v3784_v6 = vadd.f32 %v3783_v63, %v12941_v13  ;;  %v9079_v13 = vld [vmem:[%s14690_s0 + $0x368] sm:$0xf]  ;;  %v9998_v40 = vld [vmem:[%s14690_s0 + $0x3cc] sm:$0xf]  ;;  %v9124_v63 = vor.u32 %v9997_v37, %v9121_v12  ;;  %v8712_v37 = vor.u32 %v9898_v2, %v8711_v43 }
 0x458   :  { %v9080_v16 = vor.u32 %v9992_v44, %v9079_v13  ;;  %v9132_v10 = vor.u32 %v9998_v40, %v9129_v56 }
 0x459   :  { %v13302_v15 = vadd.f32 %v3958_v29, %v3900_v30  ;;  %v3843_v51 = vadd.f32 %v3842_v21, %v3784_v6  ;;  %v9120_v30 = vor.u32 %v10003_v8, %v9119_v49 }
 0x45b   :  { %15515 = vst [vmem:[#allocation3_spill] sm:$0xff] %v13302_v15 }
 0x45e   :  { %v3901_v42 = vpop.f32.mrf.mxu2  ;;  %v5461_v50 = vpop.f32.mrf.mxu0 }
 0x45f   :  { %v3960_v53 = vpop.f32.mrf.mxu3  ;;  %v3902_v36 = vadd.f32 %v3901_v42, %v3843_v51  ;;  %v5520_v52 = vpop.f32.mrf.mxu1 }
 0x460   :  { %v5521_v14 = vadd.f32 %v5520_v52, %v5461_v50  ;;  %v10103_v50 = vld [vmem:[%s14689_s1 + $0x8f0] sm:$0xff] }
 0x461   :  { %v13328_v1 = vadd.f32 %v3960_v53, %v3902_v36  ;;  %5500 = vmatmul.bf16.gmra.mxu0 %v9072_v3  ;;  %v10079_v36 = vld [vmem:[%s14689_s1 + $0x830] sm:$0xff]  ;;  %6102 = vmatpush.bf16.msra.mxu3 %v10103_v50 }
 0x462   :  { %5559 = vmatmul.bf16.gmra.mxu1 %v9076_v27  ;;  %v10095_v27 = vld [vmem:[%s14689_s1 + $0x8b0] sm:$0xff]  ;;  %5925 = vmatpush.bf16.msra.mxu0 %v10079_v36 }
 0x463   :  { %15516 = vst [vmem:[#allocation6_spill] sm:$0xff] %v13328_v1  ;;  %5618 = vmatmul.bf16.gmra.mxu2 %v9080_v16  ;;  %v8703_v52 = vld [vmem:[%s14690_s0 + $0x70] sm:$0xf]  ;;  %v9897_v16 = vld [vmem:[%s14690_s0 + $0x9c] sm:$0xf0] }
 0x464   :  { %5677 = vmatmul.bf16.gmra.mxu3 %v9084_v4  ;;  %v10087_v4 = vld [vmem:[%s14689_s1 + $0x870] sm:$0xff]  ;;  %6043 = vmatpush.bf16.msra.mxu2 %v10095_v27 }
 0x465   :  { %5984 = vmatpush.bf16.msra.mxu1 %v10087_v4 }
 0x466   :  { %v5579_v58 = vpop.f32.mrf.mxu2  ;;  %v5463_v32 = vpop.f32.mrf.mxu0 }
 0x467   :  { %v5638_v61 = vpop.f32.mrf.mxu3  ;;  %v5580_v31 = vadd.f32 %v5579_v58, %v5521_v14  ;;  %v5522_v5 = vpop.f32.mrf.mxu1  ;;  %v9891_v14 = vld [vmem:[%s14690_s0 + $0x74] sm:$0xf]  ;;  %v9892_v58 = vld [vmem:[%s14690_s0 + $0x7c] sm:$0xf] }
 0x468   :  { %v5523_v25 = vadd.f32 %v5522_v5, %v5463_v32  ;;  %v8704_v5 = vor.u32 %v9897_v16, %v8703_v52 }
 0x469   :  { %v13339_v54 = vadd.f32 %v5638_v61, %v5580_v31  ;;  %v8713_v61 = vld [vmem:[%s14690_s0 + $0xa8] sm:$0xf0] }
 0x46a   :  { %v8716_v12 = vor.u32 %v9892_v58, %v8713_v61  ;;  %v10086_v61 = vld [vmem:[%s14689_s1 + $0x868] sm:$0xff] }
 0x46b   :  { %5985 = vmatpush.bf16.msra.mxu1 %v10086_v61  ;;  %v8847_v61 = vld [vmem:[%s14690_s0 + $0x190] sm:$0xf] }
 0x46e   :  { %v5581_v34 = vpop.f32.mrf.mxu2  ;;  %v5466_v6 = vpop.f32.mrf.mxu0 }
 0x46f   :  { %v5640_v29 = vpop.f32.mrf.mxu3  ;;  %v5582_v21 = vadd.f32 %v5581_v34, %v5523_v25  ;;  %v5525_v51 = vpop.f32.mrf.mxu1  ;;  %v8708_v25 = vor.u32 %v9891_v14, %v8705_v20 }
 0x470   :  { %v5526_v39 = vadd.f32 %v5525_v51, %v5466_v6  ;;  %v10094_v6 = vld [vmem:[%s14689_s1 + $0x8a8] sm:$0xff] }
 0x471   :  { %v13368_v9 = vadd.f32 %v5640_v29, %v5582_v21  ;;  %5505 = vmatmul.bf16.gmra.mxu0 %v9120_v30  ;;  %v10078_v51 = vld [vmem:[%s14689_s1 + $0x828] sm:$0xff]  ;;  %6044 = vmatpush.bf16.msra.mxu2 %v10094_v6 }
 0x472   :  { %5564 = vmatmul.bf16.gmra.mxu1 %v9124_v63  ;;  %5926 = vmatpush.bf16.msra.mxu0 %v10078_v51 }
 0x473   :  { %5623 = vmatmul.bf16.gmra.mxu2 %v9128_v41  ;;  %v10102_v41 = vld [vmem:[%s14689_s1 + $0x8e8] sm:$0xff] }
 0x474   :  { %5682 = vmatmul.bf16.gmra.mxu3 %v9132_v10  ;;  %v8751_v10 = vld [vmem:[%s14690_s0 + $0xd0] sm:$0xf] }
 0x475   :  { %6103 = vmatpush.bf16.msra.mxu3 %v10102_v41 }
 0x476   :  { %v5584_v13 = vpop.f32.mrf.mxu2  ;;  %v5468_v0 = vpop.f32.mrf.mxu0 }
 0x477   :  { %v5643_v44 = vpop.f32.mrf.mxu3  ;;  %v5585_v18 = vadd.f32 %v5584_v13, %v5526_v39  ;;  %v5527_v42 = vpop.f32.mrf.mxu1  ;;  %v9909_v39 = vld [vmem:[%s14690_s0 + $0xfc] sm:$0xf0]  ;;  %v9903_v13 = vld [vmem:[%s14690_s0 + $0xd4] sm:$0xf] }
 0x478   :  { %v5528_v53 = vadd.f32 %v5527_v42, %v5468_v0  ;;  %v9910_v0 = vld [vmem:[%s14690_s0 + $0x104] sm:$0xf0]  ;;  %v9904_v42 = vld [vmem:[%s14690_s0 + $0xdc] sm:$0xf]  ;;  %v8752_v50 = vor.u32 %v9909_v39, %v8751_v10 }
 0x479   :  { %v13370_v3 = vadd.f32 %v5643_v44, %v5585_v18  ;;  %v8753_v44 = vld [vmem:[%s14690_s0 + $0x100] sm:$0xf0]  ;;  %v8759_v18 = vld [vmem:[%s14690_s0 + $0xd8] sm:$0xf] }
 0x47a   :  { %v8756_v52 = vor.u32 %v9903_v13, %v8753_v44  ;;  %v8760_v20 = vor.u32 %v9910_v0, %v8759_v18 }
 0x47e   :  { %v5586_v31 = vpop.f32.mrf.mxu2  ;;  %v5471_v49 = vpop.f32.mrf.mxu0 }
 0x47f   :  { %v5645_v32 = vpop.f32.mrf.mxu3  ;;  %v5587_v22 = vadd.f32 %v5586_v31, %v5528_v53  ;;  %v5530_v8 = vpop.f32.mrf.mxu1  ;;  %v8761_v53 = vld [vmem:[%s14690_s0 + $0x108] sm:$0xf0] }
 0x480   :  { %v5531_v24 = vadd.f32 %v5530_v8, %v5471_v49  ;;  %v8764_v43 = vor.u32 %v9904_v42, %v8761_v53  ;;  %v10093_v53 = vld [vmem:[%s14689_s1 + $0x8a0] sm:$0xff] }
 0x481   :  { %v13408_v46 = vadd.f32 %v5645_v32, %v5587_v22  ;;  %5696 = vmatmul.bf16.vlgmr.msrb.gmra.mxu0 %v8704_v5  ;;  %6045 = vmatpush.bf16.msra.mxu2 %v10093_v53 }
 0x482   :  { %5755 = vmatmul.bf16.vlgmr.msrb.gmra.mxu1 %v8708_v25 }
 0x483   :  { %5814 = vmatmul.bf16.vlgmr.msrb.gmra.mxu2 %v8712_v37  ;;  %v8799_v37 = vld [vmem:[%s14690_s0 + $0x130] sm:$0xf] }
 0x484   :  { %5873 = vmatmul.bf16.vlgmr.msrb.gmra.mxu3 %v8716_v12  ;;  %v9921_v12 = vld [vmem:[%s14690_s0 + $0x15c] sm:$0xf0] }
 0x485   :  { %v8800_v51 = vor.u32 %v9921_v12, %v8799_v37  ;;  %v8857_v37 = vld [vmem:[%s14690_s0 + $0x1c8] sm:$0xf0] }
 0x486   :  { %v5589_v40 = vpop.f32.mrf.mxu2  ;;  %v5473_v29 = vpop.f32.mrf.mxu0 }
 0x487   :  { %v5648_v56 = vpop.f32.mrf.mxu3  ;;  %v5590_v34 = vadd.f32 %v5589_v40, %v5531_v24  ;;  %v5532_v30 = vpop.f32.mrf.mxu1  ;;  %v9915_v24 = vld [vmem:[%s14690_s0 + $0x134] sm:$0xf]  ;;  %v8801_v40 = vld [vmem:[%s14690_s0 + $0x160] sm:$0xf0] }
 0x488   :  { %v5533_v63 = vadd.f32 %v5532_v30, %v5473_v29  ;;  %v9916_v29 = vld [vmem:[%s14690_s0 + $0x13c] sm:$0xf]  ;;  %v8809_v30 = vld [vmem:[%s14690_s0 + $0x168] sm:$0xf0]  ;;  %v8804_v41 = vor.u32 %v9915_v24, %v8801_v40 }
 0x489   :  { %v13410_v21 = vadd.f32 %v5648_v56, %v5590_v34  ;;  %v8807_v56 = vld [vmem:[%s14690_s0 + $0x138] sm:$0xf]  ;;  %v9922_v34 = vld [vmem:[%s14690_s0 + $0x164] sm:$0xf0]  ;;  %v8812_v18 = vor.u32 %v9916_v29, %v8809_v30 }
 0x48a   :  { %v8808_v44 = vor.u32 %v9922_v34, %v8807_v56 }
 0x48e   :  { %v5591_v27 = vpop.f32.mrf.mxu2  ;;  %v5476_v4 = vpop.f32.mrf.mxu0 }
 0x48f   :  { %v5650_v36 = vpop.f32.mrf.mxu3  ;;  %v5592_v16 = vadd.f32 %v5591_v27, %v5533_v63  ;;  %v5535_v14 = vpop.f32.mrf.mxu1  ;;  %v10077_v27 = vld [vmem:[%s14689_s1 + $0x820] sm:$0xff] }
 0x490   :  { %v5536_v2 = vadd.f32 %v5535_v14, %v5476_v4  ;;  %5927 = vmatpush.bf16.msra.mxu0 %v10077_v27 }
 0x491   :  { %v13445_v58 = vadd.f32 %v5650_v36, %v5592_v16  ;;  %5701 = vmatmul.bf16.gmra.mxu0 %v8752_v50  ;;  %v10101_v36 = vld [vmem:[%s14689_s1 + $0x8e0] sm:$0xff] }
 0x492   :  { %5760 = vmatmul.bf16.gmra.mxu1 %v8756_v52  ;;  %v10085_v50 = vld [vmem:[%s14689_s1 + $0x860] sm:$0xff]  ;;  %6104 = vmatpush.bf16.msra.mxu3 %v10101_v36 }
 0x493   :  { %5819 = vmatmul.bf16.gmra.mxu2 %v8760_v20  ;;  %5986 = vmatpush.bf16.msra.mxu1 %v10085_v50 }
 0x494   :  { %5878 = vmatmul.bf16.gmra.mxu3 %v8764_v43 }
 0x496   :  { %v5594_v31 = vpop.f32.mrf.mxu2  ;;  %v5478_v25 = vpop.f32.mrf.mxu0 }
 0x497   :  { %v5653_v32 = vpop.f32.mrf.mxu3  ;;  %v5595_v5 = vadd.f32 %v5594_v31, %v5536_v2  ;;  %v5537_v22 = vpop.f32.mrf.mxu1  ;;  %v9933_v31 = vld [vmem:[%s14690_s0 + $0x1bc] sm:$0xf0] }
 0x498   :  { %v5538_v49 = vadd.f32 %v5537_v22, %v5478_v25  ;;  %v8855_v25 = vld [vmem:[%s14690_s0 + $0x198] sm:$0xf]  ;;  %v9934_v22 = vld [vmem:[%s14690_s0 + $0x1c4] sm:$0xf0]  ;;  %v8848_v40 = vor.u32 %v9933_v31, %v8847_v61  ;;  %v9940_v31 = vld [vmem:[%s14690_s0 + $0x1fc] sm:$0xf] }
 0x499   :  { %v13450_v8 = vadd.f32 %v5653_v32, %v5595_v5  ;;  %v9927_v32 = vld [vmem:[%s14690_s0 + $0x194] sm:$0xf]  ;;  %v8849_v5 = vld [vmem:[%s14690_s0 + $0x1c0] sm:$0xf0]  ;;  %v9946_v61 = vld [vmem:[%s14690_s0 + $0x224] sm:$0xf0] }
 0x49a   :  { %v8852_v56 = vor.u32 %v9927_v32, %v8849_v5  ;;  %v8905_v32 = vld [vmem:[%s14690_s0 + $0x228] sm:$0xf0] }
 0x49e   :  { %v5596_v63 = vpop.f32.mrf.mxu2  ;;  %v5481_v39 = vpop.f32.mrf.mxu0 }
 0x49f   :  { %v5655_v6 = vpop.f32.mrf.mxu3  ;;  %v5597_v10 = vadd.f32 %v5596_v63, %v5538_v49  ;;  %v5540_v13 = vpop.f32.mrf.mxu1  ;;  %v9928_v49 = vld [vmem:[%s14690_s0 + $0x19c] sm:$0xf]  ;;  %v8856_v63 = vor.u32 %v9934_v22, %v8855_v25 }
 0x4a0   :  { %v5541_v0 = vadd.f32 %v5540_v13, %v5481_v39  ;;  %v10076_v39 = vld [vmem:[%s14689_s1 + $0x818] sm:$0xff] }
 0x4a1   :  { %v13476_v42 = vadd.f32 %v5655_v6, %v5597_v10  ;;  %5706 = vmatmul.bf16.gmra.mxu0 %v8800_v51  ;;  %v8860_v6 = vor.u32 %v9928_v49, %v8857_v37  ;;  %v10092_v10 = vld [vmem:[%s14689_s1 + $0x898] sm:$0xff] }
 0x4a2   :  { %5765 = vmatmul.bf16.gmra.mxu1 %v8804_v41  ;;  %v10100_v13 = vld [vmem:[%s14689_s1 + $0x8d8] sm:$0xff]  ;;  %6046 = vmatpush.bf16.msra.mxu2 %v10092_v10 }
 0x4a3   :  { %5824 = vmatmul.bf16.gmra.mxu2 %v8808_v44  ;;  %5928 = vmatpush.bf16.msra.mxu0 %v10076_v39 }
 0x4a4   :  { %5883 = vmatmul.bf16.gmra.mxu3 %v8812_v18 }
 0x4a5   :  { %6105 = vmatpush.bf16.msra.mxu3 %v10100_v13 }
 0x4a6   :  { %v5599_v52 = vpop.f32.mrf.mxu2  ;;  %v5483_v14 = vpop.f32.mrf.mxu0 }
 0x4a7   :  { %v5658_v16 = vpop.f32.mrf.mxu3  ;;  %v5600_v4 = vadd.f32 %v5599_v52, %v5541_v0  ;;  %v5542_v20 = vpop.f32.mrf.mxu1  ;;  %v10084_v52 = vld [vmem:[%s14689_s1 + $0x858] sm:$0xff] }
 0x4a8   :  { %v5543_v43 = vadd.f32 %v5542_v20, %v5483_v14  ;;  %v9939_v14 = vld [vmem:[%s14690_s0 + $0x1f4] sm:$0xf]  ;;  %v8897_v20 = vld [vmem:[%s14690_s0 + $0x220] sm:$0xf0]  ;;  %5987 = vmatpush.bf16.msra.mxu1 %v10084_v52 }
 0x4a9   :  { %v13490_v2 = vadd.f32 %v5658_v16, %v5600_v4  ;;  %v8895_v16 = vld [vmem:[%s14690_s0 + $0x1f0] sm:$0xf]  ;;  %v9945_v4 = vld [vmem:[%s14690_s0 + $0x21c] sm:$0xf0]  ;;  %v8900_v49 = vor.u32 %v9939_v14, %v8897_v20  ;;  %v9951_v52 = vld [vmem:[%s14690_s0 + $0x254] sm:$0xf] }
 0x4aa   :  { %v8896_v22 = vor.u32 %v9945_v4, %v8895_v16  ;;  %v8945_v16 = vld [vmem:[%s14690_s0 + $0x280] sm:$0xf0]  ;;  %v8951_v4 = vld [vmem:[%s14690_s0 + $0x258] sm:$0xf]  ;;  %v9958_v14 = vld [vmem:[%s14690_s0 + $0x284] sm:$0xf0] }
 0x4ab   :  { %v9952_v20 = vld [vmem:[%s14690_s0 + $0x25c] sm:$0xf] }
 0x4ae   :  { %v5601_v12 = vpop.f32.mrf.mxu2  ;;  %v5486_v29 = vpop.f32.mrf.mxu0 }
 0x4af   :  { %v5660_v24 = vpop.f32.mrf.mxu3  ;;  %v5602_v34 = vadd.f32 %v5601_v12, %v5543_v43  ;;  %v5545_v30 = vpop.f32.mrf.mxu1  ;;  %v8903_v43 = vld [vmem:[%s14690_s0 + $0x1f8] sm:$0xf] }
 0x4b0   :  { %v5546_v51 = vadd.f32 %v5545_v30, %v5486_v29 }
 0x4b1   :  { %v13516_v41 = vadd.f32 %v5660_v24, %v5602_v34  ;;  %5711 = vmatmul.bf16.gmra.mxu0 %v8848_v40  ;;  %v8904_v40 = vor.u32 %v9946_v61, %v8903_v43  ;;  %v8953_v43 = vld [vmem:[%s14690_s0 + $0x288] sm:$0xf0] }
 0x4b2   :  { %5770 = vmatmul.bf16.gmra.mxu1 %v8852_v56  ;;  %v8908_v56 = vor.u32 %v9940_v31, %v8905_v32 }
 0x4b3   :  { %5829 = vmatmul.bf16.gmra.mxu2 %v8856_v63 }
 0x4b4   :  { %5888 = vmatmul.bf16.gmra.mxu3 %v8860_v6 }
 0x4b6   :  { %v5604_v44 = vpop.f32.mrf.mxu2  ;;  %v5488_v53 = vpop.f32.mrf.mxu0 }
 0x4b7   :  { %v5663_v18 = vpop.f32.mrf.mxu3  ;;  %v5605_v0 = vadd.f32 %v5604_v44, %v5546_v51  ;;  %v5547_v27 = vpop.f32.mrf.mxu1  ;;  %v10091_v44 = vld [vmem:[%s14689_s1 + $0x890] sm:$0xff] }
 0x4b8   :  { %v5548_v36 = vadd.f32 %v5547_v27, %v5488_v53  ;;  %v8943_v53 = vld [vmem:[%s14690_s0 + $0x250] sm:$0xf]  ;;  %v9957_v27 = vld [vmem:[%s14690_s0 + $0x27c] sm:$0xf0]  ;;  %6047 = vmatpush.bf16.msra.mxu2 %v10091_v44  ;;  %v10074_v44 = vld [vmem:[%s14689_s1 + $0x808] sm:$0xff] }
 0x4b9   :  { %v13527_v50 = vadd.f32 %v5663_v18, %v5605_v0  ;;  %v10075_v18 = vld [vmem:[%s14689_s1 + $0x810] sm:$0xff]  ;;  %v8944_v32 = vor.u32 %v9957_v27, %v8943_v53  ;;  %v9969_v53 = vld [vmem:[%s14690_s0 + $0x2dc] sm:$0xf0] }
 0x4ba   :  { %v10099_v0 = vld [vmem:[%s14689_s1 + $0x8d0] sm:$0xff]  ;;  %5929 = vmatpush.bf16.msra.mxu0 %v10075_v18  ;;  %v10098_v18 = vld [vmem:[%s14689_s1 + $0x8c8] sm:$0xff] }
 0x4bb   :  { %6106 = vmatpush.bf16.msra.mxu3 %v10099_v0  ;;  %v8991_v0 = vld [vmem:[%s14690_s0 + $0x2b0] sm:$0xf]  ;;  %v9963_v27 = vld [vmem:[%s14690_s0 + $0x2b4] sm:$0xf] }
 0x4be   :  { %v5606_v5 = vpop.f32.mrf.mxu2  ;;  %v5491_v12 = vpop.f32.mrf.mxu0  ;;  %5930 = vmatpush.bf16.msra.mxu0 %v10074_v44  ;;  %v9039_v44 = vld [vmem:[%s14690_s0 + $0x310] sm:$0xf] }
 0x4bf   :  { %v5665_v25 = vpop.f32.mrf.mxu3  ;;  %v5607_v37 = vadd.f32 %v5606_v5, %v5548_v36  ;;  %v5550_v24 = vpop.f32.mrf.mxu1  ;;  %v10083_v36 = vld [vmem:[%s14689_s1 + $0x850] sm:$0xff]  ;;  %v8948_v5 = vor.u32 %v9951_v52, %v8945_v16  ;;  %v8999_v52 = vld [vmem:[%s14690_s0 + $0x2b8] sm:$0xf]  ;;  %v9970_v16 = vld [vmem:[%s14690_s0 + $0x2e4] sm:$0xf0]  ;;  %6107 = vmatpush.bf16.msra.mxu3 %v10098_v18 }
 0x4c0   :  { %v5551_v34 = vadd.f32 %v5550_v24, %v5491_v12  ;;  %5988 = vmatpush.bf16.msra.mxu1 %v10083_v36  ;;  %v8956_v12 = vor.u32 %v9952_v20, %v8953_v43  ;;  %v8993_v36 = vld [vmem:[%s14690_s0 + $0x2e0] sm:$0xf0]  ;;  %v9981_v18 = vld [vmem:[%s14690_s0 + $0x33c] sm:$0xf0] }
 0x4c1   :  { %v13556_v29 = vadd.f32 %v5665_v25, %v5607_v37  ;;  %5716 = vmatmul.bf16.gmra.mxu0 %v8896_v22  ;;  %v8952_v37 = vor.u32 %v9958_v14, %v8951_v4  ;;  %v9964_v4 = vld [vmem:[%s14690_s0 + $0x2bc] sm:$0xf]  ;;  %v9001_v14 = vld [vmem:[%s14690_s0 + $0x2e8] sm:$0xf0] }
 0x4c2   :  { %5775 = vmatmul.bf16.gmra.mxu1 %v8900_v49 }
 0x4c3   :  { %5834 = vmatmul.bf16.gmra.mxu2 %v8904_v40 }
 0x4c4   :  { %5893 = vmatmul.bf16.gmra.mxu3 %v8908_v56 }
 0x4c6   :  { %v5609_v30 = vpop.f32.mrf.mxu2  ;;  %v5493_v51 = vpop.f32.mrf.mxu0 }
 0x4c7   :  { %v5668_v63 = vpop.f32.mrf.mxu3  ;;  %v5610_v6 = vadd.f32 %v5609_v30, %v5551_v34  ;;  %v5552_v10 = vpop.f32.mrf.mxu1 }
 0x4c8   :  { %v5553_v39 = vadd.f32 %v5552_v10, %v5493_v51 }
 0x4c9   :  { %v13558_v13 = vadd.f32 %v5668_v63, %v5610_v6 }
 0x4ce   :  { %v5611_v61 = vpop.f32.mrf.mxu2  ;;  %v5496_v22 = vpop.f32.mrf.mxu0 }
 0x4cf   :  { %v5670_v31 = vpop.f32.mrf.mxu3  ;;  %v5612_v25 = vadd.f32 %v5611_v61, %v5553_v39  ;;  %v5555_v49 = vpop.f32.mrf.mxu1  ;;  %v10090_v39 = vld [vmem:[%s14689_s1 + $0x888] sm:$0xff]  ;;  %v8992_v61 = vor.u32 %v9969_v53, %v8991_v0  ;;  %v9975_v0 = vld [vmem:[%s14690_s0 + $0x314] sm:$0xf]  ;;  %v9041_v53 = vld [vmem:[%s14690_s0 + $0x340] sm:$0xf0] }
 0x4d0   :  { %v5556_v24 = vadd.f32 %v5555_v49, %v5496_v22  ;;  %6048 = vmatpush.bf16.msra.mxu2 %v10090_v39  ;;  %v9000_v22 = vor.u32 %v9970_v16, %v8999_v52  ;;  %v9004_v49 = vor.u32 %v9964_v4, %v9001_v14  ;;  %v9976_v52 = vld [vmem:[%s14690_s0 + $0x31c] sm:$0xf]  ;;  %v9049_v16 = vld [vmem:[%s14690_s0 + $0x348] sm:$0xf0] }
 0x4d1   :  { %v13596_v40 = vadd.f32 %v5670_v31, %v5612_v25  ;;  %5721 = vmatmul.bf16.gmra.mxu0 %v8944_v32  ;;  %v8996_v31 = vor.u32 %v9963_v27, %v8993_v36  ;;  %v9047_v27 = vld [vmem:[%s14690_s0 + $0x318] sm:$0xf]  ;;  %v9982_v36 = vld [vmem:[%s14690_s0 + $0x344] sm:$0xf0] }
 0x4d2   :  { %5780 = vmatmul.bf16.gmra.mxu1 %v8948_v5 }
 0x4d3   :  { %5839 = vmatmul.bf16.gmra.mxu2 %v8952_v37 }
 0x4d4   :  { %5898 = vmatmul.bf16.gmra.mxu3 %v8956_v12 }
 0x4d6   :  { %v5614_v56 = vpop.f32.mrf.mxu2  ;;  %v5498_v63 = vpop.f32.mrf.mxu0 }
 0x4d7   :  { %v5673_v34 = vpop.f32.mrf.mxu3  ;;  %v5615_v30 = vadd.f32 %v5614_v56, %v5556_v24  ;;  %v5557_v6 = vpop.f32.mrf.mxu1  ;;  %v10082_v24 = vld [vmem:[%s14689_s1 + $0x848] sm:$0xff] }
 0x4d8   :  { %v5558_v51 = vadd.f32 %v5557_v6, %v5498_v63  ;;  %5989 = vmatpush.bf16.msra.mxu1 %v10082_v24  ;;  %v10073_v24 = vld [vmem:[%s14689_s1 + $0x800] sm:$0xff] }
 0x4d9   :  { %v13598_v10 = vadd.f32 %v5673_v34, %v5615_v30  ;;  %5931 = vmatpush.bf16.msra.mxu0 %v10073_v24 }
 0x4de   :  { %v5616_v20 = vpop.f32.mrf.mxu2  ;;  %v5501_v5 = vpop.f32.mrf.mxu0 }
 0x4df   :  { %v5675_v43 = vpop.f32.mrf.mxu3  ;;  %v5617_v32 = vadd.f32 %v5616_v20, %v5558_v51  ;;  %v5560_v25 = vpop.f32.mrf.mxu1  ;;  %v9040_v20 = vor.u32 %v9981_v18, %v9039_v44 }
 0x4e0   :  { %v5561_v37 = vadd.f32 %v5560_v25, %v5501_v5  ;;  %v9048_v5 = vor.u32 %v9982_v36, %v9047_v27  ;;  %v9052_v25 = vor.u32 %v9976_v52, %v9049_v16  ;;  %v9993_v27 = vld [vmem:[%s14690_s0 + $0x39c] sm:$0xf0]  ;;  %v9987_v36 = vld [vmem:[%s14690_s0 + $0x374] sm:$0xf]  ;;  %v9089_v52 = vld [vmem:[%s14690_s0 + $0x3a0] sm:$0xf0] }
 0x4e1   :  { %v13633_v12 = vadd.f32 %v5675_v43, %v5617_v32  ;;  %5726 = vmatmul.bf16.gmra.mxu0 %v8992_v61  ;;  %v9044_v43 = vor.u32 %v9975_v0, %v9041_v53  ;;  %v9087_v53 = vld [vmem:[%s14690_s0 + $0x370] sm:$0xf]  ;;  %v9095_v16 = vld [vmem:[%s14690_s0 + $0x378] sm:$0xf] }
 0x4e2   :  { %5785 = vmatmul.bf16.gmra.mxu1 %v8996_v31 }
 0x4e3   :  { %5844 = vmatmul.bf16.gmra.mxu2 %v9000_v22 }
 0x4e4   :  { %5903 = vmatmul.bf16.gmra.mxu3 %v9004_v49 }
 0x4e6   :  { %v5619_v56 = vpop.f32.mrf.mxu2  ;;  %v5503_v63 = vpop.f32.mrf.mxu0 }
 0x4e7   :  { %v5678_v34 = vpop.f32.mrf.mxu3  ;;  %v5620_v30 = vadd.f32 %v5619_v56, %v5561_v37  ;;  %v5562_v6 = vpop.f32.mrf.mxu1  ;;  %v10089_v37 = vld [vmem:[%s14689_s1 + $0x880] sm:$0xff] }
 0x4e8   :  { %v5563_v51 = vadd.f32 %v5562_v6, %v5503_v63  ;;  %v10097_v56 = vld [vmem:[%s14689_s1 + $0x8c0] sm:$0xff]  ;;  %6049 = vmatpush.bf16.msra.mxu2 %v10089_v37 }
 0x4e9   :  { %v13638_v39 = vadd.f32 %v5678_v34, %v5620_v30  ;;  %v10081_v34 = vld [vmem:[%s14689_s1 + $0x840] sm:$0xff]  ;;  %6108 = vmatpush.bf16.msra.mxu3 %v10097_v56 }
 0x4ea   :  { %5990 = vmatpush.bf16.msra.mxu1 %v10081_v34 }
 0x4ee   :  { %v5621_v4 = vpop.f32.mrf.mxu2  ;;  %v5506_v31 = vpop.f32.mrf.mxu0 }
 0x4ef   :  { %v5680_v14 = vpop.f32.mrf.mxu3  ;;  %v5622_v61 = vadd.f32 %v5621_v4, %v5563_v51  ;;  %v5565_v32 = vpop.f32.mrf.mxu1  ;;  %v9994_v4 = vld [vmem:[%s14690_s0 + $0x3a4] sm:$0xf0] }
 0x4f0   :  { %v5566_v22 = vadd.f32 %v5565_v32, %v5506_v31  ;;  %v9088_v31 = vor.u32 %v9993_v27, %v9087_v53  ;;  %v9092_v32 = vor.u32 %v9987_v36, %v9089_v52  ;;  %v9096_v37 = vor.u32 %v9994_v4, %v9095_v16  ;;  %v9673_v53 = vld [vmem:[%s14691_s3 + $0xf8] sm:$0xf0] }
 0x4f1   :  { %v13664_v49 = vadd.f32 %v5680_v14, %v5622_v61  ;;  %5731 = vmatmul.bf16.gmra.mxu0 %v9040_v20  ;;  %v9988_v14 = vld [vmem:[%s14690_s0 + $0x37c] sm:$0xf]  ;;  %v9097_v20 = vld [vmem:[%s14690_s0 + $0x3a8] sm:$0xf0] }
 0x4f2   :  { %5790 = vmatmul.bf16.gmra.mxu1 %v9044_v43  ;;  %v9100_v24 = vor.u32 %v9988_v14, %v9097_v20 }
 0x4f3   :  { %5849 = vmatmul.bf16.gmra.mxu2 %v9048_v5 }
 0x4f4   :  { %5908 = vmatmul.bf16.gmra.mxu3 %v9052_v25 }
 0x4f6   :  { %v5624_v30 = vpop.f32.mrf.mxu2  ;;  %v5508_v51 = vpop.f32.mrf.mxu0 }
 0x4f7   :  { %v5683_v63 = vpop.f32.mrf.mxu3  ;;  %v5625_v6 = vadd.f32 %v5624_v30, %v5566_v22  ;;  %v5567_v44 = vpop.f32.mrf.mxu1 }
 0x4f8   :  { %v5568_v18 = vadd.f32 %v5567_v44, %v5508_v51  ;;  %v9663_v51 = vld [vmem:[%s14691_s3 + $0xe0] sm:$0xf]  ;;  %v10135_v44 = vld [vmem:[%s14691_s3 + $0xec] sm:$0xf0] }
 0x4f9   :  { %v13678_v0 = vadd.f32 %v5683_v63, %v5625_v6  ;;  %v9671_v63 = vld [vmem:[%s14691_s3 + $0xe8] sm:$0xf]  ;;  %v10136_v6 = vld [vmem:[%s14691_s3 + $0xf4] sm:$0xf0]  ;;  %v9664_v27 = vor.u32 %v10135_v44, %v9663_v51 }
 0x4fb   :  { %6436 = vmatpush.bf16.msrb.mxu0 %v9664_v27 }
 0x4fe   :  { %v5626_v43 = vpop.f32.mrf.mxu2  ;;  %v5697_v25 = vpop.f32.mrf.mxu0 }
 0x4ff   :  { %v5685_v61 = vpop.f32.mrf.mxu3  ;;  %v5627_v5 = vadd.f32 %v5626_v43, %v5568_v18  ;;  %v5756_v22 = vpop.f32.mrf.mxu1  ;;  %v5698_v56 = vadd.f32 %v5697_v25, %v13339_v54  ;;  %v9672_v54 = vor.u32 %v10136_v6, %v9671_v63  ;;  %v10134_v18 = vld [vmem:[%s14691_s3 + $0xec] sm:$0xf]  ;;  %v9135_v25 = vld [vmem:[%s14690_s0 + $0x3d0] sm:$0xf]  ;;  %v10000_v63 = vld [vmem:[%s14690_s0 + $0x3dc] sm:$0xf] }
 0x500   :  { %v9676_v36 = vor.u32 %v10134_v18, %v9673_v53  ;;  %v9145_v6 = vld [vmem:[%s14690_s0 + $0x408] sm:$0xf0] }
 0x501   :  { %v13705_v34 = vadd.f32 %v5685_v61, %v5627_v5  ;;  %v5757_v30 = vadd.f32 %v5756_v22, %v5698_v56  ;;  %5736 = vmatmul.bf16.gmra.mxu0 %v9088_v31  ;;  %6554 = vmatpush.bf16.msrb.mxu2 %v9672_v54  ;;  %v10133_v31 = vld [vmem:[%s14691_s3 + $0xe4] sm:$0xf]  ;;  %v10005_v22 = vld [vmem:[%s14690_s0 + $0x3fc] sm:$0xf0]  ;;  %v9143_v56 = vld [vmem:[%s14690_s0 + $0x3d8] sm:$0xf] }
 0x502   :  { %5795 = vmatmul.bf16.gmra.mxu1 %v9092_v32  ;;  %6613 = vmatpush.bf16.msrb.mxu3 %v9676_v36  ;;  %v9665_v32 = vld [vmem:[%s14691_s3 + $0xf0] sm:$0xf0]  ;;  %v9136_v44 = vor.u32 %v10005_v22, %v9135_v25 }
 0x503   :  { %5854 = vmatmul.bf16.gmra.mxu2 %v9096_v37  ;;  %v9999_v37 = vld [vmem:[%s14690_s0 + $0x3d4] sm:$0xf] }
 0x504   :  { %5913 = vmatmul.bf16.gmra.mxu3 %v9100_v24  ;;  %v9137_v24 = vld [vmem:[%s14690_s0 + $0x400] sm:$0xf0] }
 0x505   :  { %v9140_v18 = vor.u32 %v9999_v37, %v9137_v24  ;;  %v9899_v37 = vld [vmem:[%s14690_s0 + $0xac] sm:$0xf0]  ;;  %v9893_v24 = vld [vmem:[%s14690_s0 + $0x84] sm:$0xf] }
 0x506   :  { %v5815_v52 = vpop.f32.mrf.mxu2  ;;  %v5699_v14 = vpop.f32.mrf.mxu0 }
 0x507   :  { %v5874_v16 = vpop.f32.mrf.mxu3  ;;  %v5816_v4 = vadd.f32 %v5815_v52, %v5757_v30  ;;  %v5758_v20 = vpop.f32.mrf.mxu1  ;;  %v5700_v43 = vadd.f32 %v5699_v14, %v13368_v9  ;;  %v9668_v9 = vor.u32 %v10133_v31, %v9665_v32  ;;  %v10006_v30 = vld [vmem:[%s14690_s0 + $0x404] sm:$0xf0] }
 0x508   :  { %v9144_v52 = vor.u32 %v10006_v30, %v9143_v56  ;;  %v8721_v56 = vld [vmem:[%s14690_s0 + $0xb0] sm:$0xf0]  ;;  %v10132_v30 = vld [vmem:[%s14691_s3 + $0xd4] sm:$0xf0] }
 0x509   :  { %v13726_v61 = vadd.f32 %v5874_v16, %v5816_v4  ;;  %v5759_v5 = vadd.f32 %v5758_v20, %v5700_v43  ;;  %6495 = vmatpush.bf16.msrb.mxu1 %v9668_v9  ;;  %v9148_v16 = vor.u32 %v10000_v63, %v9145_v6  ;;  %v8727_v6 = vld [vmem:[%s14690_s0 + $0x88] sm:$0xf] }
 0x50e   :  { %v5817_v51 = vpop.f32.mrf.mxu2  ;;  %v5702_v27 = vpop.f32.mrf.mxu0 }
 0x50f   :  { %v5876_v54 = vpop.f32.mrf.mxu3  ;;  %v5818_v53 = vadd.f32 %v5817_v51, %v5759_v5  ;;  %v5761_v36 = vpop.f32.mrf.mxu1  ;;  %v5703_v4 = vadd.f32 %v5702_v27, %v13370_v3  ;;  %v8719_v3 = vld [vmem:[%s14690_s0 + $0x80] sm:$0xf]  ;;  %v9657_v27 = vld [vmem:[%s14691_s3 + $0xd8] sm:$0xf0] }
 0x511   :  { %v13759_v14 = vadd.f32 %v5876_v54, %v5818_v53  ;;  %v5762_v20 = vadd.f32 %v5761_v36, %v5703_v4  ;;  %5741 = vmatmul.bf16.gmra.mxu0 %v9136_v44  ;;  %v9647_v54 = vld [vmem:[%s14691_s3 + $0xc0] sm:$0xf]  ;;  %v10131_v44 = vld [vmem:[%s14691_s3 + $0xcc] sm:$0xf0]  ;;  %v10129_v36 = vld [vmem:[%s14691_s3 + $0xc4] sm:$0xf] }
 0x512   :  { %5800 = vmatmul.bf16.gmra.mxu1 %v9140_v18  ;;  %v10130_v18 = vld [vmem:[%s14691_s3 + $0xcc] sm:$0xf]  ;;  %v9648_v53 = vor.u32 %v10131_v44, %v9647_v54 }
 0x513   :  { %5859 = vmatmul.bf16.gmra.mxu2 %v9144_v52  ;;  %v9649_v52 = vld [vmem:[%s14691_s3 + $0xd0] sm:$0xf0]  ;;  %v9894_v4 = vld [vmem:[%s14690_s0 + $0x8c] sm:$0xf] }
 0x514   :  { %5918 = vmatmul.bf16.gmra.mxu3 %v9148_v16  ;;  %v9900_v16 = vld [vmem:[%s14690_s0 + $0xb4] sm:$0xf0]  ;;  %6437 = vmatpush.bf16.msrb.mxu0 %v9648_v53  ;;  %v9639_v53 = vld [vmem:[%s14691_s3 + $0xa8] sm:$0xf] }
 0x515   :  { %v8728_v44 = vor.u32 %v9900_v16, %v8727_v6  ;;  %v10127_v16 = vld [vmem:[%s14691_s3 + $0xac] sm:$0xf0] }
 0x516   :  { %v5820_v43 = vpop.f32.mrf.mxu2  ;;  %v5704_v9 = vpop.f32.mrf.mxu0 }
 0x517   :  { %v5879_v31 = vpop.f32.mrf.mxu3  ;;  %v5821_v32 = vadd.f32 %v5820_v43, %v5762_v20  ;;  %v5763_v25 = vpop.f32.mrf.mxu1  ;;  %v5705_v5 = vadd.f32 %v5704_v9, %v13408_v46  ;;  %v9655_v46 = vld [vmem:[%s14691_s3 + $0xc8] sm:$0xf]  ;;  %v8729_v20 = vld [vmem:[%s14690_s0 + $0xb8] sm:$0xf0]  ;;  %v9660_v43 = vor.u32 %v10130_v18, %v9657_v27  ;;  %v10128_v27 = vld [vmem:[%s14691_s3 + $0xb4] sm:$0xf0] }
 0x518   :  { %v9656_v51 = vor.u32 %v10132_v30, %v9655_v46  ;;  %v8732_v1 = vor.u32 %v9894_v4, %v8729_v20  ;;  %v10126_v4 = vld [vmem:[%s14691_s3 + $0xac] sm:$0xf]  ;;  %v9641_v20 = vld [vmem:[%s14691_s3 + $0xb8] sm:$0xf0] }
 0x519   :  { %v13762_v22 = vadd.f32 %v5879_v31, %v5821_v32  ;;  %v5764_v63 = vadd.f32 %v5763_v25, %v5705_v5  ;;  %v9652_v31 = vor.u32 %v10129_v36, %v9649_v52  ;;  %v8720_v25 = vor.u32 %v9899_v37, %v8719_v3  ;;  %6614 = vmatpush.bf16.msrb.mxu3 %v9660_v43  ;;  %v9631_v36 = vld [vmem:[%s14691_s3 + $0xa0] sm:$0xf]  ;;  %v9912_v43 = vld [vmem:[%s14690_s0 + $0x114] sm:$0xf0] }
 0x51a   :  { %6555 = vmatpush.bf16.msrb.mxu2 %v9656_v51  ;;  %v8724_v5 = vor.u32 %v9893_v24, %v8721_v56  ;;  %v9640_v52 = vor.u32 %v10128_v27, %v9639_v53  ;;  %v10125_v53 = vld [vmem:[%s14691_s3 + $0xa4] sm:$0xf] }
 0x51b   :  { %6496 = vmatpush.bf16.msrb.mxu1 %v9652_v31  ;;  %v9906_v31 = vld [vmem:[%s14690_s0 + $0xec] sm:$0xf] }
 0x51e   :  { %v5822_v32 = vpop.f32.mrf.mxu2  ;;  %v5707_v30 = vpop.f32.mrf.mxu0  ;;  %6556 = vmatpush.bf16.msrb.mxu2 %v9640_v52 }
 0x51f   :  { %v5881_v9 = vpop.f32.mrf.mxu3  ;;  %v5823_v46 = vadd.f32 %v5822_v32, %v5764_v63  ;;  %v5766_v54 = vpop.f32.mrf.mxu1  ;;  %v5708_v15 = vadd.f32 %v5707_v30, %v13410_v21  ;;  %v8767_v21 = vld [vmem:[%s14690_s0 + $0xe0] sm:$0xf]  ;;  %v8777_v32 = vld [vmem:[%s14690_s0 + $0x118] sm:$0xf0] }
 0x521   :  { %v13813_v45 = vadd.f32 %v5881_v9, %v5823_v46  ;;  %v5767_v57 = vadd.f32 %v5766_v54, %v5708_v15  ;;  %5932 = vmatmul.bf16.vlgmr.msra.gmra.mxu0 %v8720_v25  ;;  %v9911_v15 = vld [vmem:[%s14690_s0 + $0x10c] sm:$0xf0]  ;;  %v9632_v9 = vor.u32 %v10127_v16, %v9631_v36  ;;  %v9644_v25 = vor.u32 %v10126_v4, %v9641_v20  ;;  %v8815_v4 = vld [vmem:[%s14690_s0 + $0x140] sm:$0xf] }
 0x522   :  { %5991 = vmatmul.bf16.vlgmr.msra.gmra.mxu1 %v8724_v5  ;;  %v8768_v30 = vor.u32 %v9911_v15, %v8767_v21  ;;  %v9633_v21 = vld [vmem:[%s14691_s3 + $0xb0] sm:$0xf0]  ;;  %v9923_v20 = vld [vmem:[%s14690_s0 + $0x16c] sm:$0xf0] }
 0x523   :  { %6050 = vmatmul.bf16.vlgmr.msra.gmra.mxu2 %v8728_v44  ;;  %6438 = vmatpush.bf16.msrb.mxu0 %v9632_v9  ;;  %v9918_v9 = vld [vmem:[%s14690_s0 + $0x14c] sm:$0xf] }
 0x524   :  { %6109 = vmatmul.bf16.vlgmr.msra.gmra.mxu3 %v8732_v1  ;;  %v9905_v1 = vld [vmem:[%s14690_s0 + $0xe4] sm:$0xf] }
 0x525   :  { %6615 = vmatpush.bf16.msrb.mxu3 %v9644_v25  ;;  %v8825_v25 = vld [vmem:[%s14690_s0 + $0x178] sm:$0xf0] }
 0x526   :  { %v5825_v51 = vpop.f32.mrf.mxu2  ;;  %v5709_v37 = vpop.f32.mrf.mxu0 }
 0x527   :  { %v5884_v18 = vpop.f32.mrf.mxu3  ;;  %v5826_v3 = vadd.f32 %v5825_v51, %v5767_v57  ;;  %v5768_v24 = vpop.f32.mrf.mxu1  ;;  %v5710_v56 = vadd.f32 %v5709_v37, %v13445_v58  ;;  %v8769_v57 = vld [vmem:[%s14690_s0 + $0x110] sm:$0xf0]  ;;  %v8775_v58 = vld [vmem:[%s14690_s0 + $0xe8] sm:$0xf]  ;;  %v8780_v37 = vor.u32 %v9906_v31, %v8777_v32  ;;  %v9924_v32 = vld [vmem:[%s14690_s0 + $0x174] sm:$0xf0] }
 0x528   :  { %v8772_v54 = vor.u32 %v9905_v1, %v8769_v57  ;;  %v9636_v1 = vor.u32 %v10125_v53, %v9633_v21  ;;  %v8817_v31 = vld [vmem:[%s14690_s0 + $0x170] sm:$0xf0]  ;;  %v9623_v21 = vld [vmem:[%s14691_s3 + $0x88] sm:$0xf] }
 0x529   :  { %v13816_v63 = vadd.f32 %v5884_v18, %v5826_v3  ;;  %v5769_v6 = vadd.f32 %v5768_v24, %v5710_v56  ;;  %v8776_v3 = vor.u32 %v9912_v43, %v8775_v58  ;;  %v9917_v43 = vld [vmem:[%s14690_s0 + $0x144] sm:$0xf] }
 0x52a   :  { %6497 = vmatpush.bf16.msrb.mxu1 %v9636_v1 }
 0x52e   :  { %v5827_v5 = vpop.f32.mrf.mxu2  ;;  %v5712_v51 = vpop.f32.mrf.mxu0 }
 0x52f   :  { %v5886_v46 = vpop.f32.mrf.mxu3  ;;  %v5828_v44 = vadd.f32 %v5827_v5, %v5769_v6  ;;  %v5771_v18 = vpop.f32.mrf.mxu1  ;;  %v5713_v24 = vadd.f32 %v5712_v51, %v13450_v8 }
 0x531   :  { %v13861_v56 = vadd.f32 %v5886_v46, %v5828_v44  ;;  %v5772_v15 = vadd.f32 %v5771_v18, %v5713_v24  ;;  %5937 = vmatmul.bf16.gmra.mxu0 %v8768_v30  ;;  %v8816_v30 = vor.u32 %v9923_v20, %v8815_v4  ;;  %v9617_v4 = vld [vmem:[%s14691_s3 + $0x90] sm:$0xf0] }
 0x532   :  { %5996 = vmatmul.bf16.gmra.mxu1 %v8772_v54  ;;  %v8820_v54 = vor.u32 %v9917_v43, %v8817_v31 }
 0x533   :  { %6055 = vmatmul.bf16.gmra.mxu2 %v8776_v3 }
 0x534   :  { %6114 = vmatmul.bf16.gmra.mxu3 %v8780_v37  ;;  %v8828_v37 = vor.u32 %v9918_v9, %v8825_v25 }
 0x536   :  { %v5830_v57 = vpop.f32.mrf.mxu2  ;;  %v5714_v58 = vpop.f32.mrf.mxu0 }
 0x537   :  { %v5889_v6 = vpop.f32.mrf.mxu3  ;;  %v5831_v8 = vadd.f32 %v5830_v57, %v5772_v15  ;;  %v5773_v27 = vpop.f32.mrf.mxu1  ;;  %v5715_v36 = vadd.f32 %v5714_v58, %v13476_v42  ;;  %v8823_v42 = vld [vmem:[%s14690_s0 + $0x148] sm:$0xf]  ;;  %v10124_v15 = vld [vmem:[%s14691_s3 + $0x94] sm:$0xf0] }
 0x538   :  { %v8824_v3 = vor.u32 %v9924_v32, %v8823_v42  ;;  %v9624_v57 = vor.u32 %v10124_v15, %v9623_v21 }
 0x539   :  { %v13870_v52 = vadd.f32 %v5889_v6, %v5831_v8  ;;  %v5774_v16 = vadd.f32 %v5773_v27, %v5715_v36  ;;  %v9615_v6 = vld [vmem:[%s14691_s3 + $0x80] sm:$0xf]  ;;  %v10122_v8 = vld [vmem:[%s14691_s3 + $0x8c] sm:$0xf]  ;;  %v9625_v27 = vld [vmem:[%s14691_s3 + $0x98] sm:$0xf0] }
 0x53a   :  { %6557 = vmatpush.bf16.msrb.mxu2 %v9624_v57  ;;  %v9628_v36 = vor.u32 %v10122_v8, %v9625_v27 }
 0x53c   :  { %6616 = vmatpush.bf16.msrb.mxu3 %v9628_v36 }
 0x53e   :  { %v5832_v5 = vpop.f32.mrf.mxu2  ;;  %v5717_v51 = vpop.f32.mrf.mxu0 }
 0x53f   :  { %v5891_v46 = vpop.f32.mrf.mxu3  ;;  %v5833_v44 = vadd.f32 %v5832_v5, %v5774_v16  ;;  %v5776_v18 = vpop.f32.mrf.mxu1  ;;  %v5718_v24 = vadd.f32 %v5717_v51, %v13490_v2  ;;  %v10123_v2 = vld [vmem:[%s14691_s3 + $0x8c] sm:$0xf0]  ;;  %v10121_v16 = vld [vmem:[%s14691_s3 + $0x84] sm:$0xf]  ;;  %v8871_v51 = vld [vmem:[%s14690_s0 + $0x1a8] sm:$0xf] }
 0x540   :  { %v9616_v58 = vor.u32 %v10123_v2, %v9615_v6  ;;  %v9620_v31 = vor.u32 %v10121_v16, %v9617_v4  ;;  %v9607_v4 = vld [vmem:[%s14691_s3 + $0x68] sm:$0xf] }
 0x541   :  { %v13897_v53 = vadd.f32 %v5891_v46, %v5833_v44  ;;  %v5777_v1 = vadd.f32 %v5776_v18, %v5718_v24  ;;  %5942 = vmatmul.bf16.gmra.mxu0 %v8816_v30  ;;  %v8863_v30 = vld [vmem:[%s14690_s0 + $0x1a0] sm:$0xf]  ;;  %v9929_v44 = vld [vmem:[%s14690_s0 + $0x1a4] sm:$0xf]  ;;  %v9936_v18 = vld [vmem:[%s14690_s0 + $0x1d4] sm:$0xf0] }
 0x542   :  { %6001 = vmatmul.bf16.gmra.mxu1 %v8820_v54  ;;  %6439 = vmatpush.bf16.msrb.mxu0 %v9616_v58  ;;  %v9935_v54 = vld [vmem:[%s14690_s0 + $0x1cc] sm:$0xf0]  ;;  %v8872_v8 = vor.u32 %v9936_v18, %v8871_v51 }
 0x543   :  { %6060 = vmatmul.bf16.gmra.mxu2 %v8824_v3  ;;  %6498 = vmatpush.bf16.msrb.mxu1 %v9620_v31  ;;  %v9930_v3 = vld [vmem:[%s14690_s0 + $0x1ac] sm:$0xf]  ;;  %v8864_v15 = vor.u32 %v9935_v54, %v8863_v30  ;;  %v10119_v31 = vld [vmem:[%s14691_s3 + $0x6c] sm:$0xf0] }
 0x544   :  { %6119 = vmatmul.bf16.gmra.mxu3 %v8828_v37  ;;  %v8873_v37 = vld [vmem:[%s14690_s0 + $0x1d8] sm:$0xf0] }
 0x545   :  { %v8876_v58 = vor.u32 %v9930_v3, %v8873_v37  ;;  %v10117_v3 = vld [vmem:[%s14691_s3 + $0x64] sm:$0xf]  ;;  %v9601_v37 = vld [vmem:[%s14691_s3 + $0x70] sm:$0xf0] }
 0x546   :  { %v5835_v20 = vpop.f32.mrf.mxu2  ;;  %v5719_v32 = vpop.f32.mrf.mxu0 }
 0x547   :  { %v5894_v43 = vpop.f32.mrf.mxu3  ;;  %v5836_v42 = vadd.f32 %v5835_v20, %v5777_v1  ;;  %v5778_v9 = vpop.f32.mrf.mxu1  ;;  %v5720_v25 = vadd.f32 %v5719_v32, %v13516_v41  ;;  %v8865_v41 = vld [vmem:[%s14690_s0 + $0x1d0] sm:$0xf0]  ;;  %v10120_v20 = vld [vmem:[%s14691_s3 + $0x74] sm:$0xf0]  ;;  %v9609_v32 = vld [vmem:[%s14691_s3 + $0x78] sm:$0xf0] }
 0x548   :  { %v8868_v1 = vor.u32 %v9929_v44, %v8865_v41 }
 0x549   :  { %v13924_v5 = vadd.f32 %v5894_v43, %v5836_v42  ;;  %v5779_v46 = vadd.f32 %v5778_v9, %v5720_v25  ;;  %v9599_v43 = vld [vmem:[%s14691_s3 + $0x60] sm:$0xf]  ;;  %v10118_v42 = vld [vmem:[%s14691_s3 + $0x6c] sm:$0xf] }
 0x54a   :  { %v9600_v9 = vor.u32 %v10119_v31, %v9599_v43  ;;  %v9612_v25 = vor.u32 %v10118_v42, %v9609_v32 }
 0x54c   :  { %6440 = vmatpush.bf16.msrb.mxu0 %v9600_v9  ;;  %6617 = vmatpush.bf16.msrb.mxu3 %v9612_v25 }
 0x54e   :  { %v5837_v24 = vpop.f32.mrf.mxu2  ;;  %v5722_v6 = vpop.f32.mrf.mxu0 }
 0x54f   :  { %v5896_v21 = vpop.f32.mrf.mxu3  ;;  %v5838_v57 = vadd.f32 %v5837_v24, %v5779_v46  ;;  %v5781_v2 = vpop.f32.mrf.mxu1  ;;  %v5723_v27 = vadd.f32 %v5722_v6, %v13527_v50  ;;  %v9608_v50 = vor.u32 %v10120_v20, %v9607_v4  ;;  %v8919_v6 = vld [vmem:[%s14690_s0 + $0x208] sm:$0xf] }
 0x551   :  { %v13951_v36 = vadd.f32 %v5896_v21, %v5838_v57  ;;  %v5782_v16 = vadd.f32 %v5781_v2, %v5723_v27  ;;  %5947 = vmatmul.bf16.gmra.mxu0 %v8864_v15  ;;  %6558 = vmatpush.bf16.msrb.mxu2 %v9608_v50  ;;  %v8911_v21 = vld [vmem:[%s14690_s0 + $0x200] sm:$0xf]  ;;  %v9947_v15 = vld [vmem:[%s14690_s0 + $0x22c] sm:$0xf0]  ;;  %v8913_v57 = vld [vmem:[%s14690_s0 + $0x230] sm:$0xf0] }
 0x552   :  { %6006 = vmatmul.bf16.gmra.mxu1 %v8868_v1  ;;  %v9941_v1 = vld [vmem:[%s14690_s0 + $0x204] sm:$0xf]  ;;  %v9948_v2 = vld [vmem:[%s14690_s0 + $0x234] sm:$0xf0]  ;;  %v8912_v4 = vor.u32 %v9947_v15, %v8911_v21  ;;  %v8961_v15 = vld [vmem:[%s14690_s0 + $0x290] sm:$0xf0] }
 0x553   :  { %6065 = vmatmul.bf16.gmra.mxu2 %v8872_v8  ;;  %v9942_v8 = vld [vmem:[%s14690_s0 + $0x20c] sm:$0xf]  ;;  %v8916_v20 = vor.u32 %v9941_v1, %v8913_v57  ;;  %v8920_v42 = vor.u32 %v9948_v2, %v8919_v6  ;;  %v9953_v21 = vld [vmem:[%s14690_s0 + $0x264] sm:$0xf]  ;;  %v8967_v57 = vld [vmem:[%s14690_s0 + $0x268] sm:$0xf] }
 0x554   :  { %6124 = vmatmul.bf16.gmra.mxu3 %v8876_v58  ;;  %v8921_v58 = vld [vmem:[%s14690_s0 + $0x238] sm:$0xf0]  ;;  %v9583_v2 = vld [vmem:[%s14691_s3 + $0x40] sm:$0xf] }
 0x555   :  { %v8924_v32 = vor.u32 %v9942_v8, %v8921_v58  ;;  %v10115_v8 = vld [vmem:[%s14691_s3 + $0x4c] sm:$0xf0]  ;;  %v10114_v58 = vld [vmem:[%s14691_s3 + $0x4c] sm:$0xf] }
 0x556   :  { %v5840_v46 = vpop.f32.mrf.mxu2  ;;  %v5724_v44 = vpop.f32.mrf.mxu0 }
 0x557   :  { %v5899_v30 = vpop.f32.mrf.mxu3  ;;  %v5841_v54 = vadd.f32 %v5840_v46, %v5782_v16  ;;  %v5783_v41 = vpop.f32.mrf.mxu1  ;;  %v5725_v51 = vadd.f32 %v5724_v44, %v13556_v29  ;;  %v9604_v29 = vor.u32 %v10117_v3, %v9601_v37 }
 0x559   :  { %v13972_v18 = vadd.f32 %v5899_v30, %v5841_v54  ;;  %v5784_v24 = vadd.f32 %v5783_v41, %v5725_v51  ;;  %6499 = vmatpush.bf16.msrb.mxu1 %v9604_v29  ;;  %v10116_v29 = vld [vmem:[%s14691_s3 + $0x54] sm:$0xf0] }
 0x55e   :  { %v5842_v27 = vpop.f32.mrf.mxu2  ;;  %v5727_v50 = vpop.f32.mrf.mxu0 }
 0x55f   :  { %v5901_v16 = vpop.f32.mrf.mxu3  ;;  %v5843_v43 = vadd.f32 %v5842_v27, %v5784_v24  ;;  %v5786_v31 = vpop.f32.mrf.mxu1  ;;  %v5728_v9 = vadd.f32 %v5727_v50, %v13558_v13  ;;  %v8959_v13 = vld [vmem:[%s14690_s0 + $0x260] sm:$0xf]  ;;  %v9959_v24 = vld [vmem:[%s14690_s0 + $0x28c] sm:$0xf0]  ;;  %v9584_v27 = vor.u32 %v10115_v8, %v9583_v2  ;;  %v9954_v50 = vld [vmem:[%s14690_s0 + $0x26c] sm:$0xf] }
 0x561   :  { %v14005_v25 = vadd.f32 %v5901_v16, %v5843_v43  ;;  %v5787_v46 = vadd.f32 %v5786_v31, %v5728_v9  ;;  %5952 = vmatmul.bf16.gmra.mxu0 %v8912_v4  ;;  %v9593_v16 = vld [vmem:[%s14691_s3 + $0x58] sm:$0xf0]  ;;  %v10113_v4 = vld [vmem:[%s14691_s3 + $0x44] sm:$0xf]  ;;  %v9960_v43 = vld [vmem:[%s14690_s0 + $0x294] sm:$0xf0] }
 0x562   :  { %6011 = vmatmul.bf16.gmra.mxu1 %v8916_v20  ;;  %v9585_v20 = vld [vmem:[%s14691_s3 + $0x50] sm:$0xf0]  ;;  %v8969_v31 = vld [vmem:[%s14690_s0 + $0x298] sm:$0xf0]  ;;  %6441 = vmatpush.bf16.msrb.mxu0 %v9584_v27  ;;  %v9965_v27 = vld [vmem:[%s14690_s0 + $0x2c4] sm:$0xf] }
 0x563   :  { %6070 = vmatmul.bf16.gmra.mxu2 %v8920_v42  ;;  %v9596_v42 = vor.u32 %v10114_v58, %v9593_v16  ;;  %v9009_v16 = vld [vmem:[%s14690_s0 + $0x2f0] sm:$0xf0] }
 0x564   :  { %6129 = vmatmul.bf16.gmra.mxu3 %v8924_v32  ;;  %v9588_v32 = vor.u32 %v10113_v4, %v9585_v20  ;;  %v9575_v20 = vld [vmem:[%s14691_s3 + $0x28] sm:$0xf] }
 0x565   :  { %6618 = vmatpush.bf16.msrb.mxu3 %v9596_v42  ;;  %v10111_v42 = vld [vmem:[%s14691_s3 + $0x2c] sm:$0xf0] }
 0x566   :  { %v5845_v30 = vpop.f32.mrf.mxu2  ;;  %v5729_v41 = vpop.f32.mrf.mxu0  ;;  %6500 = vmatpush.bf16.msrb.mxu1 %v9588_v32  ;;  %v10110_v32 = vld [vmem:[%s14691_s3 + $0x2c] sm:$0xf] }
 0x567   :  { %v5904_v54 = vpop.f32.mrf.mxu3  ;;  %v5846_v44 = vadd.f32 %v5845_v30, %v5787_v46  ;;  %v5788_v51 = vpop.f32.mrf.mxu1  ;;  %v5730_v3 = vadd.f32 %v5729_v41, %v13596_v40  ;;  %v9591_v40 = vld [vmem:[%s14691_s3 + $0x48] sm:$0xf]  ;;  %v8960_v30 = vor.u32 %v9959_v24, %v8959_v13 }
 0x568   :  { %v9592_v6 = vor.u32 %v10116_v29, %v9591_v40  ;;  %v8972_v40 = vor.u32 %v9954_v50, %v8969_v31  ;;  %v9567_v50 = vld [vmem:[%s14691_s3 + $0x20] sm:$0xf] }
 0x569   :  { %v14008_v37 = vadd.f32 %v5904_v54, %v5846_v44  ;;  %v5789_v1 = vadd.f32 %v5788_v51, %v5730_v3  ;;  %v8964_v54 = vor.u32 %v9953_v21, %v8961_v15  ;;  %v8968_v3 = vor.u32 %v9960_v43, %v8967_v57  ;;  %v9971_v57 = vld [vmem:[%s14690_s0 + $0x2ec] sm:$0xf0]  ;;  %v10112_v43 = vld [vmem:[%s14691_s3 + $0x34] sm:$0xf0] }
 0x56a   :  { %6559 = vmatpush.bf16.msrb.mxu2 %v9592_v6  ;;  %v9576_v31 = vor.u32 %v10112_v43, %v9575_v20  ;;  %v10109_v20 = vld [vmem:[%s14691_s3 + $0x24] sm:$0xf] }
 0x56e   :  { %v5847_v9 = vpop.f32.mrf.mxu2  ;;  %v5732_v41 = vpop.f32.mrf.mxu0  ;;  %6560 = vmatpush.bf16.msrb.mxu2 %v9576_v31 }
 0x56f   :  { %v5906_v46 = vpop.f32.mrf.mxu3  ;;  %v5848_v44 = vadd.f32 %v5847_v9, %v5789_v1  ;;  %v5791_v51 = vpop.f32.mrf.mxu1  ;;  %v5733_v29 = vadd.f32 %v5732_v41, %v13598_v10  ;;  %v9007_v10 = vld [vmem:[%s14690_s0 + $0x2c0] sm:$0xf]  ;;  %v9577_v9 = vld [vmem:[%s14691_s3 + $0x38] sm:$0xf0] }
 0x570   :  { %v9580_v41 = vor.u32 %v10110_v32, %v9577_v9  ;;  %v9055_v32 = vld [vmem:[%s14690_s0 + $0x320] sm:$0xf]  ;;  %v9983_v9 = vld [vmem:[%s14690_s0 + $0x34c] sm:$0xf0] }
 0x571   :  { %v14059_v2 = vadd.f32 %v5906_v46, %v5848_v44  ;;  %v5792_v8 = vadd.f32 %v5791_v51, %v5733_v29  ;;  %5957 = vmatmul.bf16.gmra.mxu0 %v8960_v30  ;;  %v9972_v46 = vld [vmem:[%s14690_s0 + $0x2f4] sm:$0xf0]  ;;  %v9966_v30 = vld [vmem:[%s14690_s0 + $0x2cc] sm:$0xf]  ;;  %v9568_v44 = vor.u32 %v10111_v42, %v9567_v50  ;;  %v9012_v29 = vor.u32 %v9965_v27, %v9009_v16 }
 0x572   :  { %6016 = vmatmul.bf16.gmra.mxu1 %v8964_v54  ;;  %v9017_v54 = vld [vmem:[%s14690_s0 + $0x2f8] sm:$0xf0]  ;;  %6619 = vmatpush.bf16.msrb.mxu3 %v9580_v41 }
 0x573   :  { %6075 = vmatmul.bf16.gmra.mxu2 %v8968_v3  ;;  %6442 = vmatpush.bf16.msrb.mxu0 %v9568_v44  ;;  %v9978_v44 = vld [vmem:[%s14690_s0 + $0x32c] sm:$0xf]  ;;  %v9065_v41 = vld [vmem:[%s14690_s0 + $0x358] sm:$0xf0] }
 0x574   :  { %6134 = vmatmul.bf16.gmra.mxu3 %v8972_v40  ;;  %v9008_v40 = vor.u32 %v9971_v57, %v9007_v10  ;;  %v9569_v10 = vld [vmem:[%s14691_s3 + $0x30] sm:$0xf0] }
 0x575   :  { %v9572_v27 = vor.u32 %v10109_v20, %v9569_v10 }
 0x576   :  { %v5850_v6 = vpop.f32.mrf.mxu2  ;;  %v5734_v24 = vpop.f32.mrf.mxu0 }
 0x577   :  { %v5909_v58 = vpop.f32.mrf.mxu3  ;;  %v5851_v13 = vadd.f32 %v5850_v6, %v5792_v8  ;;  %v5793_v21 = vpop.f32.mrf.mxu1  ;;  %v5735_v15 = vadd.f32 %v5734_v24, %v13633_v12  ;;  %v9015_v12 = vld [vmem:[%s14690_s0 + $0x2c8] sm:$0xf]  ;;  %v9020_v24 = vor.u32 %v9966_v30, %v9017_v54  ;;  %6501 = vmatpush.bf16.msrb.mxu1 %v9572_v27  ;;  %v9057_v30 = vld [vmem:[%s14690_s0 + $0x350] sm:$0xf0]  ;;  %v9984_v54 = vld [vmem:[%s14690_s0 + $0x354] sm:$0xf0] }
 0x579   :  { %v14062_v1 = vadd.f32 %v5909_v58, %v5851_v13  ;;  %v5794_v4 = vadd.f32 %v5793_v21, %v5735_v15  ;;  %v9016_v13 = vor.u32 %v9972_v46, %v9015_v12  ;;  %v9977_v46 = vld [vmem:[%s14690_s0 + $0x324] sm:$0xf] }
 0x57e   :  { %v5852_v51 = vpop.f32.mrf.mxu2  ;;  %v5737_v6 = vpop.f32.mrf.mxu0 }
 0x57f   :  { %v5911_v3 = vpop.f32.mrf.mxu3  ;;  %v5853_v8 = vadd.f32 %v5852_v51, %v5794_v4  ;;  %v5796_v58 = vpop.f32.mrf.mxu1  ;;  %v5738_v21 = vadd.f32 %v5737_v6, %v13638_v39 }
 0x581   :  { %v14107_v15 = vadd.f32 %v5911_v3, %v5853_v8  ;;  %v5797_v57 = vadd.f32 %v5796_v58, %v5738_v21  ;;  %5962 = vmatmul.bf16.gmra.mxu0 %v9008_v40  ;;  %v9056_v40 = vor.u32 %v9983_v9, %v9055_v32  ;;  %v9105_v32 = vld [vmem:[%s14690_s0 + $0x3b0] sm:$0xf0]  ;;  %v10108_v9 = vld [vmem:[%s14691_s3 + $0x14] sm:$0xf0] }
 0x582   :  { %6021 = vmatmul.bf16.gmra.mxu1 %v9012_v29  ;;  %v9060_v29 = vor.u32 %v9977_v46, %v9057_v30  ;;  %v9551_v46 = vld [vmem:[%s14691_s3] sm:$0xf] }
 0x583   :  { %6080 = vmatmul.bf16.gmra.mxu2 %v9016_v13 }
 0x584   :  { %6139 = vmatmul.bf16.gmra.mxu3 %v9020_v24  ;;  %v9068_v24 = vor.u32 %v9978_v44, %v9065_v41  ;;  %v10106_v44 = vld [vmem:[%s14691_s3 + $0xc] sm:$0xf]  ;;  %v9561_v41 = vld [vmem:[%s14691_s3 + $0x18] sm:$0xf0] }
 0x586   :  { %v5855_v16 = vpop.f32.mrf.mxu2  ;;  %v5739_v12 = vpop.f32.mrf.mxu0 }
 0x587   :  { %v5914_v4 = vpop.f32.mrf.mxu3  ;;  %v5856_v39 = vadd.f32 %v5855_v16, %v5797_v57  ;;  %v5798_v43 = vpop.f32.mrf.mxu1  ;;  %v5740_v50 = vadd.f32 %v5739_v12, %v13664_v49  ;;  %v9063_v49 = vld [vmem:[%s14690_s0 + $0x328] sm:$0xf] }
 0x588   :  { %v9064_v13 = vor.u32 %v9984_v54, %v9063_v49  ;;  %v10107_v54 = vld [vmem:[%s14691_s3 + $0xc] sm:$0xf0] }
 0x589   :  { %v14116_v31 = vadd.f32 %v5914_v4, %v5856_v39  ;;  %v5799_v42 = vadd.f32 %v5798_v43, %v5740_v50  ;;  %v9995_v50 = vld [vmem:[%s14690_s0 + $0x3ac] sm:$0xf0] }
 0x58e   :  { %v5857_v51 = vpop.f32.mrf.mxu2  ;;  %v5742_v6 = vpop.f32.mrf.mxu0 }
 0x58f   :  { %v5916_v3 = vpop.f32.mrf.mxu3  ;;  %v5858_v8 = vadd.f32 %v5857_v51, %v5799_v42  ;;  %v5801_v58 = vpop.f32.mrf.mxu1  ;;  %v5743_v21 = vadd.f32 %v5742_v6, %v13678_v0  ;;  %v9103_v0 = vld [vmem:[%s14690_s0 + $0x380] sm:$0xf]  ;;  %v9989_v42 = vld [vmem:[%s14690_s0 + $0x384] sm:$0xf]  ;;  %v9111_v51 = vld [vmem:[%s14690_s0 + $0x388] sm:$0xf] }
 0x590   :  { %v9996_v6 = vld [vmem:[%s14690_s0 + $0x3b4] sm:$0xf0] }
 0x591   :  { %v14143_v20 = vadd.f32 %v5916_v3, %v5858_v8  ;;  %v5802_v10 = vadd.f32 %v5801_v58, %v5743_v21  ;;  %5967 = vmatmul.bf16.gmra.mxu0 %v9056_v40  ;;  %v9552_v3 = vor.u32 %v10107_v54, %v9551_v46  ;;  %v9564_v40 = vor.u32 %v10106_v44, %v9561_v41  ;;  %v9553_v8 = vld [vmem:[%s14691_s3 + $0x10] sm:$0xf0]  ;;  %v9990_v58 = vld [vmem:[%s14690_s0 + $0x38c] sm:$0xf] }
 0x592   :  { %6026 = vmatmul.bf16.gmra.mxu1 %v9060_v29  ;;  %v10105_v29 = vld [vmem:[%s14691_s3 + $0x4] sm:$0xf] }
 0x593   :  { %6085 = vmatmul.bf16.gmra.mxu2 %v9064_v13  ;;  %v9113_v13 = vld [vmem:[%s14690_s0 + $0x3b8] sm:$0xf0]  ;;  %6443 = vmatpush.bf16.msrb.mxu0 %v9552_v3  ;;  %v9151_v3 = vld [vmem:[%s14690_s0 + $0x3e0] sm:$0xf] }
 0x594   :  { %6144 = vmatmul.bf16.gmra.mxu3 %v9068_v24  ;;  %v9556_v24 = vor.u32 %v10105_v29, %v9553_v8  ;;  %v10001_v8 = vld [vmem:[%s14690_s0 + $0x3e4] sm:$0xf] }
 0x595   :  { %6620 = vmatpush.bf16.msrb.mxu3 %v9564_v40  ;;  %v10007_v40 = vld [vmem:[%s14690_s0 + $0x40c] sm:$0xf0] }
 0x596   :  { %v5860_v57 = vpop.f32.mrf.mxu2  ;;  %v5744_v4 = vpop.f32.mrf.mxu0  ;;  %6502 = vmatpush.bf16.msrb.mxu1 %v9556_v24 }
 0x597   :  { %v5919_v27 = vpop.f32.mrf.mxu3  ;;  %v5861_v16 = vadd.f32 %v5860_v57, %v5802_v10  ;;  %v5803_v39 = vpop.f32.mrf.mxu1  ;;  %v5745_v12 = vadd.f32 %v5744_v4, %v13705_v34  ;;  %v9559_v34 = vld [vmem:[%s14691_s3 + $0x8] sm:$0xf]  ;;  %v9104_v57 = vor.u32 %v9995_v50, %v9103_v0 }
 0x598   :  { %v9560_v49 = vor.u32 %v10108_v9, %v9559_v34  ;;  %v9116_v34 = vor.u32 %v9990_v58, %v9113_v13  ;;  %v10008_v58 = vld [vmem:[%s14690_s0 + $0x414] sm:$0xf0]  ;;  %v9161_v13 = vld [vmem:[%s14690_s0 + $0x418] sm:$0xf0] }
 0x599   :  { %v14146_v43 = vadd.f32 %v5919_v27, %v5861_v16  ;;  %v5804_v30 = vadd.f32 %v5803_v39, %v5745_v12  ;;  %v9108_v27 = vor.u32 %v9989_v42, %v9105_v32  ;;  %v9112_v12 = vor.u32 %v9996_v6, %v9111_v51  ;;  %v6799_v42 = vld [vmem:[%s14693_s5 + $0x178] sm:$0xff]  ;;  %v9153_v6 = vld [vmem:[%s14690_s0 + $0x410] sm:$0xf0] }
 0x59a   :  { %6561 = vmatpush.bf16.msrb.mxu2 %v9560_v49  ;;  %v6767_v32 = vld [vmem:[%s14693_s5 + $0x78] sm:$0xff] }
 0x59b   :  { %6820 = vmatpush.msra.mxu0 %v6767_v32 }
 0x59e   :  { %v5862_v21 = vpop.f32.mrf.mxu2  ;;  %v5933_v4 = vpop.f32.mrf.mxu0  ;;  %6974 = vmatpush.msra.mxu2 %v6799_v42 }
 0x59f   :  { %v5921_v10 = vpop.f32.mrf.mxu3  ;;  %v5863_v16 = vadd.f32 %v5862_v21, %v5804_v30  ;;  %v5992_v39 = vpop.f32.mrf.mxu1  ;;  %v5934_v46 = vadd.f32 %v5933_v4, %v13726_v61  ;;  %v6815_v61 = vld [vmem:[%s14693_s5 + $0x1f8] sm:$0xff] }
 0x5a0   :  { %7051 = vmatpush.msra.mxu3 %v6815_v61 }
 0x5a1   :  { %v14196_v9 = vadd.f32 %v5921_v10, %v5863_v16  ;;  %5972 = vmatmul.bf16.gmra.mxu0 %v9104_v57  ;;  %v5993_v49 = vadd.f32 %v5992_v39, %v5934_v46  ;;  %v9152_v57 = vor.u32 %v10007_v40, %v9151_v3  ;;  %v14237_v16 = vld [vmem:[%s14692_s2] ss:$0 sm:$0xff] }
 0x5a2   :  { %6031 = vmatmul.bf16.gmra.mxu1 %v9108_v27  ;;  %v9156_v27 = vor.u32 %v10001_v8, %v9153_v6 }
 0x5a3   :  { %6090 = vmatmul.bf16.gmra.mxu2 %v9112_v12 }
 0x5a4   :  { %6149 = vmatmul.bf16.gmra.mxu3 %v9116_v34 }
 0x5a6   :  { %v6051_v54 = vpop.f32.mrf.mxu2  ;;  %v5935_v0 = vpop.f32.mrf.mxu0 }
 0x5a7   :  { %v6110_v44 = vpop.f32.mrf.mxu3  ;;  %v6052_v41 = vadd.f32 %v6051_v54, %v5993_v49  ;;  %v5994_v50 = vpop.f32.mrf.mxu1  ;;  %v5936_v51 = vadd.f32 %v5935_v0, %v13759_v14  ;;  %v9159_v14 = vld [vmem:[%s14690_s0 + $0x3e8] sm:$0xf]  ;;  %v6783_v49 = vld [vmem:[%s14693_s5 + $0xf8] sm:$0xff]  ;;  %v6798_v54 = vld [vmem:[%s14693_s5 + $0x170] sm:$0xff] }
 0x5a8   :  { %v9160_v34 = vor.u32 %v10008_v58, %v9159_v14  ;;  %6897 = vmatpush.msra.mxu1 %v6783_v49  ;;  %6975 = vmatpush.msra.mxu2 %v6798_v54 }
 0x5a9   :  { %v6111_v30 = vadd.f32 %v6110_v44, %v6052_v41  ;;  %v5995_v24 = vadd.f32 %v5994_v50, %v5936_v51 }
 0x5ab   :  { %v6160_v29 = vadd.f32 %v6111_v30, %v12953_v7  ;;  %v10002_v7 = vld [vmem:[%s14690_s0 + $0x3ec] sm:$0xf] }
 0x5ac   :  { %v9164_v46 = vor.u32 %v10002_v7, %v9161_v13 }
 0x5ad   :  { %v6184_v0 = vadd.f32 %v14237_v16, %v6160_v29  ;;  %v6782_v29 = vld [vmem:[%s14693_s5 + $0xf0] sm:$0xff] }
 0x5ae   :  { %v6053_v21 = vpop.f32.mrf.mxu2  ;;  %v5938_v39 = vpop.f32.mrf.mxu0  ;;  %6898 = vmatpush.msra.mxu1 %v6782_v29 }
 0x5af   :  { %v6112_v10 = vpop.f32.mrf.mxu3  ;;  %v6054_v4 = vadd.f32 %v6053_v21, %v5995_v24  ;;  %v5997_v12 = vpop.f32.mrf.mxu1  ;;  %v5939_v41 = vadd.f32 %v5938_v39, %v13762_v22  ;;  %v6204_v51 = vmax.f32 %v6184_v0, 0.0  ;;  %v6766_v22 = vld [vmem:[%s14693_s5 + $0x70] sm:$0xff]  ;;  %v6797_v39 = vld [vmem:[%s14693_s5 + $0x168] sm:$0xff] }
 0x5b0   :  { %6821 = vmatpush.msra.mxu0 %v6766_v22  ;;  %6976 = vmatpush.msra.mxu2 %v6797_v39 }
 0x5b1   :  { %v6113_v44 = vadd.f32 %v6112_v10, %v6054_v4  ;;  %5977 = vmatmul.bf16.gmra.mxu0 %v9152_v57  ;;  %v5998_v32 = vadd.f32 %v5997_v12, %v5939_v41  ;;  %v6765_v12 = vld [vmem:[%s14693_s5 + $0x68] sm:$0xff] }
 0x5b2   :  { %6036 = vmatmul.bf16.gmra.mxu1 %v9156_v27  ;;  %6822 = vmatpush.msra.mxu0 %v6765_v12 }
 0x5b3   :  { %v6161_v50 = vadd.f32 %v6113_v44, %v12975_v17  ;;  %6095 = vmatmul.bf16.gmra.mxu2 %v9160_v34  ;;  %v6814_v17 = vld [vmem:[%s14693_s5 + $0x1f0] sm:$0xff] }
 0x5b4   :  { %6154 = vmatmul.bf16.gmra.mxu3 %v9164_v46 }
 0x5b5   :  { %v6185_v42 = vadd.f32 %v14237_v16, %v6161_v50  ;;  %7052 = vmatpush.msra.mxu3 %v6814_v17 }
 0x5b6   :  { %v6056_v61 = vpop.f32.mrf.mxu2  ;;  %v5940_v8 = vpop.f32.mrf.mxu0 }
 0x5b7   :  { %v6115_v30 = vpop.f32.mrf.mxu3  ;;  %v6205_v3 = vmax.f32 %v6185_v42, 0.0  ;;  %v6057_v40 = vadd.f32 %v6056_v61, %v5998_v32  ;;  %v5999_v6 = vpop.f32.mrf.mxu1  ;;  %v5941_v7 = vadd.f32 %v5940_v8, %v13813_v45  ;;  %v6813_v45 = vld [vmem:[%s14693_s5 + $0x1e8] sm:$0xff] }
 0x5b8   :  { %7053 = vmatpush.msra.mxu3 %v6813_v45 }
 0x5b9   :  { %v6224_v14 = vpack.c.bf16 %v6205_v3, %v6204_v51  ;;  %v6116_v58 = vadd.f32 %v6115_v30, %v6057_v40  ;;  %v6000_v24 = vadd.f32 %v5999_v6, %v5941_v7  ;;  %v6796_v51 = vld [vmem:[%s14693_s5 + $0x160] sm:$0xff] }
 0x5ba   :  { %v6812_v3 = vld [vmem:[%s14693_s5 + $0x1e0] sm:$0xff]  ;;  %6977 = vmatpush.msra.mxu2 %v6796_v51 }
 0x5bb   :  { %v6162_v13 = vadd.f32 %v6116_v58, %v12978_v19  ;;  %v6781_v19 = vld [vmem:[%s14693_s5 + $0xe8] sm:$0xff]  ;;  %v6780_v40 = vld [vmem:[%s14693_s5 + $0xe0] sm:$0xff]  ;;  %7054 = vmatpush.msra.mxu3 %v6812_v3  ;;  %v6762_v3 = vld [vmem:[%s14693_s5 + $0x50] sm:$0xff] }
 0x5bc   :  { %6899 = vmatpush.msra.mxu1 %v6781_v19 }
 0x5bd   :  { %v6186_v49 = vadd.f32 %v14237_v16, %v6162_v13 }
 0x5be   :  { %v6058_v21 = vpop.f32.mrf.mxu2  ;;  %v5943_v27 = vpop.f32.mrf.mxu0  ;;  %6900 = vmatpush.msra.mxu1 %v6780_v40  ;;  %v6810_v40 = vld [vmem:[%s14693_s5 + $0x1d0] sm:$0xff] }
 0x5bf   :  { %v6117_v10 = vpop.f32.mrf.mxu3  ;;  %v6059_v57 = vadd.f32 %v6058_v21, %v6000_v24  ;;  %v6002_v4 = vpop.f32.mrf.mxu1  ;;  %v5944_v46 = vadd.f32 %v5943_v27, %v13816_v63  ;;  %v6206_v42 = vmax.f32 %v6186_v49, 0.0  ;;  %v6795_v21 = vld [vmem:[%s14693_s5 + $0x158] sm:$0xff] }
 0x5c0   :  { %6978 = vmatpush.msra.mxu2 %v6795_v21 }
 0x5c1   :  { %v6118_v34 = vadd.f32 %v6117_v10, %v6059_v57  ;;  %6444 = vmatmul.bf16.vlgmr.msrb.gmra.mxu0 %v6224_v14  ;;  %v6003_v41 = vadd.f32 %v6002_v4, %v5944_v46  ;;  %v6763_v10 = vld [vmem:[%s14693_s5 + $0x58] sm:$0xff] }
 0x5c2   :  { %6503 = vmatmul.bf16.vlgmr.msrb.gmra.mxu1 %v6224_v14 }
 0x5c3   :  { %v6163_v54 = vadd.f32 %v6118_v34, %v13017_v59  ;;  %6562 = vmatmul.bf16.vlgmr.msrb.gmra.mxu2 %v6224_v14  ;;  %v6764_v59 = vld [vmem:[%s14693_s5 + $0x60] sm:$0xff] }
 0x5c4   :  { %6621 = vmatmul.bf16.vlgmr.msrb.gmra.mxu3 %v6224_v14  ;;  %6823 = vmatpush.msra.mxu0 %v6764_v59 }
 0x5c5   :  { %v6187_v44 = vadd.f32 %v14237_v16, %v6163_v54 }
 0x5c6   :  { %v6061_v0 = vpop.f32.mrf.mxu2  ;;  %v5945_v30 = vpop.f32.mrf.mxu0  ;;  %6824 = vmatpush.msra.mxu0 %v6763_v10 }
 0x5c7   :  { %v6120_v50 = vpop.f32.mrf.mxu3  ;;  %v6207_v32 = vmax.f32 %v6187_v44, 0.0  ;;  %v6062_v61 = vadd.f32 %v6061_v0, %v6003_v41  ;;  %v6004_v63 = vpop.f32.mrf.mxu1  ;;  %v5946_v6 = vadd.f32 %v5945_v30, %v13861_v56  ;;  %v6811_v56 = vld [vmem:[%s14693_s5 + $0x1d8] sm:$0xff] }
 0x5c8   :  { %7055 = vmatpush.msra.mxu3 %v6811_v56  ;;  %6825 = vmatpush.msra.mxu0 %v6762_v3  ;;  %v6809_v56 = vld [vmem:[%s14693_s5 + $0x1c8] sm:$0xff]  ;;  %v6791_v3 = vld [vmem:[%s14693_s5 + $0x138] sm:$0xff] }
 0x5c9   :  { %v6121_v8 = vadd.f32 %v6120_v50, %v6062_v61  ;;  %v6225_v22 = vpack.c.bf16 %v6207_v32, %v6206_v42  ;;  %v6005_v29 = vadd.f32 %v6004_v63, %v5946_v6 }
 0x5ca   :  { %7056 = vmatpush.msra.mxu3 %v6810_v40  ;;  %v6807_v40 = vld [vmem:[%s14693_s5 + $0x1b8] sm:$0xff] }
 0x5cb   :  { %v6164_v17 = vadd.f32 %v6121_v8, %v13020_v35 }
 0x5cc   :  { %7057 = vmatpush.msra.mxu3 %v6809_v56 }
 0x5cd   :  { %v6188_v27 = vadd.f32 %v14237_v16, %v6164_v17 }
 0x5ce   :  { %v6063_v14 = vpop.f32.mrf.mxu2  ;;  %v5948_v13 = vpop.f32.mrf.mxu0 }
 0x5cf   :  { %v6122_v58 = vpop.f32.mrf.mxu3  ;;  %v6064_v7 = vadd.f32 %v6063_v14, %v6005_v29  ;;  %v6007_v24 = vpop.f32.mrf.mxu1  ;;  %v5949_v57 = vadd.f32 %v5948_v13, %v13870_v52  ;;  %v6208_v34 = vmax.f32 %v6188_v27, 0.0  ;;  %v6779_v52 = vld [vmem:[%s14693_s5 + $0xd8] sm:$0xff] }
 0x5d0   :  { %6901 = vmatpush.msra.mxu1 %v6779_v52 }
 0x5d1   :  { %v6123_v35 = vadd.f32 %v6122_v58, %v6064_v7  ;;  %6449 = vmatmul.bf16.gmra.mxu0 %v6225_v22  ;;  %v6008_v12 = vadd.f32 %v6007_v24, %v5949_v57 }
 0x5d2   :  { %6508 = vmatmul.bf16.gmra.mxu1 %v6225_v22 }
 0x5d3   :  { %v6165_v4 = vadd.f32 %v6123_v35, %v13056_v26  ;;  %6567 = vmatmul.bf16.gmra.mxu2 %v6225_v22  ;;  %v6794_v26 = vld [vmem:[%s14693_s5 + $0x150] sm:$0xff]  ;;  %v6777_v35 = vld [vmem:[%s14693_s5 + $0xc8] sm:$0xff] }
 0x5d4   :  { %6626 = vmatmul.bf16.gmra.mxu3 %v6225_v22  ;;  %6979 = vmatpush.msra.mxu2 %v6794_v26 }
 0x5d5   :  { %v6189_v39 = vadd.f32 %v14237_v16, %v6165_v4 }
 0x5d6   :  { %v6066_v45 = vpop.f32.mrf.mxu2  ;;  %v5950_v54 = vpop.f32.mrf.mxu0 }
 0x5d7   :  { %v6125_v19 = vpop.f32.mrf.mxu3  ;;  %v6209_v46 = vmax.f32 %v6189_v39, 0.0  ;;  %v6067_v49 = vadd.f32 %v6066_v45, %v6008_v12  ;;  %v6009_v44 = vpop.f32.mrf.mxu1  ;;  %v5951_v0 = vadd.f32 %v5950_v54, %v13897_v53  ;;  %v6778_v53 = vld [vmem:[%s14693_s5 + $0xd0] sm:$0xff]  ;;  %v6792_v54 = vld [vmem:[%s14693_s5 + $0x140] sm:$0xff] }
 0x5d8   :  { %6902 = vmatpush.msra.mxu1 %v6778_v53 }
 0x5d9   :  { %v6126_v41 = vadd.f32 %v6125_v19, %v6067_v49  ;;  %v6226_v50 = vpack.c.bf16 %v6209_v46, %v6208_v34  ;;  %v6010_v32 = vadd.f32 %v6009_v44, %v5951_v0  ;;  %v6760_v44 = vld [vmem:[%s14693_s5 + $0x40] sm:$0xff] }
 0x5da   :  { %6903 = vmatpush.msra.mxu1 %v6777_v35 }
 0x5db   :  { %v6166_v42 = vadd.f32 %v6126_v41, %v13062_v33 }
 0x5dd   :  { %v6190_v6 = vadd.f32 %v14237_v16, %v6166_v42 }
 0x5de   :  { %v6068_v61 = vpop.f32.mrf.mxu2  ;;  %v5953_v51 = vpop.f32.mrf.mxu0 }
 0x5df   :  { %v6127_v30 = vpop.f32.mrf.mxu3  ;;  %v6069_v63 = vadd.f32 %v6068_v61, %v6010_v32  ;;  %v6012_v59 = vpop.f32.mrf.mxu1  ;;  %v5954_v8 = vadd.f32 %v5953_v51, %v13924_v5  ;;  %v6210_v7 = vmax.f32 %v6190_v6, 0.0  ;;  %v6793_v5 = vld [vmem:[%s14693_s5 + $0x148] sm:$0xff] }
 0x5e0   :  { %6980 = vmatpush.msra.mxu2 %v6793_v5 }
 0x5e1   :  { %v6128_v33 = vadd.f32 %v6127_v30, %v6069_v63  ;;  %6454 = vmatmul.bf16.gmra.mxu0 %v6226_v50  ;;  %v6013_v29 = vadd.f32 %v6012_v59, %v5954_v8 }
 0x5e2   :  { %6513 = vmatmul.bf16.gmra.mxu1 %v6226_v50  ;;  %6981 = vmatpush.msra.mxu2 %v6792_v54 }
 0x5e3   :  { %v6167_v22 = vadd.f32 %v6128_v33, %v13089_v48  ;;  %6572 = vmatmul.bf16.gmra.mxu2 %v6226_v50  ;;  %v6761_v48 = vld [vmem:[%s14693_s5 + $0x48] sm:$0xff] }
 0x5e4   :  { %6631 = vmatmul.bf16.gmra.mxu3 %v6226_v50  ;;  %6826 = vmatpush.msra.mxu0 %v6761_v48 }
 0x5e5   :  { %v6191_v17 = vadd.f32 %v14237_v16, %v6167_v22  ;;  %6982 = vmatpush.msra.mxu2 %v6791_v3 }
 0x5e6   :  { %v6071_v14 = vpop.f32.mrf.mxu2  ;;  %v5955_v21 = vpop.f32.mrf.mxu0  ;;  %6827 = vmatpush.msra.mxu0 %v6760_v44 }
 0x5e7   :  { %v6130_v58 = vpop.f32.mrf.mxu3  ;;  %v6211_v13 = vmax.f32 %v6191_v17, 0.0  ;;  %v6072_v24 = vadd.f32 %v6071_v14, %v6013_v29  ;;  %v6014_v10 = vpop.f32.mrf.mxu1  ;;  %v5956_v27 = vadd.f32 %v5955_v21, %v13951_v36  ;;  %v6808_v36 = vld [vmem:[%s14693_s5 + $0x1c0] sm:$0xff] }
 0x5e8   :  { %7058 = vmatpush.msra.mxu3 %v6808_v36 }
 0x5e9   :  { %v6131_v57 = vadd.f32 %v6130_v58, %v6072_v24  ;;  %v6227_v4 = vpack.c.bf16 %v6211_v13, %v6210_v7  ;;  %v6015_v12 = vadd.f32 %v6014_v10, %v5956_v27  ;;  %v6775_v13 = vld [vmem:[%s14693_s5 + $0xb8] sm:$0xff]  ;;  %v6790_v24 = vld [vmem:[%s14693_s5 + $0x130] sm:$0xff] }
 0x5ea   :  { %7059 = vmatpush.msra.mxu3 %v6807_v40  ;;  %6983 = vmatpush.msra.mxu2 %v6790_v24 }
 0x5eb   :  { %v6168_v39 = vadd.f32 %v6131_v57, %v13104_v38  ;;  %v6776_v38 = vld [vmem:[%s14693_s5 + $0xc0] sm:$0xff] }
 0x5ec   :  { %6904 = vmatpush.msra.mxu1 %v6776_v38 }
 0x5ed   :  { %v6192_v41 = vadd.f32 %v14237_v16, %v6168_v39 }
 0x5ee   :  { %v6073_v45 = vpop.f32.mrf.mxu2  ;;  %v5958_v46 = vpop.f32.mrf.mxu0  ;;  %6905 = vmatpush.msra.mxu1 %v6775_v13 }
 0x5ef   :  { %v6132_v19 = vpop.f32.mrf.mxu3  ;;  %v6074_v34 = vadd.f32 %v6073_v45, %v6015_v12  ;;  %v6017_v49 = vpop.f32.mrf.mxu1  ;;  %v5959_v26 = vadd.f32 %v5958_v46, %v13972_v18  ;;  %v6212_v30 = vmax.f32 %v6192_v41, 0.0  ;;  %v6774_v45 = vld [vmem:[%s14693_s5 + $0xb0] sm:$0xff]  ;;  %v6789_v41 = vld [vmem:[%s14693_s5 + $0x128] sm:$0xff] }
 0x5f0   :  { %6906 = vmatpush.msra.mxu1 %v6774_v45  ;;  %6984 = vmatpush.msra.mxu2 %v6789_v41 }
 0x5f1   :  { %v6133_v52 = vadd.f32 %v6132_v19, %v6074_v34  ;;  %6459 = vmatmul.bf16.gmra.mxu0 %v6227_v4  ;;  %v6018_v42 = vadd.f32 %v6017_v49, %v5959_v26 }
 0x5f2   :  { %6518 = vmatmul.bf16.gmra.mxu1 %v6227_v4 }
 0x5f3   :  { %v6169_v0 = vadd.f32 %v6133_v52, %v13131_v28  ;;  %6577 = vmatmul.bf16.gmra.mxu2 %v6227_v4  ;;  %v6759_v28 = vld [vmem:[%s14693_s5 + $0x38] sm:$0xff] }
 0x5f4   :  { %6636 = vmatmul.bf16.gmra.mxu3 %v6227_v4  ;;  %6828 = vmatpush.msra.mxu0 %v6759_v28 }
 0x5f5   :  { %v6193_v50 = vadd.f32 %v14237_v16, %v6169_v0  ;;  %v6757_v0 = vld [vmem:[%s14693_s5 + $0x28] sm:$0xff] }
 0x5f6   :  { %v6076_v32 = vpop.f32.mrf.mxu2  ;;  %v5960_v59 = vpop.f32.mrf.mxu0 }
 0x5f7   :  { %v6135_v61 = vpop.f32.mrf.mxu3  ;;  %v6213_v63 = vmax.f32 %v6193_v50, 0.0  ;;  %v6077_v51 = vadd.f32 %v6076_v32, %v6018_v42  ;;  %v6019_v18 = vpop.f32.mrf.mxu1  ;;  %v5961_v33 = vadd.f32 %v5960_v59, %v14005_v25 }
 0x5f9   :  { %v6136_v53 = vadd.f32 %v6135_v61, %v6077_v51  ;;  %v6228_v8 = vpack.c.bf16 %v6213_v63, %v6212_v30  ;;  %v6020_v22 = vadd.f32 %v6019_v18, %v5961_v33  ;;  %v6804_v33 = vld [vmem:[%s14693_s5 + $0x1a0] sm:$0xff] }
 0x5fb   :  { %v6170_v6 = vadd.f32 %v6136_v53, %v13143_v62  ;;  %v6788_v53 = vld [vmem:[%s14693_s5 + $0x120] sm:$0xff] }
 0x5fc   :  { %6985 = vmatpush.msra.mxu2 %v6788_v53 }
 0x5fd   :  { %v6194_v62 = vadd.f32 %v14237_v16, %v6170_v6 }
 0x5fe   :  { %v6078_v17 = vpop.f32.mrf.mxu2  ;;  %v5963_v58 = vpop.f32.mrf.mxu0 }
 0x5ff   :  { %v6137_v29 = vpop.f32.mrf.mxu3  ;;  %v6079_v14 = vadd.f32 %v6078_v17, %v6020_v22  ;;  %v6022_v7 = vpop.f32.mrf.mxu1  ;;  %v5964_v21 = vadd.f32 %v5963_v58, %v14008_v37  ;;  %v6214_v57 = vmax.f32 %v6194_v62, 0.0  ;;  %v6758_v37 = vld [vmem:[%s14693_s5 + $0x30] sm:$0xff]  ;;  %v6755_v62 = vld [vmem:[%s14693_s5 + $0x18] sm:$0xff] }
 0x600   :  { %6829 = vmatpush.msra.mxu0 %v6758_v37 }
 0x601   :  { %v6138_v25 = vadd.f32 %v6137_v29, %v6079_v14  ;;  %6464 = vmatmul.bf16.gmra.mxu0 %v6228_v8  ;;  %v6023_v48 = vadd.f32 %v6022_v7, %v5964_v21  ;;  %v6787_v21 = vld [vmem:[%s14693_s5 + $0x118] sm:$0xff] }
 0x602   :  { %6523 = vmatmul.bf16.gmra.mxu1 %v6228_v8  ;;  %6830 = vmatpush.msra.mxu0 %v6757_v0 }
 0x603   :  { %v6171_v10 = vadd.f32 %v6138_v25, %v13173_v11  ;;  %6582 = vmatmul.bf16.gmra.mxu2 %v6228_v8  ;;  %v6806_v11 = vld [vmem:[%s14693_s5 + $0x1b0] sm:$0xff] }
 0x604   :  { %6641 = vmatmul.bf16.gmra.mxu3 %v6228_v8  ;;  %v6772_v8 = vld [vmem:[%s14693_s5 + $0xa0] sm:$0xff]  ;;  %6986 = vmatpush.msra.mxu2 %v6787_v21 }
 0x605   :  { %v6195_v5 = vadd.f32 %v14237_v16, %v6171_v10  ;;  %7060 = vmatpush.msra.mxu3 %v6806_v11 }
 0x606   :  { %v6081_v56 = vpop.f32.mrf.mxu2  ;;  %v5965_v39 = vpop.f32.mrf.mxu0 }
 0x607   :  { %v6140_v35 = vpop.f32.mrf.mxu3  ;;  %v6215_v27 = vmax.f32 %v6195_v5, 0.0  ;;  %v6082_v4 = vadd.f32 %v6081_v56, %v6023_v48  ;;  %v6024_v12 = vpop.f32.mrf.mxu1  ;;  %v5966_v34 = vadd.f32 %v5965_v39, %v14059_v2  ;;  %v6805_v2 = vld [vmem:[%s14693_s5 + $0x1a8] sm:$0xff] }
 0x608   :  { %7061 = vmatpush.msra.mxu3 %v6805_v2 }
 0x609   :  { %v6141_v19 = vadd.f32 %v6140_v35, %v6082_v4  ;;  %v6229_v46 = vpack.c.bf16 %v6215_v27, %v6214_v57  ;;  %v6025_v54 = vadd.f32 %v6024_v12, %v5966_v34 }
 0x60a   :  { %7062 = vmatpush.msra.mxu3 %v6804_v33 }
 0x60b   :  { %v6172_v49 = vadd.f32 %v6141_v19, %v13176_v23  ;;  %v6773_v23 = vld [vmem:[%s14693_s5 + $0xa8] sm:$0xff] }
 0x60c   :  { %6907 = vmatpush.msra.mxu1 %v6773_v23 }
 0x60d   :  { %v6196_v32 = vadd.f32 %v14237_v16, %v6172_v49  ;;  %v6802_v49 = vld [vmem:[%s14693_s5 + $0x190] sm:$0xff] }
 0x60e   :  { %v6083_v44 = vpop.f32.mrf.mxu2  ;;  %v5968_v52 = vpop.f32.mrf.mxu0  ;;  %6908 = vmatpush.msra.mxu1 %v6772_v8 }
 0x60f   :  { %v6142_v36 = vpop.f32.mrf.mxu3  ;;  %v6084_v38 = vadd.f32 %v6083_v44, %v6025_v54  ;;  %v6027_v26 = vpop.f32.mrf.mxu1  ;;  %v5969_v42 = vadd.f32 %v5968_v52, %v14062_v1  ;;  %v6216_v18 = vmax.f32 %v6196_v32, 0.0  ;;  %v6770_v54 = vld [vmem:[%s14693_s5 + $0x90] sm:$0xff]  ;;  %v15517_v44 = vld [vmem:[#allocation2_spill] sm:$0xff]  ;;  %v6801_v32 = vld [vmem:[%s14693_s5 + $0x188] sm:$0xff] }
 0x611   :  { %v6143_v50 = vadd.f32 %v6142_v36, %v6084_v38  ;;  %6469 = vmatmul.bf16.gmra.mxu0 %v6229_v46  ;;  %v6028_v63 = vadd.f32 %v6027_v26, %v5969_v42  ;;  %v6753_v42 = vld [vmem:[%s14693_s5 + $0x8] sm:$0xff] }
 0x612   :  { %6528 = vmatmul.bf16.gmra.mxu1 %v6229_v46 }
 0x613   :  { %v6173_v61 = vadd.f32 %v6143_v50, %v13215_v55  ;;  %6587 = vmatmul.bf16.gmra.mxu2 %v6229_v46  ;;  %v6756_v55 = vld [vmem:[%s14693_s5 + $0x20] sm:$0xff]  ;;  %v6785_v50 = vld [vmem:[%s14693_s5 + $0x108] sm:$0xff] }
 0x614   :  { %6646 = vmatmul.bf16.gmra.mxu3 %v6229_v46  ;;  %6831 = vmatpush.msra.mxu0 %v6756_v55  ;;  %v6754_v46 = vld [vmem:[%s14693_s5 + $0x10] sm:$0xff] }
 0x615   :  { %v6197_v30 = vadd.f32 %v14237_v16, %v6173_v61 }
 0x616   :  { %v6086_v51 = vpop.f32.mrf.mxu2  ;;  %v5970_v40 = vpop.f32.mrf.mxu0  ;;  %6832 = vmatpush.msra.mxu0 %v6755_v62 }
 0x617   :  { %v6145_v59 = vpop.f32.mrf.mxu3  ;;  %v6217_v3 = vmax.f32 %v6197_v30, 0.0  ;;  %v6087_v28 = vadd.f32 %v6086_v51, %v6028_v63  ;;  %v6029_v1 = vpop.f32.mrf.mxu1  ;;  %v5971_v22 = vadd.f32 %v5970_v40, %v14107_v15  ;;  %v6803_v15 = vld [vmem:[%s14693_s5 + $0x198] sm:$0xff]  ;;  %v15518_v30 = vld [vmem:[#allocation4_spill] sm:$0xff] }
 0x618   :  { %7063 = vmatpush.msra.mxu3 %v6803_v15  ;;  %6833 = vmatpush.msra.mxu0 %v6754_v46 }
 0x619   :  { %v6146_v6 = vadd.f32 %v6145_v59, %v6087_v28  ;;  %v6230_v17 = vpack.c.bf16 %v6217_v3, %v6216_v18  ;;  %v6030_v14 = vadd.f32 %v6029_v1, %v5971_v22  ;;  %v6784_v22 = vld [vmem:[%s14693_s5 + $0x100] sm:$0xff] }
 0x61a   :  { %7064 = vmatpush.msra.mxu3 %v6802_v49  ;;  %6834 = vmatpush.msra.mxu0 %v6753_v42 }
 0x61b   :  { %v6174_v29 = vadd.f32 %v6146_v6, %v13218_v60 }
 0x61c   :  { %7065 = vmatpush.msra.mxu3 %v6801_v32 }
 0x61d   :  { %v6198_v5 = vadd.f32 %v14237_v16, %v6174_v29  ;;  %v6800_v29 = vld [vmem:[%s14693_s5 + $0x180] sm:$0xff] }
 0x61e   :  { %v6088_v58 = vpop.f32.mrf.mxu2  ;;  %v5973_v24 = vpop.f32.mrf.mxu0  ;;  %7066 = vmatpush.msra.mxu3 %v6800_v29 }
 0x61f   :  { %v6147_v7 = vpop.f32.mrf.mxu3  ;;  %v6089_v13 = vadd.f32 %v6088_v58, %v6030_v14  ;;  %v6032_v25 = vpop.f32.mrf.mxu1  ;;  %v5974_v10 = vadd.f32 %v5973_v24, %v14116_v31  ;;  %v6218_v4 = vmax.f32 %v6198_v5, 0.0  ;;  %v6771_v31 = vld [vmem:[%s14693_s5 + $0x98] sm:$0xff]  ;;  %v15519_v14 = vld [vmem:[#allocation3_spill] sm:$0xff] }
 0x620   :  { %6909 = vmatpush.msra.mxu1 %v6771_v31 }
 0x621   :  { %v6148_v60 = vadd.f32 %v6147_v7, %v6089_v13  ;;  %6474 = vmatmul.bf16.gmra.mxu0 %v6230_v17  ;;  %v6033_v35 = vadd.f32 %v6032_v25, %v5974_v10  ;;  %v15520_v10 = vld [vmem:[#allocation6_spill] sm:$0xff] }
 0x622   :  { %6533 = vmatmul.bf16.gmra.mxu1 %v6230_v17 }
 0x623   :  { %v6175_v48 = vadd.f32 %v6148_v60, %v13254_v47  ;;  %6592 = vmatmul.bf16.gmra.mxu2 %v6230_v17  ;;  %v6786_v47 = vld [vmem:[%s14693_s5 + $0x110] sm:$0xff]  ;;  %6910 = vmatpush.msra.mxu1 %v6770_v54 }
 0x624   :  { %6651 = vmatmul.bf16.gmra.mxu3 %v6230_v17  ;;  %6987 = vmatpush.msra.mxu2 %v6786_v47  ;;  %v6752_v17 = vld [vmem:[%s14693_s5] sm:$0xff] }
 0x625   :  { %v6199_v56 = vadd.f32 %v14237_v16, %v6175_v48  ;;  %6835 = vmatpush.msra.mxu0 %v6752_v17 }
 0x626   :  { %v6091_v57 = vpop.f32.mrf.mxu2  ;;  %v5975_v37 = vpop.f32.mrf.mxu0  ;;  %6988 = vmatpush.msra.mxu2 %v6785_v50 }
 0x627   :  { %v6150_v27 = vpop.f32.mrf.mxu3  ;;  %v6219_v39 = vmax.f32 %v6199_v56, 0.0  ;;  %v6092_v12 = vadd.f32 %v6091_v57, %v6033_v35  ;;  %v6034_v11 = vpop.f32.mrf.mxu1  ;;  %v5976_v19 = vadd.f32 %v5975_v37, %v14143_v20 }
 0x628   :  { %6989 = vmatpush.msra.mxu2 %v6784_v22 }
 0x629   :  { %v6151_v45 = vadd.f32 %v6150_v27, %v6092_v12  ;;  %v6231_v34 = vpack.c.bf16 %v6219_v39, %v6218_v4  ;;  %v6035_v38 = vadd.f32 %v6034_v11, %v5976_v19 }
 0x62b   :  { %v6176_v36 = vadd.f32 %v6151_v45, %v15517_v44  ;;  %v6266_v45 = vld [vmem:[%s14694_s4] sm:$0xf] }
 0x62c   :  { %v14482_v49 = vperm.slane %v6266_v45, 0  ;;  %v14484_v54 = vperm.slane %v6266_v45, 1  ;;  %v14486_v44 = vperm.slane %v6266_v45, 2 }
 0x62d   :  { %v6200_v61 = vadd.f32 %v14237_v16, %v6176_v36  ;;  %v14488_v36 = vperm.slane %v6266_v45, 3 }
 0x62e   :  { %v6093_v20 = vpop.f32.mrf.mxu2  ;;  %v5978_v41 = vpop.f32.mrf.mxu0 }
 0x62f   :  { %v6152_v52 = vpop.f32.mrf.mxu3  ;;  %v6094_v26 = vadd.f32 %v6093_v20, %v6035_v38  ;;  %v6037_v0 = vpop.f32.mrf.mxu1  ;;  %v5979_v23 = vadd.f32 %v5978_v41, %v14146_v43  ;;  %v6769_v43 = vld [vmem:[%s14693_s5 + $0x88] sm:$0xff]  ;;  %v6220_v28 = vmax.f32 %v6200_v61, 0.0 }
 0x630   :  { %6911 = vmatpush.msra.mxu1 %v6769_v43 }
 0x631   :  { %v6153_v2 = vadd.f32 %v6152_v52, %v6094_v26  ;;  %6479 = vmatmul.bf16.gmra.mxu0 %v6231_v34  ;;  %v6038_v59 = vadd.f32 %v6037_v0, %v5979_v23 }
 0x632   :  { %6538 = vmatmul.bf16.gmra.mxu1 %v6231_v34 }
 0x633   :  { %v6177_v63 = vadd.f32 %v6153_v2, %v15518_v30  ;;  %6597 = vmatmul.bf16.gmra.mxu2 %v6231_v34 }
 0x634   :  { %6656 = vmatmul.bf16.gmra.mxu3 %v6231_v34 }
 0x635   :  { %v6201_v51 = vadd.f32 %v14237_v16, %v6177_v63 }
 0x636   :  { %v6096_v18 = vpop.f32.mrf.mxu2  ;;  %v5980_v53 = vpop.f32.mrf.mxu0 }
 0x637   :  { %v6155_v3 = vpop.f32.mrf.mxu3  ;;  %v6221_v40 = vmax.f32 %v6201_v51, 0.0  ;;  %v6097_v1 = vadd.f32 %v6096_v18, %v6038_v59  ;;  %v6039_v55 = vpop.f32.mrf.mxu1  ;;  %v5981_v8 = vadd.f32 %v5980_v53, %v14196_v9  ;;  %v6768_v9 = vld [vmem:[%s14693_s5 + $0x80] sm:$0xff] }
 0x638   :  { %6912 = vmatpush.msra.mxu1 %v6768_v9 }
 0x639   :  { %v6156_v33 = vadd.f32 %v6155_v3, %v6097_v1  ;;  %v6232_v6 = vpack.c.bf16 %v6221_v40, %v6220_v28  ;;  %v6040_v7 = vadd.f32 %v6039_v55, %v5981_v8 }
 0x63b   :  { %v6178_v58 = vadd.f32 %v6156_v33, %v15519_v14 }
 0x63d   :  { %v6202_v60 = vadd.f32 %v14237_v16, %v6178_v58 }
 0x63e   :  { %v6098_v13 = vpop.f32.mrf.mxu2  ;;  %v6445_v21 = vpop.f32.mrf.mxu0 }
 0x63f   :  { %v6157_v24 = vpop.f32.mrf.mxu3  ;;  %v6099_v25 = vadd.f32 %v6098_v13, %v6040_v7  ;;  %v6504_v62 = vpop.f32.mrf.mxu1  ;;  %v6222_v57 = vmax.f32 %v6202_v60, 0.0  ;;  %v6446_v38 = vadd.f32 %v6445_v21, %v14482_v49 }
 0x640   :  { %v6505_v20 = vadd.f32 %v6504_v62, %v14484_v54 }
 0x641   :  { %v6158_v15 = vadd.f32 %v6157_v24, %v6099_v25  ;;  %6484 = vmatmul.bf16.gmra.mxu0 %v6232_v6  ;;  %v6672_v50 = vmax.f32 %v6446_v38, 0.0 }
 0x642   :  { %6543 = vmatmul.bf16.gmra.mxu1 %v6232_v6  ;;  %v6673_v42 = vmax.f32 %v6505_v20, 0.0 }
 0x643   :  { %v6179_v5 = vadd.f32 %v6158_v15, %v15520_v10  ;;  %6602 = vmatmul.bf16.gmra.mxu2 %v6232_v6 }
 0x644   :  { %6661 = vmatmul.bf16.gmra.mxu3 %v6232_v6 }
 0x645   :  { %v6203_v48 = vadd.f32 %v14237_v16, %v6179_v5 }
 0x646   :  { %v6563_v56 = vpop.f32.mrf.mxu2  ;;  %v6447_v4 = vpop.f32.mrf.mxu0 }
 0x647   :  { %v6622_v35 = vpop.f32.mrf.mxu3  ;;  %v6223_v27 = vmax.f32 %v6203_v48, 0.0  ;;  %v6506_v39 = vpop.f32.mrf.mxu1  ;;  %v6564_v52 = vadd.f32 %v6563_v56, %v14486_v44  ;;  %v6448_v30 = vadd.f32 %v6447_v4, %v14482_v49 }
 0x648   :  { %v6623_v26 = vadd.f32 %v6622_v35, %v14488_v36  ;;  %v6507_v63 = vadd.f32 %v6506_v39, %v14484_v54 }
 0x649   :  { %v6233_v12 = vpack.c.bf16 %v6223_v27, %v6222_v57  ;;  %v6674_v32 = vmax.f32 %v6564_v52, 0.0  ;;  %v6676_v40 = vmax.f32 %v6448_v30, 0.0 }
 0x64a   :  { %v6675_v61 = vmax.f32 %v6623_v26, 0.0  ;;  %v6677_v1 = vmax.f32 %v6507_v63, 0.0 }
 0x64e   :  { %v6565_v37 = vpop.f32.mrf.mxu2  ;;  %v6450_v31 = vpop.f32.mrf.mxu0 }
 0x64f   :  { %v6624_v11 = vpop.f32.mrf.mxu3  ;;  %v6509_v47 = vpop.f32.mrf.mxu1  ;;  %v6566_v43 = vadd.f32 %v6565_v37, %v14486_v44  ;;  %v6451_v33 = vadd.f32 %v6450_v31, %v14482_v49 }
 0x650   :  { %v6625_v51 = vadd.f32 %v6624_v11, %v14488_v36  ;;  %v6510_v8 = vadd.f32 %v6509_v47, %v14484_v54 }
 0x651   :  { %6489 = vmatmul.bf16.gmra.mxu0 %v6233_v12  ;;  %v6678_v53 = vmax.f32 %v6566_v43, 0.0  ;;  %v6680_v9 = vmax.f32 %v6451_v33, 0.0 }
 0x652   :  { %6548 = vmatmul.bf16.gmra.mxu1 %v6233_v12  ;;  %v6679_v55 = vmax.f32 %v6625_v51, 0.0  ;;  %v6681_v7 = vmax.f32 %v6510_v8, 0.0 }
 0x653   :  { %6607 = vmatmul.bf16.gmra.mxu2 %v6233_v12 }
 0x654   :  { %6666 = vmatmul.bf16.gmra.mxu3 %v6233_v12 }
 0x656   :  { %v6568_v16 = vpop.f32.mrf.mxu2  ;;  %v6452_v34 = vpop.f32.mrf.mxu0 }
 0x657   :  { %v6627_v19 = vpop.f32.mrf.mxu3  ;;  %v6511_v46 = vpop.f32.mrf.mxu1  ;;  %v6569_v6 = vadd.f32 %v6568_v16, %v14486_v44  ;;  %v6453_v25 = vadd.f32 %v6452_v34, %v14482_v49 }
 0x658   :  { %v6628_v22 = vadd.f32 %v6627_v19, %v14488_v36  ;;  %v6512_v21 = vadd.f32 %v6511_v46, %v14484_v54 }
 0x659   :  { %v6682_v13 = vmax.f32 %v6569_v6, 0.0  ;;  %v6684_v56 = vmax.f32 %v6453_v25, 0.0 }
 0x65a   :  { %v6683_v24 = vmax.f32 %v6628_v22, 0.0  ;;  %v6685_v35 = vmax.f32 %v6512_v21, 0.0 }
 0x65e   :  { %v6570_v41 = vpop.f32.mrf.mxu2  ;;  %v6455_v2 = vpop.f32.mrf.mxu0 }
 0x65f   :  { %v6629_v0 = vpop.f32.mrf.mxu3  ;;  %v6514_v23 = vpop.f32.mrf.mxu1  ;;  %v6571_v62 = vadd.f32 %v6570_v41, %v14486_v44  ;;  %v6456_v4 = vadd.f32 %v6455_v2, %v14482_v49 }
 0x660   :  { %v6630_v15 = vadd.f32 %v6629_v0, %v14488_v36  ;;  %v6515_v39 = vadd.f32 %v6514_v23, %v14484_v54 }
 0x661   :  { %6836 = vmatmul.f32.vlgmr.msra.gmra.mxu0 %v6672_v50  ;;  %v6686_v57 = vmax.f32 %v6571_v62, 0.0  ;;  %v6688_v16 = vmax.f32 %v6456_v4, 0.0 }
 0x662   :  { %6913 = vmatmul.f32.vlgmr.msra.gmra.mxu1 %v6673_v42  ;;  %v6687_v27 = vmax.f32 %v6630_v15, 0.0  ;;  %v6689_v19 = vmax.f32 %v6515_v39, 0.0 }
 0x663   :  { %6990 = vmatmul.f32.vlgmr.msra.gmra.mxu2 %v6674_v32 }
 0x664   :  { %7067 = vmatmul.f32.vlgmr.msra.gmra.mxu3 %v6675_v61 }
 0x666   :  { %v6573_v59 = vpop.f32.mrf.mxu2  ;;  %v6457_v3 = vpop.f32.mrf.mxu0 }
 0x667   :  { %v6632_v18 = vpop.f32.mrf.mxu3  ;;  %v6516_v28 = vpop.f32.mrf.mxu1  ;;  %v6574_v12 = vadd.f32 %v6573_v59, %v14486_v44  ;;  %v6458_v38 = vadd.f32 %v6457_v3, %v14482_v49 }
 0x668   :  { %v6633_v37 = vadd.f32 %v6632_v18, %v14488_v36  ;;  %v6517_v20 = vadd.f32 %v6516_v28, %v14484_v54 }
 0x669   :  { %6839 = vmatmul.f32.gmra.mxu0 %v6676_v40  ;;  %v6690_v34 = vmax.f32 %v6574_v12, 0.0  ;;  %v6692_v50 = vmax.f32 %v6458_v38, 0.0 }
 0x66a   :  { %6916 = vmatmul.f32.gmra.mxu1 %v6677_v1  ;;  %v6691_v46 = vmax.f32 %v6633_v37, 0.0  ;;  %v6693_v42 = vmax.f32 %v6517_v20, 0.0 }
 0x66b   :  { %6993 = vmatmul.f32.gmra.mxu2 %v6678_v53 }
 0x66c   :  { %7070 = vmatmul.f32.gmra.mxu3 %v6679_v55 }
 0x66e   :  { %v6575_v17 = vpop.f32.mrf.mxu2  ;;  %v6460_v14 = vpop.f32.mrf.mxu0 }
 0x66f   :  { %v6634_v29 = vpop.f32.mrf.mxu3  ;;  %v6519_v58 = vpop.f32.mrf.mxu1  ;;  %v6576_v52 = vadd.f32 %v6575_v17, %v14486_v44  ;;  %v6461_v30 = vadd.f32 %v6460_v14, %v14482_v49 }
 0x670   :  { %v6635_v26 = vadd.f32 %v6634_v29, %v14488_v36  ;;  %v6520_v63 = vadd.f32 %v6519_v58, %v14484_v54 }
 0x671   :  { %6842 = vmatmul.f32.gmra.mxu0 %v6680_v9  ;;  %v6694_v32 = vmax.f32 %v6576_v52, 0.0  ;;  %v6696_v40 = vmax.f32 %v6461_v30, 0.0 }
 0x672   :  { %6919 = vmatmul.f32.gmra.mxu1 %v6681_v7  ;;  %v6695_v61 = vmax.f32 %v6635_v26, 0.0  ;;  %v6697_v1 = vmax.f32 %v6520_v63, 0.0 }
 0x673   :  { %6996 = vmatmul.f32.gmra.mxu2 %v6682_v13 }
 0x674   :  { %7073 = vmatmul.f32.gmra.mxu3 %v6683_v24 }
 0x676   :  { %v6578_v60 = vpop.f32.mrf.mxu2  ;;  %v6462_v5 = vpop.f32.mrf.mxu0 }
 0x677   :  { %v6637_v10 = vpop.f32.mrf.mxu3  ;;  %v6521_v48 = vpop.f32.mrf.mxu1  ;;  %v6579_v43 = vadd.f32 %v6578_v60, %v14486_v44  ;;  %v6463_v33 = vadd.f32 %v6462_v5, %v14482_v49 }
 0x678   :  { %v6638_v51 = vadd.f32 %v6637_v10, %v14488_v36  ;;  %v6522_v8 = vadd.f32 %v6521_v48, %v14484_v54 }
 0x679   :  { %6845 = vmatmul.f32.gmra.mxu0 %v6684_v56  ;;  %v6698_v53 = vmax.f32 %v6579_v43, 0.0  ;;  %v6700_v9 = vmax.f32 %v6463_v33, 0.0 }
 0x67a   :  { %6922 = vmatmul.f32.gmra.mxu1 %v6685_v35  ;;  %v6699_v55 = vmax.f32 %v6638_v51, 0.0  ;;  %v6701_v7 = vmax.f32 %v6522_v8, 0.0 }
 0x67b   :  { %6999 = vmatmul.f32.gmra.mxu2 %v6686_v57 }
 0x67c   :  { %7076 = vmatmul.f32.gmra.mxu3 %v6687_v27 }
 0x67e   :  { %v6580_v11 = vpop.f32.mrf.mxu2  ;;  %v6465_v47 = vpop.f32.mrf.mxu0 }
 0x67f   :  { %v6639_v31 = vpop.f32.mrf.mxu3  ;;  %v6524_v45 = vpop.f32.mrf.mxu1  ;;  %v6581_v6 = vadd.f32 %v6580_v11, %v14486_v44  ;;  %v6466_v25 = vadd.f32 %v6465_v47, %v14482_v49 }
 0x680   :  { %v6640_v22 = vadd.f32 %v6639_v31, %v14488_v36  ;;  %v6525_v21 = vadd.f32 %v6524_v45, %v14484_v54 }
 0x681   :  { %6848 = vmatmul.f32.gmra.mxu0 %v6688_v16  ;;  %v6702_v13 = vmax.f32 %v6581_v6, 0.0  ;;  %v6704_v56 = vmax.f32 %v6466_v25, 0.0 }
 0x682   :  { %6925 = vmatmul.f32.gmra.mxu1 %v6689_v19  ;;  %v6703_v24 = vmax.f32 %v6640_v22, 0.0  ;;  %v6705_v35 = vmax.f32 %v6525_v21, 0.0 }
 0x683   :  { %7002 = vmatmul.f32.gmra.mxu2 %v6690_v34 }
 0x684   :  { %7079 = vmatmul.f32.gmra.mxu3 %v6691_v46 }
 0x686   :  { %v6583_v41 = vpop.f32.mrf.mxu2  ;;  %v6467_v2 = vpop.f32.mrf.mxu0 }
 0x687   :  { %v6642_v0 = vpop.f32.mrf.mxu3  ;;  %v6526_v23 = vpop.f32.mrf.mxu1  ;;  %v6584_v62 = vadd.f32 %v6583_v41, %v14486_v44  ;;  %v6468_v4 = vadd.f32 %v6467_v2, %v14482_v49 }
 0x688   :  { %v6643_v15 = vadd.f32 %v6642_v0, %v14488_v36  ;;  %v6527_v39 = vadd.f32 %v6526_v23, %v14484_v54 }
 0x689   :  { %6851 = vmatmul.f32.gmra.mxu0 %v6692_v50  ;;  %v6706_v57 = vmax.f32 %v6584_v62, 0.0  ;;  %v6708_v16 = vmax.f32 %v6468_v4, 0.0 }
 0x68a   :  { %6928 = vmatmul.f32.gmra.mxu1 %v6693_v42  ;;  %v6707_v27 = vmax.f32 %v6643_v15, 0.0  ;;  %v6709_v19 = vmax.f32 %v6527_v39, 0.0 }
 0x68b   :  { %7005 = vmatmul.f32.gmra.mxu2 %v6694_v32 }
 0x68c   :  { %7082 = vmatmul.f32.gmra.mxu3 %v6695_v61 }
 0x68e   :  { %v6585_v59 = vpop.f32.mrf.mxu2  ;;  %v6470_v3 = vpop.f32.mrf.mxu0 }
 0x68f   :  { %v6644_v18 = vpop.f32.mrf.mxu3  ;;  %v6529_v28 = vpop.f32.mrf.mxu1  ;;  %v6586_v12 = vadd.f32 %v6585_v59, %v14486_v44  ;;  %v6471_v38 = vadd.f32 %v6470_v3, %v14482_v49 }
 0x690   :  { %v6645_v37 = vadd.f32 %v6644_v18, %v14488_v36  ;;  %v6530_v20 = vadd.f32 %v6529_v28, %v14484_v54 }
 0x691   :  { %6854 = vmatmul.f32.gmra.mxu0 %v6696_v40  ;;  %v6710_v34 = vmax.f32 %v6586_v12, 0.0  ;;  %v6712_v50 = vmax.f32 %v6471_v38, 0.0 }
 0x692   :  { %6931 = vmatmul.f32.gmra.mxu1 %v6697_v1  ;;  %v6711_v46 = vmax.f32 %v6645_v37, 0.0  ;;  %v6713_v42 = vmax.f32 %v6530_v20, 0.0 }
 0x693   :  { %7008 = vmatmul.f32.gmra.mxu2 %v6698_v53 }
 0x694   :  { %7085 = vmatmul.f32.gmra.mxu3 %v6699_v55 }
 0x696   :  { %v6588_v17 = vpop.f32.mrf.mxu2  ;;  %v6472_v14 = vpop.f32.mrf.mxu0 }
 0x697   :  { %v6647_v29 = vpop.f32.mrf.mxu3  ;;  %v6531_v58 = vpop.f32.mrf.mxu1  ;;  %v6589_v52 = vadd.f32 %v6588_v17, %v14486_v44  ;;  %v6473_v30 = vadd.f32 %v6472_v14, %v14482_v49 }
 0x698   :  { %v6648_v26 = vadd.f32 %v6647_v29, %v14488_v36  ;;  %v6532_v63 = vadd.f32 %v6531_v58, %v14484_v54 }
 0x699   :  { %6857 = vmatmul.f32.gmra.mxu0 %v6700_v9  ;;  %v6714_v32 = vmax.f32 %v6589_v52, 0.0  ;;  %v6716_v40 = vmax.f32 %v6473_v30, 0.0 }
 0x69a   :  { %6934 = vmatmul.f32.gmra.mxu1 %v6701_v7  ;;  %v6715_v61 = vmax.f32 %v6648_v26, 0.0  ;;  %v6717_v1 = vmax.f32 %v6532_v63, 0.0 }
 0x69b   :  { %7011 = vmatmul.f32.gmra.mxu2 %v6702_v13 }
 0x69c   :  { %7088 = vmatmul.f32.gmra.mxu3 %v6703_v24 }
 0x69e   :  { %v6590_v60 = vpop.f32.mrf.mxu2  ;;  %v6475_v5 = vpop.f32.mrf.mxu0 }
 0x69f   :  { %v6649_v10 = vpop.f32.mrf.mxu3  ;;  %v6534_v48 = vpop.f32.mrf.mxu1  ;;  %v6591_v43 = vadd.f32 %v6590_v60, %v14486_v44  ;;  %v6476_v33 = vadd.f32 %v6475_v5, %v14482_v49 }
 0x6a0   :  { %v6650_v51 = vadd.f32 %v6649_v10, %v14488_v36  ;;  %v6535_v8 = vadd.f32 %v6534_v48, %v14484_v54 }
 0x6a1   :  { %6860 = vmatmul.f32.gmra.mxu0 %v6704_v56  ;;  %v6718_v53 = vmax.f32 %v6591_v43, 0.0  ;;  %v6720_v9 = vmax.f32 %v6476_v33, 0.0 }
 0x6a2   :  { %6937 = vmatmul.f32.gmra.mxu1 %v6705_v35  ;;  %v6719_v55 = vmax.f32 %v6650_v51, 0.0  ;;  %v6721_v7 = vmax.f32 %v6535_v8, 0.0 }
 0x6a3   :  { %7014 = vmatmul.f32.gmra.mxu2 %v6706_v57 }
 0x6a4   :  { %7091 = vmatmul.f32.gmra.mxu3 %v6707_v27 }
 0x6a6   :  { %v6593_v11 = vpop.f32.mrf.mxu2  ;;  %v6477_v47 = vpop.f32.mrf.mxu0 }
 0x6a7   :  { %v6652_v31 = vpop.f32.mrf.mxu3  ;;  %v6536_v45 = vpop.f32.mrf.mxu1  ;;  %v6594_v6 = vadd.f32 %v6593_v11, %v14486_v44  ;;  %v6478_v25 = vadd.f32 %v6477_v47, %v14482_v49 }
 0x6a8   :  { %v6653_v22 = vadd.f32 %v6652_v31, %v14488_v36  ;;  %v6537_v21 = vadd.f32 %v6536_v45, %v14484_v54 }
 0x6a9   :  { %6863 = vmatmul.f32.gmra.mxu0 %v6708_v16  ;;  %v6722_v13 = vmax.f32 %v6594_v6, 0.0  ;;  %v6724_v56 = vmax.f32 %v6478_v25, 0.0 }
 0x6aa   :  { %6940 = vmatmul.f32.gmra.mxu1 %v6709_v19  ;;  %v6723_v24 = vmax.f32 %v6653_v22, 0.0  ;;  %v6725_v35 = vmax.f32 %v6537_v21, 0.0 }
 0x6ab   :  { %7017 = vmatmul.f32.gmra.mxu2 %v6710_v34 }
 0x6ac   :  { %7094 = vmatmul.f32.gmra.mxu3 %v6711_v46 }
 0x6ae   :  { %v6595_v41 = vpop.f32.mrf.mxu2  ;;  %v6480_v2 = vpop.f32.mrf.mxu0 }
 0x6af   :  { %v6654_v0 = vpop.f32.mrf.mxu3  ;;  %v6539_v23 = vpop.f32.mrf.mxu1  ;;  %v6596_v62 = vadd.f32 %v6595_v41, %v14486_v44  ;;  %v6481_v4 = vadd.f32 %v6480_v2, %v14482_v49 }
 0x6b0   :  { %v6655_v15 = vadd.f32 %v6654_v0, %v14488_v36  ;;  %v6540_v39 = vadd.f32 %v6539_v23, %v14484_v54 }
 0x6b1   :  { %6866 = vmatmul.f32.gmra.mxu0 %v6712_v50  ;;  %v6726_v57 = vmax.f32 %v6596_v62, 0.0  ;;  %v6728_v16 = vmax.f32 %v6481_v4, 0.0 }
 0x6b2   :  { %6943 = vmatmul.f32.gmra.mxu1 %v6713_v42  ;;  %v6727_v27 = vmax.f32 %v6655_v15, 0.0  ;;  %v6729_v19 = vmax.f32 %v6540_v39, 0.0 }
 0x6b3   :  { %7020 = vmatmul.f32.gmra.mxu2 %v6714_v32 }
 0x6b4   :  { %7097 = vmatmul.f32.gmra.mxu3 %v6715_v61 }
 0x6b6   :  { %v6598_v59 = vpop.f32.mrf.mxu2  ;;  %v6482_v3 = vpop.f32.mrf.mxu0 }
 0x6b7   :  { %v6657_v18 = vpop.f32.mrf.mxu3  ;;  %v6541_v28 = vpop.f32.mrf.mxu1  ;;  %v6599_v12 = vadd.f32 %v6598_v59, %v14486_v44  ;;  %v6483_v38 = vadd.f32 %v6482_v3, %v14482_v49  ;;  %v14569_v59 = vld [vmem:[%s14695_s6] ss:$0 sm:$0xff] }
 0x6b8   :  { %v6658_v37 = vadd.f32 %v6657_v18, %v14488_v36  ;;  %v6542_v20 = vadd.f32 %v6541_v28, %v14484_v54 }
 0x6b9   :  { %6869 = vmatmul.f32.gmra.mxu0 %v6716_v40  ;;  %v6730_v34 = vmax.f32 %v6599_v12, 0.0  ;;  %v6732_v50 = vmax.f32 %v6483_v38, 0.0 }
 0x6ba   :  { %6946 = vmatmul.f32.gmra.mxu1 %v6717_v1  ;;  %v6731_v46 = vmax.f32 %v6658_v37, 0.0  ;;  %v6733_v42 = vmax.f32 %v6542_v20, 0.0 }
 0x6bb   :  { %7023 = vmatmul.f32.gmra.mxu2 %v6718_v53 }
 0x6bc   :  { %7100 = vmatmul.f32.gmra.mxu3 %v6719_v55 }
 0x6be   :  { %v6600_v17 = vpop.f32.mrf.mxu2  ;;  %v6485_v14 = vpop.f32.mrf.mxu0 }
 0x6bf   :  { %v6659_v29 = vpop.f32.mrf.mxu3  ;;  %v6544_v58 = vpop.f32.mrf.mxu1  ;;  %v6601_v52 = vadd.f32 %v6600_v17, %v14486_v44  ;;  %v6486_v30 = vadd.f32 %v6485_v14, %v14482_v49 }
 0x6c0   :  { %v6660_v26 = vadd.f32 %v6659_v29, %v14488_v36  ;;  %v6545_v63 = vadd.f32 %v6544_v58, %v14484_v54 }
 0x6c1   :  { %6872 = vmatmul.f32.gmra.mxu0 %v6720_v9  ;;  %v6734_v32 = vmax.f32 %v6601_v52, 0.0  ;;  %v6736_v1 = vmax.f32 %v6486_v30, 0.0 }
 0x6c2   :  { %6949 = vmatmul.f32.gmra.mxu1 %v6721_v7  ;;  %v6735_v61 = vmax.f32 %v6660_v26, 0.0  ;;  %v6737_v53 = vmax.f32 %v6545_v63, 0.0 }
 0x6c3   :  { %7026 = vmatmul.f32.gmra.mxu2 %v6722_v13 }
 0x6c4   :  { %7103 = vmatmul.f32.gmra.mxu3 %v6723_v24 }
 0x6c6   :  { %v6603_v60 = vpop.f32.mrf.mxu2  ;;  %v6487_v5 = vpop.f32.mrf.mxu0 }
 0x6c7   :  { %v6662_v10 = vpop.f32.mrf.mxu3  ;;  %v6546_v48 = vpop.f32.mrf.mxu1  ;;  %v6604_v43 = vadd.f32 %v6603_v60, %v14486_v44  ;;  %v6488_v6 = vadd.f32 %v6487_v5, %v14482_v49 }
 0x6c8   :  { %v6663_v51 = vadd.f32 %v6662_v10, %v14488_v36  ;;  %v6547_v22 = vadd.f32 %v6546_v48, %v14484_v54 }
 0x6c9   :  { %6875 = vmatmul.f32.gmra.mxu0 %v6724_v56  ;;  %v6738_v55 = vmax.f32 %v6604_v43, 0.0  ;;  %v6740_v25 = vmax.f32 %v6488_v6, 0.0 }
 0x6ca   :  { %6952 = vmatmul.f32.gmra.mxu1 %v6725_v35  ;;  %v6739_v33 = vmax.f32 %v6663_v51, 0.0  ;;  %v6741_v21 = vmax.f32 %v6547_v22, 0.0 }
 0x6cb   :  { %7029 = vmatmul.f32.gmra.mxu2 %v6726_v57 }
 0x6cc   :  { %7106 = vmatmul.f32.gmra.mxu3 %v6727_v27 }
 0x6ce   :  { %v6605_v11 = vpop.f32.mrf.mxu2  ;;  %v14550_v47 = vpop.f32.mrf.mxu0 }
 0x6cf   :  { %v6664_v31 = vpop.f32.mrf.mxu3  ;;  %v14552_v45 = vpop.f32.mrf.mxu1  ;;  %v6606_v17 = vadd.f32 %v6605_v11, %v14486_v44  ;;  %v6491_v48 = vadd.f32 %v14550_v47, %v14482_v49 }
 0x6d0   :  { %v6665_v29 = vadd.f32 %v6664_v31, %v14488_v36  ;;  %v6550_v56 = vadd.f32 %v14552_v45, %v14484_v54 }
 0x6d1   :  { %6878 = vmatmul.f32.gmra.mxu0 %v6728_v16  ;;  %v6742_v62 = vmax.f32 %v6606_v17, 0.0  ;;  %v6744_v31 = vmax.f32 %v6491_v48, 0.0 }
 0x6d2   :  { %6955 = vmatmul.f32.gmra.mxu1 %v6729_v19  ;;  %v6743_v15 = vmax.f32 %v6665_v29, 0.0  ;;  %v6745_v16 = vmax.f32 %v6550_v56, 0.0 }
 0x6d3   :  { %7032 = vmatmul.f32.gmra.mxu2 %v6730_v34 }
 0x6d4   :  { %7109 = vmatmul.f32.gmra.mxu3 %v6731_v46 }
 0x6d6   :  { %v6608_v41 = vpop.f32.mrf.mxu2  ;;  %v14558_v2 = vpop.f32.mrf.mxu0 }
 0x6d7   :  { %v6667_v0 = vpop.f32.mrf.mxu3  ;;  %v14560_v23 = vpop.f32.mrf.mxu1  ;;  %v6609_v35 = vadd.f32 %v6608_v41, %v14486_v44  ;;  %v6493_v20 = vadd.f32 %v14558_v2, %v14482_v49 }
 0x6d8   :  { %v6668_v57 = vadd.f32 %v6667_v0, %v14488_v36  ;;  %v6552_v52 = vadd.f32 %v14560_v23, %v14484_v54 }
 0x6d9   :  { %6881 = vmatmul.f32.gmra.mxu0 %v6732_v50  ;;  %v6746_v19 = vmax.f32 %v6609_v35, 0.0  ;;  %v6748_v43 = vmax.f32 %v6493_v20, 0.0 }
 0x6da   :  { %6958 = vmatmul.f32.gmra.mxu1 %v6733_v42  ;;  %v6747_v34 = vmax.f32 %v6668_v57, 0.0  ;;  %v6749_v51 = vmax.f32 %v6552_v52, 0.0 }
 0x6db   :  { %7035 = vmatmul.f32.gmra.mxu2 %v6734_v32 }
 0x6dc   :  { %7112 = vmatmul.f32.gmra.mxu3 %v6735_v61 }
 0x6de   :  { %v6610_v18 = vpop.f32.mrf.mxu2  ;;  %v6837_v28 = vpop.f32.mrf.mxu0 }
 0x6df   :  { %v6669_v3 = vpop.f32.mrf.mxu3  ;;  %v6914_v40 = vpop.f32.mrf.mxu1  ;;  %v6838_v8 = vadd.f32 %v14569_v59, %v6837_v28  ;;  %v6611_v41 = vadd.f32 %v6610_v18, %v14486_v44 }
 0x6e0   :  { %v6670_v0 = vadd.f32 %v6669_v3, %v14488_v36 }
 0x6e1   :  { %6884 = vmatmul.f32.gmra.mxu0 %v6736_v1  ;;  %v6915_v14 = vadd.f32 %v6914_v40, %v6838_v8  ;;  %v6750_v28 = vmax.f32 %v6611_v41, 0.0 }
 0x6e2   :  { %6961 = vmatmul.f32.gmra.mxu1 %v6737_v53  ;;  %v6751_v49 = vmax.f32 %v6670_v0, 0.0 }
 0x6e3   :  { %7038 = vmatmul.f32.gmra.mxu2 %v6738_v55 }
 0x6e4   :  { %7115 = vmatmul.f32.gmra.mxu3 %v6739_v33 }
 0x6e6   :  { %v6991_v58 = vpop.f32.mrf.mxu2  ;;  %v6840_v13 = vpop.f32.mrf.mxu0 }
 0x6e7   :  { %v7068_v9 = vpop.f32.mrf.mxu3  ;;  %v6992_v7 = vadd.f32 %v6991_v58, %v6915_v14  ;;  %v6917_v24 = vpop.f32.mrf.mxu1  ;;  %v6841_v10 = vadd.f32 %v14569_v59, %v6840_v13 }
 0x6e9   :  { %v7069_v60 = vadd.f32 %v7068_v9, %v6992_v7  ;;  %6887 = vmatmul.f32.gmra.mxu0 %v6740_v25  ;;  %v6918_v27 = vadd.f32 %v6917_v24, %v6841_v10 }
 0x6ea   :  { %6964 = vmatmul.f32.gmra.mxu1 %v6741_v21 }
 0x6eb   :  { %v9677_v5 = vmul.f32 -1.442695, %v7069_v60  ;;  %7041 = vmatmul.f32.gmra.mxu2 %v6742_v62 }
 0x6ec   :  { %7118 = vmatmul.f32.gmra.mxu3 %v6743_v15 }
 0x6ed   :  { %10139 = vpow2.f32 %v9677_v5 }
 0x6ee   :  { %v6994_v4 = vpop.f32.mrf.mxu2  ;;  %v6843_v37 = vpop.f32.mrf.mxu0 }
 0x6ef   :  { %v7071_v39 = vpop.f32.mrf.mxu3  ;;  %v6995_v12 = vadd.f32 %v6994_v4, %v6918_v27  ;;  %v6920_v11 = vpop.f32.mrf.mxu1  ;;  %v6844_v47 = vadd.f32 %v14569_v59, %v6843_v37 }
 0x6f1   :  { %v7072_v46 = vadd.f32 %v7071_v39, %v6995_v12  ;;  %6890 = vmatmul.f32.gmra.mxu0 %v6744_v31  ;;  %v6921_v50 = vadd.f32 %v6920_v11, %v6844_v47 }
 0x6f2   :  { %6967 = vmatmul.f32.gmra.mxu1 %v6745_v16 }
 0x6f3   :  { %v10140_v45 = vpop.eup %10139  ;;  %v9678_v38 = vmul.f32 -1.442695, %v7072_v46  ;;  %7044 = vmatmul.f32.gmra.mxu2 %v6746_v19 }
 0x6f4   :  { %7121 = vmatmul.f32.gmra.mxu3 %v6747_v34  ;;  %v7188_v26 = vadd.f32 1.0, %v10140_v45 }
 0x6f5   :  { %10141 = vpow2.f32 %v9678_v38 }
 0x6f6   :  { %10143 = vrcp.f32 %v7188_v26  ;;  %v6997_v42 = vpop.f32.mrf.mxu2  ;;  %v6846_v30 = vpop.f32.mrf.mxu0  ;;  %v7217_v22 = vand.u32 2147483647, %v7188_v26  ;;  %v7219_v17 = vand.u32 2147483648, %v7188_v26  ;;  %vm7213_vm1 = vweird.f32 %v7188_v26 }
 0x6f7   :  { %v7074_v32 = vpop.f32.mrf.mxu3  ;;  %v6998_v61 = vadd.f32 %v6997_v42, %v6921_v50  ;;  %v6923_v63 = vpop.f32.mrf.mxu1  ;;  %v6847_v54 = vadd.f32 %v14569_v59, %v6846_v30 }
 0x6f8   :  { %vm7218_vm3 = vcmp.eq.f32.partialorder %v7217_v22, 8.507059e+37  ;;  %v7220_v25 = vor.u32 1.1754944e-38, %v7219_v17 }
 0x6f9   :  { %v7075_v2 = vadd.f32 %v7074_v32, %v6998_v61  ;;  %6893 = vmatmul.f32.gmra.mxu0 %v6748_v43  ;;  %v6924_v40 = vadd.f32 %v6923_v63, %v6847_v54 }
 0x6fa   :  { %6970 = vmatmul.f32.gmra.mxu1 %v6749_v51 }
 0x6fb   :  { %v10142_v44 = vpop.eup %10141  ;;  %v9679_v23 = vmul.f32 -1.442695, %v7075_v2  ;;  %7047 = vmatmul.f32.gmra.mxu2 %v6750_v28 }
 0x6fc   :  { %7124 = vmatmul.f32.gmra.mxu3 %v6751_v49  ;;  %v10144_v36 = vpop.eup %10143  ;;  %v7189_v18 = vadd.f32 1.0, %v10142_v44 }
 0x6fd   :  { %v7209_v3 = vmul.f32 %v10144_v36, %v7188_v26  ;;  %10145 = vpow2.f32 %v9679_v23  ;;  %vm7214_vm0 = vweird.f32 %v10144_v36 }
 0x6fe   :  { %10147 = vrcp.f32 %v7189_v18  ;;  %v7000_v1 = vpop.f32.mrf.mxu2  ;;  %v6849_v8 = vpop.f32.mrf.mxu0  ;;  %vm7215_vm2 = vmor %vm7213_vm1, %vm7214_vm0  ;;  %v7232_v4 = vand.u32 2147483647, %v7189_v18  ;;  %v7234_v39 = vand.u32 2147483648, %v7189_v18  ;;  %vm7228_vm6 = vweird.f32 %v7189_v18 }
 0x6ff   :  { %v7077_v53 = vpop.f32.mrf.mxu3  ;;  %v7210_v55 = vsub.f32 1.0, %v7209_v3  ;;  %v7001_v33 = vadd.f32 %v7000_v1, %v6924_v40  ;;  %v6926_v6 = vpop.f32.mrf.mxu1  ;;  %v6850_v58 = vadd.f32 %v14569_v59, %v6849_v8 }
 0x700   :  { %vm7233_vm8 = vcmp.eq.f32.partialorder %v7232_v4, 8.507059e+37  ;;  %v7235_v46 = vor.u32 1.1754944e-38, %v7234_v39 }
 0x701   :  { %v7211_v29 = vmul.f32 %v10144_v36, %v7210_v55  ;;  %v7078_v14 = vadd.f32 %v7077_v53, %v7001_v33  ;;  %v6927_v60 = vadd.f32 %v6926_v6, %v6850_v58 }
 0x703   :  { %v10146_v9 = vpop.eup %10145  ;;  %v7212_v7 = vadd.f32 %v10144_v36, %v7211_v29  ;;  %v9680_v13 = vmul.f32 -1.442695, %v7078_v14 }
 0x704   :  { %v10148_v24 = vpop.eup %10147  ;;  %v7190_v21 = vadd.f32 1.0, %v10146_v9 }
 0x705   :  { %v7216_v62 = vsel %vm7215_vm2, %v10144_v36, %v7212_v7  ;;  %v7224_v15 = vmul.f32 %v10148_v24, %v7189_v18  ;;  %10149 = vpow2.f32 %v9680_v13  ;;  %vm7229_vm5 = vweird.f32 %v10148_v24 }
 0x706   :  { %v7221_v10 = vsel %vm7218_vm3, %v7220_v25, %v7216_v62  ;;  %10151 = vrcp.f32 %v7190_v21  ;;  %v7003_v5 = vpop.f32.mrf.mxu2  ;;  %v6852_v57 = vpop.f32.mrf.mxu0  ;;  %vm7230_vm7 = vmor %vm7228_vm6, %vm7229_vm5  ;;  %v7247_v61 = vand.u32 2147483647, %v7190_v21  ;;  %v7249_v30 = vand.u32 2147483648, %v7190_v21 }
 0x707   :  { %v7080_v48 = vpop.f32.mrf.mxu3  ;;  %7509 = vst.msk [vmem:[%s14696_s7] sm:$0xff] %vm7508_vm4, %v7221_v10  ;;  %v7225_v56 = vsub.f32 1.0, %v7224_v15  ;;  %v7004_v35 = vadd.f32 %v7003_v5, %v6927_v60  ;;  %v6929_v27 = vpop.f32.mrf.mxu1  ;;  %v6853_v11 = vadd.f32 %v14569_v59, %v6852_v57  ;;  %vm7243_vm10 = vweird.f32 %v7190_v21 }
 0x708   :  { %vm7248_vm12 = vcmp.eq.f32.partialorder %v7247_v61, 8.507059e+37  ;;  %v7250_v44 = vor.u32 1.1754944e-38, %v7249_v30 }
 0x709   :  { %v7226_v12 = vmul.f32 %v10148_v24, %v7225_v56  ;;  %v7081_v37 = vadd.f32 %v7080_v48, %v7004_v35  ;;  %v6930_v20 = vadd.f32 %v6929_v27, %v6853_v11 }
 0x70b   :  { %v10150_v31 = vpop.eup %10149  ;;  %v7227_v16 = vadd.f32 %v10148_v24, %v7226_v12  ;;  %v9681_v19 = vmul.f32 -1.442695, %v7081_v37 }
 0x70c   :  { %v10152_v34 = vpop.eup %10151  ;;  %v7191_v47 = vadd.f32 1.0, %v10150_v31 }
 0x70d   :  { %v7231_v45 = vsel %vm7230_vm7, %v10148_v24, %v7227_v16  ;;  %v7239_v38 = vmul.f32 %v10152_v34, %v7190_v21  ;;  %10153 = vpow2.f32 %v9681_v19  ;;  %vm7244_vm9 = vweird.f32 %v10152_v34 }
 0x70e   :  { %v7236_v52 = vsel %vm7233_vm8, %v7235_v46, %v7231_v45  ;;  %10155 = vrcp.f32 %v7191_v47  ;;  %v7006_v26 = vpop.f32.mrf.mxu2  ;;  %v6855_v42 = vpop.f32.mrf.mxu0  ;;  %vm7245_vm11 = vmor %vm7243_vm10, %vm7244_vm9  ;;  %v7262_v22 = vand.u32 2147483647, %v7191_v47  ;;  %v7264_v17 = vand.u32 2147483648, %v7191_v47 }
 0x70f   :  { %v7083_v41 = vpop.f32.mrf.mxu3  ;;  %7510 = vst.msk [vmem:[%s14696_s7 + $0x8] sm:$0xff] %vm7508_vm4, %v7236_v52  ;;  %v7240_v0 = vsub.f32 1.0, %v7239_v38  ;;  %v7007_v50 = vadd.f32 %v7006_v26, %v6930_v20  ;;  %v6932_v32 = vpop.f32.mrf.mxu1  ;;  %v6856_v51 = vadd.f32 %v14569_v59, %v6855_v42  ;;  %vm7258_vm14 = vweird.f32 %v7191_v47 }
 0x710   :  { %vm7263_vm0 = vcmp.eq.f32.partialorder %v7262_v22, 8.507059e+37  ;;  %v7265_v25 = vor.u32 1.1754944e-38, %v7264_v17 }
 0x711   :  { %v7241_v63 = vmul.f32 %v10152_v34, %v7240_v0  ;;  %v7084_v43 = vadd.f32 %v7083_v41, %v7007_v50  ;;  %v6933_v3 = vadd.f32 %v6932_v32, %v6856_v51 }
 0x713   :  { %v10154_v28 = vpop.eup %10153  ;;  %v7242_v49 = vadd.f32 %v10152_v34, %v7241_v63  ;;  %v9682_v2 = vmul.f32 -1.442695, %v7084_v43 }
 0x714   :  { %v10156_v54 = vpop.eup %10155  ;;  %v7192_v23 = vadd.f32 1.0, %v10154_v28 }
 0x715   :  { %v7246_v36 = vsel %vm7245_vm11, %v10152_v34, %v7242_v49  ;;  %v7254_v18 = vmul.f32 %v10156_v54, %v7191_v47  ;;  %10157 = vpow2.f32 %v9682_v2  ;;  %vm7259_vm13 = vweird.f32 %v10156_v54 }
 0x716   :  { %v7251_v40 = vsel %vm7248_vm12, %v7250_v44, %v7246_v36  ;;  %10159 = vrcp.f32 %v7192_v23  ;;  %v7009_v1 = vpop.f32.mrf.mxu2  ;;  %v6858_v8 = vpop.f32.mrf.mxu0  ;;  %vm7260_vm15 = vmor %vm7258_vm14, %vm7259_vm13  ;;  %v7277_v4 = vand.u32 2147483647, %v7192_v23  ;;  %v7279_v39 = vand.u32 2147483648, %v7192_v23 }
 0x717   :  { %v7086_v53 = vpop.f32.mrf.mxu3  ;;  %7511 = vst.msk [vmem:[%s14696_s7 + $0x10] sm:$0xff] %vm7508_vm4, %v7251_v40  ;;  %v7255_v55 = vsub.f32 1.0, %v7254_v18  ;;  %v7010_v33 = vadd.f32 %v7009_v1, %v6933_v3  ;;  %v6935_v6 = vpop.f32.mrf.mxu1  ;;  %v6859_v58 = vadd.f32 %v14569_v59, %v6858_v8  ;;  %vm7273_vm2 = vweird.f32 %v7192_v23 }
 0x718   :  { %vm7278_vm5 = vcmp.eq.f32.partialorder %v7277_v4, 8.507059e+37  ;;  %v7280_v46 = vor.u32 1.1754944e-38, %v7279_v39 }
 0x719   :  { %v7256_v29 = vmul.f32 %v10156_v54, %v7255_v55  ;;  %v7087_v14 = vadd.f32 %v7086_v53, %v7010_v33  ;;  %v6936_v60 = vadd.f32 %v6935_v6, %v6859_v58 }
 0x71b   :  { %v10158_v9 = vpop.eup %10157  ;;  %v7257_v7 = vadd.f32 %v10156_v54, %v7256_v29  ;;  %v9683_v13 = vmul.f32 -1.442695, %v7087_v14 }
 0x71c   :  { %v10160_v24 = vpop.eup %10159  ;;  %v7193_v21 = vadd.f32 1.0, %v10158_v9 }
 0x71d   :  { %v7261_v62 = vsel %vm7260_vm15, %v10156_v54, %v7257_v7  ;;  %v7269_v15 = vmul.f32 %v10160_v24, %v7192_v23  ;;  %10161 = vpow2.f32 %v9683_v13  ;;  %vm7274_vm1 = vweird.f32 %v10160_v24 }
 0x71e   :  { %v7266_v10 = vsel %vm7263_vm0, %v7265_v25, %v7261_v62  ;;  %10163 = vrcp.f32 %v7193_v21  ;;  %v7012_v5 = vpop.f32.mrf.mxu2  ;;  %v6861_v57 = vpop.f32.mrf.mxu0  ;;  %vm7275_vm3 = vmor %vm7273_vm2, %vm7274_vm1  ;;  %v7292_v61 = vand.u32 2147483647, %v7193_v21  ;;  %v7294_v30 = vand.u32 2147483648, %v7193_v21 }
 0x71f   :  { %v7089_v48 = vpop.f32.mrf.mxu3  ;;  %7512 = vst.msk [vmem:[%s14696_s7 + $0x18] sm:$0xff] %vm7508_vm4, %v7266_v10  ;;  %v7270_v56 = vsub.f32 1.0, %v7269_v15  ;;  %v7013_v35 = vadd.f32 %v7012_v5, %v6936_v60  ;;  %v6938_v27 = vpop.f32.mrf.mxu1  ;;  %v6862_v11 = vadd.f32 %v14569_v59, %v6861_v57  ;;  %vm7288_vm7 = vweird.f32 %v7193_v21 }
 0x720   :  { %vm7293_vm9 = vcmp.eq.f32.partialorder %v7292_v61, 8.507059e+37  ;;  %v7295_v44 = vor.u32 1.1754944e-38, %v7294_v30 }
 0x721   :  { %v7271_v12 = vmul.f32 %v10160_v24, %v7270_v56  ;;  %v7090_v37 = vadd.f32 %v7089_v48, %v7013_v35  ;;  %v6939_v20 = vadd.f32 %v6938_v27, %v6862_v11 }
 0x723   :  { %v10162_v31 = vpop.eup %10161  ;;  %v7272_v16 = vadd.f32 %v10160_v24, %v7271_v12  ;;  %v9684_v19 = vmul.f32 -1.442695, %v7090_v37 }
 0x724   :  { %v10164_v34 = vpop.eup %10163  ;;  %v7194_v47 = vadd.f32 1.0, %v10162_v31 }
 0x725   :  { %v7276_v45 = vsel %vm7275_vm3, %v10160_v24, %v7272_v16  ;;  %v7284_v38 = vmul.f32 %v10164_v34, %v7193_v21  ;;  %10165 = vpow2.f32 %v9684_v19  ;;  %vm7289_vm6 = vweird.f32 %v10164_v34 }
 0x726   :  { %v7281_v52 = vsel %vm7278_vm5, %v7280_v46, %v7276_v45  ;;  %10167 = vrcp.f32 %v7194_v47  ;;  %v7015_v26 = vpop.f32.mrf.mxu2  ;;  %v6864_v42 = vpop.f32.mrf.mxu0  ;;  %vm7290_vm8 = vmor %vm7288_vm7, %vm7289_vm6  ;;  %v7307_v22 = vand.u32 2147483647, %v7194_v47  ;;  %v7309_v17 = vand.u32 2147483648, %v7194_v47 }
 0x727   :  { %v7092_v41 = vpop.f32.mrf.mxu3  ;;  %7513 = vst.msk [vmem:[%s14696_s7 + $0x20] sm:$0xff] %vm7508_vm4, %v7281_v52  ;;  %v7285_v0 = vsub.f32 1.0, %v7284_v38  ;;  %v7016_v50 = vadd.f32 %v7015_v26, %v6939_v20  ;;  %v6941_v32 = vpop.f32.mrf.mxu1  ;;  %v6865_v51 = vadd.f32 %v14569_v59, %v6864_v42  ;;  %vm7303_vm11 = vweird.f32 %v7194_v47 }
 0x728   :  { %vm7308_vm13 = vcmp.eq.f32.partialorder %v7307_v22, 8.507059e+37  ;;  %v7310_v25 = vor.u32 1.1754944e-38, %v7309_v17 }
 0x729   :  { %v7286_v63 = vmul.f32 %v10164_v34, %v7285_v0  ;;  %v7093_v43 = vadd.f32 %v7092_v41, %v7016_v50  ;;  %v6942_v3 = vadd.f32 %v6941_v32, %v6865_v51 }
 0x72b   :  { %v10166_v28 = vpop.eup %10165  ;;  %v7287_v49 = vadd.f32 %v10164_v34, %v7286_v63  ;;  %v9685_v2 = vmul.f32 -1.442695, %v7093_v43 }
 0x72c   :  { %v10168_v54 = vpop.eup %10167  ;;  %v7195_v23 = vadd.f32 1.0, %v10166_v28 }
 0x72d   :  { %v7291_v36 = vsel %vm7290_vm8, %v10164_v34, %v7287_v49  ;;  %v7299_v18 = vmul.f32 %v10168_v54, %v7194_v47  ;;  %10169 = vpow2.f32 %v9685_v2  ;;  %vm7304_vm10 = vweird.f32 %v10168_v54 }
 0x72e   :  { %v7296_v40 = vsel %vm7293_vm9, %v7295_v44, %v7291_v36  ;;  %10171 = vrcp.f32 %v7195_v23  ;;  %v7018_v1 = vpop.f32.mrf.mxu2  ;;  %v6867_v8 = vpop.f32.mrf.mxu0  ;;  %vm7305_vm12 = vmor %vm7303_vm11, %vm7304_vm10  ;;  %v7322_v4 = vand.u32 2147483647, %v7195_v23  ;;  %v7324_v39 = vand.u32 2147483648, %v7195_v23 }
 0x72f   :  { %v7095_v53 = vpop.f32.mrf.mxu3  ;;  %7514 = vst.msk [vmem:[%s14696_s7 + $0x28] sm:$0xff] %vm7508_vm4, %v7296_v40  ;;  %v7300_v55 = vsub.f32 1.0, %v7299_v18  ;;  %v7019_v33 = vadd.f32 %v7018_v1, %v6942_v3  ;;  %v6944_v6 = vpop.f32.mrf.mxu1  ;;  %v6868_v58 = vadd.f32 %v14569_v59, %v6867_v8  ;;  %vm7318_vm15 = vweird.f32 %v7195_v23 }
 0x730   :  { %vm7323_vm1 = vcmp.eq.f32.partialorder %v7322_v4, 8.507059e+37  ;;  %v7325_v46 = vor.u32 1.1754944e-38, %v7324_v39 }
 0x731   :  { %v7301_v29 = vmul.f32 %v10168_v54, %v7300_v55  ;;  %v7096_v14 = vadd.f32 %v7095_v53, %v7019_v33  ;;  %v6945_v60 = vadd.f32 %v6944_v6, %v6868_v58 }
 0x733   :  { %v10170_v9 = vpop.eup %10169  ;;  %v7302_v7 = vadd.f32 %v10168_v54, %v7301_v29  ;;  %v9686_v13 = vmul.f32 -1.442695, %v7096_v14 }
 0x734   :  { %v10172_v24 = vpop.eup %10171  ;;  %v7196_v21 = vadd.f32 1.0, %v10170_v9 }
 0x735   :  { %v7306_v62 = vsel %vm7305_vm12, %v10168_v54, %v7302_v7  ;;  %v7314_v15 = vmul.f32 %v10172_v24, %v7195_v23  ;;  %10173 = vpow2.f32 %v9686_v13  ;;  %vm7319_vm14 = vweird.f32 %v10172_v24 }
 0x736   :  { %v7311_v10 = vsel %vm7308_vm13, %v7310_v25, %v7306_v62  ;;  %10175 = vrcp.f32 %v7196_v21  ;;  %v7021_v5 = vpop.f32.mrf.mxu2  ;;  %v6870_v57 = vpop.f32.mrf.mxu0  ;;  %vm7320_vm0 = vmor %vm7318_vm15, %vm7319_vm14  ;;  %v7337_v61 = vand.u32 2147483647, %v7196_v21  ;;  %v7339_v30 = vand.u32 2147483648, %v7196_v21 }
 0x737   :  { %v7098_v48 = vpop.f32.mrf.mxu3  ;;  %7515 = vst.msk [vmem:[%s14696_s7 + $0x30] sm:$0xff] %vm7508_vm4, %v7311_v10  ;;  %v7315_v56 = vsub.f32 1.0, %v7314_v15  ;;  %v7022_v35 = vadd.f32 %v7021_v5, %v6945_v60  ;;  %v6947_v27 = vpop.f32.mrf.mxu1  ;;  %v6871_v11 = vadd.f32 %v14569_v59, %v6870_v57  ;;  %vm7333_vm3 = vweird.f32 %v7196_v21 }
 0x738   :  { %vm7338_vm6 = vcmp.eq.f32.partialorder %v7337_v61, 8.507059e+37  ;;  %v7340_v44 = vor.u32 1.1754944e-38, %v7339_v30 }
 0x739   :  { %v7316_v12 = vmul.f32 %v10172_v24, %v7315_v56  ;;  %v7099_v37 = vadd.f32 %v7098_v48, %v7022_v35  ;;  %v6948_v20 = vadd.f32 %v6947_v27, %v6871_v11 }
 0x73b   :  { %v10174_v31 = vpop.eup %10173  ;;  %v7317_v16 = vadd.f32 %v10172_v24, %v7316_v12  ;;  %v9687_v19 = vmul.f32 -1.442695, %v7099_v37 }
 0x73c   :  { %v10176_v34 = vpop.eup %10175  ;;  %v7197_v47 = vadd.f32 1.0, %v10174_v31 }
 0x73d   :  { %v7321_v45 = vsel %vm7320_vm0, %v10172_v24, %v7317_v16  ;;  %v7329_v38 = vmul.f32 %v10176_v34, %v7196_v21  ;;  %10177 = vpow2.f32 %v9687_v19  ;;  %vm7334_vm2 = vweird.f32 %v10176_v34 }
 0x73e   :  { %v7326_v52 = vsel %vm7323_vm1, %v7325_v46, %v7321_v45  ;;  %10179 = vrcp.f32 %v7197_v47  ;;  %v7024_v26 = vpop.f32.mrf.mxu2  ;;  %v6873_v42 = vpop.f32.mrf.mxu0  ;;  %vm7335_vm5 = vmor %vm7333_vm3, %vm7334_vm2  ;;  %v7352_v22 = vand.u32 2147483647, %v7197_v47  ;;  %v7354_v17 = vand.u32 2147483648, %v7197_v47 }
 0x73f   :  { %v7101_v41 = vpop.f32.mrf.mxu3  ;;  %7516 = vst.msk [vmem:[%s14696_s7 + $0x38] sm:$0xff] %vm7508_vm4, %v7326_v52  ;;  %v7330_v0 = vsub.f32 1.0, %v7329_v38  ;;  %v7025_v50 = vadd.f32 %v7024_v26, %v6948_v20  ;;  %v6950_v32 = vpop.f32.mrf.mxu1  ;;  %v6874_v51 = vadd.f32 %v14569_v59, %v6873_v42  ;;  %vm7348_vm8 = vweird.f32 %v7197_v47 }
 0x740   :  { %vm7353_vm10 = vcmp.eq.f32.partialorder %v7352_v22, 8.507059e+37  ;;  %v7355_v25 = vor.u32 1.1754944e-38, %v7354_v17 }
 0x741   :  { %v7331_v63 = vmul.f32 %v10176_v34, %v7330_v0  ;;  %v7102_v43 = vadd.f32 %v7101_v41, %v7025_v50  ;;  %v6951_v3 = vadd.f32 %v6950_v32, %v6874_v51 }
 0x743   :  { %v10178_v28 = vpop.eup %10177  ;;  %v7332_v49 = vadd.f32 %v10176_v34, %v7331_v63  ;;  %v9688_v2 = vmul.f32 -1.442695, %v7102_v43 }
 0x744   :  { %v10180_v54 = vpop.eup %10179  ;;  %v7198_v23 = vadd.f32 1.0, %v10178_v28 }
 0x745   :  { %v7336_v36 = vsel %vm7335_vm5, %v10176_v34, %v7332_v49  ;;  %v7344_v18 = vmul.f32 %v10180_v54, %v7197_v47  ;;  %10181 = vpow2.f32 %v9688_v2  ;;  %vm7349_vm7 = vweird.f32 %v10180_v54 }
 0x746   :  { %v7341_v40 = vsel %vm7338_vm6, %v7340_v44, %v7336_v36  ;;  %10183 = vrcp.f32 %v7198_v23  ;;  %v7027_v1 = vpop.f32.mrf.mxu2  ;;  %v6876_v8 = vpop.f32.mrf.mxu0  ;;  %vm7350_vm9 = vmor %vm7348_vm8, %vm7349_vm7  ;;  %v7367_v4 = vand.u32 2147483647, %v7198_v23  ;;  %v7369_v39 = vand.u32 2147483648, %v7198_v23 }
 0x747   :  { %v7104_v53 = vpop.f32.mrf.mxu3  ;;  %7517 = vst.msk [vmem:[%s14696_s7 + $0x40] sm:$0xff] %vm7508_vm4, %v7341_v40  ;;  %v7345_v55 = vsub.f32 1.0, %v7344_v18  ;;  %v7028_v33 = vadd.f32 %v7027_v1, %v6951_v3  ;;  %v6953_v6 = vpop.f32.mrf.mxu1  ;;  %v6877_v58 = vadd.f32 %v14569_v59, %v6876_v8  ;;  %vm7363_vm12 = vweird.f32 %v7198_v23 }
 0x748   :  { %vm7368_vm14 = vcmp.eq.f32.partialorder %v7367_v4, 8.507059e+37  ;;  %v7370_v46 = vor.u32 1.1754944e-38, %v7369_v39 }
 0x749   :  { %v7346_v29 = vmul.f32 %v10180_v54, %v7345_v55  ;;  %v7105_v14 = vadd.f32 %v7104_v53, %v7028_v33  ;;  %v6954_v60 = vadd.f32 %v6953_v6, %v6877_v58 }
 0x74b   :  { %v10182_v9 = vpop.eup %10181  ;;  %v7347_v7 = vadd.f32 %v10180_v54, %v7346_v29  ;;  %v9689_v13 = vmul.f32 -1.442695, %v7105_v14 }
 0x74c   :  { %v10184_v24 = vpop.eup %10183  ;;  %v7199_v21 = vadd.f32 1.0, %v10182_v9 }
 0x74d   :  { %v7351_v62 = vsel %vm7350_vm9, %v10180_v54, %v7347_v7  ;;  %v7359_v15 = vmul.f32 %v10184_v24, %v7198_v23  ;;  %10185 = vpow2.f32 %v9689_v13  ;;  %vm7364_vm11 = vweird.f32 %v10184_v24 }
 0x74e   :  { %v7356_v10 = vsel %vm7353_vm10, %v7355_v25, %v7351_v62  ;;  %10187 = vrcp.f32 %v7199_v21  ;;  %v7030_v5 = vpop.f32.mrf.mxu2  ;;  %v6879_v57 = vpop.f32.mrf.mxu0  ;;  %vm7365_vm13 = vmor %vm7363_vm12, %vm7364_vm11  ;;  %v7382_v61 = vand.u32 2147483647, %v7199_v21  ;;  %v7384_v30 = vand.u32 2147483648, %v7199_v21 }
 0x74f   :  { %v7107_v48 = vpop.f32.mrf.mxu3  ;;  %7518 = vst.msk [vmem:[%s14696_s7 + $0x48] sm:$0xff] %vm7508_vm4, %v7356_v10  ;;  %v7360_v56 = vsub.f32 1.0, %v7359_v15  ;;  %v7031_v35 = vadd.f32 %v7030_v5, %v6954_v60  ;;  %v6956_v27 = vpop.f32.mrf.mxu1  ;;  %v6880_v11 = vadd.f32 %v14569_v59, %v6879_v57  ;;  %vm7378_vm0 = vweird.f32 %v7199_v21 }
 0x750   :  { %vm7383_vm2 = vcmp.eq.f32.partialorder %v7382_v61, 8.507059e+37  ;;  %v7385_v44 = vor.u32 1.1754944e-38, %v7384_v30 }
 0x751   :  { %v7361_v12 = vmul.f32 %v10184_v24, %v7360_v56  ;;  %v7108_v37 = vadd.f32 %v7107_v48, %v7031_v35  ;;  %v6957_v20 = vadd.f32 %v6956_v27, %v6880_v11 }
 0x753   :  { %v10186_v31 = vpop.eup %10185  ;;  %v7362_v16 = vadd.f32 %v10184_v24, %v7361_v12  ;;  %v9690_v19 = vmul.f32 -1.442695, %v7108_v37 }
 0x754   :  { %v10188_v34 = vpop.eup %10187  ;;  %v7200_v47 = vadd.f32 1.0, %v10186_v31 }
 0x755   :  { %v7366_v45 = vsel %vm7365_vm13, %v10184_v24, %v7362_v16  ;;  %v7374_v38 = vmul.f32 %v10188_v34, %v7199_v21  ;;  %10189 = vpow2.f32 %v9690_v19  ;;  %vm7379_vm15 = vweird.f32 %v10188_v34 }
 0x756   :  { %v7371_v52 = vsel %vm7368_vm14, %v7370_v46, %v7366_v45  ;;  %10191 = vrcp.f32 %v7200_v47  ;;  %v7033_v26 = vpop.f32.mrf.mxu2  ;;  %v6882_v42 = vpop.f32.mrf.mxu0  ;;  %vm7380_vm1 = vmor %vm7378_vm0, %vm7379_vm15  ;;  %v7397_v22 = vand.u32 2147483647, %v7200_v47  ;;  %v7399_v17 = vand.u32 2147483648, %v7200_v47 }
 0x757   :  { %v7110_v41 = vpop.f32.mrf.mxu3  ;;  %7519 = vst.msk [vmem:[%s14696_s7 + $0x50] sm:$0xff] %vm7508_vm4, %v7371_v52  ;;  %v7375_v0 = vsub.f32 1.0, %v7374_v38  ;;  %v7034_v50 = vadd.f32 %v7033_v26, %v6957_v20  ;;  %v6959_v32 = vpop.f32.mrf.mxu1  ;;  %v6883_v51 = vadd.f32 %v14569_v59, %v6882_v42  ;;  %vm7393_vm5 = vweird.f32 %v7200_v47 }
 0x758   :  { %vm7398_vm7 = vcmp.eq.f32.partialorder %v7397_v22, 8.507059e+37  ;;  %v7400_v25 = vor.u32 1.1754944e-38, %v7399_v17 }
 0x759   :  { %v7376_v63 = vmul.f32 %v10188_v34, %v7375_v0  ;;  %v7111_v43 = vadd.f32 %v7110_v41, %v7034_v50  ;;  %v6960_v3 = vadd.f32 %v6959_v32, %v6883_v51 }
 0x75b   :  { %v10190_v28 = vpop.eup %10189  ;;  %v7377_v49 = vadd.f32 %v10188_v34, %v7376_v63  ;;  %v9691_v2 = vmul.f32 -1.442695, %v7111_v43 }
 0x75c   :  { %v10192_v54 = vpop.eup %10191  ;;  %v7201_v23 = vadd.f32 1.0, %v10190_v28 }
 0x75d   :  { %v7381_v36 = vsel %vm7380_vm1, %v10188_v34, %v7377_v49  ;;  %v7389_v18 = vmul.f32 %v10192_v54, %v7200_v47  ;;  %10193 = vpow2.f32 %v9691_v2  ;;  %vm7394_vm3 = vweird.f32 %v10192_v54 }
 0x75e   :  { %v7386_v40 = vsel %vm7383_vm2, %v7385_v44, %v7381_v36  ;;  %10195 = vrcp.f32 %v7201_v23  ;;  %v7036_v1 = vpop.f32.mrf.mxu2  ;;  %v6885_v8 = vpop.f32.mrf.mxu0  ;;  %vm7395_vm6 = vmor %vm7393_vm5, %vm7394_vm3  ;;  %v7412_v27 = vand.u32 2147483647, %v7201_v23  ;;  %v7414_v4 = vand.u32 2147483648, %v7201_v23 }
 0x75f   :  { %v7113_v53 = vpop.f32.mrf.mxu3  ;;  %7520 = vst.msk [vmem:[%s14696_s7 + $0x58] sm:$0xff] %vm7508_vm4, %v7386_v40  ;;  %v7390_v55 = vsub.f32 1.0, %v7389_v18  ;;  %v7037_v33 = vadd.f32 %v7036_v1, %v6960_v3  ;;  %v6962_v6 = vpop.f32.mrf.mxu1  ;;  %v6886_v58 = vadd.f32 %v14569_v59, %v6885_v8  ;;  %vm7408_vm9 = vweird.f32 %v7201_v23 }
 0x760   :  { %vm7413_vm11 = vcmp.eq.f32.partialorder %v7412_v27, 8.507059e+37  ;;  %v7415_v46 = vor.u32 1.1754944e-38, %v7414_v4 }
 0x761   :  { %v7391_v29 = vmul.f32 %v10192_v54, %v7390_v55  ;;  %v7114_v14 = vadd.f32 %v7113_v53, %v7037_v33  ;;  %v6963_v60 = vadd.f32 %v6962_v6, %v6886_v58 }
 0x763   :  { %v10194_v9 = vpop.eup %10193  ;;  %v7392_v7 = vadd.f32 %v10192_v54, %v7391_v29  ;;  %v9692_v13 = vmul.f32 -1.442695, %v7114_v14  ;;  %v10219_v29 = vld [vmem:[%s14695_s6] ss:$0 sm:$0xff] }
 0x764   :  { %v10196_v24 = vpop.eup %10195  ;;  %v7202_v21 = vadd.f32 1.0, %v10194_v9 }
 0x765   :  { %v7396_v62 = vsel %vm7395_vm6, %v10192_v54, %v7392_v7  ;;  %v7404_v15 = vmul.f32 %v10196_v24, %v7201_v23  ;;  %10197 = vpow2.f32 %v9692_v13  ;;  %vm7409_vm8 = vweird.f32 %v10196_v24 }
 0x766   :  { %v7401_v10 = vsel %vm7398_vm7, %v7400_v25, %v7396_v62  ;;  %10199 = vrcp.f32 %v7202_v21  ;;  %v7039_v5 = vpop.f32.mrf.mxu2  ;;  %v6888_v57 = vpop.f32.mrf.mxu0  ;;  %vm7410_vm10 = vmor %vm7408_vm9, %vm7409_vm8  ;;  %v7427_v32 = vand.u32 2147483647, %v7202_v21  ;;  %v7429_v61 = vand.u32 2147483648, %v7202_v21 }
 0x767   :  { %v7116_v48 = vpop.f32.mrf.mxu3  ;;  %7521 = vst.msk [vmem:[%s14696_s7 + $0x60] sm:$0xff] %vm7508_vm4, %v7401_v10  ;;  %v7405_v56 = vsub.f32 1.0, %v7404_v15  ;;  %v7040_v35 = vadd.f32 %v7039_v5, %v6963_v60  ;;  %v6965_v39 = vpop.f32.mrf.mxu1  ;;  %v6889_v11 = vadd.f32 %v14569_v59, %v6888_v57  ;;  %vm7423_vm13 = vweird.f32 %v7202_v21 }
 0x768   :  { %vm7428_vm15 = vcmp.eq.f32.partialorder %v7427_v32, 8.507059e+37  ;;  %v7430_v44 = vor.u32 1.1754944e-38, %v7429_v61 }
 0x769   :  { %v7406_v12 = vmul.f32 %v10196_v24, %v7405_v56  ;;  %v7117_v37 = vadd.f32 %v7116_v48, %v7040_v35  ;;  %v6966_v20 = vadd.f32 %v6965_v39, %v6889_v11 }
 0x76b   :  { %v10198_v31 = vpop.eup %10197  ;;  %v7407_v16 = vadd.f32 %v10196_v24, %v7406_v12  ;;  %v9693_v19 = vmul.f32 -1.442695, %v7117_v37 }
 0x76c   :  { %v10200_v34 = vpop.eup %10199  ;;  %v7203_v47 = vadd.f32 1.0, %v10198_v31 }
 0x76d   :  { %v7411_v45 = vsel %vm7410_vm10, %v10196_v24, %v7407_v16  ;;  %v7419_v38 = vmul.f32 %v10200_v34, %v7202_v21  ;;  %10201 = vpow2.f32 %v9693_v19  ;;  %vm7424_vm12 = vweird.f32 %v10200_v34 }
 0x76e   :  { %v7416_v52 = vsel %vm7413_vm11, %v7415_v46, %v7411_v45  ;;  %10203 = vrcp.f32 %v7203_v47  ;;  %v7042_v26 = vpop.f32.mrf.mxu2  ;;  %v6891_v42 = vpop.f32.mrf.mxu0  ;;  %vm7425_vm14 = vmor %vm7423_vm13, %vm7424_vm12  ;;  %v7442_v8 = vand.u32 2147483647, %v7203_v47  ;;  %v7444_v6 = vand.u32 2147483648, %v7203_v47 }
 0x76f   :  { %v7119_v41 = vpop.f32.mrf.mxu3  ;;  %7522 = vst.msk [vmem:[%s14696_s7 + $0x68] sm:$0xff] %vm7508_vm4, %v7416_v52  ;;  %v7420_v0 = vsub.f32 1.0, %v7419_v38  ;;  %v7043_v50 = vadd.f32 %v7042_v26, %v6966_v20  ;;  %v6892_v43 = vadd.f32 %v14569_v59, %v6891_v42  ;;  %v6968_v51 = vpop.f32.mrf.mxu1  ;;  %vm7438_vm1 = vweird.f32 %v7203_v47 }
 0x770   :  { %vm7443_vm3 = vcmp.eq.f32.partialorder %v7442_v8, 8.507059e+37  ;;  %v7445_v24 = vor.u32 1.1754944e-38, %v7444_v6 }
 0x771   :  { %v7421_v30 = vmul.f32 %v10200_v34, %v7420_v0  ;;  %v7120_v63 = vadd.f32 %v7119_v41, %v7043_v50  ;;  %v6969_v3 = vadd.f32 %v6968_v51, %v6892_v43 }
 0x773   :  { %v10202_v28 = vpop.eup %10201  ;;  %v7422_v49 = vadd.f32 %v10200_v34, %v7421_v30  ;;  %v9694_v2 = vmul.f32 -1.442695, %v7120_v63 }
 0x774   :  { %v10204_v54 = vpop.eup %10203  ;;  %v7204_v23 = vadd.f32 1.0, %v10202_v28 }
 0x775   :  { %v7426_v36 = vsel %vm7425_vm14, %v10200_v34, %v7422_v49  ;;  %v7434_v18 = vmul.f32 %v10204_v54, %v7203_v47  ;;  %10205 = vpow2.f32 %v9694_v2  ;;  %vm7439_vm0 = vweird.f32 %v10204_v54 }
 0x776   :  { %v7431_v40 = vsel %vm7428_vm15, %v7430_v44, %v7426_v36  ;;  %10207 = vrcp.f32 %v7204_v23  ;;  %v7045_v1 = vpop.f32.mrf.mxu2  ;;  %v6894_v33 = vpop.f32.mrf.mxu0  ;;  %vm7440_vm2 = vmor %vm7438_vm1, %vm7439_vm0  ;;  %v7459_v35 = vand.u32 2147483648, %v7204_v23  ;;  %v7457_v4 = vand.u32 2147483647, %v7204_v23 }
 0x777   :  { %v7122_v53 = vpop.f32.mrf.mxu3  ;;  %7523 = vst.msk [vmem:[%s14696_s7 + $0x70] sm:$0xff] %vm7508_vm4, %v7431_v40  ;;  %v7435_v59 = vsub.f32 1.0, %v7434_v18  ;;  %v7046_v55 = vadd.f32 %v7045_v1, %v6969_v3  ;;  %v6895_v14 = vadd.f32 %v10219_v29, %v6894_v33  ;;  %v6971_v21 = vpop.f32.mrf.mxu1  ;;  %vm7453_vm6 = vweird.f32 %v7204_v23 }
 0x778   :  { %v7460_v16 = vor.u32 1.1754944e-38, %v7459_v35  ;;  %vm7458_vm8 = vcmp.eq.f32.partialorder %v7457_v4, 8.507059e+37 }
 0x779   :  { %v7436_v22 = vmul.f32 %v10204_v54, %v7435_v59  ;;  %v7123_v17 = vadd.f32 %v7122_v53, %v7046_v55  ;;  %v6972_v60 = vadd.f32 %v6971_v21, %v6895_v14 }
 0x77b   :  { %v10206_v58 = vpop.eup %10205  ;;  %v7437_v9 = vadd.f32 %v10204_v54, %v7436_v22  ;;  %v9695_v7 = vmul.f32 -1.442695, %v7123_v17 }
 0x77c   :  { %v10208_v13 = vpop.eup %10207  ;;  %v7205_v25 = vadd.f32 1.0, %v10206_v58 }
 0x77d   :  { %v7441_v62 = vsel %vm7440_vm2, %v10204_v54, %v7437_v9  ;;  %v7449_v15 = vmul.f32 %v10208_v13, %v7204_v23  ;;  %10209 = vpow2.f32 %v9695_v7  ;;  %vm7454_vm5 = vweird.f32 %v10208_v13 }
 0x77e   :  { %v7446_v10 = vsel %vm7443_vm3, %v7445_v24, %v7441_v62  ;;  %10211 = vrcp.f32 %v7205_v25  ;;  %v7048_v5 = vpop.f32.mrf.mxu2  ;;  %vm7455_vm7 = vmor %vm7453_vm6, %vm7454_vm5  ;;  %v7474_v38 = vand.u32 2147483648, %v7205_v25  ;;  %v7472_v52 = vand.u32 2147483647, %v7205_v25 }
 0x77f   :  { %7524 = vst.msk [vmem:[%s14696_s7 + $0x78] sm:$0xff] %vm7508_vm4, %v7446_v10  ;;  %v7450_v48 = vsub.f32 1.0, %v7449_v15  ;;  %v7049_v56 = vadd.f32 %v7048_v5, %v6972_v60  ;;  %v7125_v57 = vpop.f32.mrf.mxu3  ;;  %vm7468_vm10 = vweird.f32 %v7205_v25 }
 0x780   :  { %v7475_v50 = vor.u32 1.1754944e-38, %v7474_v38  ;;  %vm7473_vm12 = vcmp.eq.f32.partialorder %v7472_v52, 8.507059e+37 }
 0x781   :  { %v7451_v27 = vmul.f32 %v10208_v13, %v7450_v48  ;;  %v7126_v39 = vadd.f32 %v7125_v57, %v7049_v56 }
 0x783   :  { %v10210_v12 = vpop.eup %10209  ;;  %v7452_v37 = vadd.f32 %v10208_v13, %v7451_v27  ;;  %v9696_v11 = vmul.f32 -1.442695, %v7126_v39 }
 0x784   :  { %v10212_v31 = vpop.eup %10211  ;;  %v7206_v19 = vadd.f32 1.0, %v10210_v12 }
 0x785   :  { %v7456_v34 = vsel %vm7455_vm7, %v10208_v13, %v7452_v37  ;;  %v7464_v46 = vmul.f32 %v10212_v31, %v7205_v25  ;;  %10213 = vpow2.f32 %v9696_v11  ;;  %vm7469_vm9 = vweird.f32 %v10212_v31 }
 0x786   :  { %v7461_v47 = vsel %vm7458_vm8, %v7460_v16, %v7456_v34  ;;  %10215 = vrcp.f32 %v7206_v19  ;;  %vm7470_vm11 = vmor %vm7468_vm10, %vm7469_vm9  ;;  %v7489_v43 = vand.u32 2147483648, %v7206_v19  ;;  %v7487_v28 = vand.u32 2147483647, %v7206_v19 }
 0x787   :  { %7525 = vst.msk [vmem:[%s14696_s7 + $0x80] sm:$0xff] %vm7508_vm4, %v7461_v47  ;;  %v7465_v45 = vsub.f32 1.0, %v7464_v46  ;;  %vm7483_vm14 = vweird.f32 %v7206_v19 }
 0x788   :  { %v7490_v54 = vor.u32 1.1754944e-38, %v7489_v43  ;;  %vm7488_vm0 = vcmp.eq.f32.partialorder %v7487_v28, 8.507059e+37 }
 0x789   :  { %v7466_v20 = vmul.f32 %v10212_v31, %v7465_v45 }
 0x78b   :  { %v10214_v26 = vpop.eup %10213  ;;  %v7467_v41 = vadd.f32 %v10212_v31, %v7466_v20 }
 0x78c   :  { %v10216_v0 = vpop.eup %10215  ;;  %v7207_v42 = vadd.f32 1.0, %v10214_v26 }
 0x78d   :  { %v7471_v32 = vsel %vm7470_vm11, %v10212_v31, %v7467_v41  ;;  %v7479_v61 = vmul.f32 %v10216_v0, %v7206_v19  ;;  %vm7484_vm13 = vweird.f32 %v10216_v0 }
 0x78e   :  { %v7476_v30 = vsel %vm7473_vm12, %v7475_v50, %v7471_v32  ;;  %10217 = vrcp.f32 %v7207_v42  ;;  %vm7485_vm15 = vmor %vm7483_vm14, %vm7484_vm13  ;;  %v7504_v3 = vand.u32 2147483648, %v7207_v42  ;;  %v7502_v1 = vand.u32 2147483647, %v7207_v42 }
 0x78f   :  { %7526 = vst.msk [vmem:[%s14696_s7 + $0x88] sm:$0xff] %vm7508_vm4, %v7476_v30  ;;  %v7480_v63 = vsub.f32 1.0, %v7479_v61  ;;  %vm7498_vm2 = vweird.f32 %v7207_v42 }
 0x790   :  { %v7505_v59 = vor.u32 1.1754944e-38, %v7504_v3  ;;  %vm7503_vm5 = vcmp.eq.f32.partialorder %v7502_v1, 8.507059e+37 }
 0x791   :  { %v7481_v51 = vmul.f32 %v10216_v0, %v7480_v63 }
 0x793   :  { %v7482_v49 = vadd.f32 %v10216_v0, %v7481_v51 }
 0x794   :  { %v10218_v2 = vpop.eup %10217 }
 0x795   :  { %v7486_v44 = vsel %vm7485_vm15, %v10216_v0, %v7482_v49  ;;  %v7494_v23 = vmul.f32 %v10218_v2, %v7207_v42  ;;  %vm7499_vm1 = vweird.f32 %v10218_v2 }
 0x796   :  { %v7491_v36 = vsel %vm7488_vm0, %v7490_v54, %v7486_v44  ;;  %vm7500_vm3 = vmor %vm7498_vm2, %vm7499_vm1 }
 0x797   :  { %7527 = vst.msk [vmem:[%s14696_s7 + $0x90] sm:$0xff] %vm7508_vm4, %v7491_v36  ;;  %v7495_v18 = vsub.f32 1.0, %v7494_v23 }
 0x799   :  { %v7496_v40 = vmul.f32 %v10218_v2, %v7495_v18 }
 0x79b   :  { %v7497_v53 = vadd.f32 %v10218_v2, %v7496_v40 }
 0x79d   :  { %v7501_v55 = vsel %vm7500_vm3, %v10218_v2, %v7497_v53 }
 0x79e   :  { %v7506_v33 = vsel %vm7503_vm5, %v7505_v59, %v7501_v55 }
 0x79f   :  { %7528 = vst.msk [vmem:[%s14696_s7 + $0x98] sm:$0xff] %vm7508_vm4, %v7506_v33 }

</bundles_post_ra>
